<compile_context>
chip_gen: v7x
topology: tpu7x:2x2x1
jax: 0.10.0
libtpu: 0.0.40
codegen_flags: <defaults>
</compile_context>

<pallas_src>
import functools

import jax
import jax.numpy as jnp
from jax import lax
from jax.experimental import pallas as pl
from jax.experimental.pallas import tpu as pltpu


def _round_up(v, m):
    return (v + m - 1) // m * m


def _pad_last(a, n):
    return jnp.pad(a, [(0, 0)] * (a.ndim - 1) + [(0, n - a.shape[-1])])


# ----------------------------------------------------------------------------
# Pallas kernel: one DepthwiseXDiff branch, one batch element per grid step.
# Grid = (branch, batch), both parallel.  The search tensor arrives flattened to
# a 2-D slab (rows = h*Wx_p + w with Wx_p % 8 == 0, lanes = channels); the
# template arrives as a pre-built im2col slab (25, 9*Cin).
# ----------------------------------------------------------------------------
def _xdiff_kernel(zim_ref, x_ref,
                  w3k_ref, bnk_s_ref, bnk_b_ref,
                  w3s_ref, bns_s_ref, bns_b_ref,
                  dw_ref,
                  bn1_s_ref, bn1_b_ref, w1_ref,
                  bn2_s_ref, bn2_b_ref, w2_ref, b2_ref,
                  out_ref,
                  xc_ref, acc_ref,
                  *, Wx_p, n_out, r_xc):
    f32 = jnp.float32

    bnk_s, bnk_b = bnk_s_ref[0], bnk_b_ref[0]        # [1, hidden_p] f32
    bns_s, bns_b = bns_s_ref[0], bns_b_ref[0]
    bn1_s, bn1_b = bn1_s_ref[0], bn1_b_ref[0]
    bn2_s, bn2_b = bn2_s_ref[0], bn2_b_ref[0]
    dwv = dw_ref[0]                                  # [25, hidden_p] f32 taps
    w1 = w1_ref[0]                                   # [hidden_p, hidden_p] bf16
    w2 = w2_ref[0]                                   # [hidden_p, 128]      bf16
    b2 = b2_ref[0]                                   # [1, 128]             f32

    # ---- template: ONE im2col matmul + folded BN + ReLU; its 5x5 depthwise
    #      collapses to a 25-tap weighted sublane reduction -> [1, hidden_p] ----
    zc = jnp.dot(zim_ref[0], w3k_ref[0], preferred_element_type=f32)   # (25, hid)
    zc = jnp.maximum(zc * bnk_s + bnk_b, 0.0)
    kvec = jnp.sum(zc * dwv, axis=0, keepdims=True)                    # (1, hid)

    # ---- conv_search: 3x3 valid conv as 9 big MXU matmuls, accumulated
    #      IN PLACE into the VMEM scratch xc_ref (bounded live ranges) ---------
    for tap in range(9):
        dy, dx = divmod(tap, 3)
        off = dy * Wx_p + dx          # static; dy * Wx_p is 8-aligned (Wx_p % 8 == 0)
        part = jnp.dot(x_ref[0, off:off + r_xc, :], w3s_ref[0, tap, :, :],
                       preferred_element_type=f32)
        if tap == 0:
            xc_ref[...] = part
        else:
            xc_ref[...] += part
    xc_ref[...] = jnp.maximum(xc_ref[...] * bns_s + bns_b, 0.0)

    # ---- 5x5 depthwise on the search: per dy, ONE sublane-aligned slab load
    #      (8-aligned start, 8-multiple length), dx shifts done in-register via
    #      value slices (XLU), accumulated IN PLACE into acc_ref ---------------
    for dy in range(5):
        base = dy * Wx_p                              # static, multiple of 8
        slab = xc_ref[base:base + n_out + 8, :]       # (n_out + 8, hidden_p) f32
        contrib = slab[0:n_out] * dwv[5 * dy:5 * dy + 1, :]
        for dx in range(1, 5):
            tap = 5 * dy + dx
            contrib = contrib + slab[dx:dx + n_out] * dwv[tap:tap + 1, :]
        if dy == 0:
            acc_ref[...] = contrib
        else:
            acc_ref[...] += contrib

    # ---- head: (search - kernel), BN+ReLU, 1x1, BN+ReLU, 1x1 + bias ----------
    t = jnp.maximum((acc_ref[...] - kvec) * bn1_s + bn1_b, 0.0)
    t = jnp.dot(t.astype(jnp.bfloat16), w1, preferred_element_type=f32)
    t = jnp.maximum(t * bn2_s + bn2_b, 0.0)
    o = jnp.dot(t.astype(jnp.bfloat16), w2, preferred_element_type=f32) + b2
    out_ref[0, 0] = o.astype(out_ref.dtype)


# ----------------------------------------------------------------------------
# Wrapper: NHWC inputs, branch-stacked params -> [NB, B, Hd, Wd, cout_pad]
# ----------------------------------------------------------------------------
def _fused_xdiff_pallas(z_nhwc, x_nhwc, params, cout_pad):
    B, Hz, Wz, Cin = z_nhwc.shape
    _, Hx, Wx, _ = x_nhwc.shape
    NB, K9, hidden_p = params["w3k"].shape
    assert K9 == 9 * Cin
    assert hidden_p % 128 == 0 and cout_pad % 128 == 0
    # expand_as semantics (SiamRPN++): template must reduce to 1x1 after 3x3+5x5.
    assert Hz == 7 and Wz == 7
    Hd, Wd = Hx - 6, Wx - 6
    assert Hd >= 1 and Wd >= 1
    # padded head channels must have been zero-filled in the params
    assert params["w2"].shape[-1] == cout_pad and params["b2"].shape[-1] == cout_pad

    # Pad the image row stride to a multiple of 8 so every dy-shifted slab read
    # in the kernel starts sublane-aligned.
    Wx_p = _round_up(Wx, 8)
    n_out = Hd * Wx_p                     # full-(padded-)width flattened output rows
    r_xc = n_out + 4 * Wx_p + 8           # conv_search rows consumed by the depthwise
    nx_rows = Hx * Wx_p + 16              # flattened input rows incl. zero tail
    # Bounds invariants tying r_xc / Wd / the slice windows together:
    assert (r_xc - 1) + 2 * Wx_p + 2 < nx_rows       # deepest 3x3 tap read in-bounds
    assert 4 * Wx_p + n_out + 8 == r_xc              # deepest 5x5 slab read in-bounds
    assert (Wd - 1) + 4 + 2 <= Wx - 1                # kept outputs never touch pad cols

    # Search: pad row width to Wx_p with zero columns, append zero rows, flatten.
    x_pad = jnp.pad(x_nhwc, ((0, 0), (0, 0), (0, Wx_p - Wx), (0, 0)))
    x_flat = x_pad.reshape(B, Hx * Wx_p, Cin)
    x_flat = jnp.pad(x_flat, ((0, 0), (0, nx_rows - Hx * Wx_p), (0, 0)))
    x_flat = x_flat.astype(jnp.bfloat16)

    # Template: im2col in the wrapper (tiny) -> one MXU matmul in the kernel.
    patches = [z_nhwc[:, ph:ph + 3, pw:pw + 3, :].reshape(B, 1, K9)
               for ph in range(5) for pw in range(5)]
    z_im2col = jnp.concatenate(patches, axis=1).astype(jnp.bfloat16)    # (B, 25, 9*Cin)

    bvec = lambda br, b: (br, 0, 0)                  # branch-indexed 3-D params
    kernel = functools.partial(_xdiff_kernel, Wx_p=Wx_p, n_out=n_out, r_xc=r_xc)

    # TODO(synk): v7x-only follow-ups from the review: pipeline_mode=pl.Buffered(1)
    # on the batch-invariant weight specs, fp8 conv weights, bf16 xc_ref scratch on
    # v6e/v7x (kept f32 here for v5e's f32-only VPU and numerical headroom).
    out = pl.pallas_call(
        kernel,
        out_shape=jax.ShapeDtypeStruct((NB, B, n_out, cout_pad), jnp.float32),
        grid_spec=pltpu.PrefetchScalarGridSpec(
            num_scalar_prefetch=0,
            grid=(NB, B),                            # branch outer -> weights resident
            in_specs=[
                pl.BlockSpec((1, 25, K9), lambda br, b: (b, 0, 0)),
                pl.BlockSpec((1, nx_rows, Cin), lambda br, b: (b, 0, 0)),
                pl.BlockSpec((1, K9, hidden_p), bvec),
                pl.BlockSpec((1, 1, hidden_p), bvec),
                pl.BlockSpec((1, 1, hidden_p), bvec),
                pl.BlockSpec((1, 9, Cin, hidden_p), lambda br, b: (br, 0, 0, 0)),
                pl.BlockSpec((1, 1, hidden_p), bvec),
                pl.BlockSpec((1, 1, hidden_p), bvec),
                pl.BlockSpec((1, 25, hidden_p), bvec),
                pl.BlockSpec((1, 1, hidden_p), bvec),
                pl.BlockSpec((1, 1, hidden_p), bvec),
                pl.BlockSpec((1, hidden_p, hidden_p), bvec),
                pl.BlockSpec((1, 1, hidden_p), bvec),
                pl.BlockSpec((1, 1, hidden_p), bvec),
                pl.BlockSpec((1, hidden_p, cout_pad), bvec),
                pl.BlockSpec((1, 1, cout_pad), bvec),
            ],
            out_specs=pl.BlockSpec((1, 1, n_out, cout_pad),
                                   lambda br, b: (br, b, 0, 0)),
            scratch_shapes=[pltpu.VMEM((r_xc, hidden_p), jnp.float32),
                            pltpu.VMEM((n_out, hidden_p), jnp.float32)],
        ),
        compiler_params=pltpu.CompilerParams(
            dimension_semantics=("parallel", "parallel"),
            vmem_limit_bytes=32 * 1024 * 1024),
    )(z_im2col, x_flat,
      params["w3k"], params["bnk_s"], params["bnk_b"],
      params["w3s"], params["bns_s"], params["bns_b"],
      params["dw"],
      params["bn1_s"], params["bn1_b"], params["w1"],
      params["bn2_s"], params["bn2_b"], params["w2"], params["b2"])

    # Drop the padded-width "wrap" columns; keep the lane padding for the caller.
    out = out.reshape(NB, B, Hd, Wx_p, cout_pad)[:, :, :, :Wd, :]
    return out


# ----------------------------------------------------------------------------
# Deterministic parameter construction (synthetic, PyTorch module shapes)
# ----------------------------------------------------------------------------
_BN_EPS = 1e-5


def _fold_bn(gamma, beta, mean, var):
    scale = gamma / jnp.sqrt(var + _BN_EPS)
    bias = beta - mean * scale
    return scale.reshape(1, -1), bias.reshape(1, -1)


def _init_bn(key, c):
    k1, k2, k3, k4 = jax.random.split(key, 4)
    gamma = jax.random.uniform(k1, (c,), jnp.float32, 0.5, 1.5)
    beta = jax.random.normal(k2, (c,), jnp.float32) * 0.1
    mean = jax.random.normal(k3, (c,), jnp.float32) * 0.1
    var = jax.random.uniform(k4, (c,), jnp.float32, 0.5, 1.5)
    return gamma, beta, mean, var


def init_xdiff_params(key, in_channels, hidden, out_channels, cout_pad=128):
    """Returns (raw PyTorch-layout params, Pallas-layout params for ONE branch).

    Pallas layout: hidden zero-padded to a multiple of 128 (lane-dense slabs and
    BN vectors), head output channels zero-padded to cout_pad (lane-dense stores).
    Padded channels carry exact zeros through every stage.
    """
    assert out_channels <= cout_pad
    ks = jax.random.split(key, 10)
    raw = {
        "w3k": jax.random.normal(ks[0], (hidden, in_channels, 3, 3), jnp.float32) * 0.1,
        "bnk": _init_bn(ks[1], hidden),
        "w3s": jax.random.normal(ks[2], (hidden, in_channels, 3, 3), jnp.float32) * 0.1,
        "bns": _init_bn(ks[3], hidden),
        "dw":  jax.random.normal(ks[4], (hidden, 1, 5, 5), jnp.float32) * 0.1,
        "bn1": _init_bn(ks[5], hidden),
        "w1":  jax.random.normal(ks[6], (hidden, hidden, 1, 1), jnp.float32) * 0.1,
        "bn2": _init_bn(ks[7], hidden),
        "w2":  jax.random.normal(ks[8], (out_channels, hidden, 1, 1), jnp.float32) * 0.1,
        "b2":  jax.random.normal(ks[9], (out_channels,), jnp.float32) * 0.1,
    }
    hp = _round_up(hidden, 128)
    bf16 = jnp.bfloat16
    bnk_s, bnk_b = _fold_bn(*raw["bnk"])
    bns_s, bns_b = _fold_bn(*raw["bns"])
    bn1_s, bn1_b = _fold_bn(*raw["bn1"])
    bn2_s, bn2_b = _fold_bn(*raw["bn2"])
    # (O,I,3,3) -> (3,3,I,O); template flattened to (9*I, O) for the single
    # im2col matmul, search kept per-tap as (9, I, O).
    w3k_hwio = jnp.transpose(raw["w3k"], (2, 3, 1, 0))
    w3s_hwio = jnp.transpose(raw["w3s"], (2, 3, 1, 0))
    pallas = {
        "w3k": _pad_last(w3k_hwio.reshape(9 * in_channels, hidden), hp).astype(bf16),
        "bnk_s": _pad_last(bnk_s, hp), "bnk_b": _pad_last(bnk_b, hp),
        "w3s": _pad_last(w3s_hwio.reshape(9, in_channels, hidden), hp).astype(bf16),
        "bns_s": _pad_last(bns_s, hp), "bns_b": _pad_last(bns_b, hp),
        # (hidden,1,5,5) -> (25, hidden), tap index = dy*5+dx; fp32 VPU taps
        "dw": _pad_last(jnp.transpose(raw["dw"][:, 0], (1, 2, 0)).reshape(25, hidden), hp),
        "bn1_s": _pad_last(bn1_s, hp), "bn1_b": _pad_last(bn1_b, hp),
        "w1": jnp.pad(jnp.transpose(raw["w1"][:, :, 0, 0]),
                      ((0, hp - hidden), (0, hp - hidden))).astype(bf16),
        "bn2_s": _pad_last(bn2_s, hp), "bn2_b": _pad_last(bn2_b, hp),
        "w2": jnp.pad(jnp.transpose(raw["w2"][:, :, 0, 0]),
                      ((0, hp - hidden), (0, cout_pad - out_channels))).astype(bf16),
        "b2": _pad_last(raw["b2"].reshape(1, -1), cout_pad),
    }
    return raw, pallas


def stack_branches(branch_params):
    """Stack per-branch Pallas params on a leading branch axis."""
    return {k: jnp.stack([p[k] for p in branch_params]) for k in branch_params[0]}


# ----------------------------------------------------------------------------
# DepthwiseRPN wrapper: two DepthwiseXDiff branches fused into one pallas_call
# ----------------------------------------------------------------------------
class DepthwiseRPNPallas:
    def __init__(self, key, anchor_num=5, in_channels=256, hiddens=256):
        kc, kl = jax.random.split(key)
        self.cls_out = 2 * anchor_num
        self.loc_out = 4 * anchor_num
        self.cout_pad = 128
        self.cls_raw, cls_p = init_xdiff_params(kc, in_channels, hiddens,
                                                self.cls_out, self.cout_pad)
        self.loc_raw, loc_p = init_xdiff_params(kl, in_channels, hiddens,
                                                self.loc_out, self.cout_pad)
        self.fused_p = stack_branches([cls_p, loc_p])

    def __call__(self, z_f, x_f):
        zt = jnp.transpose(z_f, (0, 2, 3, 1))     # NCHW -> NHWC
        xt = jnp.transpose(x_f, (0, 2, 3, 1))
        out = _fused_xdiff_pallas(zt, xt, self.fused_p, self.cout_pad)
        cls = jnp.transpose(out[0, :, :, :, :self.cls_out], (0, 3, 1, 2))
        loc = jnp.transpose(out[1, :, :, :, :self.loc_out], (0, 3, 1, 2))
        return cls, loc


# ----------------------------------------------------------------------------
# Pure-JAX (XLA) reference in NCHW, used only to validate the Pallas kernel.
# Mirrors the kernel's bf16 MXU-operand rounding (inputs, conv weights, and the
# activations feeding both head 1x1 convs); all other math stays f32.
# ----------------------------------------------------------------------------
def _conv_nchw(x, w, groups=1):
    return lax.conv_general_dilated(
        x, w, window_strides=(1, 1), padding="VALID",
        dimension_numbers=("NCHW", "OIHW", "NCHW"),
        feature_group_count=groups,
        precision=lax.Precision.HIGHEST)


def _bn_nchw(t, stats):
    g, b, m, v = stats
    inv = g / jnp.sqrt(v + _BN_EPS)
    return t * inv[None, :, None, None] + (b - m * inv)[None, :, None, None]


def _q(a):
    # bf16 round-trip: mirrors the kernel's bf16 MXU operands in an f32 reference
    return a.astype(jnp.bfloat16).astype(jnp.float32)


def xdiff_ref(z, x, raw):
    hidden = raw["dw"].shape[0]
    k = jnp.maximum(_bn_nchw(_conv_nchw(_q(z), _q(raw["w3k"])), raw["bnk"]), 0.0)
    s = jnp.maximum(_bn_nchw(_conv_nchw(_q(x), _q(raw["w3s"])), raw["bns"]), 0.0)
    k = _conv_nchw(k, raw["dw"], groups=hidden)
    s = _conv_nchw(s, raw["dw"], groups=hidden)
    feat = s - jnp.broadcast_to(k, s.shape)
    t = jnp.maximum(_bn_nchw(feat, raw["bn1"]), 0.0)
    t = _conv_nchw(_q(t), _q(raw["w1"]))
    t = jnp.maximum(_bn_nchw(t, raw["bn2"]), 0.0)
    return _conv_nchw(_q(t), _q(raw["w2"])) + raw["b2"][None, :, None, None]


if __name__ == "__main__":
    key = jax.random.PRNGKey(0)
    kz, kx, kp = jax.random.split(key, 3)

    # Small shapes consistent with the module: template 7x7, search 16x16.
    B, Cin, hidden, anchor = 2, 8, 32, 2
    z_f = jax.random.normal(kz, (B, Cin, 7, 7), jnp.float32)    # template (NCHW)
    x_f = jax.random.normal(kx, (B, Cin, 16, 16), jnp.float32)  # search   (NCHW)

    rpn = DepthwiseRPNPallas(kp, anchor_num=anchor, in_channels=Cin, hiddens=hidden)
    cls, loc = rpn(z_f, x_f)
    jax.block_until_ready((cls, loc))

    cls_ref = xdiff_ref(z_f, x_f, rpn.cls_raw)
    loc_ref = xdiff_ref(z_f, x_f, rpn.loc_raw)
    assert cls.shape == cls_ref.shape and loc.shape == loc_ref.shape
    assert jnp.allclose(cls, cls_ref, atol=2e-2, rtol=2e-2), \
        float(jnp.max(jnp.abs(cls - cls_ref)))
    assert jnp.allclose(loc, loc_ref, atol=2e-2, rtol=2e-2), \
        float(jnp.max(jnp.abs(loc - loc_ref)))

    print("KERNEL_OK")
</pallas_src>

<mosaic_0001>
module attributes {stable_mosaic.version = 11 : i64} {
  func.func @_xdiff_kernel(%arg0: i32, %arg1: i32, %arg2: memref<1x25x72xbf16, #tpu.memory_space<vmem>>, %arg3: memref<1x272x8xbf16, #tpu.memory_space<vmem>>, %arg4: memref<1x72x128xbf16, #tpu.memory_space<vmem>>, %arg5: memref<1x1x128xf32, #tpu.memory_space<vmem>>, %arg6: memref<1x1x128xf32, #tpu.memory_space<vmem>>, %arg7: memref<1x9x8x128xbf16, #tpu.memory_space<vmem>>, %arg8: memref<1x1x128xf32, #tpu.memory_space<vmem>>, %arg9: memref<1x1x128xf32, #tpu.memory_space<vmem>>, %arg10: memref<1x25x128xf32, #tpu.memory_space<vmem>>, %arg11: memref<1x1x128xf32, #tpu.memory_space<vmem>>, %arg12: memref<1x1x128xf32, #tpu.memory_space<vmem>>, %arg13: memref<1x128x128xbf16, #tpu.memory_space<vmem>>, %arg14: memref<1x1x128xf32, #tpu.memory_space<vmem>>, %arg15: memref<1x1x128xf32, #tpu.memory_space<vmem>>, %arg16: memref<1x128x128xbf16, #tpu.memory_space<vmem>>, %arg17: memref<1x1x128xf32, #tpu.memory_space<vmem>>, %arg18: memref<1x1x160x128xf32, #tpu.memory_space<vmem>>, %arg19: memref<232x128xf32, #tpu.memory_space<vmem>>, %arg20: memref<160x128xf32, #tpu.memory_space<vmem>>) attributes {dimension_semantics = [#tpu.dimension_semantics<parallel>, #tpu.dimension_semantics<parallel>], iteration_bounds = array<i64: 2, 2>, scalar_prefetch = 0 : i64, scratch_operands = 2 : i64, tpu.core_type = #tpu.core_type<tc>, window_params = [{transform_indices = @transform_0, window_bounds = array<i64: 1, 25, 72>}, {transform_indices = @transform_1, window_bounds = array<i64: 1, 272, 8>}, {transform_indices = @transform_2, window_bounds = array<i64: 1, 72, 128>}, {transform_indices = @transform_3, window_bounds = array<i64: 1, 1, 128>}, {transform_indices = @transform_4, window_bounds = array<i64: 1, 1, 128>}, {transform_indices = @transform_5, window_bounds = array<i64: 1, 9, 8, 128>}, {transform_indices = @transform_6, window_bounds = array<i64: 1, 1, 128>}, {transform_indices = @transform_7, window_bounds = array<i64: 1, 1, 128>}, {transform_indices = @transform_8, window_bounds = array<i64: 1, 25, 128>}, {transform_indices = @transform_9, window_bounds = array<i64: 1, 1, 128>}, {transform_indices = @transform_10, window_bounds = array<i64: 1, 1, 128>}, {transform_indices = @transform_11, window_bounds = array<i64: 1, 128, 128>}, {transform_indices = @transform_12, window_bounds = array<i64: 1, 1, 128>}, {transform_indices = @transform_13, window_bounds = array<i64: 1, 1, 128>}, {transform_indices = @transform_14, window_bounds = array<i64: 1, 128, 128>}, {transform_indices = @transform_15, window_bounds = array<i64: 1, 1, 128>}, {transform_indices = @transform_16, window_bounds = array<i64: 1, 1, 160, 128>}]} {
    %c0 = arith.constant 0 : index
    %c0_0 = arith.constant 0 : index
    %c0_1 = arith.constant 0 : index
    %0 = vector.load %arg5[%c0, %c0_0, %c0_1] : memref<1x1x128xf32, #tpu.memory_space<vmem>>, vector<1x1x128xf32>
    %1 = vector.shape_cast %0 : vector<1x1x128xf32> to vector<1x128xf32>
    %c0_2 = arith.constant 0 : index
    %c0_3 = arith.constant 0 : index
    %c0_4 = arith.constant 0 : index
    %2 = vector.load %arg6[%c0_2, %c0_3, %c0_4] : memref<1x1x128xf32, #tpu.memory_space<vmem>>, vector<1x1x128xf32>
    %3 = vector.shape_cast %2 : vector<1x1x128xf32> to vector<1x128xf32>
    %c0_5 = arith.constant 0 : index
    %c0_6 = arith.constant 0 : index
    %c0_7 = arith.constant 0 : index
    %4 = vector.load %arg8[%c0_5, %c0_6, %c0_7] : memref<1x1x128xf32, #tpu.memory_space<vmem>>, vector<1x1x128xf32>
    %5 = vector.shape_cast %4 : vector<1x1x128xf32> to vector<1x128xf32>
    %c0_8 = arith.constant 0 : index
    %c0_9 = arith.constant 0 : index
    %c0_10 = arith.constant 0 : index
    %6 = vector.load %arg9[%c0_8, %c0_9, %c0_10] : memref<1x1x128xf32, #tpu.memory_space<vmem>>, vector<1x1x128xf32>
    %7 = vector.shape_cast %6 : vector<1x1x128xf32> to vector<1x128xf32>
    %c0_11 = arith.constant 0 : index
    %c0_12 = arith.constant 0 : index
    %c0_13 = arith.constant 0 : index
    %8 = vector.load %arg11[%c0_11, %c0_12, %c0_13] : memref<1x1x128xf32, #tpu.memory_space<vmem>>, vector<1x1x128xf32>
    %9 = vector.shape_cast %8 : vector<1x1x128xf32> to vector<1x128xf32>
    %c0_14 = arith.constant 0 : index
    %c0_15 = arith.constant 0 : index
    %c0_16 = arith.constant 0 : index
    %10 = vector.load %arg12[%c0_14, %c0_15, %c0_16] : memref<1x1x128xf32, #tpu.memory_space<vmem>>, vector<1x1x128xf32>
    %11 = vector.shape_cast %10 : vector<1x1x128xf32> to vector<1x128xf32>
    %c0_17 = arith.constant 0 : index
    %c0_18 = arith.constant 0 : index
    %c0_19 = arith.constant 0 : index
    %12 = vector.load %arg14[%c0_17, %c0_18, %c0_19] : memref<1x1x128xf32, #tpu.memory_space<vmem>>, vector<1x1x128xf32>
    %13 = vector.shape_cast %12 : vector<1x1x128xf32> to vector<1x128xf32>
    %c0_20 = arith.constant 0 : index
    %c0_21 = arith.constant 0 : index
    %c0_22 = arith.constant 0 : index
    %14 = vector.load %arg15[%c0_20, %c0_21, %c0_22] : memref<1x1x128xf32, #tpu.memory_space<vmem>>, vector<1x1x128xf32>
    %15 = vector.shape_cast %14 : vector<1x1x128xf32> to vector<1x128xf32>
    %c0_23 = arith.constant 0 : index
    %c0_24 = arith.constant 0 : index
    %c0_25 = arith.constant 0 : index
    %16 = vector.load %arg10[%c0_23, %c0_24, %c0_25] : memref<1x25x128xf32, #tpu.memory_space<vmem>>, vector<1x25x128xf32>
    %17 = vector.shape_cast %16 : vector<1x25x128xf32> to vector<25x128xf32>
    %c0_26 = arith.constant 0 : index
    %c0_27 = arith.constant 0 : index
    %c0_28 = arith.constant 0 : index
    %18 = vector.load %arg13[%c0_26, %c0_27, %c0_28] : memref<1x128x128xbf16, #tpu.memory_space<vmem>>, vector<1x128x128xbf16>
    %19 = vector.shape_cast %18 : vector<1x128x128xbf16> to vector<128x128xbf16>
    %c0_29 = arith.constant 0 : index
    %c0_30 = arith.constant 0 : index
    %c0_31 = arith.constant 0 : index
    %20 = vector.load %arg16[%c0_29, %c0_30, %c0_31] : memref<1x128x128xbf16, #tpu.memory_space<vmem>>, vector<1x128x128xbf16>
    %21 = vector.shape_cast %20 : vector<1x128x128xbf16> to vector<128x128xbf16>
    %c0_32 = arith.constant 0 : index
    %c0_33 = arith.constant 0 : index
    %c0_34 = arith.constant 0 : index
    %22 = vector.load %arg17[%c0_32, %c0_33, %c0_34] : memref<1x1x128xf32, #tpu.memory_space<vmem>>, vector<1x1x128xf32>
    %23 = vector.shape_cast %22 : vector<1x1x128xf32> to vector<1x128xf32>
    %c0_35 = arith.constant 0 : index
    %c0_36 = arith.constant 0 : index
    %c0_37 = arith.constant 0 : index
    %24 = vector.load %arg2[%c0_35, %c0_36, %c0_37] : memref<1x25x72xbf16, #tpu.memory_space<vmem>>, vector<1x25x72xbf16>
    %25 = vector.shape_cast %24 : vector<1x25x72xbf16> to vector<25x72xbf16>
    %c0_38 = arith.constant 0 : index
    %c0_39 = arith.constant 0 : index
    %c0_40 = arith.constant 0 : index
    %26 = vector.load %arg4[%c0_38, %c0_39, %c0_40] : memref<1x72x128xbf16, #tpu.memory_space<vmem>>, vector<1x72x128xbf16>
    %27 = vector.shape_cast %26 : vector<1x72x128xbf16> to vector<72x128xbf16>
    %cst = arith.constant dense<0.000000e+00> : vector<25x128xf32>
    %28 = tpu.matmul %25, %27, %cst {dimension_numbers = #tpu.dot_dimension_numbers<[1], [0], [0], [1], [0, 0, 1, 1], [], []>} : vector<25x72xbf16>, vector<72x128xbf16>, vector<25x128xf32> -> vector<25x128xf32>
    %29 = vector.broadcast %1 : vector<1x128xf32> to vector<25x128xf32>
    %30 = arith.mulf %28, %29 : vector<25x128xf32>
    %31 = vector.broadcast %3 : vector<1x128xf32> to vector<25x128xf32>
    %32 = arith.addf %30, %31 : vector<25x128xf32>
    %cst_41 = arith.constant 0.000000e+00 : f32
    %33 = vector.broadcast %cst_41 : f32 to vector<25x128xf32>
    %34 = arith.maximumf %32, %33 : vector<25x128xf32>
    %35 = arith.mulf %34, %17 : vector<25x128xf32>
    %cst_42 = arith.constant dense<0.000000e+00> : vector<128xf32>
    %36 = vector.multi_reduction <add>, %35, %cst_42 [0] : vector<25x128xf32> to vector<128xf32>
    %37 = vector.shape_cast %36 : vector<128xf32> to vector<1x128xf32>
    %c0_43 = arith.constant 0 : index
    %c0_44 = arith.constant 0 : index
    %c0_45 = arith.constant 0 : index
    %38 = vector.load %arg3[%c0_43, %c0_44, %c0_45] : memref<1x272x8xbf16, #tpu.memory_space<vmem>>, vector<1x232x8xbf16>
    %39 = vector.shape_cast %38 : vector<1x232x8xbf16> to vector<232x8xbf16>
    %c0_46 = arith.constant 0 : index
    %c0_47 = arith.constant 0 : index
    %c0_48 = arith.constant 0 : index
    %c0_49 = arith.constant 0 : index
    %40 = vector.load %arg7[%c0_46, %c0_47, %c0_48, %c0_49] : memref<1x9x8x128xbf16, #tpu.memory_space<vmem>>, vector<1x1x8x128xbf16>
    %41 = vector.shape_cast %40 : vector<1x1x8x128xbf16> to vector<8x128xbf16>
    %cst_50 = arith.constant dense<0.000000e+00> : vector<232x128xf32>
    %42 = tpu.matmul %39, %41, %cst_50 {dimension_numbers = #tpu.dot_dimension_numbers<[1], [0], [0], [1], [0, 0, 1, 1], [], []>} : vector<232x8xbf16>, vector<8x128xbf16>, vector<232x128xf32> -> vector<232x128xf32>
    %c0_51 = arith.constant 0 : index
    %c0_52 = arith.constant 0 : index
    %43 = vector.load %arg19[%c0_51, %c0_52] : memref<232x128xf32, #tpu.memory_space<vmem>>, vector<232x128xf32>
    tpu.vector_store %arg19[%c0_51, %c0_52], %42 {strides = array<i32>} : memref<232x128xf32, #tpu.memory_space<vmem>>, vector<232x128xf32>,
    %c0_53 = arith.constant 0 : index
    %c1 = arith.constant 1 : index
    %c0_54 = arith.constant 0 : index
    %44 = vector.load %arg3[%c0_53, %c1, %c0_54] : memref<1x272x8xbf16, #tpu.memory_space<vmem>>, vector<1x232x8xbf16>
    %45 = vector.shape_cast %44 : vector<1x232x8xbf16> to vector<232x8xbf16>
    %c0_55 = arith.constant 0 : index
    %c1_56 = arith.constant 1 : index
    %c0_57 = arith.constant 0 : index
    %c0_58 = arith.constant 0 : index
    %46 = vector.load %arg7[%c0_55, %c1_56, %c0_57, %c0_58] : memref<1x9x8x128xbf16, #tpu.memory_space<vmem>>, vector<1x1x8x128xbf16>
    %47 = vector.shape_cast %46 : vector<1x1x8x128xbf16> to vector<8x128xbf16>
    %cst_59 = arith.constant dense<0.000000e+00> : vector<232x128xf32>
    %48 = tpu.matmul %45, %47, %cst_59 {dimension_numbers = #tpu.dot_dimension_numbers<[1], [0], [0], [1], [0, 0, 1, 1], [], []>} : vector<232x8xbf16>, vector<8x128xbf16>, vector<232x128xf32> -> vector<232x128xf32>
    %c0_60 = arith.constant 0 : index
    %c0_61 = arith.constant 0 : index
    %49 = vector.load %arg19[%c0_60, %c0_61] : memref<232x128xf32, #tpu.memory_space<vmem>>, vector<232x128xf32>
    %50 = arith.addf %49, %48 : vector<232x128xf32>
    %c0_62 = arith.constant 0 : index
    %c0_63 = arith.constant 0 : index
    %51 = vector.load %arg19[%c0_62, %c0_63] : memref<232x128xf32, #tpu.memory_space<vmem>>, vector<232x128xf32>
    tpu.vector_store %arg19[%c0_62, %c0_63], %50 {strides = array<i32>} : memref<232x128xf32, #tpu.memory_space<vmem>>, vector<232x128xf32>,
    %c0_64 = arith.constant 0 : index
    %c2 = arith.constant 2 : index
    %c0_65 = arith.constant 0 : index
    %52 = vector.load %arg3[%c0_64, %c2, %c0_65] : memref<1x272x8xbf16, #tpu.memory_space<vmem>>, vector<1x232x8xbf16>
    %53 = vector.shape_cast %52 : vector<1x232x8xbf16> to vector<232x8xbf16>
    %c0_66 = arith.constant 0 : index
    %c2_67 = arith.constant 2 : index
    %c0_68 = arith.constant 0 : index
    %c0_69 = arith.constant 0 : index
    %54 = vector.load %arg7[%c0_66, %c2_67, %c0_68, %c0_69] : memref<1x9x8x128xbf16, #tpu.memory_space<vmem>>, vector<1x1x8x128xbf16>
    %55 = vector.shape_cast %54 : vector<1x1x8x128xbf16> to vector<8x128xbf16>
    %cst_70 = arith.constant dense<0.000000e+00> : vector<232x128xf32>
    %56 = tpu.matmul %53, %55, %cst_70 {dimension_numbers = #tpu.dot_dimension_numbers<[1], [0], [0], [1], [0, 0, 1, 1], [], []>} : vector<232x8xbf16>, vector<8x128xbf16>, vector<232x128xf32> -> vector<232x128xf32>
    %c0_71 = arith.constant 0 : index
    %c0_72 = arith.constant 0 : index
    %57 = vector.load %arg19[%c0_71, %c0_72] : memref<232x128xf32, #tpu.memory_space<vmem>>, vector<232x128xf32>
    %58 = arith.addf %57, %56 : vector<232x128xf32>
    %c0_73 = arith.constant 0 : index
    %c0_74 = arith.constant 0 : index
    %59 = vector.load %arg19[%c0_73, %c0_74] : memref<232x128xf32, #tpu.memory_space<vmem>>, vector<232x128xf32>
    tpu.vector_store %arg19[%c0_73, %c0_74], %58 {strides = array<i32>} : memref<232x128xf32, #tpu.memory_space<vmem>>, vector<232x128xf32>,
    %c0_75 = arith.constant 0 : index
    %c16 = arith.constant 16 : index
    %c0_76 = arith.constant 0 : index
    %60 = vector.load %arg3[%c0_75, %c16, %c0_76] : memref<1x272x8xbf16, #tpu.memory_space<vmem>>, vector<1x232x8xbf16>
    %61 = vector.shape_cast %60 : vector<1x232x8xbf16> to vector<232x8xbf16>
    %c0_77 = arith.constant 0 : index
    %c3 = arith.constant 3 : index
    %c0_78 = arith.constant 0 : index
    %c0_79 = arith.constant 0 : index
    %62 = vector.load %arg7[%c0_77, %c3, %c0_78, %c0_79] : memref<1x9x8x128xbf16, #tpu.memory_space<vmem>>, vector<1x1x8x128xbf16>
    %63 = vector.shape_cast %62 : vector<1x1x8x128xbf16> to vector<8x128xbf16>
    %cst_80 = arith.constant dense<0.000000e+00> : vector<232x128xf32>
    %64 = tpu.matmul %61, %63, %cst_80 {dimension_numbers = #tpu.dot_dimension_numbers<[1], [0], [0], [1], [0, 0, 1, 1], [], []>} : vector<232x8xbf16>, vector<8x128xbf16>, vector<232x128xf32> -> vector<232x128xf32>
    %c0_81 = arith.constant 0 : index
    %c0_82 = arith.constant 0 : index
    %65 = vector.load %arg19[%c0_81, %c0_82] : memref<232x128xf32, #tpu.memory_space<vmem>>, vector<232x128xf32>
    %66 = arith.addf %65, %64 : vector<232x128xf32>
    %c0_83 = arith.constant 0 : index
    %c0_84 = arith.constant 0 : index
    %67 = vector.load %arg19[%c0_83, %c0_84] : memref<232x128xf32, #tpu.memory_space<vmem>>, vector<232x128xf32>
    tpu.vector_store %arg19[%c0_83, %c0_84], %66 {strides = array<i32>} : memref<232x128xf32, #tpu.memory_space<vmem>>, vector<232x128xf32>,
    %c0_85 = arith.constant 0 : index
    %c17 = arith.constant 17 : index
    %c0_86 = arith.constant 0 : index
    %68 = vector.load %arg3[%c0_85, %c17, %c0_86] : memref<1x272x8xbf16, #tpu.memory_space<vmem>>, vector<1x232x8xbf16>
    %69 = vector.shape_cast %68 : vector<1x232x8xbf16> to vector<232x8xbf16>
    %c0_87 = arith.constant 0 : index
    %c4 = arith.constant 4 : index
    %c0_88 = arith.constant 0 : index
    %c0_89 = arith.constant 0 : index
    %70 = vector.load %arg7[%c0_87, %c4, %c0_88, %c0_89] : memref<1x9x8x128xbf16, #tpu.memory_space<vmem>>, vector<1x1x8x128xbf16>
    %71 = vector.shape_cast %70 : vector<1x1x8x128xbf16> to vector<8x128xbf16>
    %cst_90 = arith.constant dense<0.000000e+00> : vector<232x128xf32>
    %72 = tpu.matmul %69, %71, %cst_90 {dimension_numbers = #tpu.dot_dimension_numbers<[1], [0], [0], [1], [0, 0, 1, 1], [], []>} : vector<232x8xbf16>, vector<8x128xbf16>, vector<232x128xf32> -> vector<232x128xf32>
    %c0_91 = arith.constant 0 : index
    %c0_92 = arith.constant 0 : index
    %73 = vector.load %arg19[%c0_91, %c0_92] : memref<232x128xf32, #tpu.memory_space<vmem>>, vector<232x128xf32>
    %74 = arith.addf %73, %72 : vector<232x128xf32>
    %c0_93 = arith.constant 0 : index
    %c0_94 = arith.constant 0 : index
    %75 = vector.load %arg19[%c0_93, %c0_94] : memref<232x128xf32, #tpu.memory_space<vmem>>, vector<232x128xf32>
    tpu.vector_store %arg19[%c0_93, %c0_94], %74 {strides = array<i32>} : memref<232x128xf32, #tpu.memory_space<vmem>>, vector<232x128xf32>,
    %c0_95 = arith.constant 0 : index
    %c18 = arith.constant 18 : index
    %c0_96 = arith.constant 0 : index
    %76 = vector.load %arg3[%c0_95, %c18, %c0_96] : memref<1x272x8xbf16, #tpu.memory_space<vmem>>, vector<1x232x8xbf16>
    %77 = vector.shape_cast %76 : vector<1x232x8xbf16> to vector<232x8xbf16>
    %c0_97 = arith.constant 0 : index
    %c5 = arith.constant 5 : index
    %c0_98 = arith.constant 0 : index
    %c0_99 = arith.constant 0 : index
    %78 = vector.load %arg7[%c0_97, %c5, %c0_98, %c0_99] : memref<1x9x8x128xbf16, #tpu.memory_space<vmem>>, vector<1x1x8x128xbf16>
    %79 = vector.shape_cast %78 : vector<1x1x8x128xbf16> to vector<8x128xbf16>
    %cst_100 = arith.constant dense<0.000000e+00> : vector<232x128xf32>
    %80 = tpu.matmul %77, %79, %cst_100 {dimension_numbers = #tpu.dot_dimension_numbers<[1], [0], [0], [1], [0, 0, 1, 1], [], []>} : vector<232x8xbf16>, vector<8x128xbf16>, vector<232x128xf32> -> vector<232x128xf32>
    %c0_101 = arith.constant 0 : index
    %c0_102 = arith.constant 0 : index
    %81 = vector.load %arg19[%c0_101, %c0_102] : memref<232x128xf32, #tpu.memory_space<vmem>>, vector<232x128xf32>
    %82 = arith.addf %81, %80 : vector<232x128xf32>
    %c0_103 = arith.constant 0 : index
    %c0_104 = arith.constant 0 : index
    %83 = vector.load %arg19[%c0_103, %c0_104] : memref<232x128xf32, #tpu.memory_space<vmem>>, vector<232x128xf32>
    tpu.vector_store %arg19[%c0_103, %c0_104], %82 {strides = array<i32>} : memref<232x128xf32, #tpu.memory_space<vmem>>, vector<232x128xf32>,
    %c0_105 = arith.constant 0 : index
    %c32 = arith.constant 32 : index
    %c0_106 = arith.constant 0 : index
    %84 = vector.load %arg3[%c0_105, %c32, %c0_106] : memref<1x272x8xbf16, #tpu.memory_space<vmem>>, vector<1x232x8xbf16>
    %85 = vector.shape_cast %84 : vector<1x232x8xbf16> to vector<232x8xbf16>
    %c0_107 = arith.constant 0 : index
    %c6 = arith.constant 6 : index
    %c0_108 = arith.constant 0 : index
    %c0_109 = arith.constant 0 : index
    %86 = vector.load %arg7[%c0_107, %c6, %c0_108, %c0_109] : memref<1x9x8x128xbf16, #tpu.memory_space<vmem>>, vector<1x1x8x128xbf16>
    %87 = vector.shape_cast %86 : vector<1x1x8x128xbf16> to vector<8x128xbf16>
    %cst_110 = arith.constant dense<0.000000e+00> : vector<232x128xf32>
    %88 = tpu.matmul %85, %87, %cst_110 {dimension_numbers = #tpu.dot_dimension_numbers<[1], [0], [0], [1], [0, 0, 1, 1], [], []>} : vector<232x8xbf16>, vector<8x128xbf16>, vector<232x128xf32> -> vector<232x128xf32>
    %c0_111 = arith.constant 0 : index
    %c0_112 = arith.constant 0 : index
    %89 = vector.load %arg19[%c0_111, %c0_112] : memref<232x128xf32, #tpu.memory_space<vmem>>, vector<232x128xf32>
    %90 = arith.addf %89, %88 : vector<232x128xf32>
    %c0_113 = arith.constant 0 : index
    %c0_114 = arith.constant 0 : index
    %91 = vector.load %arg19[%c0_113, %c0_114] : memref<232x128xf32, #tpu.memory_space<vmem>>, vector<232x128xf32>
    tpu.vector_store %arg19[%c0_113, %c0_114], %90 {strides = array<i32>} : memref<232x128xf32, #tpu.memory_space<vmem>>, vector<232x128xf32>,
    %c0_115 = arith.constant 0 : index
    %c33 = arith.constant 33 : index
    %c0_116 = arith.constant 0 : index
    %92 = vector.load %arg3[%c0_115, %c33, %c0_116] : memref<1x272x8xbf16, #tpu.memory_space<vmem>>, vector<1x232x8xbf16>
    %93 = vector.shape_cast %92 : vector<1x232x8xbf16> to vector<232x8xbf16>
    %c0_117 = arith.constant 0 : index
    %c7 = arith.constant 7 : index
    %c0_118 = arith.constant 0 : index
    %c0_119 = arith.constant 0 : index
    %94 = vector.load %arg7[%c0_117, %c7, %c0_118, %c0_119] : memref<1x9x8x128xbf16, #tpu.memory_space<vmem>>, vector<1x1x8x128xbf16>
    %95 = vector.shape_cast %94 : vector<1x1x8x128xbf16> to vector<8x128xbf16>
    %cst_120 = arith.constant dense<0.000000e+00> : vector<232x128xf32>
    %96 = tpu.matmul %93, %95, %cst_120 {dimension_numbers = #tpu.dot_dimension_numbers<[1], [0], [0], [1], [0, 0, 1, 1], [], []>} : vector<232x8xbf16>, vector<8x128xbf16>, vector<232x128xf32> -> vector<232x128xf32>
    %c0_121 = arith.constant 0 : index
    %c0_122 = arith.constant 0 : index
    %97 = vector.load %arg19[%c0_121, %c0_122] : memref<232x128xf32, #tpu.memory_space<vmem>>, vector<232x128xf32>
    %98 = arith.addf %97, %96 : vector<232x128xf32>
    %c0_123 = arith.constant 0 : index
    %c0_124 = arith.constant 0 : index
    %99 = vector.load %arg19[%c0_123, %c0_124] : memref<232x128xf32, #tpu.memory_space<vmem>>, vector<232x128xf32>
    tpu.vector_store %arg19[%c0_123, %c0_124], %98 {strides = array<i32>} : memref<232x128xf32, #tpu.memory_space<vmem>>, vector<232x128xf32>,
    %c0_125 = arith.constant 0 : index
    %c34 = arith.constant 34 : index
    %c0_126 = arith.constant 0 : index
    %100 = vector.load %arg3[%c0_125, %c34, %c0_126] : memref<1x272x8xbf16, #tpu.memory_space<vmem>>, vector<1x232x8xbf16>
    %101 = vector.shape_cast %100 : vector<1x232x8xbf16> to vector<232x8xbf16>
    %c0_127 = arith.constant 0 : index
    %c8 = arith.constant 8 : index
    %c0_128 = arith.constant 0 : index
    %c0_129 = arith.constant 0 : index
    %102 = vector.load %arg7[%c0_127, %c8, %c0_128, %c0_129] : memref<1x9x8x128xbf16, #tpu.memory_space<vmem>>, vector<1x1x8x128xbf16>
    %103 = vector.shape_cast %102 : vector<1x1x8x128xbf16> to vector<8x128xbf16>
    %cst_130 = arith.constant dense<0.000000e+00> : vector<232x128xf32>
    %104 = tpu.matmul %101, %103, %cst_130 {dimension_numbers = #tpu.dot_dimension_numbers<[1], [0], [0], [1], [0, 0, 1, 1], [], []>} : vector<232x8xbf16>, vector<8x128xbf16>, vector<232x128xf32> -> vector<232x128xf32>
    %c0_131 = arith.constant 0 : index
    %c0_132 = arith.constant 0 : index
    %105 = vector.load %arg19[%c0_131, %c0_132] : memref<232x128xf32, #tpu.memory_space<vmem>>, vector<232x128xf32>
    %106 = arith.addf %105, %104 : vector<232x128xf32>
    %c0_133 = arith.constant 0 : index
    %c0_134 = arith.constant 0 : index
    %107 = vector.load %arg19[%c0_133, %c0_134] : memref<232x128xf32, #tpu.memory_space<vmem>>, vector<232x128xf32>
    tpu.vector_store %arg19[%c0_133, %c0_134], %106 {strides = array<i32>} : memref<232x128xf32, #tpu.memory_space<vmem>>, vector<232x128xf32>,
    %c0_135 = arith.constant 0 : index
    %c0_136 = arith.constant 0 : index
    %108 = vector.load %arg19[%c0_135, %c0_136] : memref<232x128xf32, #tpu.memory_space<vmem>>, vector<232x128xf32>
    %109 = vector.broadcast %5 : vector<1x128xf32> to vector<232x128xf32>
    %110 = arith.mulf %108, %109 : vector<232x128xf32>
    %111 = vector.broadcast %7 : vector<1x128xf32> to vector<232x128xf32>
    %112 = arith.addf %110, %111 : vector<232x128xf32>
    %cst_137 = arith.constant 0.000000e+00 : f32
    %113 = vector.broadcast %cst_137 : f32 to vector<232x128xf32>
    %114 = arith.maximumf %112, %113 : vector<232x128xf32>
    %c0_138 = arith.constant 0 : index
    %c0_139 = arith.constant 0 : index
    %115 = vector.load %arg19[%c0_138, %c0_139] : memref<232x128xf32, #tpu.memory_space<vmem>>, vector<232x128xf32>
    tpu.vector_store %arg19[%c0_138, %c0_139], %114 {strides = array<i32>} : memref<232x128xf32, #tpu.memory_space<vmem>>, vector<232x128xf32>,
    %c0_140 = arith.constant 0 : index
    %c0_141 = arith.constant 0 : index
    %116 = vector.load %arg19[%c0_140, %c0_141] : memref<232x128xf32, #tpu.memory_space<vmem>>, vector<168x128xf32>
    %117 = vector.extract_strided_slice %116 {offsets = [0, 0], sizes = [160, 128], strides = [1, 1]} : vector<168x128xf32> to vector<160x128xf32>
    %118 = vector.extract_strided_slice %17 {offsets = [0, 0], sizes = [1, 128], strides = [1, 1]} : vector<25x128xf32> to vector<1x128xf32>
    %119 = vector.broadcast %118 : vector<1x128xf32> to vector<160x128xf32>
    %120 = arith.mulf %117, %119 : vector<160x128xf32>
    %121 = vector.extract_strided_slice %116 {offsets = [1, 0], sizes = [160, 128], strides = [1, 1]} : vector<168x128xf32> to vector<160x128xf32>
    %122 = vector.extract_strided_slice %17 {offsets = [1, 0], sizes = [1, 128], strides = [1, 1]} : vector<25x128xf32> to vector<1x128xf32>
    %123 = vector.broadcast %122 : vector<1x128xf32> to vector<160x128xf32>
    %124 = arith.mulf %121, %123 : vector<160x128xf32>
    %125 = arith.addf %120, %124 : vector<160x128xf32>
    %126 = vector.extract_strided_slice %116 {offsets = [2, 0], sizes = [160, 128], strides = [1, 1]} : vector<168x128xf32> to vector<160x128xf32>
    %127 = vector.extract_strided_slice %17 {offsets = [2, 0], sizes = [1, 128], strides = [1, 1]} : vector<25x128xf32> to vector<1x128xf32>
    %128 = vector.broadcast %127 : vector<1x128xf32> to vector<160x128xf32>
    %129 = arith.mulf %126, %128 : vector<160x128xf32>
    %130 = arith.addf %125, %129 : vector<160x128xf32>
    %131 = vector.extract_strided_slice %116 {offsets = [3, 0], sizes = [160, 128], strides = [1, 1]} : vector<168x128xf32> to vector<160x128xf32>
    %132 = vector.extract_strided_slice %17 {offsets = [3, 0], sizes = [1, 128], strides = [1, 1]} : vector<25x128xf32> to vector<1x128xf32>
    %133 = vector.broadcast %132 : vector<1x128xf32> to vector<160x128xf32>
    %134 = arith.mulf %131, %133 : vector<160x128xf32>
    %135 = arith.addf %130, %134 : vector<160x128xf32>
    %136 = vector.extract_strided_slice %116 {offsets = [4, 0], sizes = [160, 128], strides = [1, 1]} : vector<168x128xf32> to vector<160x128xf32>
    %137 = vector.extract_strided_slice %17 {offsets = [4, 0], sizes = [1, 128], strides = [1, 1]} : vector<25x128xf32> to vector<1x128xf32>
    %138 = vector.broadcast %137 : vector<1x128xf32> to vector<160x128xf32>
    %139 = arith.mulf %136, %138 : vector<160x128xf32>
    %140 = arith.addf %135, %139 : vector<160x128xf32>
    %c0_142 = arith.constant 0 : index
    %c0_143 = arith.constant 0 : index
    %141 = vector.load %arg20[%c0_142, %c0_143] : memref<160x128xf32, #tpu.memory_space<vmem>>, vector<160x128xf32>
    tpu.vector_store %arg20[%c0_142, %c0_143], %140 {strides = array<i32>} : memref<160x128xf32, #tpu.memory_space<vmem>>, vector<160x128xf32>,
    %c16_144 = arith.constant 16 : index
    %c0_145 = arith.constant 0 : index
    %142 = vector.load %arg19[%c16_144, %c0_145] : memref<232x128xf32, #tpu.memory_space<vmem>>, vector<168x128xf32>
    %143 = vector.extract_strided_slice %142 {offsets = [0, 0], sizes = [160, 128], strides = [1, 1]} : vector<168x128xf32> to vector<160x128xf32>
    %144 = vector.extract_strided_slice %17 {offsets = [5, 0], sizes = [1, 128], strides = [1, 1]} : vector<25x128xf32> to vector<1x128xf32>
    %145 = vector.broadcast %144 : vector<1x128xf32> to vector<160x128xf32>
    %146 = arith.mulf %143, %145 : vector<160x128xf32>
    %147 = vector.extract_strided_slice %142 {offsets = [1, 0], sizes = [160, 128], strides = [1, 1]} : vector<168x128xf32> to vector<160x128xf32>
    %148 = vector.extract_strided_slice %17 {offsets = [6, 0], sizes = [1, 128], strides = [1, 1]} : vector<25x128xf32> to vector<1x128xf32>
    %149 = vector.broadcast %148 : vector<1x128xf32> to vector<160x128xf32>
    %150 = arith.mulf %147, %149 : vector<160x128xf32>
    %151 = arith.addf %146, %150 : vector<160x128xf32>
    %152 = vector.extract_strided_slice %142 {offsets = [2, 0], sizes = [160, 128], strides = [1, 1]} : vector<168x128xf32> to vector<160x128xf32>
    %153 = vector.extract_strided_slice %17 {offsets = [7, 0], sizes = [1, 128], strides = [1, 1]} : vector<25x128xf32> to vector<1x128xf32>
    %154 = vector.broadcast %153 : vector<1x128xf32> to vector<160x128xf32>
    %155 = arith.mulf %152, %154 : vector<160x128xf32>
    %156 = arith.addf %151, %155 : vector<160x128xf32>
    %157 = vector.extract_strided_slice %142 {offsets = [3, 0], sizes = [160, 128], strides = [1, 1]} : vector<168x128xf32> to vector<160x128xf32>
    %158 = vector.extract_strided_slice %17 {offsets = [8, 0], sizes = [1, 128], strides = [1, 1]} : vector<25x128xf32> to vector<1x128xf32>
    %159 = vector.broadcast %158 : vector<1x128xf32> to vector<160x128xf32>
    %160 = arith.mulf %157, %159 : vector<160x128xf32>
    %161 = arith.addf %156, %160 : vector<160x128xf32>
    %162 = vector.extract_strided_slice %142 {offsets = [4, 0], sizes = [160, 128], strides = [1, 1]} : vector<168x128xf32> to vector<160x128xf32>
    %163 = vector.extract_strided_slice %17 {offsets = [9, 0], sizes = [1, 128], strides = [1, 1]} : vector<25x128xf32> to vector<1x128xf32>
    %164 = vector.broadcast %163 : vector<1x128xf32> to vector<160x128xf32>
    %165 = arith.mulf %162, %164 : vector<160x128xf32>
    %166 = arith.addf %161, %165 : vector<160x128xf32>
    %c0_146 = arith.constant 0 : index
    %c0_147 = arith.constant 0 : index
    %167 = vector.load %arg20[%c0_146, %c0_147] : memref<160x128xf32, #tpu.memory_space<vmem>>, vector<160x128xf32>
    %168 = arith.addf %167, %166 : vector<160x128xf32>
    %c0_148 = arith.constant 0 : index
    %c0_149 = arith.constant 0 : index
    %169 = vector.load %arg20[%c0_148, %c0_149] : memref<160x128xf32, #tpu.memory_space<vmem>>, vector<160x128xf32>
    tpu.vector_store %arg20[%c0_148, %c0_149], %168 {strides = array<i32>} : memref<160x128xf32, #tpu.memory_space<vmem>>, vector<160x128xf32>,
    %c32_150 = arith.constant 32 : index
    %c0_151 = arith.constant 0 : index
    %170 = vector.load %arg19[%c32_150, %c0_151] : memref<232x128xf32, #tpu.memory_space<vmem>>, vector<168x128xf32>
    %171 = vector.extract_strided_slice %170 {offsets = [0, 0], sizes = [160, 128], strides = [1, 1]} : vector<168x128xf32> to vector<160x128xf32>
    %172 = vector.extract_strided_slice %17 {offsets = [10, 0], sizes = [1, 128], strides = [1, 1]} : vector<25x128xf32> to vector<1x128xf32>
    %173 = vector.broadcast %172 : vector<1x128xf32> to vector<160x128xf32>
    %174 = arith.mulf %171, %173 : vector<160x128xf32>
    %175 = vector.extract_strided_slice %170 {offsets = [1, 0], sizes = [160, 128], strides = [1, 1]} : vector<168x128xf32> to vector<160x128xf32>
    %176 = vector.extract_strided_slice %17 {offsets = [11, 0], sizes = [1, 128], strides = [1, 1]} : vector<25x128xf32> to vector<1x128xf32>
    %177 = vector.broadcast %176 : vector<1x128xf32> to vector<160x128xf32>
    %178 = arith.mulf %175, %177 : vector<160x128xf32>
    %179 = arith.addf %174, %178 : vector<160x128xf32>
    %180 = vector.extract_strided_slice %170 {offsets = [2, 0], sizes = [160, 128], strides = [1, 1]} : vector<168x128xf32> to vector<160x128xf32>
    %181 = vector.extract_strided_slice %17 {offsets = [12, 0], sizes = [1, 128], strides = [1, 1]} : vector<25x128xf32> to vector<1x128xf32>
    %182 = vector.broadcast %181 : vector<1x128xf32> to vector<160x128xf32>
    %183 = arith.mulf %180, %182 : vector<160x128xf32>
    %184 = arith.addf %179, %183 : vector<160x128xf32>
    %185 = vector.extract_strided_slice %170 {offsets = [3, 0], sizes = [160, 128], strides = [1, 1]} : vector<168x128xf32> to vector<160x128xf32>
    %186 = vector.extract_strided_slice %17 {offsets = [13, 0], sizes = [1, 128], strides = [1, 1]} : vector<25x128xf32> to vector<1x128xf32>
    %187 = vector.broadcast %186 : vector<1x128xf32> to vector<160x128xf32>
    %188 = arith.mulf %185, %187 : vector<160x128xf32>
    %189 = arith.addf %184, %188 : vector<160x128xf32>
    %190 = vector.extract_strided_slice %170 {offsets = [4, 0], sizes = [160, 128], strides = [1, 1]} : vector<168x128xf32> to vector<160x128xf32>
    %191 = vector.extract_strided_slice %17 {offsets = [14, 0], sizes = [1, 128], strides = [1, 1]} : vector<25x128xf32> to vector<1x128xf32>
    %192 = vector.broadcast %191 : vector<1x128xf32> to vector<160x128xf32>
    %193 = arith.mulf %190, %192 : vector<160x128xf32>
    %194 = arith.addf %189, %193 : vector<160x128xf32>
    %c0_152 = arith.constant 0 : index
    %c0_153 = arith.constant 0 : index
    %195 = vector.load %arg20[%c0_152, %c0_153] : memref<160x128xf32, #tpu.memory_space<vmem>>, vector<160x128xf32>
    %196 = arith.addf %195, %194 : vector<160x128xf32>
    %c0_154 = arith.constant 0 : index
    %c0_155 = arith.constant 0 : index
    %197 = vector.load %arg20[%c0_154, %c0_155] : memref<160x128xf32, #tpu.memory_space<vmem>>, vector<160x128xf32>
    tpu.vector_store %arg20[%c0_154, %c0_155], %196 {strides = array<i32>} : memref<160x128xf32, #tpu.memory_space<vmem>>, vector<160x128xf32>,
    %c48 = arith.constant 48 : index
    %c0_156 = arith.constant 0 : index
    %198 = vector.load %arg19[%c48, %c0_156] : memref<232x128xf32, #tpu.memory_space<vmem>>, vector<168x128xf32>
    %199 = vector.extract_strided_slice %198 {offsets = [0, 0], sizes = [160, 128], strides = [1, 1]} : vector<168x128xf32> to vector<160x128xf32>
    %200 = vector.extract_strided_slice %17 {offsets = [15, 0], sizes = [1, 128], strides = [1, 1]} : vector<25x128xf32> to vector<1x128xf32>
    %201 = vector.broadcast %200 : vector<1x128xf32> to vector<160x128xf32>
    %202 = arith.mulf %199, %201 : vector<160x128xf32>
    %203 = vector.extract_strided_slice %198 {offsets = [1, 0], sizes = [160, 128], strides = [1, 1]} : vector<168x128xf32> to vector<160x128xf32>
    %204 = vector.extract_strided_slice %17 {offsets = [16, 0], sizes = [1, 128], strides = [1, 1]} : vector<25x128xf32> to vector<1x128xf32>
    %205 = vector.broadcast %204 : vector<1x128xf32> to vector<160x128xf32>
    %206 = arith.mulf %203, %205 : vector<160x128xf32>
    %207 = arith.addf %202, %206 : vector<160x128xf32>
    %208 = vector.extract_strided_slice %198 {offsets = [2, 0], sizes = [160, 128], strides = [1, 1]} : vector<168x128xf32> to vector<160x128xf32>
    %209 = vector.extract_strided_slice %17 {offsets = [17, 0], sizes = [1, 128], strides = [1, 1]} : vector<25x128xf32> to vector<1x128xf32>
    %210 = vector.broadcast %209 : vector<1x128xf32> to vector<160x128xf32>
    %211 = arith.mulf %208, %210 : vector<160x128xf32>
    %212 = arith.addf %207, %211 : vector<160x128xf32>
    %213 = vector.extract_strided_slice %198 {offsets = [3, 0], sizes = [160, 128], strides = [1, 1]} : vector<168x128xf32> to vector<160x128xf32>
    %214 = vector.extract_strided_slice %17 {offsets = [18, 0], sizes = [1, 128], strides = [1, 1]} : vector<25x128xf32> to vector<1x128xf32>
    %215 = vector.broadcast %214 : vector<1x128xf32> to vector<160x128xf32>
    %216 = arith.mulf %213, %215 : vector<160x128xf32>
    %217 = arith.addf %212, %216 : vector<160x128xf32>
    %218 = vector.extract_strided_slice %198 {offsets = [4, 0], sizes = [160, 128], strides = [1, 1]} : vector<168x128xf32> to vector<160x128xf32>
    %219 = vector.extract_strided_slice %17 {offsets = [19, 0], sizes = [1, 128], strides = [1, 1]} : vector<25x128xf32> to vector<1x128xf32>
    %220 = vector.broadcast %219 : vector<1x128xf32> to vector<160x128xf32>
    %221 = arith.mulf %218, %220 : vector<160x128xf32>
    %222 = arith.addf %217, %221 : vector<160x128xf32>
    %c0_157 = arith.constant 0 : index
    %c0_158 = arith.constant 0 : index
    %223 = vector.load %arg20[%c0_157, %c0_158] : memref<160x128xf32, #tpu.memory_space<vmem>>, vector<160x128xf32>
    %224 = arith.addf %223, %222 : vector<160x128xf32>
    %c0_159 = arith.constant 0 : index
    %c0_160 = arith.constant 0 : index
    %225 = vector.load %arg20[%c0_159, %c0_160] : memref<160x128xf32, #tpu.memory_space<vmem>>, vector<160x128xf32>
    tpu.vector_store %arg20[%c0_159, %c0_160], %224 {strides = array<i32>} : memref<160x128xf32, #tpu.memory_space<vmem>>, vector<160x128xf32>,
    %c64 = arith.constant 64 : index
    %c0_161 = arith.constant 0 : index
    %226 = vector.load %arg19[%c64, %c0_161] : memref<232x128xf32, #tpu.memory_space<vmem>>, vector<168x128xf32>
    %227 = vector.extract_strided_slice %226 {offsets = [0, 0], sizes = [160, 128], strides = [1, 1]} : vector<168x128xf32> to vector<160x128xf32>
    %228 = vector.extract_strided_slice %17 {offsets = [20, 0], sizes = [1, 128], strides = [1, 1]} : vector<25x128xf32> to vector<1x128xf32>
    %229 = vector.broadcast %228 : vector<1x128xf32> to vector<160x128xf32>
    %230 = arith.mulf %227, %229 : vector<160x128xf32>
    %231 = vector.extract_strided_slice %226 {offsets = [1, 0], sizes = [160, 128], strides = [1, 1]} : vector<168x128xf32> to vector<160x128xf32>
    %232 = vector.extract_strided_slice %17 {offsets = [21, 0], sizes = [1, 128], strides = [1, 1]} : vector<25x128xf32> to vector<1x128xf32>
    %233 = vector.broadcast %232 : vector<1x128xf32> to vector<160x128xf32>
    %234 = arith.mulf %231, %233 : vector<160x128xf32>
    %235 = arith.addf %230, %234 : vector<160x128xf32>
    %236 = vector.extract_strided_slice %226 {offsets = [2, 0], sizes = [160, 128], strides = [1, 1]} : vector<168x128xf32> to vector<160x128xf32>
    %237 = vector.extract_strided_slice %17 {offsets = [22, 0], sizes = [1, 128], strides = [1, 1]} : vector<25x128xf32> to vector<1x128xf32>
    %238 = vector.broadcast %237 : vector<1x128xf32> to vector<160x128xf32>
    %239 = arith.mulf %236, %238 : vector<160x128xf32>
    %240 = arith.addf %235, %239 : vector<160x128xf32>
    %241 = vector.extract_strided_slice %226 {offsets = [3, 0], sizes = [160, 128], strides = [1, 1]} : vector<168x128xf32> to vector<160x128xf32>
    %242 = vector.extract_strided_slice %17 {offsets = [23, 0], sizes = [1, 128], strides = [1, 1]} : vector<25x128xf32> to vector<1x128xf32>
    %243 = vector.broadcast %242 : vector<1x128xf32> to vector<160x128xf32>
    %244 = arith.mulf %241, %243 : vector<160x128xf32>
    %245 = arith.addf %240, %244 : vector<160x128xf32>
    %246 = vector.extract_strided_slice %226 {offsets = [4, 0], sizes = [160, 128], strides = [1, 1]} : vector<168x128xf32> to vector<160x128xf32>
    %247 = vector.extract_strided_slice %17 {offsets = [24, 0], sizes = [1, 128], strides = [1, 1]} : vector<25x128xf32> to vector<1x128xf32>
    %248 = vector.broadcast %247 : vector<1x128xf32> to vector<160x128xf32>
    %249 = arith.mulf %246, %248 : vector<160x128xf32>
    %250 = arith.addf %245, %249 : vector<160x128xf32>
    %c0_162 = arith.constant 0 : index
    %c0_163 = arith.constant 0 : index
    %251 = vector.load %arg20[%c0_162, %c0_163] : memref<160x128xf32, #tpu.memory_space<vmem>>, vector<160x128xf32>
    %252 = arith.addf %251, %250 : vector<160x128xf32>
    %c0_164 = arith.constant 0 : index
    %c0_165 = arith.constant 0 : index
    %253 = vector.load %arg20[%c0_164, %c0_165] : memref<160x128xf32, #tpu.memory_space<vmem>>, vector<160x128xf32>
    tpu.vector_store %arg20[%c0_164, %c0_165], %252 {strides = array<i32>} : memref<160x128xf32, #tpu.memory_space<vmem>>, vector<160x128xf32>,
    %c0_166 = arith.constant 0 : index
    %c0_167 = arith.constant 0 : index
    %254 = vector.load %arg20[%c0_166, %c0_167] : memref<160x128xf32, #tpu.memory_space<vmem>>, vector<160x128xf32>
    %255 = vector.broadcast %37 : vector<1x128xf32> to vector<160x128xf32>
    %256 = arith.subf %254, %255 : vector<160x128xf32>
    %257 = vector.broadcast %9 : vector<1x128xf32> to vector<160x128xf32>
    %258 = arith.mulf %256, %257 : vector<160x128xf32>
    %259 = vector.broadcast %11 : vector<1x128xf32> to vector<160x128xf32>
    %260 = arith.addf %258, %259 : vector<160x128xf32>
    %cst_168 = arith.constant 0.000000e+00 : f32
    %261 = vector.broadcast %cst_168 : f32 to vector<160x128xf32>
    %262 = arith.maximumf %260, %261 : vector<160x128xf32>
    %263 = arith.truncf %262 : vector<160x128xf32> to vector<160x128xbf16>
    %cst_169 = arith.constant dense<0.000000e+00> : vector<160x128xf32>
    %264 = tpu.matmul %263, %19, %cst_169 {dimension_numbers = #tpu.dot_dimension_numbers<[1], [0], [0], [1], [0, 0, 1, 1], [], []>} : vector<160x128xbf16>, vector<128x128xbf16>, vector<160x128xf32> -> vector<160x128xf32>
    %265 = vector.broadcast %13 : vector<1x128xf32> to vector<160x128xf32>
    %266 = arith.mulf %264, %265 : vector<160x128xf32>
    %267 = vector.broadcast %15 : vector<1x128xf32> to vector<160x128xf32>
    %268 = arith.addf %266, %267 : vector<160x128xf32>
    %cst_170 = arith.constant 0.000000e+00 : f32
    %269 = vector.broadcast %cst_170 : f32 to vector<160x128xf32>
    %270 = arith.maximumf %268, %269 : vector<160x128xf32>
    %271 = arith.truncf %270 : vector<160x128xf32> to vector<160x128xbf16>
    %cst_171 = arith.constant dense<0.000000e+00> : vector<160x128xf32>
    %272 = tpu.matmul %271, %21, %cst_171 {dimension_numbers = #tpu.dot_dimension_numbers<[1], [0], [0], [1], [0, 0, 1, 1], [], []>} : vector<160x128xbf16>, vector<128x128xbf16>, vector<160x128xf32> -> vector<160x128xf32>
    %273 = vector.broadcast %23 : vector<1x128xf32> to vector<160x128xf32>
    %274 = arith.addf %272, %273 : vector<160x128xf32>
    %c0_172 = arith.constant 0 : index
    %c0_173 = arith.constant 0 : index
    %c0_174 = arith.constant 0 : index
    %c0_175 = arith.constant 0 : index
    %275 = vector.load %arg18[%c0_172, %c0_173, %c0_174, %c0_175] : memref<1x1x160x128xf32, #tpu.memory_space<vmem>>, vector<1x1x160x128xf32>
    %276 = vector.shape_cast %275 : vector<1x1x160x128xf32> to vector<160x128xf32>
    %277 = vector.shape_cast %274 : vector<160x128xf32> to vector<1x1x160x128xf32>
    tpu.vector_store %arg18[%c0_172, %c0_173, %c0_174, %c0_175], %277 {strides = array<i32>} : memref<1x1x160x128xf32, #tpu.memory_space<vmem>>, vector<1x1x160x128xf32>,
    return
  }
  func.func @transform_0(%arg0: i32, %arg1: i32) -> (i32, i32, i32) {
    %c0_i32 = arith.constant 0 : i32
    %c0_i32_0 = arith.constant 0 : i32
    %c0_i32_1 = arith.constant 0 : i32
    return %arg1, %c0_i32, %c0_i32_0 : i32, i32, i32
  }
  func.func @transform_1(%arg0: i32, %arg1: i32) -> (i32, i32, i32) {
    %c0_i32 = arith.constant 0 : i32
    %c0_i32_0 = arith.constant 0 : i32
    %c0_i32_1 = arith.constant 0 : i32
    return %arg1, %c0_i32, %c0_i32_0 : i32, i32, i32
  }
  func.func @transform_2(%arg0: i32, %arg1: i32) -> (i32, i32, i32) {
    %c0_i32 = arith.constant 0 : i32
    %c0_i32_0 = arith.constant 0 : i32
    %c0_i32_1 = arith.constant 0 : i32
    return %arg0, %c0_i32, %c0_i32_0 : i32, i32, i32
  }
  func.func @transform_3(%arg0: i32, %arg1: i32) -> (i32, i32, i32) {
    %c0_i32 = arith.constant 0 : i32
    %c0_i32_0 = arith.constant 0 : i32
    %c0_i32_1 = arith.constant 0 : i32
    return %arg0, %c0_i32, %c0_i32_0 : i32, i32, i32
  }
  func.func @transform_4(%arg0: i32, %arg1: i32) -> (i32, i32, i32) {
    %c0_i32 = arith.constant 0 : i32
    %c0_i32_0 = arith.constant 0 : i32
    %c0_i32_1 = arith.constant 0 : i32
    return %arg0, %c0_i32, %c0_i32_0 : i32, i32, i32
  }
  func.func @transform_5(%arg0: i32, %arg1: i32) -> (i32, i32, i32, i32) {
    %c0_i32 = arith.constant 0 : i32
    %c0_i32_0 = arith.constant 0 : i32
    %c0_i32_1 = arith.constant 0 : i32
    %c0_i32_2 = arith.constant 0 : i32
    return %arg0, %c0_i32, %c0_i32_0, %c0_i32_1 : i32, i32, i32, i32
  }
  func.func @transform_6(%arg0: i32, %arg1: i32) -> (i32, i32, i32) {
    %c0_i32 = arith.constant 0 : i32
    %c0_i32_0 = arith.constant 0 : i32
    %c0_i32_1 = arith.constant 0 : i32
    return %arg0, %c0_i32, %c0_i32_0 : i32, i32, i32
  }
  func.func @transform_7(%arg0: i32, %arg1: i32) -> (i32, i32, i32) {
    %c0_i32 = arith.constant 0 : i32
    %c0_i32_0 = arith.constant 0 : i32
    %c0_i32_1 = arith.constant 0 : i32
    return %arg0, %c0_i32, %c0_i32_0 : i32, i32, i32
  }
  func.func @transform_8(%arg0: i32, %arg1: i32) -> (i32, i32, i32) {
    %c0_i32 = arith.constant 0 : i32
    %c0_i32_0 = arith.constant 0 : i32
    %c0_i32_1 = arith.constant 0 : i32
    return %arg0, %c0_i32, %c0_i32_0 : i32, i32, i32
  }
  func.func @transform_9(%arg0: i32, %arg1: i32) -> (i32, i32, i32) {
    %c0_i32 = arith.constant 0 : i32
    %c0_i32_0 = arith.constant 0 : i32
    %c0_i32_1 = arith.constant 0 : i32
    return %arg0, %c0_i32, %c0_i32_0 : i32, i32, i32
  }
  func.func @transform_10(%arg0: i32, %arg1: i32) -> (i32, i32, i32) {
    %c0_i32 = arith.constant 0 : i32
    %c0_i32_0 = arith.constant 0 : i32
    %c0_i32_1 = arith.constant 0 : i32
    return %arg0, %c0_i32, %c0_i32_0 : i32, i32, i32
  }
  func.func @transform_11(%arg0: i32, %arg1: i32) -> (i32, i32, i32) {
    %c0_i32 = arith.constant 0 : i32
    %c0_i32_0 = arith.constant 0 : i32
    %c0_i32_1 = arith.constant 0 : i32
    return %arg0, %c0_i32, %c0_i32_0 : i32, i32, i32
  }
  func.func @transform_12(%arg0: i32, %arg1: i32) -> (i32, i32, i32) {
    %c0_i32 = arith.constant 0 : i32
    %c0_i32_0 = arith.constant 0 : i32
    %c0_i32_1 = arith.constant 0 : i32
    return %arg0, %c0_i32, %c0_i32_0 : i32, i32, i32
  }
  func.func @transform_13(%arg0: i32, %arg1: i32) -> (i32, i32, i32) {
    %c0_i32 = arith.constant 0 : i32
    %c0_i32_0 = arith.constant 0 : i32
    %c0_i32_1 = arith.constant 0 : i32
    return %arg0, %c0_i32, %c0_i32_0 : i32, i32, i32
  }
  func.func @transform_14(%arg0: i32, %arg1: i32) -> (i32, i32, i32) {
    %c0_i32 = arith.constant 0 : i32
    %c0_i32_0 = arith.constant 0 : i32
    %c0_i32_1 = arith.constant 0 : i32
    return %arg0, %c0_i32, %c0_i32_0 : i32, i32, i32
  }
  func.func @transform_15(%arg0: i32, %arg1: i32) -> (i32, i32, i32) {
    %c0_i32 = arith.constant 0 : i32
    %c0_i32_0 = arith.constant 0 : i32
    %c0_i32_1 = arith.constant 0 : i32
    return %arg0, %c0_i32, %c0_i32_0 : i32, i32, i32
  }
  func.func @transform_16(%arg0: i32, %arg1: i32) -> (i32, i32, i32, i32) {
    %c0_i32 = arith.constant 0 : i32
    %c0_i32_0 = arith.constant 0 : i32
    %c0_i32_1 = arith.constant 0 : i32
    return %arg0, %arg1, %c0_i32, %c0_i32_0 : i32, i32, i32, i32
  }
}

</mosaic_0001>

<bundles_post_ra>
// kernel: tpu_custom_call.1
= control target key start
LH: loop header
LB: loop body
LE: loop exit
PB: predicated region body
PF: predicated region fallthrough
CT: control target
= control target key end

     0   :  { %s15076_s0 = inlined_call_operand.vmem [shape: bf16[2,25,72], index: 0, kind: input, shape index: {}]   ;;  %s15077_s1 = inlined_call_operand.vmem [shape: bf16[2,272,8], index: 1, kind: input, shape index: {}]   ;;  %s15078_s2 = inlined_call_operand.vmem [shape: bf16[2,72,128], index: 2, kind: input, shape index: {}]   ;;  %s15079_s3 = inlined_call_operand.vmem [shape: f32[2,1,128], index: 3, kind: input, shape index: {}]   ;;  %s15080_s4 = inlined_call_operand.vmem [shape: f32[2,1,128], index: 4, kind: input, shape index: {}]   ;;  %s15081_s5 = inlined_call_operand.vmem [shape: bf16[2,9,8,128], index: 5, kind: input, shape index: {}]   ;;  %s15082_s6 = inlined_call_operand.vmem [shape: f32[2,1,128], index: 6, kind: input, shape index: {}]   ;;  %s15083_s7 = inlined_call_operand.vmem [shape: f32[2,1,128], index: 7, kind: input, shape index: {}]   ;;  %s15084_s8 = inlined_call_operand.vmem [shape: f32[2,25,128], index: 8, kind: input, shape index: {}]   ;;  %s15085_s9 = inlined_call_operand.vmem [shape: f32[2,1,128], index: 9, kind: input, shape index: {}]   ;;  %s15086_s10 = inlined_call_operand.vmem [shape: f32[2,1,128], index: 10, kind: input, shape index: {}]   ;;  %s15087_s11 = inlined_call_operand.vmem [shape: bf16[2,128,128], index: 11, kind: input, shape index: {}]   ;;  %s15088_s12 = inlined_call_operand.vmem [shape: f32[2,1,128], index: 12, kind: input, shape index: {}]   ;;  %s15089_s13 = inlined_call_operand.vmem [shape: f32[2,1,128], index: 13, kind: input, shape index: {}]   ;;  %s15090_s14 = inlined_call_operand.vmem [shape: bf16[2,128,128], index: 14, kind: input, shape index: {}]   ;;  %s15091_s15 = inlined_call_operand.vmem [shape: f32[2,1,128], index: 15, kind: input, shape index: {}]   ;;  %s15092_s16 = inlined_call_operand.hbm [shape: f32[2,2,160,128], index: 16, kind: output, shape index: {}]  }
   0x1   :  { %15486 = sst [smem:[#allocation72_spill]] %s15076_s0 }
   0x2   :  { %15487 = sst [smem:[#allocation73_spill]] %s15091_s15 }
   0x3   :  { %15488 = sst [smem:[#allocation74_spill]] %s15092_s16 }
   0x4   :  { %21 = vsyncpa [#allocation5], 0 }
   0x5   :  { %23 = vsyncpa [#allocation5 + $0x1], 0  ;;  %s10937_s21 = smov 0   ;;  %s10939_s22 = smov 0  }
   0x6   :  { %s10941_s23 = smov 0   ;;  %s10943_s24 = smov 0  }
   0x7   :  { %s10945_s25 = smov 0   ;;  %s10947_s26 = smov 0  }
   0x8   :  { %s10949_s27 = smov 0   ;;  %s10951_s28 = smov 0  }
   0x9 LB: > { %15489 = sst [smem:[#allocation7_spill]] %s10817_s21  ;;  %s8882_s29 = sadd.s32 4294967295, %s10845_s28   ;;  %s10845_s28 = sphi %s10951_s28, %s29_s28   ;;  %s10841_s27 = sphi %s10949_s27, %s16053_s27   ;;  %s10837_s26 = sphi %s10947_s26, %s16052_s26   ;;  %s10833_s25 = sphi %s10945_s25, %s16051_s25   ;;  %s10829_s24 = sphi %s10943_s24, %s16050_s24   ;;  %s10825_s23 = sphi %s10941_s23, %s16049_s23   ;;  %s10821_s22 = sphi %s10939_s22, %s16055_s22   ;;  %s10817_s21 = sphi %s10937_s21, %s16054_s21  }
   0xa   : > { %15490 = sst [smem:[#allocation8_spill]] %s10825_s23  ;;  %s8883_s30 = sadd.s32 4294967294, %s10845_s28  }
   0xb   : > { %15491 = sst [smem:[#allocation9_spill]] %s10837_s26  ;;  %s38_s0 = sadd.s32 1, %s10837_s26 }
   0xc   : > { %15492 = sst [smem:[#allocation10_spill]] %s10841_s27  ;;  %p39_p0 = scmp.ge.s32.totalorder %s38_s0, 2 }
   0xd   : > { %15493 = sst [smem:[#allocation11_spill]] %s10845_s28  ;;  %s41_s17 = sadd.s32 1, %s10841_s27 }
   0xe   : > { %p476_p1 = scmp.ne.s32.totalorder %s10825_s23, %s10821_s22  ;;  %p477_p2 = scmp.eq.s32.totalorder %s8882_s29, 3 }
   0xf   : > { %s16057_s0 = smov (%p39_p0, %s38_s0), 0  ;;  %s16059_s17 = smov (!%p39_p0, %s41_s17), %s10841_s27 }
  0x10   : > { %15494 = sst [smem:[#allocation12_spill]] %s16057_s0  ;;  %s462_s18 = ssub.s32 %s10837_s26, %s16057_s0 }
  0x11   : > { %p10988_p3 = por %p477_p2, %p476_p1  ;;  %p43_p4 = scmp.ge.s32.totalorder %s16059_s17, 2 }
  0x12   : > { %p482_p5 = scmp.ne.s32.totalorder %s10821_s22, %s10817_s21  ;;  %p483_p6 = scmp.eq.s32.totalorder %s8883_s30, 3 }
  0x13   : > { %p8886_p7 = scmp.ge.s32.totalorder %s10845_s28, 1  ;;  %s16061_s17 = smov (%p43_p4, %s16059_s17), 0 }
  0x14   : > { %15496 = sst [smem:[#allocation13_spill]] %s16061_s17  ;;  %p10997_p8 = por %p483_p6, %p482_p5 }
  0x15   : > { %p611_p9 = scmp.lt.s32.totalorder %s10845_s28, 5  ;;  %s461_s29 = ssub.s32 %s10841_s27, %s16061_s17 }
  0x16   : > { %s15497_s20 = scalar_select %p10997_p8, 1, 0 }
  0x17   : > { %s466_s16 = sadd.s32 1, %s10825_s23  ;;  %s463_s15 = sor.u32 %s462_s18, %s461_s29 }
  0x18   : > { %15498 = sst [smem:[#allocation14_spill]] %s15497_s20  ;;  %p612_p10 = pnand %p8886_p7, %p611_p9 }
  0x19   : > { %p464_p11 = scmp.eq.s32.totalorder %s463_s15, 0 }
  0x1a   : > { %615 = sbr.rel (%p612_p10) target bundleno = 1771 (0x6eb), region = 84 }
  0x1b   : > { %s11006_s0 = scalar_select %p464_p11, %s10825_s23, %s466_s16  }
  0x1d   : > { %15499 = sst [smem:[#allocation15_spill]] %s11006_s0 }
  0x21   : > { %p728_p12 = scmp.lt.s32.totalorder %s10833_s25, 1  ;;  %p718_p13 = scmp.lt.s32.totalorder %s10829_s24, 1  ;;  %v10847_v0 = vmov 0.0   ;;  %vm10848_vm0 = vmmov 0   ;;  %vm883_vm1 = vcmask 1043456   ;;  %vm1078_vm3 = vcmask 64512  }
  0x22   : > { %9666 = vmatprep.subr.bf16.mxu1 %v10847_v0  ;;  %9668 = vmatprep.mubr.msk.bf16.mxu1 %vm10848_vm0, %v10847_v0  ;;  %vm1415_vm2 = vsmask.f32 7424  ;;  %s15500_s17 = sld [smem:[#allocation72_spill]]  ;;  %vm876_vm4 = vcmask 588800   ;;  %vm1929_vm5 = vcmask 1046528   ;;  %vm966_vm6 = vcmask 1040384  }
  0x23   : > { %s11014_s30 = scalar_select %p728_p12, %s10833_s25, 1  ;;  %vm5276_vm7 = vcmask 1045504   ;;  %vm5404_vm8 = vcmask 1044480  }
  0x24   : > { %s719_s15 = scalar_select %p718_p13, %s10829_s24, 1 }
  0x25   : > { %s10500_s16 = smul.u32 36, %s11014_s30  ;;  %s9214_s21 = sshll.u32 %s11014_s30, 5 }
  0x26   : > { %s10499_s18 = smul.u32 136, %s719_s15  ;;  %s9213_s26 = sshll.u32 %s719_s15, 4 }
  0x27   : > { %s11021_s27 = scalar_lea.vmem %s15078_s2, %s10500_s16  ;;  %s11026_s23 = scalar_lea.vmem %s15081_s5, %s10500_s16 }
  0x28   : > { %v10578_v1 = vld [vmem:[%s11021_s27] sm:$0xff]   ;;  %s11032_s28 = scalar_lea.vmem %s15077_s1, %s10499_s18  ;;  %v9032_v2 = vld [vmem:[%s11026_s23 + $0x10] sm:$0xf]  ;;  %v10579_v4 = vld [vmem:[%s11021_s27 + $0x8] sm:$0xff]   ;;  %s11045_s20 = scalar_lea.vmem %s15500_s17, %s9213_s26 }
  0x29   : > { %9404 = vmatprep.subr.bf16.mxu0 %v10578_v1  ;;  %v2909_v3 = vsel %vm883_vm1, %v9032_v2, 0  ;;  %v10580_v5 = vld [vmem:[%s11032_s28 + $0x8] sm:$0xff]   ;;  %v10581_v6 = vld [vmem:[%s11032_s28 + $0x10] sm:$0xff]   ;;  %v10584_v13 = vld [vmem:[%s11032_s28 + $0x18] sm:$0xff]   ;;  %s735_s16 = scalar_lea.vmem %s15079_s3, %s11014_s30  ;;  %s738_s26 = scalar_lea.vmem %s15080_s4, %s11014_s30 }
  0x2a   : > { %9405 = vmatpush3.bf16.msra.mxu0 %v10578_v1  ;;  %9667 = vmatpush3.bf16.msra.mxu1 %v2909_v3  ;;  %v2745_v7 = vshrl.u32 %v10580_v5, 16  ;;  %v2747_v8 = vshll.u32 %v10580_v5, 16  ;;  %v9063_v9 = vld [vmem:[%s11026_s23 + $0x14] sm:$0xf]  ;;  %v2752_v11 = vshll.u32 %v10581_v6, 16  ;;  %v10583_v15 = vld [vmem:[%s11021_s27 + $0x18] sm:$0xff]   ;;  %s11791_s29 = scalar_lea.vmem %s15082_s6, %s11014_s30  ;;  %s11800_s0 = scalar_lea.vmem %s15083_s7, %s11014_s30 }
  0x2b   : > { %9406 = vmatprep.subr.bf16.mxu0 %v10579_v4  ;;  %9728 = vmatprep.subr.bf16.mxu1 %v10847_v0  ;;  %v10582_v10 = vld [vmem:[%s11021_s27 + $0x10] sm:$0xff]   ;;  %v2756_v16 = vshrl.u32 %v10581_v6, 16  ;;  %v2760_v18 = vshll.u32 %v10584_v13, 16  ;;  %v10586_v19 = vld [vmem:[%s11045_s20] sm:$0xff]   ;;  %v3332_v20 = vsel %vm883_vm1, %v9063_v9, 0  ;;  %v2764_v27 = vshrl.u32 %v10584_v13, 16  ;;  %s771_s15 = scalar_lea.vmem %s15089_s13, %s11014_s30 }
  0x2c   : > { %v2749_v12 = vrot.slane %v2747_v8, 1  ;;  %v2754_v14 = vrot.slane %v2752_v11, 1  ;;  %v10585_v22 = vld [vmem:[%s11021_s27 + $0x20] ss:$0 sps:$4 sm:$0xff]   ;;  %9414 = vmatprep.mubr.msk.bf16.mxu0 %vm876_vm4, %v10586_v19  ;;  %v10587_v31 = vld [vmem:[%s11045_s20 + $0x8] sm:$0x1f]   ;;  %s11343_s20 = scalar_lea.vmem %s15084_s8, %s9214_s21  ;;  %s12269_s27 = scalar_lea.vmem %s15085_s9, %s11014_s30 }
  0x2d   : > { %v10588_v23 = vld [vmem:[%s11032_s28 + $0x20] sm:$0xff]   ;;  %v2762_v25 = vrot.slane %v2760_v18, 1  ;;  %v885_v26 = vsel %vm883_vm1, %v10585_v22, 0  ;;  %v10590_v35 = vld [vmem:[%s11032_s28 + $0x28] sm:$0xff]   ;;  %v10592_v40 = vld [vmem:[%s11032_s28 + $0x30] sm:$0xff]   ;;  %s16043_s18 = sld [smem:[#allocation73_spill]] }
  0x2e   : > { %9407 = vmatpush3.bf16.msra.mxu0 %v10579_v4  ;;  %v2750_v17 = vor.u32 %v2749_v12, %v2745_v7  ;;  %v2758_v24 = vor.u32 %v2756_v16, %v2754_v14  ;;  %v2768_v28 = vshll.u32 %v10588_v23, 16  ;;  %v1004_v30 = vld [vmem:[%s11026_s23] sm:$0xf]  ;;  %v2772_v37 = vshrl.u32 %v10588_v23, 16  ;;  %v10591_v46 = vld [vmem:[%s11032_s28 + $0x8] sm:$0xff]   ;;  %v10594_v48 = vld [vmem:[%s11032_s28 + $0x38] sm:$0xff]  }
  0x2f   : > { %9408 = vmatprep.subr.bf16.mxu0 %v10582_v10  ;;  %v1125_v32 = vsel %vm883_vm1, %v1004_v30, 0  ;;  %v2766_v33 = vor.u32 %v2764_v27, %v2762_v25  ;;  %v2776_v38 = vshll.u32 %v10590_v35, 16  ;;  %v10589_v39 = vld [vmem:[%s11032_s28] sm:$0xff]   ;;  %v2780_v43 = vshrl.u32 %v10590_v35, 16  ;;  %v10593_v55 = vld [vmem:[%s11032_s28 + $0x10] sm:$0xff]   ;;  %v10595_v62 = vld [vmem:[%s11032_s28 + $0x18] sm:$0xff]  }
  0x30   : > { %v2755_v21 = vsel %vm1415_vm2, %v2750_v17, %v2754_v14  ;;  %v2763_v29 = vsel %vm1415_vm2, %v2758_v24, %v2762_v25  ;;  %v2770_v34 = vrot.slane %v2768_v28, 1  ;;  %v2784_v44 = vshll.u32 %v10592_v40, 16  ;;  %v8939_v50 = vld [vmem:[%s11026_s23 + $0x4] sm:$0xf]  ;;  %v10598_v2 = vld [vmem:[%s11032_s28 + $0x48] sm:$0xff]   ;;  %v10600_v7 = vld [vmem:[%s11032_s28 + $0x50] sm:$0xff]  }
  0x31   : > { %9669 = vmatmul.mubr.msk.bf16.vlgmr.msra.gmra.mrb[0].mxu1 %vm1078_vm3, %v2755_v21  ;;  %v2778_v42 = vrot.slane %v2776_v38, 1  ;;  %v2792_v51 = vshll.u32 %v10594_v48, 16  ;;  %v1581_v52 = vsel %vm883_vm1, %v8939_v50, 0  ;;  %v2788_v54 = vshrl.u32 %v10592_v40, 16  ;;  %v10596_v57 = vld [vmem:[%s11032_s28 + $0x40] sm:$0xff]   ;;  %v10599_v13 = vld [vmem:[%s11032_s28 + $0x28] sm:$0xff]  }
  0x32   : > { %9409 = vmatpush3.bf16.msra.mxu0 %v10582_v10  ;;  %9729 = vmatpush3.bf16.msra.mxu1 %v3332_v20  ;;  %v2771_v36 = vsel %vm1415_vm2, %v2766_v33, %v2770_v34  ;;  %v2774_v41 = vor.u32 %v2772_v37, %v2770_v34  ;;  %v2786_v47 = vrot.slane %v2784_v44, 1  ;;  %v2796_v60 = vshrl.u32 %v10594_v48, 16  ;;  %v10597_v6 = vld [vmem:[%s11032_s28 + $0x20] sm:$0xff]   ;;  %v10601_v20 = vld [vmem:[%s11032_s28 + $0x30] sm:$0xff]   ;;  %v10603_v27 = vld [vmem:[%s11032_s28 + $0x38] sm:$0xff]   ;;  %s10502_s21 = smul.u32 40, %s10833_s25 }
  0x33   : > { %9410 = vmatprep.subr.bf16.mxu0 %v10583_v15  ;;  %9672 = vmatprep.mubr.msk.bf16.mxu1 %vm10848_vm0, %v10847_v0  ;;  %v2782_v49 = vor.u32 %v2780_v43, %v2778_v42  ;;  %v2794_v56 = vrot.slane %v2792_v51, 1  ;;  %v2800_v61 = vshll.u32 %v10596_v57, 16  ;;  %v2804_v4 = vshrl.u32 %v10596_v57, 16  ;;  %v10605_v34 = vld [vmem:[%s11032_s28 + $0x40] sm:$0xff]   ;;  %v10607_v38 = vld [vmem:[%s11032_s28 + $0x48] sm:$0xff]   ;;  %v10609_v48 = vld [vmem:[%s11032_s28 + $0x50] sm:$0xff]  }
  0x34   : > { %9790 = vmatprep.subr.bf16.mxu1 %v10847_v0  ;;  %v2779_v45 = vsel %vm1415_vm2, %v2774_v41, %v2778_v42  ;;  %v2790_v58 = vor.u32 %v2788_v54, %v2786_v47  ;;  %v2808_v5 = vshll.u32 %v10598_v2, 16  ;;  %v2812_v10 = vshrl.u32 %v10598_v2, 16  ;;  %v10610_v42 = vld [vmem:[%s11032_s28 + $0x78] sm:$0x1f]   ;;  %v10613_v54 = vld [vmem:[%s11032_s28 + $0x8] sm:$0xfe]  }
  0x35   : > { %v2787_v53 = vsel %vm1415_vm2, %v2782_v49, %v2786_v47  ;;  %v2798_v63 = vor.u32 %v2796_v60, %v2794_v56  ;;  %v2802_v1 = vrot.slane %v2800_v61, 1  ;;  %v2816_v11 = vshll.u32 %v10600_v7, 16  ;;  %v10612_v57 = vld [vmem:[%s11032_s28 + $0x60] sm:$0xff]  }
  0x36   : > { %9411 = vmatpush3.bf16.msra.mxu0 %v10583_v15  ;;  %v2795_v59 = vsel %vm1415_vm2, %v2790_v58, %v2794_v56  ;;  %v2810_v9 = vrot.slane %v2808_v5, 1  ;;  %v10602_v15 = vld [vmem:[%s11032_s28 + $0x58] sm:$0xff]   ;;  %v2820_v17 = vshrl.u32 %v10600_v7, 16  ;;  %v10619_v2 = vld [vmem:[%s11032_s28] sm:$0xff]  }
  0x37   : > { %10497 = vmatprep.subr.msk.bf16.mxu0 %vm883_vm1, %v10585_v22  ;;  %v2803_v3 = vsel %vm1415_vm2, %v2798_v63, %v2802_v1  ;;  %v2806_v8 = vor.u32 %v2804_v4, %v2802_v1  ;;  %v2818_v14 = vrot.slane %v2816_v11, 1  ;;  %v2824_v18 = vshll.u32 %v10602_v15, 16  ;;  %v10604_v22 = vld [vmem:[%s11032_s28 + $0x60] sm:$0xff]   ;;  %v9094_v58 = vld [vmem:[%s11026_s23 + $0x18] sm:$0xf]  ;;  %v10615_v63 = vld [vmem:[%s11032_s28 + $0x68] sm:$0xff]  }
  0x38   : > { %v2814_v16 = vor.u32 %v2812_v10, %v2810_v9  ;;  %v2828_v24 = vshrl.u32 %v10602_v15, 16  ;;  %v2832_v25 = vshll.u32 %v10604_v22, 16  ;;  %v3723_v61 = vsel %vm883_vm1, %v9094_v58, 0  ;;  %v10620_v4 = vld [vmem:[%s11032_s28 + $0x8] sm:$0xff]   ;;  %v10618_v7 = vld [vmem:[%s11032_s28 + $0x20] sm:$0xff]   ;;  %v10622_v15 = vld [vmem:[%s11032_s28 + $0x10] sm:$0xff]  }
  0x39   : > { %9673 = vmatmul.mubr.msk.bf16.gmra.mrb[4].mxu1 %vm1078_vm3, %v2763_v29  ;;  %v2811_v12 = vsel %vm1415_vm2, %v2806_v8, %v2810_v9  ;;  %v2826_v21 = vrot.slane %v2824_v18, 1  ;;  %v2822_v23 = vor.u32 %v2820_v17, %v2818_v14  ;;  %v10606_v29 = vld [vmem:[%s11032_s28 + $0x68] sm:$0xff]   ;;  %v1419_v5 = vshll.u32 %v10619_v2, 16  ;;  %v10617_v8 = vld [vmem:[%s11032_s28 + $0x70] ss:$0 sps:$4 sm:$0xff]  }
  0x3a   : > { %9413 = vmatpush3.bf16.msra.mxu0 %v885_v26  ;;  %9676 = vmatprep.mubr.msk.bf16.mxu1 %vm10848_vm0, %v10847_v0  ;;  %v2819_v19 = vsel %vm1415_vm2, %v2814_v16, %v2818_v14  ;;  %v2834_v28 = vrot.slane %v2832_v25, 1  ;;  %v1417_v9 = vshrl.u32 %v10619_v2, 16  ;;  %v1424_v11 = vshll.u32 %v10620_v4, 16  ;;  %v10621_v17 = vld [vmem:[%s11032_s28 + $0x28] sm:$0xff]  }
  0x3b   : > { %9418 = vmatprep.subr.bf16.mxu0 %v10847_v0  ;;  %v2827_v26 = vsel %vm1415_vm2, %v2822_v23, %v2826_v21  ;;  %v2830_v30 = vor.u32 %v2828_v24, %v2826_v21  ;;  %v1421_v10 = vrot.slane %v1419_v5, 1  ;;  %v8970_v18 = vld [vmem:[%s11026_s23 + $0x8] sm:$0xf]  ;;  %v1432_v21 = vshll.u32 %v10622_v15, 16 }
  0x3c   : > { %v1426_v14 = vrot.slane %v1424_v11, 1  ;;  %v3264_v23 = vrot.slane %v10621_v17, 1  ;;  %v10636_v17 = vld [vmem:[%s11032_s28 + $0x48] sm:$0xff]  }
  0x3d   : > { %9415 = vmatmul.mubr.msk.bf16.vlgmr.msra.gmra.mrb[0].mxu0 %vm876_vm4, %v10587_v31  ;;  %v2836_v31 = vshrl.u32 %v10604_v22, 16  ;;  %v2835_v33 = vsel %vm1415_vm2, %v2830_v30, %v2834_v28  ;;  %v2005_v22 = vsel %vm883_vm1, %v8970_v18, 0  ;;  %v1434_v25 = vrot.slane %v1432_v21, 1 }
  0x3e   : > { %9419 = vmatpush3.bf16.msra.mxu0 %v1125_v32  ;;  %9420 = vmatprep.mubr.msk.bf16.mxu0 %vm10848_vm0, %v10847_v0  ;;  %v2840_v32 = vshll.u32 %v10606_v29, 16  ;;  %v1436_v30 = vshrl.u32 %v10622_v15, 16 }
  0x3f   : > { %9480 = vmatprep.subr.bf16.mxu0 %v10847_v0  ;;  %v2838_v37 = vor.u32 %v2836_v31, %v2834_v28  ;;  %v10623_v28 = vld [vmem:[%s11032_s28 + $0x30] sm:$0xff]  }
  0x40   : > { %v2842_v35 = vrot.slane %v2840_v32, 1  ;;  %v3266_v32 = vrot.slane %v10623_v28, 1  ;;  %v10637_v28 = vld [vmem:[%s11032_s28 + $0x68] sm:$0xff]  }
  0x41   : > { %9677 = vmatmul.mubr.msk.bf16.gmra.mrb[8].mxu1 %vm1078_vm3, %v2771_v36  ;;  %v10608_v36 = vld [vmem:[%s11032_s28 + $0x70] sm:$0xff]  }
  0x42   : > { %9680 = vmatprep.mubr.msk.bf16.mxu1 %vm10848_vm0, %v10847_v0  ;;  %v2848_v40 = vshll.u32 %v10608_v36, 16  ;;  %v2843_v41 = vsel %vm1415_vm2, %v2838_v37, %v2842_v35  ;;  %v10625_v37 = vld [vmem:[%s11032_s28 + $0x38] sm:$0xff]  }
  0x44   : > { %v2850_v43 = vrot.slane %v2848_v40, 1 }
  0x45   : > { %9421 = vmatmul.mubr.msk.bf16.vlgmr.msra.gmra.mrb[4].mxu0 %vm1078_vm3, %v10589_v39  ;;  %v2844_v39 = vshrl.u32 %v10606_v29, 16 }
  0x46   : > { %9424 = vmatprep.mubr.msk.bf16.mxu0 %vm10848_vm0, %v10847_v0  ;;  %9481 = vmatpush3.bf16.msra.mxu0 %v1581_v52  ;;  %v10611_v52 = vld [vmem:[%s11032_s28 + $0x58] sm:$0xff]  }
  0x47   : > { %9542 = vmatprep.subr.bf16.mxu0 %v10847_v0  ;;  %v2846_v44 = vor.u32 %v2844_v39, %v2842_v35  ;;  %v10626_v35 = vld [vmem:[%s11032_s28 + $0x20] sm:$0xff]  }
  0x48   : > { %v1448_v40 = vshll.u32 %v10626_v35, 16 }
  0x49   : > { %9681 = vmatmul.mubr.msk.bf16.gmra.mrb[12].mxu1 %vm1078_vm3, %v2779_v45  ;;  %v2852_v45 = vshrl.u32 %v10608_v36, 16  ;;  %v2851_v47 = vsel %vm1415_vm2, %v2846_v44, %v2850_v43  ;;  %v3267_v36 = vsel %vm1929_vm5, %v3264_v23, %v3266_v32  ;;  %v10628_v44 = vld [vmem:[%s11032_s28 + $0x28] sm:$0xff]  }
  0x4a   : > { %9684 = vmatprep.mubr.msk.bf16.mxu1 %vm10848_vm0, %v10847_v0 }
  0x4b   : > { %v2854_v50 = vor.u32 %v2852_v45, %v2850_v43  ;;  %v1450_v43 = vrot.slane %v1448_v40, 1 }
  0x4d   : > { %9425 = vmatmul.mubr.msk.bf16.gmra.mrb[8].mxu0 %vm1078_vm3, %v10591_v46  ;;  %v2856_v46 = vshll.u32 %v10610_v42, 16 }
  0x4e   : > { %9428 = vmatprep.mubr.msk.bf16.mxu0 %vm10848_vm0, %v10847_v0 }
  0x4f   : > { %v2858_v49 = vrot.slane %v2856_v46, 1  ;;  %v10627_v46 = vld [vmem:[%s11032_s28 + $0x40] sm:$0xff]  }
  0x51   : > { %9685 = vmatmul.mubr.msk.bf16.gmra.mrb[16].mxu1 %vm1078_vm3, %v2787_v53  ;;  %v2859_v51 = vsel %vm1415_vm2, %v2854_v50, %v2858_v49  ;;  %v2860_v53 = vshrl.u32 %v10610_v42, 16  ;;  %v3270_v50 = vrot.slane %v10627_v46, 1  ;;  %v10641_v46 = vld [vmem:[%s11032_s28 + $0x78] sm:$0x1f]  }
  0x52   : > { %9688 = vmatprep.mubr.msk.bf16.mxu1 %vm10848_vm0, %v10847_v0 }
  0x53   : > { %v2862_v56 = vor.u32 %v2860_v53, %v2858_v49  ;;  %v1456_v49 = vshll.u32 %v10628_v44, 16  ;;  %v10630_v53 = vld [vmem:[%s11032_s28 + $0x30] sm:$0xff]  }
  0x54   : > { %v1464_v58 = vshll.u32 %v10630_v53, 16 }
  0x55   : > { %9429 = vmatmul.mubr.msk.bf16.gmra.mrb[12].mxu0 %vm1078_vm3, %v10593_v55  ;;  %v10614_v55 = vld [vmem:[%s11032_s28 + $0x10] sm:$0xff]  }
  0x56   : > { %9432 = vmatprep.mubr.msk.bf16.mxu0 %vm10848_vm0, %v10847_v0  ;;  %v3258_v60 = vrot.slane %v10614_v55, 1  ;;  %v10629_v55 = vld [vmem:[%s11032_s28 + $0x48] sm:$0xff]  }
  0x59   : > { %9689 = vmatmul.mubr.msk.bf16.gmra.mrb[20].mxu1 %vm1078_vm3, %v2795_v59  ;;  %v3257_v59 = vrot.slane %v10613_v54, 1 }
  0x5a   : > { %9692 = vmatprep.mubr.msk.bf16.mxu1 %vm10848_vm0, %v10847_v0 }
  0x5b   : > { %v3259_v1 = vsel %vm1929_vm5, %v3257_v59, %v3258_v60  ;;  %v3272_v59 = vrot.slane %v10629_v55, 1 }
  0x5d   : > { %9433 = vmatmul.mubr.msk.bf16.gmra.mrb[16].mxu0 %vm1078_vm3, %v10595_v62  ;;  %v10616_v62 = vld [vmem:[%s11032_s28 + $0x18] sm:$0xff]  }
  0x5e   : > { %9436 = vmatprep.mubr.msk.bf16.mxu0 %vm10848_vm0, %v10847_v0 }
  0x61   : > { %9693 = vmatmul.mubr.msk.bf16.gmra.mrb[24].mxu1 %vm1078_vm3, %v2803_v3  ;;  %v3260_v3 = vrot.slane %v10616_v62, 1  ;;  %v10632_v62 = vld [vmem:[%s11032_s28 + $0x38] sm:$0xff]  }
  0x62   : > { %9696 = vmatprep.mubr.msk.bf16.mxu1 %vm10848_vm0, %v10847_v0 }
  0x65   : > { %9437 = vmatmul.mubr.msk.bf16.gmra.mrb[20].mxu0 %vm1078_vm3, %v10597_v6  ;;  %v3261_v6 = vsel %vm1929_vm5, %v3258_v60, %v3260_v3 }
  0x66   : > { %9440 = vmatprep.mubr.msk.bf16.mxu0 %vm10848_vm0, %v10847_v0 }
  0x69   : > { %9697 = vmatmul.mubr.msk.bf16.gmra.mrb[28].mxu1 %vm1078_vm3, %v2811_v12  ;;  %v3262_v12 = vrot.slane %v10618_v7, 1 }
  0x6a   : > { %9700 = vmatprep.mubr.msk.bf16.mxu1 %vm10848_vm0, %v10847_v0 }
  0x6b   : > { %v3263_v16 = vsel %vm1929_vm5, %v3260_v3, %v3262_v12  ;;  %v1468_v3 = vshrl.u32 %v10630_v53, 16 }
  0x6d   : > { %9441 = vmatmul.mubr.msk.bf16.gmra.mrb[24].mxu0 %vm1078_vm3, %v10599_v13  ;;  %v1422_v13 = vor.u32 %v1421_v10, %v1417_v9  ;;  %v10633_v10 = vld [vmem:[%s11032_s28 + $0x58] sm:$0xff]  }
  0x6e   : > { %9444 = vmatprep.mubr.msk.bf16.mxu0 %vm10848_vm0, %v10847_v0 }
  0x71   : > { %9701 = vmatmul.mubr.msk.bf16.gmra.mrb[32].mxu1 %vm1078_vm3, %v2819_v19  ;;  %v1427_v19 = vsel %vm1415_vm2, %v1422_v13, %v1426_v14 }
  0x72   : > { %9704 = vmatprep.mubr.msk.bf16.mxu1 %vm10848_vm0, %v10847_v0 }
  0x75   : > { %9445 = vmatmul.mubr.msk.bf16.gmra.mrb[28].mxu0 %vm1078_vm3, %v10601_v20  ;;  %v1428_v20 = vshrl.u32 %v10620_v4, 16  ;;  %v1472_v4 = vshll.u32 %v10632_v62, 16 }
  0x76   : > { %9448 = vmatprep.mubr.msk.bf16.mxu0 %vm10848_vm0, %v10847_v0 }
  0x77   : > { %v1430_v24 = vor.u32 %v1428_v20, %v1426_v14  ;;  %v1474_v7 = vrot.slane %v1472_v4, 1  ;;  %v3276_v14 = vrot.slane %v10633_v10, 1 }
  0x79   : > { %9705 = vmatmul.mubr.msk.bf16.gmra.mrb[36].mxu1 %vm1078_vm3, %v2827_v26  ;;  %v10624_v26 = vld [vmem:[%s11032_s28 + $0x18] sm:$0xff]   ;;  %v1435_v29 = vsel %vm1415_vm2, %v1430_v24, %v1434_v25 }
  0x7a   : > { %9708 = vmatprep.mubr.msk.bf16.mxu1 %vm10848_vm0, %v10847_v0  ;;  %v1440_v31 = vshll.u32 %v10624_v26, 16  ;;  %v1444_v39 = vshrl.u32 %v10624_v26, 16  ;;  %v10638_v26 = vld [vmem:[%s11032_s28 + $0x50] sm:$0xff]  }
  0x7d   : > { %9449 = vmatmul.mubr.msk.bf16.gmra.mrb[32].mxu0 %vm1078_vm3, %v10603_v27  ;;  %v3265_v27 = vsel %vm1929_vm5, %v3262_v12, %v3264_v23  ;;  %v1476_v12 = vshrl.u32 %v10632_v62, 16 }
  0x7e   : > { %9452 = vmatprep.mubr.msk.bf16.mxu0 %vm10848_vm0, %v10847_v0 }
  0x7f   : > { %v1478_v15 = vor.u32 %v1476_v12, %v1474_v7 }
  0x81   : > { %9709 = vmatmul.mubr.msk.bf16.gmra.mrb[40].mxu1 %vm1078_vm3, %v2835_v33  ;;  %v1438_v33 = vor.u32 %v1436_v30, %v1434_v25  ;;  %v1492_v30 = vshrl.u32 %v10636_v17, 16 }
  0x82   : > { %9712 = vmatprep.mubr.msk.bf16.mxu1 %vm10848_vm0, %v10847_v0 }
  0x85   : > { %9453 = vmatmul.mubr.msk.bf16.gmra.mrb[36].mxu0 %vm1078_vm3, %v10605_v34  ;;  %v1442_v34 = vrot.slane %v1440_v31, 1  ;;  %v1496_v31 = vshll.u32 %v10638_v26, 16 }
  0x86   : > { %9456 = vmatprep.mubr.msk.bf16.mxu0 %vm10848_vm0, %v10847_v0 }
  0x87   : > { %v1446_v42 = vor.u32 %v1444_v39, %v1442_v34  ;;  %v1500_v39 = vshrl.u32 %v10638_v26, 16 }
  0x89   : > { %9713 = vmatmul.mubr.msk.bf16.gmra.mrb[44].mxu1 %vm1078_vm3, %v2843_v41  ;;  %v3268_v41 = vrot.slane %v10625_v37, 1  ;;  %v10639_v37 = vld [vmem:[%s11032_s28 + $0x70] sm:$0xff]  }
  0x8a   : > { %9716 = vmatprep.mubr.msk.bf16.mxu1 %vm10848_vm0, %v10847_v0 }
  0x8b   : > { %v3269_v45 = vsel %vm1929_vm5, %v3266_v32, %v3268_v41  ;;  %v3271_v54 = vsel %vm1929_vm5, %v3268_v41, %v3270_v50  ;;  %v3280_v32 = vrot.slane %v10637_v28, 1  ;;  %v3282_v41 = vrot.slane %v10639_v37, 1 }
  0x8d   : > { %9457 = vmatmul.mubr.msk.bf16.gmra.mrb[40].mxu0 %vm1078_vm3, %v10607_v38  ;;  %v1443_v38 = vsel %vm1415_vm2, %v1438_v33, %v1442_v34  ;;  %v1498_v34 = vrot.slane %v1496_v31, 1 }
  0x8e   : > { %9460 = vmatprep.mubr.msk.bf16.mxu0 %vm10848_vm0, %v10847_v0 }
  0x91   : > { %9717 = vmatmul.mubr.msk.bf16.gmra.mrb[48].mxu1 %vm1078_vm3, %v2851_v47  ;;  %v1451_v47 = vsel %vm1415_vm2, %v1446_v42, %v1450_v43  ;;  %v1502_v42 = vor.u32 %v1500_v39, %v1498_v34 }
  0x92   : > { %9720 = vmatprep.mubr.msk.bf16.mxu1 %vm10848_vm0, %v10847_v0 }
  0x95   : > { %9461 = vmatmul.mubr.msk.bf16.gmra.mrb[44].mxu0 %vm1078_vm3, %v10609_v48  ;;  %v1452_v48 = vshrl.u32 %v10626_v35, 16  ;;  %v10640_v35 = vld [vmem:[%s11032_s28 + $0x58] sm:$0xff]  }
  0x96   : > { %9464 = vmatprep.mubr.msk.bf16.mxu0 %vm10848_vm0, %v10847_v0  ;;  %v1504_v40 = vshll.u32 %v10640_v35, 16 }
  0x99   : > { %9721 = vmatmul.mubr.msk.bf16.gmra.mrb[52].mxu1 %vm1078_vm3, %v2859_v51  ;;  %v1454_v51 = vor.u32 %v1452_v48, %v1450_v43  ;;  %v1506_v43 = vrot.slane %v1504_v40, 1  ;;  %v1508_v48 = vshrl.u32 %v10640_v35, 16  ;;  %v10648_v40 = vld [vmem:[%s11032_s28] sm:$0xfe]  }
  0x9a   : > { %9724 = vmatprep.mubr.msk.bf16.mxu1 %vm10848_vm0, %v10847_v0 }
  0x9d   : > { %9465 = vmatmul.mubr.msk.bf16.gmra.mrb[48].mxu0 %vm1078_vm3, %v10611_v52  ;;  %v1458_v52 = vrot.slane %v1456_v49, 1 }
  0x9e   : > { %9468 = vmatprep.mubr.msk.bf16.mxu0 %vm10848_vm0, %v10847_v0 }
  0xa1   : > { %9725 = vmatmul.mubr.msk.bf16.gmra.mrb[56].mxu1 %vm1078_vm3, %v2862_v56  ;;  %v1459_v56 = vsel %vm1415_vm2, %v1454_v51, %v1458_v52  ;;  %v10643_v51 = vld [vmem:[%s11032_s28 + $0x68] sm:$0xff]  }
  0xa2   : > { %9730 = vmatprep.mubr.msk.bf16.mxu1 %vm10848_vm0, %v10847_v0 }
  0xa5   : > { %9469 = vmatmul.mubr.msk.bf16.gmra.mrb[52].mxu0 %vm1078_vm3, %v10612_v57  ;;  %v1460_v57 = vshrl.u32 %v10628_v44, 16  ;;  %v10642_v44 = vld [vmem:[%s11032_s28 + $0x60] sm:$0xff]  }
  0xa6   : > { %9472 = vmatprep.mubr.msk.bf16.mxu0 %vm10848_vm0, %v10847_v0  ;;  %v1512_v49 = vshll.u32 %v10642_v44, 16 }
  0xa7   : > { %v1462_v60 = vor.u32 %v1460_v57, %v1458_v52  ;;  %v1510_v52 = vor.u32 %v1508_v48, %v1506_v43  ;;  %v1516_v57 = vshrl.u32 %v10642_v44, 16  ;;  %v10647_v44 = vld [vmem:[%s11032_s28 + $0x20] sm:$0xff]  }
  0xa8   : > { %v1514_v53 = vrot.slane %v1512_v49, 1 }
  0xa9   : > { %9731 = vmatmul.mubr.msk.bf16.vlgmr.msra.gmra.mrb[0].mxu1 %vm1078_vm3, %v3259_v1  ;;  %v10631_v1 = vld [vmem:[%s11032_s28 + $0x50] sm:$0xff]  }
  0xaa   : > { %9791 = vmatpush3.bf16.msra.mxu1 %v3723_v61  ;;  %9734 = vmatprep.mubr.msk.bf16.mxu1 %vm10848_vm0, %v10847_v0  ;;  %v1466_v61 = vrot.slane %v1464_v58, 1  ;;  %v3274_v5 = vrot.slane %v10631_v1, 1  ;;  %v1520_v58 = vshll.u32 %v10643_v51, 16  ;;  %v1515_v62 = vsel %vm1415_vm2, %v1510_v52, %v1514_v53  ;;  %v10653_v52 = vld [vmem:[%s11032_s28 + $0x18] sm:$0xff]  }
  0xab   : > { %9852 = vmatprep.subr.bf16.mxu1 %v10847_v0 }
  0xac   : > { %v1467_v2 = vsel %vm1415_vm2, %v1462_v60, %v1466_v61  ;;  %v3275_v9 = vsel %vm1929_vm5, %v3272_v59, %v3274_v5  ;;  %v3277_v18 = vsel %vm1929_vm5, %v3274_v5, %v3276_v14 }
  0xad   : > { %9473 = vmatmul.mubr.msk.bf16.gmra.mrb[56].mxu0 %vm1078_vm3, %v10615_v63  ;;  %v3273_v63 = vsel %vm1929_vm5, %v3270_v50, %v3272_v59  ;;  %v3284_v50 = vrot.slane %v10641_v46, 1  ;;  %v8908_v59 = vld [vmem:[%s738_s26] ss:$0 sm:$0xff] }
  0xae   : > { %9476 = vmatprep.mubr.msk.bf16.mxu0 %vm10848_vm0, %v10847_v0 }
  0xaf   : > { %v3285_v55 = vsel %vm1929_vm5, %v3282_v41, %v3284_v50 }
  0xb1   : > { %9735 = vmatmul.mubr.msk.bf16.gmra.mrb[4].mxu1 %vm1078_vm3, %v3261_v6  ;;  %v1470_v6 = vor.u32 %v1468_v3, %v1466_v61 }
  0xb2   : > { %9738 = vmatprep.mubr.msk.bf16.mxu1 %vm10848_vm0, %v10847_v0 }
  0xb3   : > { %v1475_v11 = vsel %vm1415_vm2, %v1470_v6, %v1474_v7  ;;  %v1518_v7 = vor.u32 %v1516_v57, %v1514_v53  ;;  %v1935_v53 = vrot.slane %v10653_v52, 1 }
  0xb5   : > { %9477 = vmatmul.mubr.msk.bf16.gmra.mrb[60].mxu0 %vm1078_vm3, %v10617_v8  ;;  %v10634_v8 = vld [vmem:[%s11032_s28 + $0x40] sm:$0xff]  }
  0xb6   : > { %9482 = vmatprep.mubr.msk.bf16.mxu0 %vm10848_vm0, %v10847_v0  ;;  %v1480_v13 = vshll.u32 %v10634_v8, 16  ;;  %v1484_v21 = vshrl.u32 %v10634_v8, 16  ;;  %v1522_v8 = vrot.slane %v1520_v58, 1  ;;  %v10654_v58 = vld [vmem:[%s11032_s28 + $0x38] sm:$0xff]  }
  0xb9   : > { %9739 = vmatmul.mubr.msk.bf16.gmra.mrb[8].mxu1 %vm1078_vm3, %v3263_v16  ;;  %v1482_v16 = vrot.slane %v1480_v13, 1 }
  0xba   : > { %9742 = vmatprep.mubr.msk.bf16.mxu1 %vm10848_vm0, %v10847_v0 }
  0xbb   : > { %v1483_v20 = vsel %vm1415_vm2, %v1478_v15, %v1482_v16  ;;  %v1486_v24 = vor.u32 %v1484_v21, %v1482_v16  ;;  %v11355_v16 = vld [vmem:[%s11343_s20 + $0x8] sm:$0xff]  ;;  %v1523_v21 = vsel %vm1415_vm2, %v1518_v7, %v1522_v8  ;;  %v10660_v7 = vld [vmem:[%s11032_s28 + $0x50] sm:$0xff]  }
  0xbd   : > { %9483 = vmatmul.mubr.msk.bf16.vlgmr.msra.gmra.mrb[4].mxu0 %vm1078_vm3, %v1427_v19  ;;  %v10635_v19 = vld [vmem:[%s11032_s28 + $0x60] sm:$0xff]  }
  0xbe   : > { %9486 = vmatprep.mubr.msk.bf16.mxu0 %vm10848_vm0, %v10847_v0  ;;  %9543 = vmatpush3.bf16.msra.mxu0 %v2005_v22  ;;  %v1488_v22 = vshll.u32 %v10636_v17, 16  ;;  %v3278_v23 = vrot.slane %v10635_v19, 1  ;;  %v791_v17 = vld [vmem:[%s11343_s20 + $0x10] sm:$0xff] }
  0xbf   : > { %9604 = vmatprep.subr.bf16.mxu0 %v10847_v0 }
  0xc0   : > { %v1490_v25 = vrot.slane %v1488_v22, 1  ;;  %v1524_v22 = vshrl.u32 %v10643_v51, 16 }
  0xc1   : > { %9743 = vmatmul.mubr.msk.bf16.gmra.mrb[12].mxu1 %vm1078_vm3, %v3265_v27  ;;  %v3279_v27 = vsel %vm1929_vm5, %v3276_v14, %v3278_v23  ;;  %v792_v14 = vld [vmem:[%s11343_s20 + $0x18] sm:$0x1] }
  0xc2   : > { %9746 = vmatprep.mubr.msk.bf16.mxu1 %vm10848_vm0, %v10847_v0  ;;  %v1494_v33 = vor.u32 %v1492_v30, %v1490_v25  ;;  %v1526_v30 = vor.u32 %v1524_v22, %v1522_v8  ;;  %v10669_v22 = vld [vmem:[%s11032_s28 + $0x58] sm:$0xff]  }
  0xc5   : > { %9487 = vmatmul.mubr.msk.bf16.gmra.mrb[8].mxu0 %vm1078_vm3, %v1435_v29  ;;  %v1491_v29 = vsel %vm1415_vm2, %v1486_v24, %v1490_v25 }
  0xc6   : > { %9490 = vmatprep.mubr.msk.bf16.mxu0 %vm10848_vm0, %v10847_v0 }
  0xc9   : > { %9747 = vmatmul.mubr.msk.bf16.gmra.mrb[16].mxu1 %vm1078_vm3, %v3267_v36  ;;  %v3281_v36 = vsel %vm1929_vm5, %v3278_v23, %v3280_v32 }
  0xca   : > { %9750 = vmatprep.mubr.msk.bf16.mxu1 %vm10848_vm0, %v10847_v0 }
  0xcd   : > { %9491 = vmatmul.mubr.msk.bf16.gmra.mrb[12].mxu0 %vm1078_vm3, %v1443_v38  ;;  %v1499_v38 = vsel %vm1415_vm2, %v1494_v33, %v1498_v34  ;;  %v10644_v33 = vld [vmem:[%s11032_s28 + $0x10] sm:$0xff]  }
  0xce   : > { %9494 = vmatprep.mubr.msk.bf16.mxu0 %vm10848_vm0, %v10847_v0 }
  0xd1   : > { %9751 = vmatmul.mubr.msk.bf16.gmra.mrb[20].mxu1 %vm1078_vm3, %v3269_v45  ;;  %v3283_v45 = vsel %vm1929_vm5, %v3280_v32, %v3282_v41  ;;  %v10649_v41 = vld [vmem:[%s11032_s28 + $0x8] sm:$0xff]  }
  0xd2   : > { %9754 = vmatprep.mubr.msk.bf16.mxu1 %vm10848_vm0, %v10847_v0 }
  0xd5   : > { %9495 = vmatmul.mubr.msk.bf16.gmra.mrb[16].mxu0 %vm1078_vm3, %v1451_v47  ;;  %v1507_v47 = vsel %vm1415_vm2, %v1502_v42, %v1506_v43  ;;  %v1930_v42 = vrot.slane %v10648_v40, 1  ;;  %v1931_v43 = vrot.slane %v10649_v41, 1  ;;  %v10676_v41 = vld [vmem:[%s11032_s28 + $0x70] sm:$0x1f]  }
  0xd6   : > { %9498 = vmatprep.mubr.msk.bf16.mxu0 %vm10848_vm0, %v10847_v0 }
  0xd7   : > { %v1932_v46 = vsel %vm1929_vm5, %v1930_v42, %v1931_v43 }
  0xd9   : > { %9755 = vmatmul.mubr.msk.bf16.gmra.mrb[24].mxu1 %vm1078_vm3, %v3271_v54  ;;  %v8907_v54 = vld [vmem:[%s735_s16] ss:$0 sm:$0xff] }
  0xda   : > { %9758 = vmatprep.mubr.msk.bf16.mxu1 %vm10848_vm0, %v10847_v0 }
  0xdd   : > { %9499 = vmatmul.mubr.msk.bf16.gmra.mrb[20].mxu0 %vm1078_vm3, %v1459_v56 }
  0xde   : > { %9502 = vmatprep.mubr.msk.bf16.mxu0 %vm10848_vm0, %v10847_v0 }
  0xe1   : > { %9759 = vmatmul.mubr.msk.bf16.gmra.mrb[28].mxu1 %vm1078_vm3, %v3273_v63 }
  0xe2   : > { %9762 = vmatprep.mubr.msk.bf16.mxu1 %vm10848_vm0, %v10847_v0 }
  0xe5   : > { %9503 = vmatmul.mubr.msk.bf16.gmra.mrb[24].mxu0 %vm1078_vm3, %v1467_v2 }
  0xe6   : > { %9506 = vmatprep.mubr.msk.bf16.mxu0 %vm10848_vm0, %v10847_v0 }
  0xe9   : > { %9763 = vmatmul.mubr.msk.bf16.gmra.mrb[32].mxu1 %vm1078_vm3, %v3275_v9  ;;  %v789_v9 = vld [vmem:[%s11343_s20] sm:$0xff] }
  0xea   : > { %9766 = vmatprep.mubr.msk.bf16.mxu1 %vm10848_vm0, %v10847_v0 }
  0xed   : > { %9507 = vmatmul.mubr.msk.bf16.gmra.mrb[28].mxu0 %vm1078_vm3, %v1475_v11  ;;  %v10645_v11 = vld [vmem:[%s11032_s28 + $0x70] sm:$0x1f]  }
  0xee   : > { %9510 = vmatprep.mubr.msk.bf16.mxu0 %vm10848_vm0, %v10847_v0  ;;  %v1528_v24 = vshll.u32 %v10645_v11, 16  ;;  %v1532_v37 = vshrl.u32 %v10645_v11, 16  ;;  %v10662_v11 = vld [vmem:[%s11032_s28 + $0x58] sm:$0xff]  }
  0xf0   : > { %v1530_v31 = vrot.slane %v1528_v24, 1  ;;  %v10668_v24 = vld [vmem:[%s11032_s28 + $0x70] sm:$0xff]  }
  0xf1   : > { %9767 = vmatmul.mubr.msk.bf16.gmra.mrb[36].mxu1 %vm1078_vm3, %v3277_v18 }
  0xf2   : > { %9770 = vmatprep.mubr.msk.bf16.mxu1 %vm10848_vm0, %v10847_v0  ;;  %v1534_v39 = vor.u32 %v1532_v37, %v1530_v31 }
  0xf5   : > { %9511 = vmatmul.mubr.msk.bf16.gmra.mrb[32].mxu0 %vm1078_vm3, %v1483_v20 }
  0xf6   : > { %9514 = vmatprep.mubr.msk.bf16.mxu0 %vm10848_vm0, %v10847_v0 }
  0xf9   : > { %9771 = vmatmul.mubr.msk.bf16.gmra.mrb[40].mxu1 %vm1078_vm3, %v3279_v27 }
  0xfa   : > { %9774 = vmatprep.mubr.msk.bf16.mxu1 %vm10848_vm0, %v10847_v0 }
  0xfd   : > { %9515 = vmatmul.mubr.msk.bf16.gmra.mrb[36].mxu0 %vm1078_vm3, %v1491_v29  ;;  %v9125_v29 = vld [vmem:[%s11026_s23 + $0x1c] sm:$0xf] }
  0xfe   : > { %9518 = vmatprep.mubr.msk.bf16.mxu0 %vm10848_vm0, %v10847_v0  ;;  %v4236_v35 = vsel %vm883_vm1, %v9125_v29, 0  ;;  %v10674_v29 = vld [vmem:[%s11032_s28 + $0x10] sm:$0xff]  }
  0xff   : > { %v4072_v37 = vshrl.u32 %v10674_v29, 16 }
 0x101   : > { %9775 = vmatmul.mubr.msk.bf16.gmra.mrb[44].mxu1 %vm1078_vm3, %v3281_v36  ;;  %v1531_v36 = vsel %vm1415_vm2, %v1526_v30, %v1530_v31  ;;  %v10673_v31 = vld [vmem:[%s11032_s28 + $0x68] sm:$0xff]  }
 0x102   : > { %9778 = vmatprep.mubr.msk.bf16.mxu1 %vm10848_vm0, %v10847_v0 }
 0x105   : > { %9519 = vmatmul.mubr.msk.bf16.gmra.mrb[40].mxu0 %vm1078_vm3, %v1499_v38  ;;  %v10646_v38 = vld [vmem:[%s11032_s28 + $0x18] sm:$0xff]  }
 0x106   : > { %9522 = vmatprep.mubr.msk.bf16.mxu0 %vm10848_vm0, %v10847_v0 }
 0x109   : > { %9779 = vmatmul.mubr.msk.bf16.gmra.mrb[48].mxu1 %vm1078_vm3, %v3283_v45  ;;  %v9001_v45 = vld [vmem:[%s11026_s23 + $0xc] sm:$0xf] }
 0x10a   : > { %9782 = vmatprep.mubr.msk.bf16.mxu1 %vm10848_vm0, %v10847_v0  ;;  %v2396_v48 = vsel %vm883_vm1, %v9001_v45, 0  ;;  %v9156_v45 = vld [vmem:[%s11026_s23 + $0x20] sm:$0xf]  ;;  %s9215_s23 = sshll.u32 %s11014_s30, 6 }
 0x10b   : > { %s11706_s16 = scalar_lea.vmem %s15087_s11, %s9215_s23  ;;  %s14263_s26 = scalar_lea.vmem %s15090_s14, %s9215_s23 }
 0x10c   : > { %s10501_s23 = smul.u32 20, %s10829_s24 }
 0x10d   : > { %9523 = vmatmul.mubr.msk.bf16.gmra.mrb[44].mxu0 %vm1078_vm3, %v1507_v47  ;;  %v10651_v47 = vld [vmem:[%s11032_s28 + $0x10] sm:$0xff]  }
 0x10e   : > { %9526 = vmatprep.mubr.msk.bf16.mxu0 %vm10848_vm0, %v10847_v0  ;;  %v1933_v49 = vrot.slane %v10651_v47, 1 }
 0x110   : > { %v9416_v56 = vpop.f32.mrb[0].mxu0  ;;  %v1934_v51 = vsel %vm1929_vm5, %v1931_v43, %v1933_v49 }
 0x111   : > { %v944_v60 = vmul.f32 %v9416_v56, %v8907_v54  ;;  %v921_v61 = vpop.f32.mrb[1].mxu0  ;;  %9783 = vmatmul.mubr.msk.bf16.gmra.mrb[52].mxu1 %vm1078_vm3, %v3285_v55  ;;  %v1936_v55 = vsel %vm1929_vm5, %v1933_v49, %v1935_v53  ;;  %v10655_v56 = vld [vmem:[%s11032_s28 + $0x20] sm:$0xff]  }
 0x112   : > { %v942_v63 = vmul.f32 %v8907_v54, %v921_v61  ;;  %v9417_v1 = vpop.f32.mrb[2].mxu0  ;;  %9786 = vmatprep.mubr.msk.bf16.mxu1 %vm10848_vm0, %v10847_v0  ;;  %v1937_v57 = vrot.slane %v10655_v56, 1 }
 0x113   : > { %v954_v2 = vadd.f32 %v8908_v59, %v944_v60  ;;  %v945_v3 = vmul.f32 %v9417_v1, %v8907_v54  ;;  %v924_v4 = vpop.f32.mrb[3].mxu0  ;;  %v10657_v60 = vld [vmem:[%s11032_s28 + $0x28] sm:$0xff]   ;;  %v10659_v1 = vld [vmem:[%s11032_s28 + $0x30] sm:$0xff]  }
 0x114   : > { %v952_v5 = vadd.f32 %v8908_v59, %v942_v63  ;;  %v943_v6 = vmul.f32 %v8907_v54, %v924_v4  ;;  %v10652_v54 = vld [vmem:[%s11032_s28 + $0x30] sm:$0xff]   ;;  %v1939_v61 = vrot.slane %v10657_v60, 1 }
 0x115   : > { %9527 = vmatmul.mubr.msk.bf16.gmra.mrb[48].mxu0 %vm1078_vm3, %v1515_v62  ;;  %v955_v10 = vadd.f32 %v8908_v59, %v945_v3  ;;  %v958_v12 = vmax.f32 %v954_v2, 0.0  ;;  %v10656_v62 = vld [vmem:[%s11032_s28 + $0x40] sm:$0xff]   ;;  %v1941_v2 = vrot.slane %v10659_v1, 1  ;;  %v10658_v3 = vld [vmem:[%s11032_s28 + $0x48] sm:$0xff]   ;;  %v10680_v60 = vld [vmem:[%s11032_s28 + $0x30] sm:$0xff]  }
 0x116   : > { %9530 = vmatprep.mubr.msk.bf16.mxu0 %vm10848_vm0, %v10847_v0  ;;  %v956_v13 = vmax.f32 %v952_v5, 0.0  ;;  %v953_v15 = vadd.f32 %v8908_v59, %v943_v6  ;;  %v1938_v59 = vsel %vm1929_vm5, %v1935_v53, %v1937_v57  ;;  %v1940_v63 = vsel %vm1929_vm5, %v1937_v57, %v1939_v61  ;;  %v10661_v5 = vld [vmem:[%s11032_s28 + $0x38] sm:$0xff]   ;;  %v10679_v1 = vld [vmem:[%s11032_s28 + $0x8] sm:$0xff]  }
 0x117   : > { %v959_v18 = vmax.f32 %v955_v10, 0.0  ;;  %v962_v25 = vmul.f32 %v958_v12, %v791_v17  ;;  %v1942_v4 = vsel %vm1929_vm5, %v1939_v61, %v1941_v2  ;;  %v1943_v6 = vrot.slane %v10661_v5, 1 }
 0x118   : > { %v960_v19 = vmul.f32 %v956_v13, %v789_v9  ;;  %v957_v20 = vmax.f32 %v953_v15, 0.0  ;;  %v10663_v9 = vld [vmem:[%s11032_s28 + $0x40] sm:$0xff]   ;;  %v10665_v13 = vld [vmem:[%s11032_s28 + $0x48] sm:$0xff]  }
 0x119   : > { %v963_v23 = vmul.f32 %v959_v18, %v792_v14  ;;  %9787 = vmatmul.mubr.msk.bf16.gmra.mrb[56].mxu1 %vm1078_vm3, %v3284_v50  ;;  %v10650_v50 = vld [vmem:[%s11032_s28 + $0x28] sm:$0xff]   ;;  %v1944_v8 = vsel %vm1929_vm5, %v1941_v2, %v1943_v6  ;;  %v1945_v10 = vrot.slane %v10663_v9, 1  ;;  %v1947_v14 = vrot.slane %v10665_v13, 1  ;;  %v10664_v15 = vld [vmem:[%s11032_s28 + $0x60] sm:$0xff]   ;;  %v10667_v18 = vld [vmem:[%s11032_s28 + $0x50] sm:$0xff]  }
 0x11a   : > { %v961_v26 = vmul.f32 %v957_v20, %v11355_v16  ;;  %9792 = vmatprep.mubr.msk.bf16.mxu1 %vm10848_vm0, %v10847_v0  ;;  %v10666_v20 = vld [vmem:[%s11032_s28 + $0x68] sm:$0xff]  }
 0x11b   : > { %v967_v28 = vsel %vm966_vm6, %v963_v23, 0.0  ;;  %v1946_v12 = vsel %vm1929_vm5, %v1943_v6, %v1945_v10  ;;  %v1948_v17 = vsel %vm1929_vm5, %v1945_v10, %v1947_v14  ;;  %v1951_v23 = vrot.slane %v10669_v22, 1 }
 0x11c   : > { %v964_v27 = vadd.f32 %v961_v26, %v960_v19  ;;  %v1949_v19 = vrot.slane %v10667_v18, 1  ;;  %v10671_v26 = vld [vmem:[%s11032_s28 + $0x60] sm:$0xff]   ;;  %v4107_v6 = vshrl.u32 %v10680_v60, 16 }
 0x11d   : > { %9531 = vmatmul.mubr.msk.bf16.gmra.mrb[52].mxu0 %vm1078_vm3, %v1523_v21 }
 0x11e   : > { %9534 = vmatprep.mubr.msk.bf16.mxu0 %vm10848_vm0, %v10847_v0  ;;  %v965_v32 = vadd.f32 %v964_v27, %v962_v25  ;;  %v1950_v21 = vsel %vm1929_vm5, %v1947_v14, %v1949_v19  ;;  %v1952_v25 = vsel %vm1929_vm5, %v1949_v19, %v1951_v23  ;;  %v1953_v27 = vrot.slane %v10671_v26, 1  ;;  %v10686_v19 = vld [vmem:[%s11032_s28 + $0x48] sm:$0xff]   ;;  %v10688_v26 = vld [vmem:[%s11032_s28 + $0x50] sm:$0xff]  }
 0x11f   : > { %v4127_v22 = vshll.u32 %v10686_v19, 16 }
 0x120   : > { %v11368_v34 = vadd.f32 %v967_v28, %v965_v32  ;;  %v10670_v28 = vld [vmem:[%s11032_s28 + $0x78] sm:$0xff]   ;;  %v1954_v30 = vsel %vm1929_vm5, %v1951_v23, %v1953_v27  ;;  %v10685_v23 = vld [vmem:[%s11032_s28 + $0x20] sm:$0xff]  }
 0x121   : > { %9793 = vmatmul.mubr.msk.bf16.vlgmr.msra.gmra.mrb[0].mxu1 %vm1078_vm3, %v10644_v33  ;;  %v10675_v32 = vld [vmem:[%s11032_s28 + $0x18] sm:$0xff]   ;;  %v4074_v33 = vshll.u32 %v10674_v29, 16  ;;  %v4135_v29 = vshll.u32 %v10688_v26, 16 }
 0x122   : > { %9853 = vmatpush3.bf16.msra.mxu1 %v4236_v35  ;;  %9796 = vmatprep.mubr.msk.bf16.mxu1 %vm10848_vm0, %v10847_v0  ;;  %v1955_v35 = vrot.slane %v10673_v31, 1 }
 0x123   : > { %9914 = vmatprep.subr.bf16.mxu1 %v10847_v0 }
 0x124   : > { %v1956_v40 = vsel %vm1929_vm5, %v1953_v27, %v1955_v35 }
 0x125   : > { %9535 = vmatmul.mubr.msk.bf16.gmra.mrb[56].mxu0 %vm1078_vm3, %v1531_v36  ;;  %v10672_v36 = vld [vmem:[%s11032_s28 + $0x80] ss:$0 sps:$4 sm:$0xff]  }
 0x126   : > { %9538 = vmatprep.mubr.msk.bf16.mxu0 %vm10848_vm0, %v10847_v0 }
 0x129   : > { %9797 = vmatmul.mubr.msk.bf16.gmra.mrb[4].mxu1 %vm1078_vm3, %v10646_v38  ;;  %v4076_v38 = vrot.slane %v4074_v33, 1  ;;  %v10690_v33 = vld [vmem:[%s11032_s28 + $0x58] sm:$0xff]  }
 0x12a   : > { %9800 = vmatprep.mubr.msk.bf16.mxu1 %vm10848_vm0, %v10847_v0 }
 0x12b   : > { %v4077_v42 = vor.u32 %v4076_v38, %v4072_v37  ;;  %v4143_v37 = vshll.u32 %v10690_v33, 16  ;;  %v10689_v38 = vld [vmem:[%s11032_s28 + $0x30] sm:$0xff]  }
 0x12d   : > { %9539 = vmatmul.mubr.msk.bf16.gmra.mrb[60].mxu0 %vm1078_vm3, %v1534_v39  ;;  %v4079_v39 = vshll.u32 %v10675_v32, 16 }
 0x12e   : > { %9544 = vmatprep.mubr.msk.bf16.mxu0 %vm10848_vm0, %v10847_v0 }
 0x12f   : > { %v4081_v43 = vrot.slane %v4079_v39, 1 }
 0x131   : > { %9801 = vmatmul.mubr.msk.bf16.gmra.mrb[8].mxu1 %vm1078_vm3, %v10647_v44  ;;  %v10677_v44 = vld [vmem:[%s11032_s28 + $0x20] sm:$0xff]   ;;  %v4082_v47 = vsel %vm1415_vm2, %v4077_v42, %v4081_v43 }
 0x132   : > { %9804 = vmatprep.mubr.msk.bf16.mxu1 %vm10848_vm0, %v10847_v0  ;;  %v4087_v49 = vshll.u32 %v10677_v44, 16  ;;  %v4091_v56 = vshrl.u32 %v10677_v44, 16 }
 0x134   : > { %v4089_v53 = vrot.slane %v4087_v49, 1 }
 0x135   : > { %9545 = vmatmul.mubr.msk.bf16.vlgmr.msra.gmra.mrb[4].mxu0 %vm1078_vm3, %v1932_v46  ;;  %v1957_v46 = vrot.slane %v10676_v41, 1  ;;  %v10692_v41 = vld [vmem:[%s11032_s28 + $0x60] sm:$0xff]  }
 0x136   : > { %9548 = vmatprep.mubr.msk.bf16.mxu0 %vm10848_vm0, %v10847_v0  ;;  %9605 = vmatpush3.bf16.msra.mxu0 %v2396_v48  ;;  %v4083_v48 = vshrl.u32 %v10675_v32, 16  ;;  %v4137_v32 = vrot.slane %v4135_v29, 1  ;;  %v4151_v44 = vshll.u32 %v10692_v41, 16  ;;  %v10707_v29 = vld [vmem:[%s11032_s28 + $0x78] ss:$0 sps:$4 sm:$0xff]  }
 0x138   : > { %v4085_v52 = vor.u32 %v4083_v48, %v4081_v43  ;;  %v4147_v43 = vshrl.u32 %v10690_v33, 16  ;;  %v10694_v48 = vld [vmem:[%s11032_s28 + $0x68] sm:$0xff]  }
 0x139   : > { %9805 = vmatmul.mubr.msk.bf16.gmra.mrb[12].mxu1 %vm1078_vm3, %v10650_v50  ;;  %v4659_v50 = vsel %vm883_vm1, %v9156_v45, 0  ;;  %v10691_v45 = vld [vmem:[%s11032_s28 + $0x38] sm:$0xff]  }
 0x13a   : > { %9808 = vmatprep.mubr.msk.bf16.mxu1 %vm10848_vm0, %v10847_v0 }
 0x13d   : > { %9549 = vmatmul.mubr.msk.bf16.gmra.mrb[8].mxu0 %vm1078_vm3, %v1934_v51  ;;  %v1958_v51 = vsel %vm1929_vm5, %v1955_v35, %v1957_v46 }
 0x13e   : > { %9552 = vmatprep.mubr.msk.bf16.mxu0 %vm10848_vm0, %v10847_v0 }
 0x141   : > { %9809 = vmatmul.mubr.msk.bf16.gmra.mrb[16].mxu1 %vm1078_vm3, %v10652_v54  ;;  %v10678_v54 = vld [vmem:[%s11032_s28 + $0x28] sm:$0xff]  }
 0x142   : > { %9812 = vmatprep.mubr.msk.bf16.mxu1 %vm10848_vm0, %v10847_v0  ;;  %v4095_v57 = vshll.u32 %v10678_v54, 16 }
 0x145   : > { %9553 = vmatmul.mubr.msk.bf16.gmra.mrb[12].mxu0 %vm1078_vm3, %v1936_v55  ;;  %v4090_v55 = vsel %vm1415_vm2, %v4085_v52, %v4089_v53  ;;  %v10693_v52 = vld [vmem:[%s11032_s28 + $0x40] sm:$0xff]  }
 0x146   : > { %9556 = vmatprep.mubr.msk.bf16.mxu0 %vm10848_vm0, %v10847_v0 }
 0x149   : > { %9813 = vmatmul.mubr.msk.bf16.gmra.mrb[20].mxu1 %vm1078_vm3, %v10654_v58  ;;  %v4093_v58 = vor.u32 %v4091_v56, %v4089_v53 }
 0x14a   : > { %9816 = vmatprep.mubr.msk.bf16.mxu1 %vm10848_vm0, %v10847_v0 }
 0x14d   : > { %9557 = vmatmul.mubr.msk.bf16.gmra.mrb[16].mxu0 %vm1078_vm3, %v1938_v59  ;;  %v4097_v59 = vrot.slane %v4095_v57, 1  ;;  %v4163_v57 = vshrl.u32 %v10694_v48, 16 }
 0x14e   : > { %9560 = vmatprep.mubr.msk.bf16.mxu0 %vm10848_vm0, %v10847_v0 }
 0x14f   : > { %v4098_v61 = vsel %vm1415_vm2, %v4093_v58, %v4097_v59 }
 0x151   : > { %9817 = vmatmul.mubr.msk.bf16.gmra.mrb[24].mxu1 %vm1078_vm3, %v10656_v62  ;;  %v4099_v62 = vshrl.u32 %v10678_v54, 16 }
 0x152   : > { %9820 = vmatprep.mubr.msk.bf16.mxu1 %vm10848_vm0, %v10847_v0 }
 0x153   : > { %v4101_v2 = vor.u32 %v4099_v62, %v4097_v59  ;;  %v10695_v59 = vld [vmem:[%s11032_s28 + $0x48] sm:$0xff]   ;;  %v10698_v62 = vld [vmem:[%s11032_s28 + $0x78] sm:$0xff]  }
 0x155   : > { %9561 = vmatmul.mubr.msk.bf16.gmra.mrb[20].mxu0 %vm1078_vm3, %v1940_v63  ;;  %v4103_v63 = vshll.u32 %v10680_v60, 16 }
 0x156   : > { %9564 = vmatprep.mubr.msk.bf16.mxu0 %vm10848_vm0, %v10847_v0 }
 0x159   : > { %9821 = vmatmul.mubr.msk.bf16.gmra.mrb[28].mxu1 %vm1078_vm3, %v10658_v3  ;;  %v4105_v3 = vrot.slane %v4103_v63, 1 }
 0x15a   : > { %9824 = vmatprep.mubr.msk.bf16.mxu1 %vm10848_vm0, %v10847_v0 }
 0x15b   : > { %v4106_v5 = vsel %vm1415_vm2, %v4101_v2, %v4105_v3  ;;  %v4109_v9 = vor.u32 %v4107_v6, %v4105_v3  ;;  %v4175_v2 = vshll.u32 %v10698_v62, 16  ;;  %v10697_v3 = vld [vmem:[%s11032_s28 + $0x50] sm:$0xff]   ;;  %v10700_v6 = vld [vmem:[%s11032_s28 + $0x80] sm:$0x1f]  }
 0x15d   : > { %9565 = vmatmul.mubr.msk.bf16.gmra.mrb[24].mxu0 %vm1078_vm3, %v1942_v4  ;;  %v10682_v4 = vld [vmem:[%s11032_s28 + $0x38] sm:$0xff]  }
 0x15e   : > { %9568 = vmatprep.mubr.msk.bf16.mxu0 %vm10848_vm0, %v10847_v0  ;;  %v4115_v13 = vshrl.u32 %v10682_v4, 16 }
 0x161   : > { %9825 = vmatmul.mubr.msk.bf16.gmra.mrb[32].mxu1 %vm1078_vm3, %v10660_v7  ;;  %v4111_v7 = vshll.u32 %v10682_v4, 16 }
 0x162   : > { %9828 = vmatprep.mubr.msk.bf16.mxu1 %vm10848_vm0, %v10847_v0 }
 0x163   : > { %v4113_v10 = vrot.slane %v4111_v7, 1 }
 0x165   : > { %9569 = vmatmul.mubr.msk.bf16.gmra.mrb[28].mxu0 %vm1078_vm3, %v1944_v8  ;;  %v10681_v8 = vld [vmem:[%s11032_s28 + $0x10] sm:$0xff]  }
 0x166   : > { %9572 = vmatprep.mubr.msk.bf16.mxu0 %vm10848_vm0, %v10847_v0 }
 0x169   : > { %9829 = vmatmul.mubr.msk.bf16.gmra.mrb[36].mxu1 %vm1078_vm3, %v10662_v11  ;;  %v10684_v11 = vld [vmem:[%s11032_s28 + $0x40] sm:$0xff]  }
 0x16a   : > { %9832 = vmatprep.mubr.msk.bf16.mxu1 %vm10848_vm0, %v10847_v0  ;;  %v4119_v14 = vshll.u32 %v10684_v11, 16 }
 0x16c   : > { %v4121_v18 = vrot.slane %v4119_v14, 1  ;;  %v10701_v14 = vld [vmem:[%s11032_s28 + $0x60] sm:$0xff]  }
 0x16d   : > { %9573 = vmatmul.mubr.msk.bf16.gmra.mrb[32].mxu0 %vm1078_vm3, %v1946_v12  ;;  %v4114_v12 = vsel %vm1415_vm2, %v4109_v9, %v4113_v10  ;;  %v4183_v9 = vshll.u32 %v10700_v6, 16 }
 0x16e   : > { %9576 = vmatprep.mubr.msk.bf16.mxu0 %vm10848_vm0, %v10847_v0 }
 0x171   : > { %9833 = vmatmul.mubr.msk.bf16.gmra.mrb[40].mxu1 %vm1078_vm3, %v10664_v15  ;;  %v10683_v15 = vld [vmem:[%s11032_s28 + $0x18] sm:$0xff]  }
 0x172   : > { %9836 = vmatprep.mubr.msk.bf16.mxu1 %vm10848_vm0, %v10847_v0 }
 0x175   : > { %9577 = vmatmul.mubr.msk.bf16.gmra.mrb[36].mxu0 %vm1078_vm3, %v1948_v17  ;;  %v4117_v17 = vor.u32 %v4115_v13, %v4113_v10  ;;  %v10699_v10 = vld [vmem:[%s11032_s28 + $0x58] sm:$0xff]  }
 0x176   : > { %9580 = vmatprep.mubr.msk.bf16.mxu0 %vm10848_vm0, %v10847_v0 }
 0x179   : > { %9837 = vmatmul.mubr.msk.bf16.gmra.mrb[44].mxu1 %vm1078_vm3, %v10666_v20  ;;  %v4122_v20 = vsel %vm1415_vm2, %v4117_v17, %v4121_v18 }
 0x17a   : > { %9840 = vmatprep.mubr.msk.bf16.mxu1 %vm10848_vm0, %v10847_v0 }
 0x17d   : > { %9581 = vmatmul.mubr.msk.bf16.gmra.mrb[40].mxu0 %vm1078_vm3, %v1950_v21  ;;  %v4123_v21 = vshrl.u32 %v10684_v11, 16 }
 0x17e   : > { %9584 = vmatprep.mubr.msk.bf16.mxu0 %vm10848_vm0, %v10847_v0 }
 0x181   : > { %9841 = vmatmul.mubr.msk.bf16.gmra.mrb[48].mxu1 %vm1078_vm3, %v10668_v24  ;;  %v4125_v24 = vor.u32 %v4123_v21, %v4121_v18  ;;  %v10703_v18 = vld [vmem:[%s11032_s28 + $0x10] sm:$0xfe]  }
 0x182   : > { %9844 = vmatprep.mubr.msk.bf16.mxu1 %vm10848_vm0, %v10847_v0  ;;  %v4584_v21 = vrot.slane %v10703_v18, 1 }
 0x185   : > { %9585 = vmatmul.mubr.msk.bf16.gmra.mrb[44].mxu0 %vm1078_vm3, %v1952_v25  ;;  %v4129_v25 = vrot.slane %v4127_v22, 1 }
 0x186   : > { %9588 = vmatprep.mubr.msk.bf16.mxu0 %vm10848_vm0, %v10847_v0 }
 0x187   : > { %v4130_v27 = vsel %vm1415_vm2, %v4125_v24, %v4129_v25  ;;  %v10706_v24 = vld [vmem:[%s11032_s28 + $0x20] sm:$0xff]  }
 0x189   : > { %9845 = vmatmul.mubr.msk.bf16.gmra.mrb[52].mxu1 %vm1078_vm3, %v10670_v28  ;;  %v4131_v28 = vshrl.u32 %v10686_v19, 16  ;;  %v10704_v19 = vld [vmem:[%s11032_s28 + $0x18] sm:$0xff]  }
 0x18a   : > { %9848 = vmatprep.mubr.msk.bf16.mxu1 %vm10848_vm0, %v10847_v0  ;;  %v4585_v22 = vrot.slane %v10704_v19, 1 }
 0x18b   : > { %v4133_v31 = vor.u32 %v4131_v28, %v4129_v25  ;;  %v10705_v25 = vld [vmem:[%s11032_s28 + $0x70] sm:$0xff]   ;;  %v10708_v28 = vld [vmem:[%s11032_s28 + $0x28] sm:$0xff]  }
 0x18d   : > { %9589 = vmatmul.mubr.msk.bf16.gmra.mrb[48].mxu0 %vm1078_vm3, %v1954_v30  ;;  %v10687_v30 = vld [vmem:[%s11032_s28 + $0x28] sm:$0xff]   ;;  %v4138_v35 = vsel %vm1415_vm2, %v4133_v31, %v4137_v32 }
 0x18e   : > { %9592 = vmatprep.mubr.msk.bf16.mxu0 %vm10848_vm0, %v10847_v0 }
 0x191   : > { %9849 = vmatmul.mubr.msk.bf16.gmra.mrb[56].mxu1 %vm1078_vm3, %v10672_v36  ;;  %v4139_v36 = vshrl.u32 %v10688_v26, 16  ;;  %v4587_v26 = vrot.slane %v10706_v24, 1 }
 0x192   : > { %9854 = vmatprep.mubr.msk.bf16.mxu1 %vm10848_vm0, %v10847_v0 }
 0x193   : > { %v4141_v39 = vor.u32 %v4139_v36, %v4137_v32  ;;  %v10709_v32 = vld [vmem:[%s11032_s28 + $0x30] sm:$0xff]   ;;  %v10710_v36 = vld [vmem:[%s11032_s28 + $0x38] sm:$0xff]  }
 0x194   : > { %v4591_v33 = vrot.slane %v10709_v32, 1  ;;  %v10725_v32 = vld [vmem:[%s11706_s16 + $0x28] sm:$0xff]  }
 0x195   : > { %9593 = vmatmul.mubr.msk.bf16.gmra.mrb[52].mxu0 %vm1078_vm3, %v1956_v40  ;;  %v4145_v40 = vrot.slane %v4143_v37, 1  ;;  %v4593_v37 = vrot.slane %v10710_v36, 1 }
 0x196   : > { %9596 = vmatprep.mubr.msk.bf16.mxu0 %vm10848_vm0, %v10847_v0 }
 0x197   : > { %v4146_v42 = vsel %vm1415_vm2, %v4141_v39, %v4145_v40  ;;  %v10711_v39 = vld [vmem:[%s11032_s28 + $0x40] sm:$0xff]  }
 0x199   : > { %9855 = vmatmul.mubr.msk.bf16.vlgmr.msra.gmra.mrb[0].mxu1 %vm1078_vm3, %v4082_v47  ;;  %v4153_v47 = vrot.slane %v4151_v44, 1 }
 0x19a   : > { %9915 = vmatpush3.bf16.msra.mxu1 %v4659_v50  ;;  %9858 = vmatprep.mubr.msk.bf16.mxu1 %vm10848_vm0, %v10847_v0  ;;  %v4155_v50 = vshrl.u32 %v10692_v41, 16 }
 0x19c   : > { %v4157_v53 = vor.u32 %v4155_v50, %v4153_v47 }
 0x19d   : > { %9597 = vmatmul.mubr.msk.bf16.gmra.mrb[56].mxu0 %vm1078_vm3, %v1958_v51  ;;  %v4159_v51 = vshll.u32 %v10694_v48, 16  ;;  %v10714_v48 = vld [vmem:[%s11032_s28 + $0x58] sm:$0xff]  }
 0x19e   : > { %9600 = vmatprep.mubr.msk.bf16.mxu0 %vm10848_vm0, %v10847_v0 }
 0x19f   : > { %v4161_v54 = vrot.slane %v4159_v51, 1  ;;  %v10715_v51 = vld [vmem:[%s11032_s28 + $0x60] sm:$0xff]  }
 0x1a1   : > { %9859 = vmatmul.mubr.msk.bf16.gmra.mrb[4].mxu1 %vm1078_vm3, %v4090_v55  ;;  %v10696_v55 = vld [vmem:[%s11032_s28 + $0x70] sm:$0xff]   ;;  %v4162_v56 = vsel %vm1415_vm2, %v4157_v53, %v4161_v54  ;;  %v4165_v60 = vor.u32 %v4163_v57, %v4161_v54  ;;  %v10716_v54 = vld [vmem:[%s11032_s28 + $0x68] sm:$0xff]  }
 0x1a2   : > { %9862 = vmatprep.mubr.msk.bf16.mxu1 %vm10848_vm0, %v10847_v0  ;;  %v4167_v58 = vshll.u32 %v10696_v55, 16  ;;  %v10717_v57 = vld [vmem:[%s11032_s28 + $0x70] sm:$0xff]  }
 0x1a5   : > { %9601 = vmatmul.mubr.msk.bf16.gmra.mrb[60].mxu0 %vm1078_vm3, %v1957_v46  ;;  %v4149_v46 = vor.u32 %v4147_v43, %v4145_v40  ;;  %v4595_v40 = vrot.slane %v10711_v39, 1 }
 0x1a6   : > { %9606 = vmatprep.mubr.msk.bf16.mxu0 %vm10848_vm0, %v10847_v0 }
 0x1a7   : > { %v4154_v49 = vsel %vm1415_vm2, %v4149_v46, %v4153_v47  ;;  %v4596_v41 = vsel %vm1929_vm5, %v4593_v37, %v4595_v40 }
 0x1a9   : > { %9863 = vmatmul.mubr.msk.bf16.gmra.mrb[8].mxu1 %vm1078_vm3, %v4098_v61  ;;  %v4169_v61 = vrot.slane %v4167_v58, 1 }
 0x1aa   : > { %9866 = vmatprep.mubr.msk.bf16.mxu1 %vm10848_vm0, %v10847_v0 }
 0x1ab   : > { %v4170_v63 = vsel %vm1415_vm2, %v4165_v60, %v4169_v61 }
 0x1ad   : > { %9607 = vmatmul.mubr.msk.bf16.vlgmr.msra.gmra.mrb[4].mxu0 %vm1078_vm3, %v10679_v1  ;;  %v4171_v1 = vshrl.u32 %v10696_v55, 16  ;;  %v4605_v55 = vrot.slane %v10716_v54, 1 }
 0x1ae   : > { %9610 = vmatprep.mubr.msk.bf16.mxu0 %vm10848_vm0, %v10847_v0 }
 0x1af   : > { %v4173_v4 = vor.u32 %v4171_v1, %v4169_v61  ;;  %v10718_v61 = vld [vmem:[%s11032_s28 + $0x78] sm:$0xff]   ;;  %v10719_v1 = vld [vmem:[%s11032_s28 + $0x80] sm:$0x1f]  }
 0x1b1   : > { %9867 = vmatmul.mubr.msk.bf16.gmra.mrb[12].mxu1 %vm1078_vm3, %v4106_v5  ;;  %v4177_v5 = vrot.slane %v4175_v2, 1  ;;  %v4611_v2 = vrot.slane %v10719_v1, 1 }
 0x1b2   : > { %9870 = vmatprep.mubr.msk.bf16.mxu1 %vm10848_vm0, %v10847_v0 }
 0x1b3   : > { %v4178_v7 = vsel %vm1415_vm2, %v4173_v4, %v4177_v5  ;;  %v10721_v4 = vld [vmem:[%s11706_s16 + $0x8] sm:$0xff]  }
 0x1b5   : > { %9611 = vmatmul.mubr.msk.bf16.gmra.mrb[8].mxu0 %vm1078_vm3, %v10681_v8  ;;  %v4179_v8 = vshrl.u32 %v10698_v62, 16  ;;  %v4609_v62 = vrot.slane %v10718_v61, 1  ;;  %v969_v61 = vrot.slane %v11368_v34, 4 }
 0x1b6   : > { %9614 = vmatprep.mubr.msk.bf16.mxu0 %vm10848_vm0, %v10847_v0 }
 0x1b7   : > { %v4181_v11 = vor.u32 %v4179_v8, %v4177_v5  ;;  %v10722_v5 = vld [vmem:[%s11706_s16 + $0x10] sm:$0xff]  }
 0x1b9   : > { %9871 = vmatmul.mubr.msk.bf16.gmra.mrb[16].mxu1 %vm1078_vm3, %v4114_v12  ;;  %v4185_v12 = vrot.slane %v4183_v9, 1 }
 0x1ba   : > { %9874 = vmatprep.mubr.msk.bf16.mxu1 %vm10848_vm0, %v10847_v0 }
 0x1bb   : > { %v4186_v13 = vsel %vm1415_vm2, %v4181_v11, %v4185_v12 }
 0x1bd   : > { %9615 = vmatmul.mubr.msk.bf16.gmra.mrb[12].mxu0 %vm1078_vm3, %v10683_v15  ;;  %v4187_v15 = vshrl.u32 %v10700_v6, 16 }
 0x1be   : > { %9618 = vmatprep.mubr.msk.bf16.mxu0 %vm10848_vm0, %v10847_v0 }
 0x1bf   : > { %v4189_v17 = vor.u32 %v4187_v15, %v4185_v12 }
 0x1c1   : > { %9875 = vmatmul.mubr.msk.bf16.gmra.mrb[20].mxu1 %vm1078_vm3, %v4122_v20  ;;  %v10702_v20 = vld [vmem:[%s11032_s28 + $0x68] sm:$0xff]  }
 0x1c2   : > { %9878 = vmatprep.mubr.msk.bf16.mxu1 %vm10848_vm0, %v10847_v0 }
 0x1c5   : > { %9619 = vmatmul.mubr.msk.bf16.gmra.mrb[16].mxu0 %vm1078_vm3, %v10685_v23  ;;  %v4586_v23 = vsel %vm1929_vm5, %v4584_v21, %v4585_v22 }
 0x1c6   : > { %9622 = vmatprep.mubr.msk.bf16.mxu0 %vm10848_vm0, %v10847_v0 }
 0x1c9   : > { %9879 = vmatmul.mubr.msk.bf16.gmra.mrb[24].mxu1 %vm1078_vm3, %v4130_v27  ;;  %v4588_v27 = vsel %vm1929_vm5, %v4585_v22, %v4587_v26 }
 0x1ca   : > { %9882 = vmatprep.mubr.msk.bf16.mxu1 %vm10848_vm0, %v10847_v0 }
 0x1cd   : > { %9623 = vmatmul.mubr.msk.bf16.gmra.mrb[20].mxu0 %vm1078_vm3, %v10687_v30  ;;  %v4589_v30 = vrot.slane %v10708_v28, 1 }
 0x1ce   : > { %9626 = vmatprep.mubr.msk.bf16.mxu0 %vm10848_vm0, %v10847_v0 }
 0x1cf   : > { %v4590_v31 = vsel %vm1929_vm5, %v4587_v26, %v4589_v30 }
 0x1d1   : > { %9883 = vmatmul.mubr.msk.bf16.gmra.mrb[28].mxu1 %vm1078_vm3, %v4138_v35  ;;  %v4592_v35 = vsel %vm1929_vm5, %v4589_v30, %v4591_v33 }
 0x1d2   : > { %9886 = vmatprep.mubr.msk.bf16.mxu1 %vm10848_vm0, %v10847_v0 }
 0x1d5   : > { %9627 = vmatmul.mubr.msk.bf16.gmra.mrb[24].mxu0 %vm1078_vm3, %v10689_v38  ;;  %v4594_v38 = vsel %vm1929_vm5, %v4591_v33, %v4593_v37 }
 0x1d6   : > { %9630 = vmatprep.mubr.msk.bf16.mxu0 %vm10848_vm0, %v10847_v0 }
 0x1d9   : > { %9887 = vmatmul.mubr.msk.bf16.gmra.mrb[32].mxu1 %vm1078_vm3, %v4146_v42  ;;  %v10712_v42 = vld [vmem:[%s11032_s28 + $0x48] sm:$0xff]  }
 0x1da   : > { %9890 = vmatprep.mubr.msk.bf16.mxu1 %vm10848_vm0, %v10847_v0  ;;  %v4597_v43 = vrot.slane %v10712_v42, 1 }
 0x1dc   : > { %v4598_v44 = vsel %vm1929_vm5, %v4595_v40, %v4597_v43 }
 0x1dd   : > { %9631 = vmatmul.mubr.msk.bf16.gmra.mrb[28].mxu0 %vm1078_vm3, %v10691_v45  ;;  %v10713_v45 = vld [vmem:[%s11032_s28 + $0x50] sm:$0xff]   ;;  %s12285_s28 = scalar_lea.vmem %s15086_s10, %s11014_s30 }
 0x1de   : > { %9634 = vmatprep.mubr.msk.bf16.mxu0 %vm10848_vm0, %v10847_v0  ;;  %v4599_v46 = vrot.slane %v10713_v45, 1 }
 0x1e0   : > { %v4600_v47 = vsel %vm1929_vm5, %v4597_v43, %v4599_v46 }
 0x1e1   : > { %9891 = vmatmul.mubr.msk.bf16.gmra.mrb[36].mxu1 %vm1078_vm3, %v4154_v49  ;;  %v4601_v49 = vrot.slane %v10714_v48, 1 }
 0x1e2   : > { %9894 = vmatprep.mubr.msk.bf16.mxu1 %vm10848_vm0, %v10847_v0 }
 0x1e3   : > { %v4602_v50 = vsel %vm1929_vm5, %v4599_v46, %v4601_v49 }
 0x1e5   : > { %9635 = vmatmul.mubr.msk.bf16.gmra.mrb[32].mxu0 %vm1078_vm3, %v10693_v52  ;;  %v4603_v52 = vrot.slane %v10715_v51, 1 }
 0x1e6   : > { %9638 = vmatprep.mubr.msk.bf16.mxu0 %vm10848_vm0, %v10847_v0 }
 0x1e7   : > { %v4604_v53 = vsel %vm1929_vm5, %v4601_v49, %v4603_v52  ;;  %v4606_v58 = vsel %vm1929_vm5, %v4603_v52, %v4605_v55  ;;  %v10727_v49 = vld [vmem:[%s11706_s16 + $0x38] sm:$0xff]  }
 0x1e9   : > { %9895 = vmatmul.mubr.msk.bf16.gmra.mrb[40].mxu1 %vm1078_vm3, %v4162_v56  ;;  %v10720_v56 = vld [vmem:[%s11706_s16] sm:$0xff]  }
 0x1ea   : > { %9898 = vmatprep.mubr.msk.bf16.mxu1 %vm10848_vm0, %v10847_v0  ;;  %9976 = vmatprep.subr.bf16.mxu0 %v10720_v56 }
 0x1eb   : > { %9977 = vmatpush3.bf16.msra.mxu0 %v10720_v56 }
 0x1ec   : > { %9978 = vmatprep.subr.bf16.mxu0 %v10721_v4 }
 0x1ed   : > { %9639 = vmatmul.mubr.msk.bf16.gmra.mrb[36].mxu0 %vm1078_vm3, %v10695_v59  ;;  %v4607_v59 = vrot.slane %v10717_v57, 1 }
 0x1ee   : > { %9642 = vmatprep.mubr.msk.bf16.mxu0 %vm10848_vm0, %v10847_v0 }
 0x1ef   : > { %v4608_v60 = vsel %vm1929_vm5, %v4605_v55, %v4607_v59  ;;  %9979 = vmatpush3.bf16.msra.mxu0 %v10721_v4 }
 0x1f0   : > { %9980 = vmatprep.subr.bf16.mxu0 %v10722_v5 }
 0x1f1   : > { %9899 = vmatmul.mubr.msk.bf16.gmra.mrb[44].mxu1 %vm1078_vm3, %v4170_v63  ;;  %v4610_v63 = vsel %vm1929_vm5, %v4607_v59, %v4609_v62 }
 0x1f2   : > { %9902 = vmatprep.mubr.msk.bf16.mxu1 %vm10848_vm0, %v10847_v0 }
 0x1f3   : > { %9981 = vmatpush3.bf16.msra.mxu0 %v10722_v5  ;;  %v11803_v5 = vld [vmem:[%s11791_s29] ss:$0 sm:$0xff] }
 0x1f5   : > { %9643 = vmatmul.mubr.msk.bf16.gmra.mrb[40].mxu0 %vm1078_vm3, %v10697_v3  ;;  %v4612_v3 = vsel %vm1929_vm5, %v4609_v62, %v4611_v2 }
 0x1f6   : > { %9646 = vmatprep.mubr.msk.bf16.mxu0 %vm10848_vm0, %v10847_v0 }
 0x1f9   : > { %9903 = vmatmul.mubr.msk.bf16.gmra.mrb[48].mxu1 %vm1078_vm3, %v4178_v7 }
 0x1fa   : > { %9906 = vmatprep.mubr.msk.bf16.mxu1 %vm10848_vm0, %v10847_v0 }
 0x1fd   : > { %9647 = vmatmul.mubr.msk.bf16.gmra.mrb[44].mxu0 %vm1078_vm3, %v10699_v10 }
 0x1fe   : > { %9650 = vmatprep.mubr.msk.bf16.mxu0 %vm10848_vm0, %v10847_v0 }
 0x201   : > { %9907 = vmatmul.mubr.msk.bf16.gmra.mrb[52].mxu1 %vm1078_vm3, %v4186_v13 }
 0x202   : > { %9910 = vmatprep.mubr.msk.bf16.mxu1 %vm10848_vm0, %v10847_v0 }
 0x205   : > { %9651 = vmatmul.mubr.msk.bf16.gmra.mrb[48].mxu0 %vm1078_vm3, %v10701_v14 }
 0x206   : > { %9654 = vmatprep.mubr.msk.bf16.mxu0 %vm10848_vm0, %v10847_v0 }
 0x209   : > { %9911 = vmatmul.mubr.msk.bf16.gmra.mrb[56].mxu1 %vm1078_vm3, %v4189_v17 }
 0x20a   : > { %9916 = vmatprep.mubr.msk.bf16.mxu1 %vm10848_vm0, %v10847_v0 }
 0x20d   : > { %9655 = vmatmul.mubr.msk.bf16.gmra.mrb[52].mxu0 %vm1078_vm3, %v10702_v20 }
 0x20e   : > { %9658 = vmatprep.mubr.msk.bf16.mxu0 %vm10848_vm0, %v10847_v0 }
 0x211   : > { %9917 = vmatmul.mubr.msk.bf16.vlgmr.msra.gmra.mrb[0].mxu1 %vm1078_vm3, %v4586_v23  ;;  %v10724_v23 = vld [vmem:[%s11706_s16 + $0x20] sm:$0xff]  }
 0x212   : > { %9920 = vmatprep.mubr.msk.bf16.mxu1 %vm10848_vm0, %v10847_v0 }
 0x215   : > { %9659 = vmatmul.mubr.msk.bf16.gmra.mrb[56].mxu0 %vm1078_vm3, %v10705_v25 }
 0x216   : > { %9662 = vmatprep.mubr.msk.bf16.mxu0 %vm10848_vm0, %v10847_v0 }
 0x219   : > { %9921 = vmatmul.mubr.msk.bf16.gmra.mrb[4].mxu1 %vm1078_vm3, %v4588_v27 }
 0x21a   : > { %9924 = vmatprep.mubr.msk.bf16.mxu1 %vm10848_vm0, %v10847_v0 }
 0x21d   : > { %9663 = vmatmul.mubr.msk.bf16.gmra.mrb[60].mxu0 %vm1078_vm3, %v10707_v29 }
 0x221   : > { %9925 = vmatmul.mubr.msk.bf16.gmra.mrb[8].mxu1 %vm1078_vm3, %v4590_v31 }
 0x222   : > { %9928 = vmatprep.mubr.msk.bf16.mxu1 %vm10848_vm0, %v10847_v0 }
 0x229   : > { %9929 = vmatmul.mubr.msk.bf16.gmra.mrb[12].mxu1 %vm1078_vm3, %v4592_v35  ;;  %v10726_v35 = vld [vmem:[%s11706_s16 + $0x30] sm:$0xff]  }
 0x22a   : > { %9932 = vmatprep.mubr.msk.bf16.mxu1 %vm10848_vm0, %v10847_v0 }
 0x231   : > { %9933 = vmatmul.mubr.msk.bf16.gmra.mrb[16].mxu1 %vm1078_vm3, %v4594_v38 }
 0x232   : > { %9936 = vmatprep.mubr.msk.bf16.mxu1 %vm10848_vm0, %v10847_v0 }
 0x239   : > { %9937 = vmatmul.mubr.msk.bf16.gmra.mrb[20].mxu1 %vm1078_vm3, %v4596_v41 }
 0x23a   : > { %9940 = vmatprep.mubr.msk.bf16.mxu1 %vm10848_vm0, %v10847_v0 }
 0x241   : > { %9941 = vmatmul.mubr.msk.bf16.gmra.mrb[24].mxu1 %vm1078_vm3, %v4598_v44 }
 0x242   : > { %9944 = vmatprep.mubr.msk.bf16.mxu1 %vm10848_vm0, %v10847_v0 }
 0x249   : > { %9945 = vmatmul.mubr.msk.bf16.gmra.mrb[28].mxu1 %vm1078_vm3, %v4600_v47 }
 0x24a   : > { %9948 = vmatprep.mubr.msk.bf16.mxu1 %vm10848_vm0, %v10847_v0 }
 0x251   : > { %9949 = vmatmul.mubr.msk.bf16.gmra.mrb[32].mxu1 %vm1078_vm3, %v4602_v50 }
 0x252   : > { %9952 = vmatprep.mubr.msk.bf16.mxu1 %vm10848_vm0, %v10847_v0 }
 0x259   : > { %9953 = vmatmul.mubr.msk.bf16.gmra.mrb[36].mxu1 %vm1078_vm3, %v4604_v53 }
 0x25a   : > { %9956 = vmatprep.mubr.msk.bf16.mxu1 %vm10848_vm0, %v10847_v0 }
 0x261   : > { %9957 = vmatmul.mubr.msk.bf16.gmra.mrb[40].mxu1 %vm1078_vm3, %v4606_v58 }
 0x262   : > { %9960 = vmatprep.mubr.msk.bf16.mxu1 %vm10848_vm0, %v10847_v0 }
 0x269   : > { %9961 = vmatmul.mubr.msk.bf16.gmra.mrb[44].mxu1 %vm1078_vm3, %v4608_v60  ;;  %v5078_v60 = vlaneseq }
 0x26a   : > { %9964 = vmatprep.mubr.msk.bf16.mxu1 %vm10848_vm0, %v10847_v0 }
 0x271   : > { %9965 = vmatmul.mubr.msk.bf16.gmra.mrb[48].mxu1 %vm1078_vm3, %v4610_v63  ;;  %v5079_v63 = vshrl.u32 %v5078_v60, 7 }
 0x272   : > { %9968 = vmatprep.mubr.msk.bf16.mxu1 %vm10848_vm0, %v10847_v0 }
 0x279   : > { %9969 = vmatmul.mubr.msk.bf16.gmra.mrb[52].mxu1 %vm1078_vm3, %v4612_v3  ;;  %v970_v3 = vadd.f32 %v969_v61, %v11368_v34  ;;  %v10738_v61 = vld [vmem:[%s11343_s20] sm:$0xff] }
 0x27a   : > { %9972 = vmatprep.mubr.msk.bf16.mxu1 %vm10848_vm0, %v10847_v0  ;;  %v10723_v0 = vld [vmem:[%s11706_s16 + $0x18] sm:$0xff]  }
 0x27b   : > { %9982 = vmatprep.subr.bf16.mxu0 %v10723_v0 }
 0x27c   : > { %9983 = vmatpush3.bf16.msra.mxu0 %v10723_v0  ;;  %v5656_v0 = vsub.s32 5, %v5079_v63 }
 0x27d   : > { %9984 = vmatprep.subr.bf16.mxu0 %v10724_v23 }
 0x280   : > { %v11730_v6 = vpop.f32.mrb[4].mxu0  ;;  %9985 = vmatpush3.bf16.msra.mxu0 %v10724_v23  ;;  %v971_v23 = vrot.slane %v970_v3, 2 }
 0x281   : > { %v9608_v7 = vpop.f32.mrb[5].mxu0  ;;  %9973 = vmatmul.mubr.msk.bf16.gmra.mrb[56].mxu1 %vm1078_vm3, %v4611_v2  ;;  %9986 = vmatprep.subr.bf16.mxu0 %v10725_v32 }
 0x282   : > { %v11732_v8 = vpop.f32.mrb[6].mxu0  ;;  %v5104_v7 = vsub.s32 1, %v5079_v63 }
 0x283   : > { %v9609_v9 = vpop.f32.mrb[7].mxu0 }
 0x284   : > { %9987 = vmatpush3.bf16.msra.mxu0 %v10725_v32  ;;  %v5232_v9 = vsub.s32 2, %v5079_v63  ;;  %v11806_v34 = vrot.slane %v11355_v16, %v5104_v7 }
 0x285   : > { %9988 = vmatprep.subr.bf16.mxu0 %v10726_v35 }
 0x286   : > { %15510 = vst [vmem:[#allocation25_spill] sm:$0xff] %v11806_v34 }
 0x288   : > { %v11735_v10 = vpop.f32.mrb[8].mxu0  ;;  %9989 = vmatpush3.bf16.msra.mxu0 %v10726_v35  ;;  %v11822_v35 = vrot.slane %v11355_v16, %v5656_v0 }
 0x289   : > { %v9612_v11 = vpop.f32.mrb[9].mxu0  ;;  %9990 = vmatprep.subr.bf16.mxu0 %v10727_v49 }
 0x28a   : > { %v11737_v12 = vpop.f32.mrb[10].mxu0  ;;  %v5360_v11 = vsub.s32 3, %v5079_v63  ;;  %15514 = vst [vmem:[#allocation29_spill] sm:$0xff] %v11822_v35 }
 0x28b   : > { %v9613_v13 = vpop.f32.mrb[11].mxu0 }
 0x28c   : > { %9991 = vmatpush3.bf16.msra.mxu0 %v10727_v49  ;;  %v5488_v13 = vsub.s32 4, %v5079_v63 }
 0x28e   : > { %v11819_v32 = vrot.slane %v11355_v16, %v5488_v13 }
 0x290   : > { %v11740_v14 = vpop.f32.mrb[12].mxu0  ;;  %15513 = vst [vmem:[#allocation28_spill] sm:$0xff] %v11819_v32 }
 0x291   : > { %v9616_v15 = vpop.f32.mrb[13].mxu0 }
 0x292   : > { %v11742_v17 = vpop.f32.mrb[14].mxu0  ;;  %v5680_v15 = vsub.s32 6, %v5079_v63 }
 0x293   : > { %v9617_v18 = vpop.f32.mrb[15].mxu0 }
 0x294   : > { %v5807_v18 = vsub.s32 7, %v5079_v63 }
 0x298   : > { %v11744_v19 = vpop.f32.mrb[16].mxu0 }
 0x299   : > { %v9620_v20 = vpop.f32.mrb[17].mxu0 }
 0x29a   : > { %v11746_v21 = vpop.f32.mrb[18].mxu0 }
 0x29b   : > { %v9621_v22 = vpop.f32.mrb[19].mxu0 }
 0x29c   : > { %v11809_v22 = vrot.slane %v11355_v16, %v5232_v9 }
 0x29e   : > { %15511 = vst [vmem:[#allocation26_spill] sm:$0xff] %v11809_v22 }
 0x2a0   : > { %v11749_v24 = vpop.f32.mrb[20].mxu0 }
 0x2a1   : > { %v9624_v25 = vpop.f32.mrb[21].mxu0 }
 0x2a2   : > { %v11751_v26 = vpop.f32.mrb[22].mxu0 }
 0x2a3   : > { %v9625_v27 = vpop.f32.mrb[23].mxu0 }
 0x2a8   : > { %v11753_v28 = vpop.f32.mrb[24].mxu0 }
 0x2a9   : > { %v9628_v29 = vpop.f32.mrb[25].mxu0 }
 0x2aa   : > { %v11755_v30 = vpop.f32.mrb[26].mxu0  ;;  %v11813_v29 = vld [vmem:[%s11800_s0] ss:$0 sm:$0xff] }
 0x2ab   : > { %v9629_v31 = vpop.f32.mrb[27].mxu0 }
 0x2ac   : > { %v11816_v31 = vrot.slane %v11355_v16, %v5360_v11 }
 0x2ae   : > { %15512 = vst [vmem:[#allocation27_spill] sm:$0xff] %v11816_v31 }
 0x2b0   : > { %v11758_v33 = vpop.f32.mrb[28].mxu0 }
 0x2b1   : > { %v9632_v36 = vpop.f32.mrb[29].mxu0 }
 0x2b2   : > { %v11761_v37 = vpop.f32.mrb[30].mxu0  ;;  %v10736_v36 = vld [vmem:[%s11343_s20 + $0x8] sm:$0xff] }
 0x2b3   : > { %v9633_v38 = vpop.f32.mrb[31].mxu0 }
 0x2b4   : > { %v11825_v38 = vrot.slane %v10736_v36, %v5680_v15 }
 0x2b6   : > { %15515 = vst [vmem:[#allocation30_spill] sm:$0xff] %v11825_v38 }
 0x2b8   : > { %v11763_v39 = vpop.f32.mrb[32].mxu0 }
 0x2b9   : > { %v9636_v40 = vpop.f32.mrb[33].mxu0 }
 0x2ba   : > { %v11765_v41 = vpop.f32.mrb[34].mxu0 }
 0x2bb   : > { %v9637_v42 = vpop.f32.mrb[35].mxu0 }
 0x2c0   : > { %v11767_v43 = vpop.f32.mrb[36].mxu0 }
 0x2c1   : > { %v9640_v44 = vpop.f32.mrb[37].mxu0 }
 0x2c2   : > { %v11769_v45 = vpop.f32.mrb[38].mxu0  ;;  %v5080_v44 = vsub.s32 0, %v5079_v63  ;;  %v972_v63 = vadd.f32 %v971_v23, %v970_v3  ;;  %v11862_v23 = vrot.slane %v10738_v61, %v5488_v13 }
 0x2c3   : > { %15501 = vst [vmem:[#allocation16_spill] sm:$0xff] %v11769_v45  ;;  %v9641_v46 = vpop.f32.mrb[39].mxu0 }
 0x2c4   : > { %15528 = vst [vmem:[#allocation43_spill] sm:$0xff] %v11862_v23 }
 0x2c8   : > { %v11771_v47 = vpop.f32.mrb[40].mxu0 }
 0x2c9   : > { %15502 = vst [vmem:[#allocation17_spill] sm:$0xff] %v11771_v47  ;;  %v9644_v48 = vpop.f32.mrb[41].mxu0 }
 0x2ca   : > { %v11774_v50 = vpop.f32.mrb[42].mxu0 }
 0x2cb   : > { %15503 = vst [vmem:[#allocation18_spill] sm:$0xff] %v11774_v50  ;;  %v9645_v51 = vpop.f32.mrb[43].mxu0 }
 0x2d0   : > { %v11776_v52 = vpop.f32.mrb[44].mxu0 }
 0x2d1   : > { %15504 = vst [vmem:[#allocation19_spill] sm:$0xff] %v11776_v52  ;;  %v9648_v53 = vpop.f32.mrb[45].mxu0 }
 0x2d2   : > { %v11778_v54 = vpop.f32.mrb[46].mxu0  ;;  %v10737_v53 = vld [vmem:[%s11343_s20 + $0x10] sm:$0xff] }
 0x2d3   : > { %15505 = vst [vmem:[#allocation20_spill] sm:$0xff] %v11778_v54  ;;  %v9649_v55 = vpop.f32.mrb[47].mxu0  ;;  %v11836_v16 = vrot.slane %v10737_v53, %v5232_v9 }
 0x2d4   : > { %v11834_v55 = vrot.slane %v10737_v53, %v5104_v7 }
 0x2d5   : > { %15519 = vst [vmem:[#allocation34_spill] sm:$0xff] %v11836_v16 }
 0x2d6   : > { %15518 = vst [vmem:[#allocation33_spill] sm:$0xff] %v11834_v55 }
 0x2d8   : > { %v11780_v56 = vpop.f32.mrb[48].mxu0 }
 0x2d9   : > { %15506 = vst [vmem:[#allocation21_spill] sm:$0xff] %v11780_v56  ;;  %v9652_v57 = vpop.f32.mrb[49].mxu0 }
 0x2da   : > { %v11782_v58 = vpop.f32.mrb[50].mxu0  ;;  %v11838_v57 = vrot.slane %v10737_v53, %v5360_v11 }
 0x2db   : > { %15507 = vst [vmem:[#allocation22_spill] sm:$0xff] %v11782_v58  ;;  %v9653_v59 = vpop.f32.mrb[51].mxu0 }
 0x2dc   : > { %15520 = vst [vmem:[#allocation35_spill] sm:$0xff] %v11838_v57  ;;  %v11840_v59 = vrot.slane %v10737_v53, %v5488_v13 }
 0x2de   : > { %15521 = vst [vmem:[#allocation36_spill] sm:$0xff] %v11840_v59 }
 0x2e0   : > { %v11785_v62 = vpop.f32.mrb[52].mxu0 }
 0x2e1   : > { %15508 = vst [vmem:[#allocation23_spill] sm:$0xff] %v11785_v62  ;;  %v9656_v1 = vpop.f32.mrb[53].mxu0 }
 0x2e2   : > { %v11793_v2 = vpop.f32.mrb[54].mxu0  ;;  %v11845_v1 = vrot.slane %v10738_v61, %v5104_v7 }
 0x2e3   : > { %15509 = vst [vmem:[#allocation24_spill] sm:$0xff] %v11793_v2  ;;  %v9657_v4 = vpop.f32.mrb[55].mxu0  ;;  %v973_v2 = vrot.slane %v972_v63, 1 }
 0x2e4   : > { %v4695_v20 = vpop.f32.mrb[0].mxu1 }
 0x2e5   : > { %v10048_v25 = vadd.f32 %v4695_v20, %v11730_v6  ;;  %v9918_v27 = vpop.f32.mrb[1].mxu1  ;;  %v11829_v6 = vrot.slane %v10736_v36, %v5807_v18 }
 0x2e6   : > { %v4698_v40 = vpop.f32.mrb[2].mxu1  ;;  %v11851_v27 = vrot.slane %v10737_v53, %v5680_v15 }
 0x2e7   : > { %15517 = vst [vmem:[#allocation32_spill] sm:$0xff] %v11829_v6  ;;  %v4935_v46 = vmul.f32 %v10048_v25, %v11803_v5  ;;  %v10049_v48 = vadd.f32 %v4698_v40, %v11732_v8  ;;  %v9919_v49 = vpop.f32.mrb[3].mxu1  ;;  %v11849_v25 = vrot.slane %v10737_v53, %v5656_v0  ;;  %v11853_v40 = vrot.slane %v10738_v61, %v5232_v9 }
 0x2e8   : > { %v11827_v42 = vpop.f32.mrb[56].mxu0  ;;  %15524 = vst [vmem:[#allocation39_spill] sm:$0xff] %v11851_v27  ;;  %v11855_v49 = vrot.slane %v10738_v61, %v5360_v11  ;;  %v11870_v9 = vrot.slane %v10736_v36, %v5080_v44  ;;  %v11872_v11 = vrot.slane %v10737_v53, %v5080_v44 }
 0x2e9   : > { %15516 = vst [vmem:[#allocation31_spill] sm:$0xff] %v11827_v42  ;;  %v9660_v51 = vpop.f32.mrb[57].mxu0  ;;  %v4970_v4 = vadd.f32 %v11813_v29, %v4935_v46  ;;  %v4936_v8 = vmul.f32 %v10049_v48, %v11803_v5  ;;  %15523 = vst [vmem:[#allocation38_spill] sm:$0xff] %v11849_v25  ;;  %v11864_v46 = vrot.slane %v10738_v61, %v5656_v0 }
 0x2ea   : > { %v11842_v60 = vpop.f32.mrb[58].mxu0  ;;  %15525 = vst [vmem:[#allocation40_spill] sm:$0xff] %v11853_v40  ;;  %15526 = vst [vmem:[#allocation41_spill] sm:$0xff] %v11855_v49  ;;  %v11857_v51 = vrot.slane %v10737_v53, %v5807_v18  ;;  %v11866_v48 = vrot.slane %v10738_v61, %v5680_v15 }
 0x2eb   : > { %15522 = vst [vmem:[#allocation37_spill] sm:$0xff] %v11842_v60  ;;  %v9661_v20 = vpop.f32.mrb[59].mxu0  ;;  %v11859_v60 = vrot.slane %v10738_v61, %v5080_v44  ;;  %v4999_v7 = vmax.f32 %v4970_v4, 0.0  ;;  %v4971_v3 = vadd.f32 %v11813_v29, %v4936_v8  ;;  %15529 = vst [vmem:[#allocation44_spill] sm:$0xff] %v11864_v46 }
 0x2ec   : > { %15527 = vst [vmem:[#allocation42_spill] sm:$0xff] %v11857_v51  ;;  %15530 = vst [vmem:[#allocation45_spill] sm:$0xff] %v11866_v48  ;;  %v11868_v20 = vrot.slane %v10738_v61, %v5807_v18  ;;  %v4703_v42 = vpop.f32.mrb[4].mxu1 }
 0x2ed   : > { %15532 = vst [vmem:[#allocation47_spill] sm:$0xff] %v11870_v9  ;;  %15533 = vst [vmem:[#allocation48_spill] sm:$0xff] %v11872_v11  ;;  %v5106_v62 = vmul.f32 %v11845_v1, %v4999_v7  ;;  %v9922_v58 = vpop.f32.mrb[5].mxu1  ;;  %v5234_v4 = vmul.f32 %v11853_v40, %v4999_v7  ;;  %v5362_v13 = vmul.f32 %v11855_v49, %v4999_v7  ;;  %v5000_v8 = vmax.f32 %v4971_v3, 0.0 }
 0x2ee   : > { %15531 = vst [vmem:[#allocation46_spill] sm:$0xff] %v11868_v20  ;;  %v10050_v0 = vadd.f32 %v4703_v42, %v11735_v10  ;;  %v4706_v15 = vpop.f32.mrb[6].mxu1  ;;  %v5082_v18 = vmul.f32 %v11859_v60, %v4999_v7  ;;  %v5490_v58 = vmul.f32 %v11862_v23, %v4999_v7 }
 0x2ef   : > { %v10051_v36 = vadd.f32 %v4706_v15, %v11737_v12  ;;  %v9923_v44 = vpop.f32.mrb[7].mxu1  ;;  %v5149_v61 = vrot.slane %v5106_v62, 1  ;;  %v5107_v54 = vmul.f32 %v11845_v1, %v5000_v8  ;;  %v5235_v3 = vmul.f32 %v11853_v40, %v5000_v8 }
 0x2f0   : > { %v11878_v56 = vpop.f32.mrb[60].mxu0  ;;  %v5363_v42 = vmul.f32 %v11855_v49, %v5000_v8  ;;  %v4937_v52 = vmul.f32 %v10050_v0, %v11803_v5  ;;  %v5277_v15 = vrot.slane %v5234_v4, 2  ;;  %v5405_v44 = vrot.slane %v5362_v13, 3 }
 0x2f1   : > { %15534 = vst [vmem:[#allocation49_spill] sm:$0xff] %v11878_v56  ;;  %v9664_v53 = vpop.f32.mrb[61].mxu0  ;;  %v5491_v56 = vmul.f32 %v11862_v23, %v5000_v8  ;;  %v4938_v50 = vmul.f32 %v10051_v36, %v11803_v5  ;;  %v5150_v62 = vrot.slane %v5107_v54, 1  ;;  %v5532_v25 = vrot.slane %v5490_v58, 4 }
 0x2f2   : > { %v2547_v10 = vpop.f32.mrb[62].mxu0  ;;  %v5278_v53 = vrot.slane %v5235_v3, 2  ;;  %v5406_v7 = vrot.slane %v5363_v42, 3  ;;  %v4972_v47 = vadd.f32 %v11813_v29, %v4937_v52  ;;  %v11896_v36 = vadd.f32 %v973_v2, %v972_v63 }
 0x2f3   : > { %v9665_v12 = vpop.f32.mrb[63].mxu0  ;;  %v5533_v51 = vrot.slane %v5491_v56, 4  ;;  %v4973_v27 = vadd.f32 %v11813_v29, %v4938_v50  ;;  %v11892_v10 = vld [vmem:[%s11343_s20 + $0x18] ss:$0 sm:$0xff]  ;;  %v5151_v45 = vsel %vm1929_vm5, %v5149_v61, %v5150_v62  ;;  %v5083_v52 = vmul.f32 %v11859_v60, %v5000_v8 }
 0x2f4   : > { %15535 = vst [vmem:[#allocation50_spill] sm:$0xff] %v11892_v10  ;;  %v5279_v0 = vsel %vm5276_vm7, %v5277_v15, %v5278_v53  ;;  %v4711_v59 = vpop.f32.mrb[8].mxu1  ;;  %v5210_v4 = vadd.f32 %v5151_v45, %v5082_v18  ;;  %v5407_v54 = vsel %vm5404_vm8, %v5405_v44, %v5406_v7  ;;  %v11899_v13 = vmax.f32 %v4972_v47, 0.0 }
 0x2f5   : > { %v9926_v56 = vpop.f32.mrb[9].mxu1  ;;  %v11902_v3 = vmax.f32 %v4973_v27, 0.0  ;;  %v10052_v50 = vadd.f32 %v4711_v59, %v11740_v14  ;;  %v5534_v61 = vsel %vm883_vm1, %v5532_v25, %v5533_v51 }
 0x2f6   : > { %v4714_v58 = vpop.f32.mrb[10].mxu1  ;;  %v5338_v42 = vadd.f32 %v5279_v0, %v5210_v4  ;;  %v11909_v45 = vmul.f32 %v11845_v1, %v11899_v13  ;;  %v11913_v47 = vmul.f32 %v11853_v40, %v11899_v13  ;;  %v11918_v14 = vmul.f32 %v11855_v49, %v11899_v13 }
 0x2f7   : > { %v10053_v12 = vadd.f32 %v4714_v58, %v11742_v17  ;;  %v9927_v2 = vpop.f32.mrb[11].mxu1  ;;  %v4939_v63 = vmul.f32 %v10052_v50, %v11803_v5  ;;  %v11922_v59 = vmul.f32 %v11862_v23, %v11899_v13  ;;  %v5658_v17 = vmul.f32 %v11864_v46, %v11899_v13 }
 0x2f8   : > { %15536 = vst [vmem:[#allocation51_spill] sm:$0xff] %v11918_v14  ;;  %v15109_v27 = vrot.slane %v11909_v45, 1  ;;  %v15112_v8 = vrot.slane %v11913_v47, 2  ;;  %v5466_v18 = vadd.f32 %v5407_v54, %v5338_v42  ;;  %v15111_v44 = vrot.slane %v11918_v14, 3 }
 0x2f9   : > { %15537 = vst [vmem:[#allocation52_spill] sm:$0xff] %v11922_v59  ;;  %v4940_v25 = vmul.f32 %v10053_v12, %v11803_v5  ;;  %v4974_v15 = vadd.f32 %v11813_v29, %v4939_v63  ;;  %v15110_v0 = vrot.slane %v11922_v59, 4  ;;  %v5659_v4 = vmul.f32 %v11864_v46, %v11902_v3 }
 0x2fa   : > { %v5153_v50 = vsel %vm1929_vm5, %v5150_v62, %v15109_v27  ;;  %v5281_v58 = vsel %vm5276_vm7, %v5278_v53, %v15112_v8  ;;  %v11941_v54 = vadd.f32 %v5534_v61, %v5466_v18  ;;  %v5409_v63 = vsel %vm5404_vm8, %v5406_v7, %v15111_v44 }
 0x2fb   : > { %v4975_v56 = vadd.f32 %v11813_v29, %v4940_v25  ;;  %v11943_v42 = vmax.f32 %v4974_v15, 0.0  ;;  %v5211_v2 = vadd.f32 %v5153_v50, %v5083_v52  ;;  %v5536_v25 = vsel %vm883_vm1, %v5533_v51, %v15110_v0 }
 0x2fc   : > { %v4719_v12 = vpop.f32.mrb[12].mxu1  ;;  %v5682_v53 = vmul.f32 %v11866_v48, %v11899_v13  ;;  %v5683_v61 = vmul.f32 %v11866_v48, %v11902_v3  ;;  %v5809_v51 = vmul.f32 %v11868_v20, %v11899_v13  ;;  %v5810_v15 = vmul.f32 %v11868_v20, %v11902_v3 }
 0x2fd   : > { %v11951_v46 = vmax.f32 %v4975_v56, 0.0  ;;  %v10054_v62 = vadd.f32 %v4719_v12, %v11744_v19  ;;  %v9930_v27 = vpop.f32.mrb[13].mxu1  ;;  %v5339_v18 = vadd.f32 %v5281_v58, %v5211_v2  ;;  %v11960_v7 = vmul.f32 %v11866_v48, %v11943_v42 }
 0x2fe   : > { %v4722_v52 = vpop.f32.mrb[14].mxu1  ;;  %v5724_v50 = vrot.slane %v5682_v53, 1  ;;  %v5725_v12 = vrot.slane %v5683_v61, 1  ;;  %v11971_v2 = vmul.f32 %v11868_v20, %v11943_v42  ;;  %v5851_v44 = vrot.slane %v5809_v51, 2 }
 0x2ff   : > { %v4941_v19 = vmul.f32 %v10054_v62, %v11803_v5  ;;  %v10055_v27 = vadd.f32 %v4722_v52, %v11746_v21  ;;  %v9931_v56 = vpop.f32.mrb[15].mxu1  ;;  %v5467_v0 = vadd.f32 %v5409_v63, %v5339_v18  ;;  %v15118_v58 = vrot.slane %v11960_v7, 1 }
 0x300   : > { %v5726_v48 = vsel %vm1929_vm5, %v5724_v50, %v5725_v12  ;;  %v5852_v62 = vrot.slane %v5810_v15, 2  ;;  %v15117_v53 = vrot.slane %v11971_v2, 2 }
 0x301   : > { %v4976_v8 = vadd.f32 %v11813_v29, %v4941_v19  ;;  %v4942_v59 = vmul.f32 %v10055_v27, %v11803_v5  ;;  %v5594_v14 = vadd.f32 %v5536_v25, %v5467_v0  ;;  %v5728_v21 = vsel %vm1929_vm5, %v5725_v12, %v15118_v58 }
 0x302   : > { %v5785_v63 = vadd.f32 %v5726_v48, %v5658_v17  ;;  %v5786_v18 = vadd.f32 %v5728_v21, %v5659_v4  ;;  %v5853_v51 = vsel %vm5276_vm7, %v5851_v44, %v5852_v62  ;;  %v5855_v15 = vsel %vm5276_vm7, %v5852_v62, %v15117_v53 }
 0x303   : > { %v11980_v61 = vmax.f32 %v4976_v8, 0.0  ;;  %v4977_v52 = vadd.f32 %v11813_v29, %v4942_v59  ;;  %v5936_v25 = vmul.f32 %v11870_v9, %v11899_v13  ;;  %v5937_v48 = vmul.f32 %v11870_v9, %v11902_v3 }
 0x304   : > { %v4727_v19 = vpop.f32.mrb[16].mxu1  ;;  %v5912_v0 = vadd.f32 %v5853_v51, %v5785_v63  ;;  %v5913_v4 = vadd.f32 %v5855_v15, %v5786_v18  ;;  %v11996_v44 = vmul.f32 %v11870_v9, %v11943_v42  ;;  %v6063_v12 = vmul.f32 %v11806_v34, %v11899_v13 }
 0x305   : > { %v11991_v17 = vmax.f32 %v4977_v52, 0.0  ;;  %v10056_v8 = vadd.f32 %v4727_v19, %v11749_v24  ;;  %v9934_v59 = vpop.f32.mrb[17].mxu1  ;;  %v5978_v56 = vrot.slane %v5936_v25, 3  ;;  %v5979_v50 = vrot.slane %v5937_v48, 3 }
 0x306   : > { %15538 = vst [vmem:[#allocation53_spill] sm:$0xff] %v11996_v44  ;;  %v4730_v27 = vpop.f32.mrb[18].mxu1  ;;  %v6064_v62 = vmul.f32 %v11806_v34, %v11902_v3  ;;  %v15120_v52 = vrot.slane %v11996_v44, 3  ;;  %v12007_v18 = vmul.f32 %v11806_v34, %v11943_v42  ;;  %v6105_v19 = vrot.slane %v6063_v12, 4 }
 0x307   : > { %v4943_v21 = vmul.f32 %v10056_v8, %v11803_v5  ;;  %v10057_v63 = vadd.f32 %v4730_v27, %v11751_v26  ;;  %v9935_v24 = vpop.f32.mrb[19].mxu1  ;;  %v5980_v51 = vsel %vm5404_vm8, %v5978_v56, %v5979_v50  ;;  %v6271_v25 = vmul.f32 %v11809_v22, %v11943_v42 }
 0x308   : > { %15539 = vst [vmem:[#allocation54_spill] sm:$0xff] %v12007_v18  ;;  %v6106_v15 = vrot.slane %v6064_v62, 4  ;;  %v5982_v26 = vsel %vm5404_vm8, %v5979_v50, %v15120_v52  ;;  %v6039_v59 = vadd.f32 %v5980_v51, %v5912_v0  ;;  %v15119_v53 = vrot.slane %v12007_v18, 4 }
 0x309   : > { %v4978_v48 = vadd.f32 %v11813_v29, %v4943_v21  ;;  %v4944_v8 = vmul.f32 %v10057_v63, %v11803_v5  ;;  %v6040_v27 = vadd.f32 %v5982_v26, %v5913_v4  ;;  %v6272_v56 = vmul.f32 %v11809_v22, %v11951_v46 }
 0x30a   : > { %v6107_v24 = vsel %vm883_vm1, %v6105_v19, %v6106_v15  ;;  %v6295_v63 = vmul.f32 %v11816_v31, %v11943_v42  ;;  %v6109_v0 = vsel %vm883_vm1, %v6106_v15, %v15119_v53  ;;  %v6296_v4 = vmul.f32 %v11816_v31, %v11951_v46 }
 0x30b   : > { %v12021_v12 = vmax.f32 %v4978_v48, 0.0  ;;  %v4979_v62 = vadd.f32 %v11813_v29, %v4944_v8  ;;  %v6166_v21 = vadd.f32 %v6107_v24, %v6039_v59  ;;  %v12033_v50 = vmul.f32 %v11816_v31, %v11980_v61 }
 0x30c   : > { %v4735_v58 = vpop.f32.mrb[20].mxu1  ;;  %v6422_v51 = vmul.f32 %v11819_v32, %v11943_v42  ;;  %v6167_v26 = vadd.f32 %v6109_v0, %v6040_v27  ;;  %v6337_v24 = vrot.slane %v6295_v63, 1  ;;  %v6338_v53 = vrot.slane %v6296_v4, 1 }
 0x30d   : > { %v12037_v19 = vmax.f32 %v4979_v62, 0.0  ;;  %v10058_v48 = vadd.f32 %v4735_v58, %v11753_v28  ;;  %v9938_v8 = vpop.f32.mrb[21].mxu1  ;;  %v12041_v59 = vadd.f32 %v6166_v21, %v11941_v54  ;;  %v15128_v52 = vrot.slane %v12033_v50, 1 }
 0x30e   : > { %v4738_v15 = vpop.f32.mrb[22].mxu1  ;;  %v6423_v31 = vmul.f32 %v11819_v32, %v11951_v46  ;;  %v12048_v44 = vadd.f32 %v6167_v26, %v5594_v14  ;;  %v12052_v28 = vmul.f32 %v11819_v32, %v11980_v61  ;;  %v6339_v54 = vsel %vm1929_vm5, %v6337_v24, %v6338_v53 }
 0x30f   : > { %v4945_v18 = vmul.f32 %v10058_v48, %v11803_v5  ;;  %v10059_v62 = vadd.f32 %v4738_v15, %v11755_v30  ;;  %v9939_v22 = vpop.f32.mrb[23].mxu1  ;;  %v6341_v58 = vsel %vm1929_vm5, %v6338_v53, %v15128_v52  ;;  %v6464_v27 = vrot.slane %v6422_v51, 2 }
 0x310   : > { %v6465_v21 = vrot.slane %v6423_v31, 2  ;;  %v6398_v30 = vadd.f32 %v6339_v54, %v6271_v25  ;;  %v6399_v22 = vadd.f32 %v6341_v58, %v6272_v56  ;;  %v15127_v4 = vrot.slane %v12052_v28, 2 }
 0x311   : > { %v4980_v63 = vadd.f32 %v11813_v29, %v4945_v18  ;;  %v4946_v0 = vmul.f32 %v10059_v62, %v11803_v5  ;;  %v6549_v48 = vmul.f32 %v11822_v35, %v11943_v42  ;;  %v6550_v8 = vmul.f32 %v11822_v35, %v11951_v46 }
 0x312   : > { %v6466_v14 = vsel %vm5276_vm7, %v6464_v27, %v6465_v21  ;;  %v12071_v18 = vmul.f32 %v11822_v35, %v11980_v61  ;;  %v6468_v56 = vsel %vm5276_vm7, %v6465_v21, %v15127_v4  ;;  %v6676_v24 = vmul.f32 %v11825_v38, %v11943_v42 }
 0x313   : > { %v12066_v26 = vmax.f32 %v4980_v63, 0.0  ;;  %v4981_v31 = vadd.f32 %v11813_v29, %v4946_v0  ;;  %v6525_v53 = vadd.f32 %v6466_v14, %v6398_v30  ;;  %v6591_v51 = vrot.slane %v6549_v48, 3 }
 0x314   : > { %v4743_v25 = vpop.f32.mrb[24].mxu1  ;;  %v6592_v15 = vrot.slane %v6550_v8, 3  ;;  %v6526_v27 = vadd.f32 %v6468_v56, %v6399_v22  ;;  %v15129_v63 = vrot.slane %v12071_v18, 3  ;;  %v6677_v14 = vmul.f32 %v11825_v38, %v11951_v46 }
 0x315   : > { %v12078_v62 = vmax.f32 %v4981_v31, 0.0  ;;  %v10060_v54 = vadd.f32 %v4743_v25, %v11758_v33  ;;  %v9942_v58 = vpop.f32.mrb[25].mxu1  ;;  %v12087_v21 = vmul.f32 %v11825_v38, %v11980_v61  ;;  %v6718_v48 = vrot.slane %v6676_v24, 4 }
 0x316   : > { %v4746_v0 = vpop.f32.mrb[26].mxu1  ;;  %v6593_v30 = vsel %vm5404_vm8, %v6591_v51, %v6592_v15  ;;  %v6595_v22 = vsel %vm5404_vm8, %v6592_v15, %v15129_v63  ;;  %v6719_v51 = vrot.slane %v6677_v14, 4  ;;  %v6884_v4 = vmul.f32 %v11829_v6, %v11980_v61 }
 0x317   : > { %15540 = vst [vmem:[#allocation55_spill] sm:$0xff] %v12078_v62  ;;  %15541 = vst [vmem:[#allocation56_spill] sm:$0xff] %v12087_v21  ;;  %v4947_v8 = vmul.f32 %v10060_v54, %v11803_v5  ;;  %v10061_v31 = vadd.f32 %v4746_v0, %v11761_v37  ;;  %v9943_v33 = vpop.f32.mrb[27].mxu1  ;;  %v6652_v25 = vadd.f32 %v6593_v30, %v6525_v53  ;;  %v15130_v58 = vrot.slane %v12087_v21, 4 }
 0x318   : > { %v6653_v56 = vadd.f32 %v6595_v22, %v6526_v27  ;;  %v6885_v37 = vmul.f32 %v11829_v6, %v11991_v17  ;;  %v6908_v54 = vmul.f32 %v11872_v11, %v11980_v61  ;;  %v6720_v15 = vsel %vm883_vm1, %v6718_v48, %v6719_v51 }
 0x319   : > { %v4982_v52 = vadd.f32 %v11813_v29, %v4947_v8  ;;  %v4948_v24 = vmul.f32 %v10061_v31, %v11803_v5  ;;  %v6722_v53 = vsel %vm883_vm1, %v6719_v51, %v15130_v58  ;;  %v6909_v27 = vmul.f32 %v11872_v11, %v11991_v17 }
 0x31a   : > { %v12111_v0 = vmul.f32 %v11872_v11, %v12021_v12  ;;  %v6779_v8 = vadd.f32 %v6720_v15, %v6652_v25  ;;  %v6780_v31 = vadd.f32 %v6722_v53, %v6653_v56  ;;  %v6950_v22 = vrot.slane %v6908_v54, 1 }
 0x31b   : > { %v12113_v30 = vmax.f32 %v4982_v52, 0.0  ;;  %v4983_v14 = vadd.f32 %v11813_v29, %v4948_v24  ;;  %v6951_v48 = vrot.slane %v6909_v27, 1  ;;  %v7035_v51 = vmul.f32 %v11834_v55, %v11980_v61 }
 0x31c   : > { %v4751_v33 = vpop.f32.mrb[28].mxu1  ;;  %v15135_v63 = vrot.slane %v12111_v0, 1  ;;  %v6819_v52 = vadd.f32 %v6779_v8, %v12041_v59  ;;  %v7036_v54 = vmul.f32 %v11834_v55, %v11991_v17  ;;  %v12132_v15 = vmul.f32 %v11834_v55, %v12021_v12 }
 0x31d   : > { %15542 = vst [vmem:[#allocation57_spill] sm:$0xff] %v12113_v30  ;;  %v12119_v58 = vmax.f32 %v4983_v14, 0.0  ;;  %v10062_v62 = vadd.f32 %v4751_v33, %v11763_v39  ;;  %v9946_v21 = vpop.f32.mrb[29].mxu1  ;;  %v6820_v30 = vadd.f32 %v6780_v31, %v12048_v44  ;;  %v6952_v25 = vsel %vm1929_vm5, %v6950_v22, %v6951_v48 }
 0x31e   : > { %v4754_v24 = vpop.f32.mrb[30].mxu1  ;;  %v6954_v56 = vsel %vm1929_vm5, %v6951_v48, %v15135_v63  ;;  %v7011_v44 = vadd.f32 %v6952_v25, %v6884_v4  ;;  %v7077_v27 = vrot.slane %v7035_v51, 2  ;;  %v7078_v14 = vrot.slane %v7036_v54, 2 }
 0x31f   : > { %15543 = vst [vmem:[#allocation58_spill] sm:$0xff] %v12119_v58  ;;  %v4949_v39 = vmul.f32 %v10062_v62, %v11803_v5  ;;  %v10063_v59 = vadd.f32 %v4754_v24, %v11765_v41  ;;  %v9947_v21 = vpop.f32.mrb[31].mxu1  ;;  %v7012_v53 = vadd.f32 %v6954_v56, %v6885_v37  ;;  %v15134_v8 = vrot.slane %v12132_v15, 2 }
 0x320   : > { %v7162_v31 = vmul.f32 %v11836_v16, %v11980_v61  ;;  %v7163_v48 = vmul.f32 %v11836_v16, %v11991_v17  ;;  %v12145_v41 = vmul.f32 %v11836_v16, %v12021_v12  ;;  %v7079_v4 = vsel %vm5276_vm7, %v7077_v27, %v7078_v14 }
 0x321   : > { %v4984_v33 = vadd.f32 %v11813_v29, %v4949_v39  ;;  %v4950_v22 = vmul.f32 %v10063_v59, %v11803_v5  ;;  %v7081_v62 = vsel %vm5276_vm7, %v7078_v14, %v15134_v8  ;;  %v7289_v51 = vmul.f32 %v11838_v57, %v11980_v61 }
 0x322   : > { %15544 = vst [vmem:[#allocation59_spill] sm:$0xff] %v12145_v41  ;;  %v7204_v37 = vrot.slane %v7162_v31, 3  ;;  %v7138_v56 = vadd.f32 %v7079_v4, %v7011_v44  ;;  %v7139_v54 = vadd.f32 %v7081_v62, %v7012_v53  ;;  %v7205_v59 = vrot.slane %v7163_v48, 3  ;;  %v15548_v44 = vld [vmem:[#allocation36_spill] sm:$0xff] }
 0x323   : > { %v12153_v24 = vmax.f32 %v4984_v33, 0.0  ;;  %v4985_v25 = vadd.f32 %v11813_v29, %v4950_v22  ;;  %v15140_v21 = vrot.slane %v12145_v41, 3  ;;  %v7290_v27 = vmul.f32 %v11838_v57, %v11991_v17 }
 0x324   : > { %v4759_v39 = vpop.f32.mrb[32].mxu1  ;;  %v12161_v14 = vmul.f32 %v11838_v57, %v12021_v12  ;;  %v7331_v63 = vrot.slane %v7289_v51, 4  ;;  %v7497_v53 = vmul.f32 %v15548_v44, %v12021_v12  ;;  %v7206_v48 = vsel %vm5404_vm8, %v7204_v37, %v7205_v59 }
 0x325   : > { %15545 = vst [vmem:[#allocation60_spill] sm:$0xff] %v12153_v24  ;;  %v12163_v31 = vmax.f32 %v4985_v25, 0.0  ;;  %v10064_v33 = vadd.f32 %v4759_v39, %v11767_v43  ;;  %v9950_v8 = vpop.f32.mrb[33].mxu1  ;;  %v7208_v4 = vsel %vm5404_vm8, %v7205_v59, %v15140_v21  ;;  %v7332_v62 = vrot.slane %v7290_v27, 4  ;;  %v15550_v59 = vld [vmem:[#allocation38_spill] sm:$0xff] }
 0x326   : > { %15546 = vst [vmem:[#allocation61_spill] sm:$0xff] %v12161_v14  ;;  %v4762_v22 = vpop.f32.mrb[34].mxu1  ;;  %v15141_v24 = vrot.slane %v12161_v14, 4  ;;  %v7265_v8 = vadd.f32 %v7206_v48, %v7138_v56  ;;  %v7266_v51 = vadd.f32 %v7208_v4, %v7139_v54  ;;  %v7498_v41 = vmul.f32 %v15548_v44, %v12037_v19  ;;  %v15552_v48 = vld [vmem:[#allocation39_spill] sm:$0xff] }
 0x327   : > { %15547 = vst [vmem:[#allocation62_spill] sm:$0xff] %v12163_v31  ;;  %v4951_v25 = vmul.f32 %v10064_v33, %v11803_v5  ;;  %v15549_v31 = vld [vmem:[#allocation16_spill] sm:$0xff]  ;;  %v9951_v43 = vpop.f32.mrb[35].mxu1  ;;  %v7333_v39 = vsel %vm883_vm1, %v7331_v63, %v7332_v62  ;;  %v7521_v27 = vmul.f32 %v15550_v59, %v12021_v12  ;;  %v7522_v56 = vmul.f32 %v15550_v59, %v12037_v19 }
 0x328   : > { %v10065_v58 = vadd.f32 %v4762_v22, %v15549_v31  ;;  %v7335_v37 = vsel %vm883_vm1, %v7332_v62, %v15141_v24  ;;  %v7392_v31 = vadd.f32 %v7333_v39, %v7265_v8  ;;  %v12189_v63 = vmul.f32 %v15550_v59, %v12066_v26 }
 0x329   : > { %v4986_v21 = vadd.f32 %v11813_v29, %v4951_v25  ;;  %v7393_v22 = vadd.f32 %v7335_v37, %v7266_v51  ;;  %v7563_v54 = vrot.slane %v7521_v27, 1  ;;  %v7648_v4 = vmul.f32 %v15552_v48, %v12021_v12 }
 0x32a   : > { %v4952_v33 = vmul.f32 %v10065_v58, %v11803_v5  ;;  %15551 = vst [vmem:[#allocation16_spill] sm:$0xff] %v12189_v63  ;;  %v12196_v25 = vadd.f32 %v7392_v31, %v6819_v52  ;;  %v7564_v51 = vrot.slane %v7522_v56, 1  ;;  %v15150_v39 = vrot.slane %v12189_v63, 1 }
 0x32b   : > { %v12193_v62 = vmax.f32 %v4986_v21, 0.0  ;;  %v12198_v58 = vadd.f32 %v7393_v22, %v6820_v30  ;;  %v7649_v37 = vmul.f32 %v15552_v48, %v12037_v19  ;;  %v12205_v27 = vmul.f32 %v15552_v48, %v12066_v26  ;;  %v15555_v21 = vld [vmem:[#allocation17_spill] sm:$0xff]  ;;  %v15556_v30 = vld [vmem:[#allocation42_spill] sm:$0xff] }
 0x32c   : > { %v4987_v43 = vadd.f32 %v11813_v29, %v4952_v33  ;;  %v4767_v8 = vpop.f32.mrb[36].mxu1  ;;  %v7690_v52 = vrot.slane %v7648_v4, 2  ;;  %v7775_v31 = vmul.f32 %v15556_v30, %v12021_v12  ;;  %v7565_v56 = vsel %vm1929_vm5, %v7563_v54, %v7564_v51 }
 0x32d   : > { %15553 = vst [vmem:[#allocation63_spill] sm:$0xff] %v12193_v62  ;;  %v10066_v62 = vadd.f32 %v4767_v8, %v15555_v21  ;;  %v9954_v33 = vpop.f32.mrb[37].mxu1  ;;  %v7567_v14 = vsel %vm1929_vm5, %v7564_v51, %v15150_v39  ;;  %v7691_v59 = vrot.slane %v7649_v37, 2  ;;  %v15149_v48 = vrot.slane %v12205_v27, 2 }
 0x32e   : > { %v12207_v24 = vmax.f32 %v4987_v43, 0.0  ;;  %v4770_v22 = vpop.f32.mrb[38].mxu1  ;;  %v7624_v8 = vadd.f32 %v7565_v56, %v7497_v53  ;;  %v7625_v21 = vadd.f32 %v7567_v14, %v7498_v41  ;;  %v7776_v63 = vmul.f32 %v15556_v30, %v12037_v19 }
 0x32f   : > { %v4953_v43 = vmul.f32 %v10066_v62, %v11803_v5  ;;  %v9955_v4 = vpop.f32.mrb[39].mxu1  ;;  %v7692_v33 = vsel %vm5276_vm7, %v7690_v52, %v7691_v59  ;;  %v7694_v54 = vsel %vm5276_vm7, %v7691_v59, %v15149_v48  ;;  %v12227_v51 = vmul.f32 %v15556_v30, %v12066_v26 }
 0x330   : > { %15554 = vst [vmem:[#allocation64_spill] sm:$0xff] %v12207_v24  ;;  %v15557_v24 = vld [vmem:[#allocation18_spill] sm:$0xff]  ;;  %v7751_v53 = vadd.f32 %v7692_v33, %v7624_v8  ;;  %v7752_v41 = vadd.f32 %v7694_v54, %v7625_v21  ;;  %v7817_v14 = vrot.slane %v7775_v31, 3  ;;  %v7818_v37 = vrot.slane %v7776_v63, 3 }
 0x331   : > { %v10067_v44 = vadd.f32 %v4770_v22, %v15557_v24  ;;  %v4988_v62 = vadd.f32 %v11813_v29, %v4953_v43  ;;  %v15154_v52 = vrot.slane %v12227_v51, 3  ;;  %v7902_v59 = vmul.f32 %v11892_v10, %v12021_v12 }
 0x332   : > { %v7903_v4 = vmul.f32 %v11892_v10, %v12037_v19  ;;  %v12241_v43 = vmul.f32 %v11892_v10, %v12066_v26  ;;  %v5084_v21 = vmul.f32 %v11859_v60, %v11899_v13 }
 0x333   : > { %v4954_v24 = vmul.f32 %v10067_v44, %v11803_v5  ;;  %v12234_v22 = vmax.f32 %v4988_v62, 0.0  ;;  %v7819_v44 = vsel %vm5404_vm8, %v7817_v14, %v7818_v37  ;;  %v7821_v63 = vsel %vm5404_vm8, %v7818_v37, %v15154_v52 }
 0x334   : > { %v7944_v31 = vrot.slane %v7902_v59, 4  ;;  %v4775_v8 = vpop.f32.mrb[40].mxu1  ;;  %v7878_v54 = vadd.f32 %v7819_v44, %v7751_v53  ;;  %v7879_v62 = vadd.f32 %v7821_v63, %v7752_v41  ;;  %v15155_v39 = vrot.slane %v12241_v43, 4 }
 0x335   : > { %15558 = vst [vmem:[#allocation17_spill] sm:$0xff] %v12234_v22  ;;  %v4989_v56 = vadd.f32 %v11813_v29, %v4954_v24  ;;  %v7945_v24 = vrot.slane %v7903_v4, 4  ;;  %v9958_v48 = vpop.f32.mrb[41].mxu1  ;;  %v15560_v22 = vld [vmem:[#allocation19_spill] sm:$0xff]  ;;  %v5085_v37 = vmul.f32 %v11859_v60, %v11902_v3  ;;  %v5109_v59 = vmul.f32 %v11845_v1, %v11902_v3 }
 0x336   : > { %v10068_v14 = vadd.f32 %v4775_v8, %v15560_v22  ;;  %v4778_v10 = vpop.f32.mrb[42].mxu1  ;;  %v12261_v53 = vmul.f32 %v11845_v1, %v11943_v42  ;;  %v5237_v48 = vmul.f32 %v11853_v40, %v11902_v3 }
 0x337   : > { %v12249_v33 = vmax.f32 %v4989_v56, 0.0  ;;  %v7946_v13 = vsel %vm883_vm1, %v7944_v31, %v7945_v24  ;;  %v15561_v56 = vld [vmem:[#allocation20_spill] sm:$0xff]  ;;  %v9959_v41 = vpop.f32.mrb[43].mxu1  ;;  %v7948_v22 = vsel %vm883_vm1, %v7945_v24, %v15155_v39  ;;  %v5154_v44 = vrot.slane %v5109_v59, 1  ;;  %v12309_v39 = vld [vmem:[%s12285_s28] ss:$0 sm:$0xff] }
 0x338   : > { %v10069_v52 = vadd.f32 %v4778_v10, %v15561_v56  ;;  %v8005_v4 = vadd.f32 %v7946_v13, %v7878_v54  ;;  %v4955_v10 = vmul.f32 %v10068_v14, %v11803_v5  ;;  %v8006_v63 = vadd.f32 %v7948_v22, %v7879_v62  ;;  %v12293_v14 = vld [vmem:[%s12269_s27] ss:$0 sm:$0xff]  ;;  %15565 = vst [vmem:[#allocation20_spill] sm:$0xff] %v12309_v39 }
 0x339   : > { %15559 = vst [vmem:[#allocation18_spill] sm:$0xff] %v12249_v33  ;;  %v15156_v8 = vrot.slane %v12261_v53, 1  ;;  %v12279_v56 = vmul.f32 %v11853_v40, %v11943_v42  ;;  %v15562_v62 = vrot.slane %v11909_v45, 1  ;;  %v15564_v45 = vrot.slane %v11913_v47, 2 }
 0x33a   : > { %v4956_v31 = vmul.f32 %v10069_v52, %v11803_v5  ;;  %v8045_v54 = vadd.f32 %v8005_v4, %v12196_v25  ;;  %v4990_v24 = vadd.f32 %v11813_v29, %v4955_v10  ;;  %v5282_v52 = vrot.slane %v5237_v48, 2 }
 0x33b   : > { %v5155_v5 = vsel %vm1929_vm5, %v15562_v62, %v5154_v44  ;;  %v8046_v59 = vadd.f32 %v8006_v63, %v12198_v58  ;;  %v5157_v41 = vsel %vm1929_vm5, %v5154_v44, %v15156_v8  ;;  %v15158_v44 = vrot.slane %v12279_v56, 2 }
 0x33c   : > { %v4991_v13 = vadd.f32 %v11813_v29, %v4956_v31  ;;  %v5212_v22 = vadd.f32 %v5155_v5, %v5084_v21  ;;  %v8105_v25 = vsub.f32 %v8045_v54, %v11896_v36  ;;  %v12301_v4 = vmax.f32 %v4990_v24, 0.0  ;;  %v12306_v62 = vpop.f32.mrb[44].mxu1 }
 0x33d   : > { %v5213_v10 = vadd.f32 %v5157_v41, %v5085_v37  ;;  %v5283_v48 = vsel %vm5276_vm7, %v15564_v45, %v5282_v52  ;;  %v8106_v29 = vsub.f32 %v8046_v59, %v11896_v36  ;;  %v9962_v63 = vpop.f32.mrb[45].mxu1  ;;  %v5365_v37 = vmul.f32 %v11855_v49, %v11902_v3  ;;  %v15568_v41 = vld [vmem:[#allocation44_spill] sm:$0xff] }
 0x33e   : > { %15563 = vst [vmem:[#allocation19_spill] sm:$0xff] %v12301_v4  ;;  %v12312_v58 = vmax.f32 %v4991_v13, 0.0  ;;  %v5340_v21 = vadd.f32 %v5283_v48, %v5212_v22  ;;  %v8131_v31 = vmul.f32 %v12293_v14, %v8105_v25  ;;  %v12320_v47 = vmul.f32 %v11855_v49, %v11943_v42  ;;  %v12324_v24 = vpop.f32.mrb[46].mxu1  ;;  %v15569_v4 = vld [vmem:[#allocation51_spill] sm:$0xff] }
 0x33f   : > { %v5493_v54 = vmul.f32 %v11862_v23, %v11902_v3  ;;  %v8132_v5 = vmul.f32 %v12293_v14, %v8106_v29  ;;  %v5285_v59 = vsel %vm5276_vm7, %v5282_v52, %v15158_v44  ;;  %v12332_v13 = vmul.f32 %v11862_v23, %v11943_v42  ;;  %v9963_v25 = vpop.f32.mrb[47].mxu1 }
 0x340   : > { %15566 = vst [vmem:[#allocation65_spill] sm:$0xff] %v12312_v58  ;;  %15567 = vst [vmem:[#allocation66_spill] sm:$0xff] %v12320_v47  ;;  %v5660_v22 = vmul.f32 %v15568_v41, %v11943_v42  ;;  %v8157_v45 = vadd.f32 %v12309_v39, %v8131_v31  ;;  %v5341_v48 = vadd.f32 %v5285_v59, %v5213_v10  ;;  %v5410_v3 = vrot.slane %v5365_v37, 3  ;;  %v15571_v31 = vld [vmem:[#allocation45_spill] sm:$0xff]  ;;  %v15572_v25 = vld [vmem:[#allocation52_spill] sm:$0xff] }
 0x341   : > { %v15166_v63 = vrot.slane %v12320_v47, 3  ;;  %v8158_v29 = vadd.f32 %v12309_v39, %v8132_v5  ;;  %v5537_v8 = vrot.slane %v5493_v54, 4  ;;  %v5661_v52 = vmul.f32 %v15568_v41, %v11951_v46 }
 0x342   : > { %v8177_v44 = vmax.f32 %v8157_v45, 0.0  ;;  %v15570_v33 = vrot.slane %v15569_v4, 3  ;;  %v5685_v37 = vmul.f32 %v15571_v31, %v11951_v46  ;;  %v15573_v58 = vrot.slane %v15572_v25, 4 }
 0x343   : > { %v5413_v10 = vsel %vm5404_vm8, %v5410_v3, %v15166_v63  ;;  %v8178_v59 = vmax.f32 %v8158_v29, 0.0  ;;  %v15574_v45 = vrot.slane %v12332_v13, 4 }
 0x344   : > { %v5411_v23 = vsel %vm5404_vm8, %v15570_v33, %v5410_v3  ;;  %v5469_v54 = vadd.f32 %v5413_v10, %v5341_v48  ;;  %v5538_v39 = vsel %vm883_vm1, %v15573_v58, %v5537_v8  ;;  %v12358_v33 = vmul.f32 %v15571_v31, %v11980_v61  ;;  %v12362_v63 = vpop.f32.mrb[48].mxu1 }
 0x345   : > { %v5468_v5 = vadd.f32 %v5411_v23, %v5340_v21  ;;  %v5540_v4 = vsel %vm883_vm1, %v5537_v8, %v15574_v45  ;;  %v5729_v47 = vrot.slane %v5685_v37, 1  ;;  %v5812_v3 = vmul.f32 %v11868_v20, %v11951_v46  ;;  %15576 = vst [vmem:[#allocation51_spill] sm:$0xff] %v12362_v63  ;;  %v9966_v29 = vpop.f32.mrb[49].mxu1 }
 0x346   : > { %15575 = vst [vmem:[#allocation44_spill] sm:$0xff] %v12358_v33  ;;  %v8197_v23 = vpack.c.bf16 %v8178_v59, %v8177_v44  ;;  %v5596_v48 = vadd.f32 %v5540_v4, %v5469_v54  ;;  %v12366_v58 = vmul.f32 %v11868_v20, %v11980_v61  ;;  %v15577_v8 = vrot.slane %v11960_v7, 1  ;;  %v12374_v31 = vpop.f32.mrb[50].mxu1 }
 0x347   : > { %v5595_v21 = vadd.f32 %v5538_v39, %v5468_v5  ;;  %v15168_v25 = vrot.slane %v12358_v33, 1  ;;  %v5856_v37 = vrot.slane %v5812_v3, 2  ;;  %v5939_v45 = vmul.f32 %v11870_v9, %v11951_v46  ;;  %15578 = vst [vmem:[#allocation52_spill] sm:$0xff] %v12374_v31  ;;  %v9967_v5 = vpop.f32.mrb[51].mxu1  ;;  %v15582_v31 = vld [vmem:[#allocation53_spill] sm:$0xff] }
 0x348   : > { %v5730_v10 = vsel %vm1929_vm5, %v15577_v8, %v5729_v47  ;;  %9992 = vmatprep.mubr.bf16.mxu0 %v8197_v23  ;;  %v15170_v44 = vrot.slane %v12366_v58, 2  ;;  %v12379_v59 = vmul.f32 %v11870_v9, %v11980_v61  ;;  %v6066_v7 = vmul.f32 %v11806_v34, %v11951_v46 }
 0x349   : > { %v5787_v39 = vadd.f32 %v5730_v10, %v5660_v22  ;;  %v5732_v54 = vsel %vm1929_vm5, %v5729_v47, %v15168_v25  ;;  %v15580_v4 = vrot.slane %v11971_v2, 2  ;;  %v5983_v23 = vrot.slane %v5939_v45, 3  ;;  %v15584_v45 = vld [vmem:[#allocation26_spill] sm:$0xff] }
 0x34a   : > { %15579 = vst [vmem:[#allocation67_spill] sm:$0xff] %v12379_v59  ;;  %v12391_v22 = vmul.f32 %v11806_v34, %v11980_v61  ;;  %v5788_v29 = vadd.f32 %v5732_v54, %v5661_v52  ;;  %v5859_v8 = vsel %vm5276_vm7, %v5856_v37, %v15170_v44  ;;  %v15172_v5 = vrot.slane %v12379_v59, 3 }
 0x34b   : > { %v5857_v3 = vsel %vm5276_vm7, %v15580_v4, %v5856_v37  ;;  %v15583_v63 = vrot.slane %v15582_v31, 3  ;;  %v6110_v2 = vrot.slane %v6066_v7, 4  ;;  %v6273_v25 = vmul.f32 %v15584_v45, %v11980_v61  ;;  %v15587_v7 = vld [vmem:[#allocation27_spill] sm:$0xff] }
 0x34c   : > { %15581 = vst [vmem:[#allocation68_spill] sm:$0xff] %v12391_v22  ;;  %v5914_v10 = vadd.f32 %v5857_v3, %v5787_v39  ;;  %v15171_v4 = vrot.slane %v12391_v22, 4  ;;  %v5915_v33 = vadd.f32 %v5859_v8, %v5788_v29  ;;  %v5986_v52 = vsel %vm5404_vm8, %v5983_v23, %v15172_v5  ;;  %v15585_v39 = vld [vmem:[#allocation54_spill] sm:$0xff] }
 0x34d   : > { %v5984_v47 = vsel %vm5404_vm8, %v15583_v63, %v5983_v23  ;;  %v6274_v37 = vmul.f32 %v15584_v45, %v11991_v17  ;;  %v15586_v3 = vrot.slane %v15585_v39, 4  ;;  %v6298_v44 = vmul.f32 %v15587_v7, %v11991_v17 }
 0x34e   : > { %v6041_v54 = vadd.f32 %v5984_v47, %v5914_v10  ;;  %v6113_v63 = vsel %vm883_vm1, %v6110_v2, %v15171_v4  ;;  %v12418_v29 = vmul.f32 %v15587_v7, %v12021_v12  ;;  %v6042_v23 = vadd.f32 %v5986_v52, %v5915_v33 }
 0x34f   : > { %v6111_v31 = vsel %vm883_vm1, %v15586_v3, %v6110_v2  ;;  %v6425_v10 = vmul.f32 %v11819_v32, %v11991_v17  ;;  %v12424_v47 = vmul.f32 %v11819_v32, %v12021_v12  ;;  %v6342_v39 = vrot.slane %v6298_v44, 1 }
 0x350   : > { %v6168_v8 = vadd.f32 %v6111_v31, %v6041_v54  ;;  %v15183_v3 = vrot.slane %v12418_v29, 1  ;;  %v6552_v2 = vmul.f32 %v11822_v35, %v11991_v17  ;;  %v12431_v4 = vmul.f32 %v11822_v35, %v12021_v12 }
 0x351   : > { %v6169_v5 = vadd.f32 %v6113_v63, %v6042_v23  ;;  %v6469_v52 = vrot.slane %v6425_v10, 2  ;;  %v15182_v54 = vrot.slane %v12424_v47, 2  ;;  %v15588_v31 = vrot.slane %v12033_v50, 1 }
 0x352   : > { %v6208_v33 = vadd.f32 %v6168_v8, %v5595_v21  ;;  %v6345_v44 = vsel %vm1929_vm5, %v6342_v39, %v15183_v3  ;;  %v6596_v7 = vrot.slane %v6552_v2, 3  ;;  %v15181_v45 = vrot.slane %v12431_v4, 3 }
 0x353   : > { %v6343_v32 = vsel %vm1929_vm5, %v15588_v31, %v6342_v39  ;;  %v6209_v22 = vadd.f32 %v6169_v5, %v5596_v48  ;;  %v6401_v35 = vadd.f32 %v6345_v44, %v6274_v37  ;;  %v15589_v63 = vrot.slane %v12052_v28, 2  ;;  %v15593_v31 = vld [vmem:[#allocation56_spill] sm:$0xff] }
 0x354   : > { %v6400_v59 = vadd.f32 %v6343_v32, %v6273_v25  ;;  %v6472_v50 = vsel %vm5276_vm7, %v6469_v52, %v15182_v54  ;;  %v15590_v23 = vrot.slane %v12071_v18, 3  ;;  %v6599_v10 = vsel %vm5404_vm8, %v6596_v7, %v15181_v45 }
 0x355   : > { %v6470_v21 = vsel %vm5276_vm7, %v15589_v63, %v6469_v52  ;;  %v6679_v32 = vmul.f32 %v11825_v38, %v11991_v17  ;;  %v6528_v25 = vadd.f32 %v6472_v50, %v6401_v35  ;;  %v12457_v28 = vmul.f32 %v11825_v38, %v12021_v12 }
 0x356   : > { %v6597_v8 = vsel %vm5404_vm8, %v15590_v23, %v6596_v7  ;;  %v6527_v48 = vadd.f32 %v6470_v21, %v6400_v59  ;;  %v6886_v5 = vmul.f32 %v11829_v6, %v12021_v12  ;;  %v6887_v18 = vmul.f32 %v11829_v6, %v12037_v19 }
 0x357   : > { %15591 = vst [vmem:[#allocation53_spill] sm:$0xff] %v12457_v28  ;;  %v6723_v37 = vrot.slane %v6679_v32, 4  ;;  %v6911_v39 = vmul.f32 %v11872_v11, %v12037_v19  ;;  %v12467_v7 = vmul.f32 %v11872_v11, %v12066_v26  ;;  %v6655_v35 = vadd.f32 %v6599_v10, %v6528_v25 }
 0x358   : > { %v6654_v59 = vadd.f32 %v6597_v8, %v6527_v48  ;;  %v15187_v2 = vrot.slane %v12457_v28, 4  ;;  %v7038_v52 = vmul.f32 %v11834_v55, %v12037_v19  ;;  %v15594_v44 = vrot.slane %v15593_v31, 4 }
 0x359   : > { %15592 = vst [vmem:[#allocation54_spill] sm:$0xff] %v12467_v7  ;;  %v6955_v21 = vrot.slane %v6911_v39, 1  ;;  %v15186_v50 = vrot.slane %v12467_v7, 1  ;;  %v12478_v23 = vmul.f32 %v11834_v55, %v12066_v26  ;;  %v7165_v48 = vmul.f32 %v11836_v16, %v12037_v19  ;;  %v15611_v7 = vld [vmem:[#allocation16_spill] sm:$0xff] }
 0x35a   : > { %v6724_v63 = vsel %vm883_vm1, %v15594_v44, %v6723_v37  ;;  %v6726_v8 = vsel %vm883_vm1, %v6723_v37, %v15187_v2  ;;  %v7082_v32 = vrot.slane %v7038_v52, 2  ;;  %v15596_v31 = vrot.slane %v12111_v0, 1  ;;  %v12495_v52 = vpop.f32.mrb[52].mxu1  ;;  %v15607_v2 = vld [vmem:[#allocation39_spill] sm:$0xff] }
 0x35b   : > { %15595 = vst [vmem:[#allocation56_spill] sm:$0xff] %v12478_v23  ;;  %v6781_v10 = vadd.f32 %v6724_v63, %v6654_v59  ;;  %v6782_v25 = vadd.f32 %v6726_v8, %v6655_v35  ;;  %v6958_v44 = vsel %vm1929_vm5, %v6955_v21, %v15186_v50  ;;  %v15185_v45 = vrot.slane %v12478_v23, 2  ;;  %15598 = vst [vmem:[#allocation69_spill] sm:$0xff] %v12495_v52  ;;  %v9970_v8 = vpop.f32.mrb[53].mxu1 }
 0x35c   : > { %v6956_v39 = vsel %vm1929_vm5, %v15596_v31, %v6955_v21  ;;  %v7014_v28 = vadd.f32 %v6958_v44, %v6887_v18  ;;  %v15597_v37 = vrot.slane %v12132_v15, 2  ;;  %v12502_v63 = vmul.f32 %v11836_v16, %v12066_v26  ;;  %v15605_v8 = vld [vmem:[#allocation38_spill] sm:$0xff] }
 0x35d   : > { %v6821_v54 = vadd.f32 %v6781_v10, %v6208_v33  ;;  %v7013_v3 = vadd.f32 %v6956_v39, %v6886_v5  ;;  %v6822_v35 = vadd.f32 %v6782_v25, %v6209_v22  ;;  %v7085_v0 = vsel %vm5276_vm7, %v7082_v32, %v15185_v45  ;;  %v12510_v22 = vpop.f32.mrb[54].mxu1  ;;  %v15601_v10 = vld [vmem:[#allocation59_spill] sm:$0xff] }
 0x35e   : > { %v7083_v59 = vsel %vm5276_vm7, %v15597_v37, %v7082_v32  ;;  %15599 = vst [vmem:[#allocation70_spill] sm:$0xff] %v12502_v63  ;;  %v7209_v21 = vrot.slane %v7165_v48, 3  ;;  %v7141_v5 = vadd.f32 %v7085_v0, %v7014_v28  ;;  %v7292_v15 = vmul.f32 %v11838_v57, %v12037_v19  ;;  %15600 = vst [vmem:[#allocation71_spill] sm:$0xff] %v12510_v22  ;;  %v15603_v48 = vld [vmem:[#allocation36_spill] sm:$0xff]  ;;  %v9971_v44 = vpop.f32.mrb[55].mxu1 }
 0x35f   : > { %v7140_v33 = vadd.f32 %v7083_v59, %v7013_v3  ;;  %v12508_v18 = vmul.f32 %v11838_v57, %v12066_v26  ;;  %v15602_v25 = vrot.slane %v15601_v10, 3  ;;  %v15188_v31 = vrot.slane %v12502_v63, 3  ;;  %v15604_v3 = vld [vmem:[#allocation55_spill] sm:$0xff] }
 0x360   : > { %v7499_v39 = vmul.f32 %v15603_v48, %v12066_v26  ;;  %v7500_v28 = vmul.f32 %v15603_v48, %v15604_v3  ;;  %v7336_v59 = vrot.slane %v7292_v15, 4  ;;  %v7524_v45 = vmul.f32 %v15605_v8, %v15604_v3 }
 0x361   : > { %v7210_v32 = vsel %vm5404_vm8, %v15602_v25, %v7209_v21  ;;  %v7212_v10 = vsel %vm5404_vm8, %v7209_v21, %v15188_v31  ;;  %v15606_v25 = vld [vmem:[#allocation57_spill] sm:$0xff]  ;;  %v7651_v22 = vmul.f32 %v15607_v2, %v15604_v3  ;;  %v15610_v52 = vrot.slane %v12508_v18, 4 }
 0x362   : > { %v7267_v37 = vadd.f32 %v7210_v32, %v7140_v33  ;;  %v12528_v50 = vmul.f32 %v15605_v8, %v15606_v25  ;;  %v12534_v33 = vmul.f32 %v15607_v2, %v15606_v25  ;;  %v7268_v15 = vadd.f32 %v7212_v10, %v7141_v5  ;;  %v15608_v32 = vld [vmem:[#allocation61_spill] sm:$0xff] }
 0x363   : > { %v15609_v44 = vrot.slane %v15608_v32, 4  ;;  %v7339_v21 = vsel %vm883_vm1, %v7336_v59, %v15610_v52  ;;  %v7568_v31 = vrot.slane %v7524_v45, 1  ;;  %v7695_v57 = vrot.slane %v7651_v22, 2 }
 0x364   : > { %v15202_v8 = vrot.slane %v12528_v50, 1  ;;  %v15199_v63 = vrot.slane %v12534_v33, 2  ;;  %v7395_v23 = vadd.f32 %v7339_v21, %v7268_v15  ;;  %v15612_v2 = vrot.slane %v15611_v7, 1 }
 0x365   : > { %v7337_v0 = vsel %vm883_vm1, %v15609_v44, %v7336_v59  ;;  %v7778_v10 = vmul.f32 %v15556_v30, %v15604_v3  ;;  %v12551_v32 = vmul.f32 %v15556_v30, %v15606_v25 }
 0x366   : > { %v7394_v48 = vadd.f32 %v7337_v0, %v7267_v37  ;;  %v7569_v5 = vsel %vm1929_vm5, %v15612_v2, %v7568_v31  ;;  %v7571_v45 = vsel %vm1929_vm5, %v7568_v31, %v15202_v8  ;;  %v15613_v37 = vrot.slane %v12205_v27, 2 }
 0x367   : > { %v7626_v22 = vadd.f32 %v7569_v5, %v7499_v39  ;;  %v7435_v7 = vadd.f32 %v7395_v23, %v6822_v35  ;;  %v7627_v0 = vadd.f32 %v7571_v45, %v7500_v28  ;;  %v7698_v2 = vsel %vm5276_vm7, %v7695_v57, %v15199_v63  ;;  %v15616_v39 = vld [vmem:[#allocation21_spill] sm:$0xff] }
 0x368   : > { %v7434_v52 = vadd.f32 %v7394_v48, %v6821_v54  ;;  %v7696_v59 = vsel %vm5276_vm7, %v15613_v37, %v7695_v57  ;;  %v7822_v15 = vrot.slane %v7778_v10, 3  ;;  %v15198_v54 = vrot.slane %v12551_v32, 3  ;;  %v15614_v48 = vld [vmem:[#allocation50_spill] sm:$0xff] }
 0x369   : > { %v7753_v44 = vadd.f32 %v7696_v59, %v7626_v22  ;;  %v7905_v21 = vmul.f32 %v15614_v48, %v15604_v3  ;;  %v12567_v31 = vmul.f32 %v15614_v48, %v15606_v25  ;;  %v7754_v27 = vadd.f32 %v7698_v2, %v7627_v0  ;;  %v15617_v57 = vld [vmem:[#allocation22_spill] sm:$0xff]  ;;  %v12581_v0 = vld [vmem:[%s11791_s29] ss:$0 sm:$0xff] }
 0x36a   : > { %v15615_v23 = vrot.slane %v12227_v51, 3  ;;  %v10070_v28 = vadd.f32 %v12306_v62, %v15616_v39  ;;  %v10071_v5 = vadd.f32 %v12324_v24, %v15617_v57  ;;  %v7825_v10 = vsel %vm5404_vm8, %v7822_v15, %v15198_v54  ;;  %v12598_v39 = vld [vmem:[%s11800_s0] ss:$0 sm:$0xff] }
 0x36b   : > { %v7949_v22 = vrot.slane %v7905_v21, 4  ;;  %v15197_v37 = vrot.slane %v12567_v31, 4  ;;  %v7881_v59 = vadd.f32 %v7825_v10, %v7754_v27  ;;  %v5086_v62 = vmul.f32 %v11859_v60, %v11943_v42 }
 0x36c   : > { %v7823_v35 = vsel %vm5404_vm8, %v15615_v23, %v7822_v15  ;;  %v4957_v51 = vmul.f32 %v12581_v0, %v10070_v28  ;;  %v4958_v2 = vmul.f32 %v12581_v0, %v10071_v5  ;;  %v15618_v24 = vrot.slane %v12241_v43, 4 }
 0x36d   : > { %v7880_v45 = vadd.f32 %v7823_v35, %v7753_v44  ;;  %v7952_v15 = vsel %vm883_vm1, %v7949_v22, %v15197_v37  ;;  %v5087_v44 = vmul.f32 %v11859_v60, %v11951_v46  ;;  %v5111_v21 = vmul.f32 %v11845_v1, %v11951_v46 }
 0x36e   : > { %v7950_v23 = vsel %vm883_vm1, %v15618_v24, %v7949_v22  ;;  %v8008_v35 = vadd.f32 %v7952_v15, %v7881_v59  ;;  %v4992_v42 = vadd.f32 %v12598_v39, %v4957_v51  ;;  %v4993_v43 = vadd.f32 %v12598_v39, %v4958_v2 }
 0x36f   : > { %v8007_v27 = vadd.f32 %v7950_v23, %v7880_v45  ;;  %v12604_v28 = vmul.f32 %v11845_v1, %v11980_v61  ;;  %v5158_v57 = vrot.slane %v5111_v21, 1  ;;  %v5239_v5 = vmul.f32 %v11853_v40, %v11951_v46 }
 0x370   : > { %v12610_v10 = vmul.f32 %v11853_v40, %v11980_v61  ;;  %v8048_v22 = vadd.f32 %v8008_v35, %v7435_v7  ;;  %v12612_v59 = vmax.f32 %v4992_v42, 0.0  ;;  %v12614_v24 = vmax.f32 %v4993_v43, 0.0 }
 0x371   : > { %v8047_v45 = vadd.f32 %v8007_v27, %v7434_v52  ;;  %v15621_v51 = vrot.slane %v12261_v53, 1  ;;  %v15201_v23 = vrot.slane %v12604_v28, 1  ;;  %v5286_v15 = vrot.slane %v5239_v5, 2 }
 0x372   : > { %15619 = vst [vmem:[#allocation59_spill] sm:$0xff] %v12612_v59  ;;  %15620 = vst [vmem:[#allocation55_spill] sm:$0xff] %v12614_v24  ;;  %v15200_v21 = vrot.slane %v12610_v10, 2  ;;  %v8108_v54 = vsub.f32 %v8048_v22, %v11896_v36  ;;  %v5367_v52 = vmul.f32 %v11855_v49, %v11951_v46  ;;  %v15622_v53 = vrot.slane %v12279_v56, 2  ;;  %v15623_v56 = vld [vmem:[#allocation43_spill] sm:$0xff] }
 0x373   : > { %v5159_v2 = vsel %vm1929_vm5, %v15621_v51, %v5158_v57  ;;  %v8107_v37 = vsub.f32 %v8047_v45, %v11896_v36  ;;  %v5161_v7 = vsel %vm1929_vm5, %v5158_v57, %v15201_v23  ;;  %v12636_v42 = vmul.f32 %v11855_v49, %v11980_v61 }
 0x374   : > { %v5214_v63 = vadd.f32 %v5159_v2, %v5086_v62  ;;  %v5287_v27 = vsel %vm5276_vm7, %v15622_v53, %v5286_v15  ;;  %v5289_v35 = vsel %vm5276_vm7, %v5286_v15, %v15200_v21  ;;  %v8134_v43 = vmul.f32 %v12293_v14, %v8108_v54  ;;  %v15624_v15 = vld [vmem:[#allocation20_spill] sm:$0xff] }
 0x375   : > { %v8133_v62 = vmul.f32 %v12293_v14, %v8107_v37  ;;  %v5215_v5 = vadd.f32 %v5161_v7, %v5087_v44  ;;  %v5414_v22 = vrot.slane %v5367_v52, 3  ;;  %v15204_v57 = vrot.slane %v12636_v42, 3  ;;  %v15625_v37 = vld [vmem:[#allocation66_spill] sm:$0xff] }
 0x376   : > { %v5342_v45 = vadd.f32 %v5287_v27, %v5214_v63  ;;  %v5495_v51 = vmul.f32 %v15623_v56, %v11951_v46  ;;  %v12645_v2 = vmul.f32 %v15623_v56, %v11980_v61  ;;  %v8160_v21 = vadd.f32 %v15624_v15, %v8134_v43 }
 0x377   : > { %v8159_v53 = vadd.f32 %v15624_v15, %v8133_v62  ;;  %v5343_v23 = vadd.f32 %v5289_v35, %v5215_v5  ;;  %v5662_v54 = vmul.f32 %v15568_v41, %v11980_v61  ;;  %v15626_v63 = vrot.slane %v15625_v37, 3 }
 0x378   : > { %v5417_v46 = vsel %vm5404_vm8, %v5414_v22, %v15204_v57  ;;  %v5541_v52 = vrot.slane %v5495_v51, 4  ;;  %v15205_v7 = vrot.slane %v12645_v2, 4  ;;  %v8180_v8 = vmax.f32 %v8160_v21, 0.0 }
 0x379   : > { %v5415_v44 = vsel %vm5404_vm8, %v15626_v63, %v5414_v22  ;;  %v8179_v27 = vmax.f32 %v8159_v53, 0.0  ;;  %v5471_v24 = vadd.f32 %v5417_v46, %v5343_v23  ;;  %v15627_v35 = vrot.slane %v12332_v13, 4  ;;  %v15628_v22 = vld [vmem:[#allocation45_spill] sm:$0xff] }
 0x37a   : > { %v5470_v62 = vadd.f32 %v5415_v44, %v5342_v45  ;;  %v5544_v5 = vsel %vm883_vm1, %v5541_v52, %v15205_v7  ;;  %v5663_v37 = vmul.f32 %v15568_v41, %v11991_v17  ;;  %v5687_v51 = vmul.f32 %v15628_v22, %v11991_v17 }
 0x37b   : > { %v5542_v43 = vsel %vm883_vm1, %v15627_v35, %v5541_v52  ;;  %v8198_v63 = vpack.c.bf16 %v8180_v8, %v8179_v27  ;;  %v5598_v53 = vadd.f32 %v5544_v5, %v5471_v24  ;;  %v12670_v23 = vmul.f32 %v15628_v22, %v12021_v12  ;;  %v15632_v27 = vld [vmem:[#allocation44_spill] sm:$0xff] }
 0x37c   : > { %v5597_v57 = vadd.f32 %v5542_v43, %v5470_v62  ;;  %v5733_v13 = vrot.slane %v5687_v51, 1  ;;  %v5814_v21 = vmul.f32 %v11868_v20, %v11991_v17  ;;  %v12676_v45 = vmul.f32 %v11868_v20, %v12021_v12 }
 0x37d   : > { %15629 = vst [vmem:[#allocation57_spill] sm:$0xff] %v12670_v23  ;;  %v5941_v44 = vmul.f32 %v11870_v9, %v11991_v17  ;;  %9993 = vmatmul.mubr.bf16.vlgmr.msra.gmra.mrb[64].mxu0 %v8198_v63  ;;  %v15217_v8 = vrot.slane %v12670_v23, 1  ;;  %v12683_v24 = vmul.f32 %v11870_v9, %v12021_v12  ;;  %v6068_v46 = vmul.f32 %v11806_v34, %v11991_v17 }
 0x37e   : > { %v12689_v52 = vmul.f32 %v11806_v34, %v12021_v12  ;;  %v15633_v62 = vrot.slane %v15632_v27, 1  ;;  %v5860_v43 = vrot.slane %v5814_v21, 2  ;;  %v15216_v5 = vrot.slane %v12676_v45, 2  ;;  %v15635_v27 = vld [vmem:[#allocation67_spill] sm:$0xff] }
 0x37f   : > { %15630 = vst [vmem:[#allocation61_spill] sm:$0xff] %v12683_v24  ;;  %v5987_v51 = vrot.slane %v5941_v44, 3  ;;  %v5736_v63 = vsel %vm1929_vm5, %v5733_v13, %v15217_v8  ;;  %v15215_v59 = vrot.slane %v12683_v24, 3  ;;  %v6114_v9 = vrot.slane %v6068_v46, 4 }
 0x380   : > { %15631 = vst [vmem:[#allocation16_spill] sm:$0xff] %v12689_v52  ;;  %v5734_v35 = vsel %vm1929_vm5, %v15633_v62, %v5733_v13  ;;  %v5790_v20 = vadd.f32 %v5736_v63, %v5663_v37  ;;  %v15634_v34 = vrot.slane %v12366_v58, 2  ;;  %v5863_v21 = vsel %vm5276_vm7, %v5860_v43, %v15216_v5  ;;  %v15637_v13 = vld [vmem:[#allocation68_spill] sm:$0xff]  ;;  %v15642_v5 = vld [vmem:[#allocation29_spill] sm:$0xff] }
 0x381   : > { %v5789_v7 = vadd.f32 %v5734_v35, %v5662_v54  ;;  %v15636_v62 = vrot.slane %v15635_v27, 3  ;;  %v5990_v54 = vsel %vm5404_vm8, %v5987_v51, %v15215_v59  ;;  %v15638_v46 = vrot.slane %v15637_v13, 4  ;;  %v15639_v35 = vld [vmem:[#allocation26_spill] sm:$0xff]  ;;  %v15640_v27 = vld [vmem:[#allocation27_spill] sm:$0xff] }
 0x382   : > { %v5861_v22 = vsel %vm5276_vm7, %v15634_v34, %v5860_v43  ;;  %v15218_v58 = vrot.slane %v12689_v52, 4  ;;  %v5917_v34 = vadd.f32 %v5863_v21, %v5790_v20  ;;  %v6275_v63 = vmul.f32 %v15639_v35, %v12021_v12  ;;  %v15641_v20 = vld [vmem:[#allocation28_spill] sm:$0xff] }
 0x383   : > { %v5988_v44 = vsel %vm5404_vm8, %v15636_v62, %v5987_v51  ;;  %v5916_v23 = vadd.f32 %v5861_v22, %v5789_v7  ;;  %v6115_v37 = vsel %vm883_vm1, %v15638_v46, %v6114_v9  ;;  %v6276_v43 = vmul.f32 %v15639_v35, %v12037_v19 }
 0x384   : > { %v6300_v7 = vmul.f32 %v15640_v27, %v12037_v19  ;;  %v6117_v51 = vsel %vm883_vm1, %v6114_v9, %v15218_v58  ;;  %v12726_v62 = vmul.f32 %v15640_v27, %v12066_v26  ;;  %v6427_v21 = vmul.f32 %v15641_v20, %v12037_v19 }
 0x385   : > { %v6043_v22 = vadd.f32 %v5988_v44, %v5916_v23  ;;  %v6044_v13 = vadd.f32 %v5990_v54, %v5917_v34  ;;  %v12732_v59 = vmul.f32 %v15641_v20, %v12066_v26  ;;  %v6554_v23 = vmul.f32 %v15642_v5, %v12037_v19 }
 0x386   : > { %v6346_v46 = vrot.slane %v6300_v7, 1  ;;  %v15228_v8 = vrot.slane %v12726_v62, 1  ;;  %v6473_v9 = vrot.slane %v6427_v21, 2  ;;  %v12739_v58 = vmul.f32 %v15642_v5, %v12066_v26 }
 0x387   : > { %v6170_v44 = vadd.f32 %v6115_v37, %v6043_v22  ;;  %v6171_v27 = vadd.f32 %v6117_v51, %v6044_v13  ;;  %v15643_v52 = vrot.slane %v12418_v29, 1  ;;  %v15226_v34 = vrot.slane %v12732_v59, 2 }
 0x388   : > { %v6600_v7 = vrot.slane %v6554_v23, 3  ;;  %v6349_v37 = vsel %vm1929_vm5, %v6346_v46, %v15228_v8  ;;  %v15644_v21 = vrot.slane %v12424_v47, 2  ;;  %v15225_v13 = vrot.slane %v12739_v58, 3 }
 0x389   : > { %v6347_v54 = vsel %vm1929_vm5, %v15643_v52, %v6346_v46  ;;  %v6210_v20 = vadd.f32 %v6170_v44, %v5597_v57  ;;  %v6211_v5 = vadd.f32 %v6171_v27, %v5598_v53  ;;  %v6403_v24 = vadd.f32 %v6349_v37, %v6276_v43 }
 0x38a   : > { %v6402_v22 = vadd.f32 %v6347_v54, %v6275_v63  ;;  %v6474_v35 = vsel %vm5276_vm7, %v15644_v21, %v6473_v9  ;;  %v6476_v29 = vsel %vm5276_vm7, %v6473_v9, %v15226_v34  ;;  %v15645_v52 = vrot.slane %v12431_v4, 3 }
 0x38b   : > { %v6681_v63 = vmul.f32 %v11825_v38, %v12037_v19  ;;  %v12762_v47 = vmul.f32 %v11825_v38, %v12066_v26  ;;  %v6530_v53 = vadd.f32 %v6476_v29, %v6403_v24  ;;  %v6888_v43 = vmul.f32 %v11829_v6, %v12066_v26 }
 0x38c   : > { %v6601_v51 = vsel %vm5404_vm8, %v15645_v52, %v6600_v7  ;;  %v6529_v57 = vadd.f32 %v6474_v35, %v6402_v22  ;;  %v6889_v27 = vmul.f32 %v11829_v6, %v15604_v3  ;;  %v6913_v4 = vmul.f32 %v11872_v11, %v15604_v3  ;;  %v15647_v22 = vld [vmem:[#allocation53_spill] sm:$0xff] }
 0x38d   : > { %v6603_v35 = vsel %vm5404_vm8, %v6600_v7, %v15225_v13  ;;  %v6727_v23 = vrot.slane %v6681_v63, 4  ;;  %v15227_v44 = vrot.slane %v12762_v47, 4  ;;  %v12776_v24 = vmul.f32 %v11872_v11, %v15606_v25 }
 0x38e   : > { %v6656_v46 = vadd.f32 %v6601_v51, %v6529_v57  ;;  %v6657_v9 = vadd.f32 %v6603_v35, %v6530_v53  ;;  %v6959_v54 = vrot.slane %v6913_v4, 1  ;;  %v7040_v37 = vmul.f32 %v11834_v55, %v15604_v3  ;;  %v15650_v53 = vld [vmem:[#allocation54_spill] sm:$0xff] }
 0x38f   : > { %15646 = vst [vmem:[#allocation50_spill] sm:$0xff] %v12776_v24  ;;  %v15648_v21 = vrot.slane %v15647_v22, 4  ;;  %v6730_v7 = vsel %vm883_vm1, %v6727_v23, %v15227_v44  ;;  %v12788_v52 = vmul.f32 %v11834_v55, %v15606_v25  ;;  %v7167_v51 = vmul.f32 %v11836_v16, %v15604_v3 }
 0x390   : > { %v6784_v63 = vadd.f32 %v6730_v7, %v6657_v9  ;;  %v15651_v4 = vrot.slane %v15650_v53, 1  ;;  %v15232_v22 = vrot.slane %v12776_v24, 1  ;;  %v7086_v13 = vrot.slane %v7040_v37, 2  ;;  %v15653_v7 = vld [vmem:[#allocation56_spill] sm:$0xff] }
 0x391   : > { %v6728_v29 = vsel %vm883_vm1, %v15648_v21, %v6727_v23  ;;  %15649 = vst [vmem:[#allocation21_spill] sm:$0xff] %v12788_v52  ;;  %v15231_v34 = vrot.slane %v12788_v52, 2  ;;  %v12799_v23 = vmul.f32 %v11836_v16, %v15606_v25  ;;  %v7213_v9 = vrot.slane %v7167_v51, 3  ;;  %v15655_v16 = vld [vmem:[#allocation70_spill] sm:$0xff]  ;;  %v12820_v51 = vpop.f32.mrb[56].mxu1 }
 0x392   : > { %v6783_v57 = vadd.f32 %v6728_v29, %v6656_v46  ;;  %v6960_v35 = vsel %vm1929_vm5, %v15651_v4, %v6959_v54  ;;  %v6824_v8 = vadd.f32 %v6784_v63, %v6211_v5  ;;  %v6962_v46 = vsel %vm1929_vm5, %v6959_v54, %v15232_v22  ;;  %15658 = vst [vmem:[#allocation43_spill] sm:$0xff] %v12820_v51  ;;  %v15661_v22 = vld [vmem:[#allocation38_spill] sm:$0xff] }
 0x393   : > { %v7015_v21 = vadd.f32 %v6960_v35, %v6888_v43  ;;  %15652 = vst [vmem:[#allocation22_spill] sm:$0xff] %v12799_v23  ;;  %v7016_v29 = vadd.f32 %v6962_v46, %v6889_v27  ;;  %v15654_v53 = vrot.slane %v15653_v7, 2  ;;  %v7089_v43 = vsel %vm5276_vm7, %v7086_v13, %v15231_v34 }
 0x394   : > { %v6823_v44 = vadd.f32 %v6783_v57, %v6210_v20  ;;  %v15235_v37 = vrot.slane %v12799_v23, 3  ;;  %v15656_v20 = vrot.slane %v15655_v16, 3  ;;  %v15657_v57 = vld [vmem:[#allocation35_spill] sm:$0xff]  ;;  %v15660_v16 = vld [vmem:[#allocation58_spill] sm:$0xff] }
 0x395   : > { %v7087_v4 = vsel %vm5276_vm7, %v15654_v53, %v7086_v13  ;;  %v7294_v54 = vmul.f32 %v15657_v57, %v15604_v3  ;;  %v12818_v27 = vmul.f32 %v15657_v57, %v15606_v25  ;;  %v7143_v63 = vadd.f32 %v7089_v43, %v7016_v29  ;;  %v9974_v53 = vpop.f32.mrb[57].mxu1  ;;  %v15662_v43 = vld [vmem:[#allocation60_spill] sm:$0xff] }
 0x396   : > { %v7142_v35 = vadd.f32 %v7087_v4, %v7015_v21  ;;  %v7214_v5 = vsel %vm5404_vm8, %v15656_v20, %v7213_v9  ;;  %v7216_v13 = vsel %vm5404_vm8, %v7213_v9, %v15235_v37  ;;  %v15659_v21 = vld [vmem:[#allocation36_spill] sm:$0xff]  ;;  %v7526_v57 = vmul.f32 %v15661_v22, %v15660_v16  ;;  %v4810_v51 = vpop.f32.mrb[58].mxu1  ;;  %v15663_v9 = vld [vmem:[#allocation39_spill] sm:$0xff] }
 0x397   : > { %v7501_v46 = vmul.f32 %v15659_v21, %v15606_v25  ;;  %v7502_v7 = vmul.f32 %v15659_v21, %v15660_v16  ;;  %v7340_v20 = vrot.slane %v7294_v54, 4  ;;  %v15241_v34 = vrot.slane %v12818_v27, 4 }
 0x398   : > { %v7269_v4 = vadd.f32 %v7214_v5, %v7142_v35  ;;  %v7270_v29 = vadd.f32 %v7216_v13, %v7143_v63  ;;  %v12834_v23 = vmul.f32 %v15661_v22, %v15662_v43  ;;  %v7653_v37 = vmul.f32 %v15663_v9, %v15660_v16  ;;  %v9975_v35 = vpop.f32.mrb[59].mxu1 }
 0x399   : > { %v12840_v21 = vmul.f32 %v15663_v9, %v15662_v43  ;;  %v15664_v5 = vrot.slane %v12508_v18, 4  ;;  %v7343_v51 = vsel %vm883_vm1, %v7340_v20, %v15241_v34  ;;  %v7572_v63 = vrot.slane %v7526_v57, 1 }
 0x39a   : > { %v7780_v13 = vmul.f32 %v15556_v30, %v15660_v16  ;;  %v7397_v22 = vadd.f32 %v7343_v51, %v7270_v29  ;;  %v15249_v52 = vrot.slane %v12834_v23, 1  ;;  %v7699_v24 = vrot.slane %v7653_v37, 2 }
 0x39b   : > { %v7341_v54 = vsel %vm883_vm1, %v15664_v5, %v7340_v20  ;;  %v15665_v9 = vrot.slane %v12528_v50, 1  ;;  %v15242_v18 = vrot.slane %v12840_v21, 2  ;;  %v12857_v5 = vmul.f32 %v15556_v30, %v15662_v43 }
 0x39c   : > { %v7396_v53 = vadd.f32 %v7341_v54, %v7269_v4  ;;  %v7826_v20 = vrot.slane %v7780_v13, 3  ;;  %v7437_v34 = vadd.f32 %v7397_v22, %v6824_v8  ;;  %v7575_v4 = vsel %vm1929_vm5, %v7572_v63, %v15249_v52 }
 0x39d   : > { %v7573_v35 = vsel %vm1929_vm5, %v15665_v9, %v7572_v63  ;;  %v7629_v54 = vadd.f32 %v7575_v4, %v7502_v7  ;;  %v15666_v37 = vrot.slane %v12534_v33, 2  ;;  %v7702_v9 = vsel %vm5276_vm7, %v7699_v24, %v15242_v18  ;;  %v15668_v7 = vld [vmem:[#allocation23_spill] sm:$0xff] }
 0x39e   : > { %v7436_v57 = vadd.f32 %v7396_v53, %v6823_v44  ;;  %v7628_v29 = vadd.f32 %v7573_v35, %v7501_v46  ;;  %v15667_v51 = vrot.slane %v12551_v32, 3  ;;  %v15248_v8 = vrot.slane %v12857_v5, 3  ;;  %v15669_v63 = vld [vmem:[#allocation51_spill] sm:$0xff]  ;;  %v15670_v35 = vld [vmem:[#allocation24_spill] sm:$0xff] }
 0x39f   : > { %v7700_v50 = vsel %vm5276_vm7, %v15666_v37, %v7699_v24  ;;  %v7907_v22 = vmul.f32 %v15614_v48, %v15660_v16  ;;  %v12876_v46 = vmul.f32 %v15614_v48, %v15662_v43  ;;  %v7756_v33 = vadd.f32 %v7702_v9, %v7629_v54  ;;  %v15671_v24 = vld [vmem:[#allocation52_spill] sm:$0xff] }
 0x3a0   : > { %v7827_v13 = vsel %vm5404_vm8, %v15667_v51, %v7826_v20  ;;  %v7755_v44 = vadd.f32 %v7700_v50, %v7628_v29  ;;  %v10072_v53 = vadd.f32 %v15669_v63, %v15668_v7  ;;  %v10073_v4 = vadd.f32 %v15671_v24, %v15670_v35 }
 0x3a1   : > { %v5088_v32 = vmul.f32 %v11859_v60, %v11980_v61  ;;  %v7829_v29 = vsel %vm5404_vm8, %v7826_v20, %v15248_v8  ;;  %v7953_v50 = vrot.slane %v7907_v22, 4  ;;  %v15243_v51 = vrot.slane %v12876_v46, 4 }
 0x3a2   : > { %v7882_v37 = vadd.f32 %v7827_v13, %v7755_v44  ;;  %v7883_v18 = vadd.f32 %v7829_v29, %v7756_v33  ;;  %v4959_v54 = vmul.f32 %v12581_v0, %v10072_v53  ;;  %v4960_v9 = vmul.f32 %v12581_v0, %v10073_v4 }
 0x3a3   : > { %v5089_v7 = vmul.f32 %v11859_v60, %v11991_v17  ;;  %v15672_v63 = vrot.slane %v12567_v31, 4  ;;  %v7956_v20 = vsel %vm883_vm1, %v7953_v50, %v15243_v51  ;;  %v5113_v13 = vmul.f32 %v11845_v1, %v11991_v17 }
 0x3a4   : > { %v12902_v44 = vmul.f32 %v11845_v1, %v12021_v12  ;;  %v8010_v33 = vadd.f32 %v7956_v20, %v7883_v18  ;;  %v4994_v53 = vadd.f32 %v12598_v39, %v4959_v54  ;;  %v4995_v35 = vadd.f32 %v12598_v39, %v4960_v9 }
 0x3a5   : > { %v7954_v61 = vsel %vm883_vm1, %v15672_v63, %v7953_v50  ;;  %v5162_v31 = vrot.slane %v5113_v13, 1  ;;  %v5241_v4 = vmul.f32 %v11853_v40, %v11991_v17  ;;  %v12911_v29 = vmul.f32 %v11853_v40, %v12021_v12 }
 0x3a6   : > { %v8009_v22 = vadd.f32 %v7954_v61, %v7882_v37  ;;  %v15247_v24 = vrot.slane %v12902_v44, 1  ;;  %v8050_v63 = vadd.f32 %v8010_v33, %v7437_v34  ;;  %v12913_v51 = vmax.f32 %v4994_v53, 0.0 }
 0x3a7   : > { %v12915_v37 = vmax.f32 %v4995_v35, 0.0  ;;  %v15675_v18 = vrot.slane %v12604_v28, 1  ;;  %v5290_v61 = vrot.slane %v5241_v4, 2  ;;  %v15244_v20 = vrot.slane %v12911_v29, 2 }
 0x3a8   : > { %v8049_v50 = vadd.f32 %v8009_v22, %v7436_v57  ;;  %15673 = vst [vmem:[#allocation20_spill] sm:$0xff] %v12913_v51  ;;  %v5165_v9 = vsel %vm1929_vm5, %v5162_v31, %v15247_v24  ;;  %v8110_v57 = vsub.f32 %v8050_v63, %v11896_v36  ;;  %v15676_v33 = vrot.slane %v12610_v10, 2 }
 0x3a9   : > { %15674 = vst [vmem:[#allocation66_spill] sm:$0xff] %v12915_v37  ;;  %v5163_v54 = vsel %vm1929_vm5, %v15675_v18, %v5162_v31  ;;  %v5217_v22 = vadd.f32 %v5165_v9, %v5089_v7  ;;  %v5293_v28 = vsel %vm5276_vm7, %v5290_v61, %v15244_v20  ;;  %v5369_v35 = vmul.f32 %v11855_v49, %v11991_v17 }
 0x3aa   : > { %v8109_v13 = vsub.f32 %v8049_v50, %v11896_v36  ;;  %v5216_v34 = vadd.f32 %v5163_v54, %v5088_v32  ;;  %v5291_v53 = vsel %vm5276_vm7, %v15676_v33, %v5290_v61  ;;  %v12936_v31 = vmul.f32 %v11855_v49, %v12021_v12 }
 0x3ab   : > { %v8136_v32 = vmul.f32 %v12293_v14, %v8110_v57  ;;  %v5345_v50 = vadd.f32 %v5293_v28, %v5217_v22  ;;  %v5418_v10 = vrot.slane %v5369_v35, 3  ;;  %v5497_v18 = vmul.f32 %v15623_v56, %v11991_v17 }
 0x3ac   : > { %v8135_v4 = vmul.f32 %v12293_v14, %v8109_v13  ;;  %v5344_v7 = vadd.f32 %v5291_v53, %v5216_v34  ;;  %v15246_v63 = vrot.slane %v12936_v31, 3  ;;  %v12945_v54 = vmul.f32 %v15623_v56, %v12021_v12 }
 0x3ad   : > { %v8162_v61 = vadd.f32 %v15624_v15, %v8136_v32  ;;  %v5664_v13 = vmul.f32 %v15568_v41, %v12021_v12  ;;  %v5665_v14 = vmul.f32 %v15568_v41, %v12037_v19  ;;  %v15677_v57 = vrot.slane %v12636_v42, 3 }
 0x3ae   : > { %v8161_v9 = vadd.f32 %v15624_v15, %v8135_v4  ;;  %v5421_v17 = vsel %vm5404_vm8, %v5418_v10, %v15246_v63  ;;  %v5545_v22 = vrot.slane %v5497_v18, 4  ;;  %v15245_v33 = vrot.slane %v12945_v54, 4 }
 0x3af   : > { %v5419_v34 = vsel %vm5404_vm8, %v15677_v57, %v5418_v10  ;;  %v8182_v28 = vmax.f32 %v8162_v61, 0.0  ;;  %v5473_v35 = vadd.f32 %v5421_v17, %v5345_v50  ;;  %v15678_v4 = vrot.slane %v12645_v2, 4  ;;  %v15679_v57 = vld [vmem:[#allocation45_spill] sm:$0xff] }
 0x3b0   : > { %v8181_v53 = vmax.f32 %v8161_v9, 0.0  ;;  %v5472_v15 = vadd.f32 %v5419_v34, %v5344_v7  ;;  %v5548_v42 = vsel %vm883_vm1, %v5545_v22, %v15245_v33  ;;  %v5689_v20 = vmul.f32 %v15679_v57, %v12037_v19  ;;  %v15681_v7 = vld [vmem:[#allocation46_spill] sm:$0xff] }
 0x3b1   : > { %v5546_v32 = vsel %vm883_vm1, %v15678_v4, %v5545_v22  ;;  %v12970_v10 = vmul.f32 %v15679_v57, %v12066_v26  ;;  %v5600_v61 = vadd.f32 %v5548_v42, %v5473_v35  ;;  %v5816_v50 = vmul.f32 %v15681_v7, %v12037_v19  ;;  %v15683_v22 = vld [vmem:[#allocation47_spill] sm:$0xff]  ;;  %v15687_v35 = vld [vmem:[#allocation57_spill] sm:$0xff] }
 0x3b2   : > { %v8199_v18 = vpack.c.bf16 %v8182_v28, %v8181_v53  ;;  %v5599_v9 = vadd.f32 %v5546_v32, %v5472_v15  ;;  %v5737_v2 = vrot.slane %v5689_v20, 1  ;;  %v12977_v17 = vmul.f32 %v15681_v7, %v12066_v26  ;;  %v15685_v28 = vld [vmem:[#allocation25_spill] sm:$0xff] }
 0x3b3   : > { %15680 = vst [vmem:[#allocation44_spill] sm:$0xff] %v12970_v10  ;;  %v15254_v34 = vrot.slane %v12970_v10, 1  ;;  %v5943_v4 = vmul.f32 %v15683_v22, %v12037_v19  ;;  %v5864_v33 = vrot.slane %v5816_v50, 2  ;;  %v12983_v53 = vmul.f32 %v15683_v22, %v12066_v26 }
 0x3b4   : > { %15682 = vst [vmem:[#allocation67_spill] sm:$0xff] %v12977_v17  ;;  %9996 = vmatprep.mubr.bf16.mxu0 %v8199_v18  ;;  %v6070_v15 = vmul.f32 %v15685_v28, %v12037_v19  ;;  %v12989_v20 = vmul.f32 %v15685_v28, %v12066_v26  ;;  %v15688_v32 = vrot.slane %v15687_v35, 1  ;;  %v15257_v50 = vrot.slane %v12977_v17, 2 }
 0x3b5   : > { %15684 = vst [vmem:[#allocation68_spill] sm:$0xff] %v12983_v53  ;;  %v5740_v18 = vsel %vm1929_vm5, %v5737_v2, %v15254_v34  ;;  %v5991_v63 = vrot.slane %v5943_v4, 3  ;;  %v15689_v52 = vrot.slane %v12676_v45, 2  ;;  %v15255_v51 = vrot.slane %v12983_v53, 3 }
 0x3b6   : > { %15686 = vst [vmem:[#allocation53_spill] sm:$0xff] %v12989_v20  ;;  %v5738_v42 = vsel %vm1929_vm5, %v15688_v32, %v5737_v2  ;;  %v5792_v8 = vadd.f32 %v5740_v18, %v5665_v14  ;;  %v5867_v35 = vsel %vm5276_vm7, %v5864_v33, %v15257_v50  ;;  %v15690_v32 = vld [vmem:[#allocation61_spill] sm:$0xff]  ;;  %v6118_v2 = vrot.slane %v6070_v15, 4 }
 0x3b7   : > { %v5791_v24 = vadd.f32 %v5738_v42, %v5664_v13  ;;  %v5865_v37 = vsel %vm5276_vm7, %v15689_v52, %v5864_v33  ;;  %v15691_v28 = vrot.slane %v15690_v32, 3  ;;  %v15256_v34 = vrot.slane %v12989_v20, 4  ;;  %v15692_v52 = vld [vmem:[#allocation26_spill] sm:$0xff]  ;;  %v15693_v42 = vld [vmem:[#allocation16_spill] sm:$0xff] }
 0x3b8   : > { %v5919_v13 = vadd.f32 %v5867_v35, %v5792_v8  ;;  %v5994_v45 = vsel %vm5404_vm8, %v5991_v63, %v15255_v51  ;;  %v6277_v14 = vmul.f32 %v15692_v52, %v12066_v26  ;;  %v15694_v18 = vrot.slane %v15693_v42, 4  ;;  %v15695_v8 = vld [vmem:[#allocation27_spill] sm:$0xff]  ;;  %v15696_v32 = vld [vmem:[#allocation28_spill] sm:$0xff] }
 0x3b9   : > { %v5992_v10 = vsel %vm5404_vm8, %v15691_v28, %v5991_v63  ;;  %v5918_v4 = vadd.f32 %v5865_v37, %v5791_v24  ;;  %v6121_v28 = vsel %vm883_vm1, %v6118_v2, %v15256_v34  ;;  %v6278_v15 = vmul.f32 %v15692_v52, %v15604_v3 }
 0x3ba   : > { %v6119_v33 = vsel %vm883_vm1, %v15694_v18, %v6118_v2  ;;  %v6302_v24 = vmul.f32 %v15695_v8, %v15604_v3  ;;  %v6046_v35 = vadd.f32 %v5994_v45, %v5919_v13  ;;  %v13026_v63 = vmul.f32 %v15695_v8, %v15606_v25  ;;  %v15697_v2 = vld [vmem:[#allocation29_spill] sm:$0xff] }
 0x3bb   : > { %v6045_v37 = vadd.f32 %v5992_v10, %v5918_v4  ;;  %v6429_v42 = vmul.f32 %v15696_v32, %v15604_v3  ;;  %v13032_v51 = vmul.f32 %v15696_v32, %v15606_v25  ;;  %v6556_v34 = vmul.f32 %v15697_v2, %v15604_v3 }
 0x3bc   : > { %v6350_v18 = vrot.slane %v6302_v24, 1  ;;  %v13038_v50 = vmul.f32 %v15697_v2, %v15606_v25  ;;  %v6173_v4 = vadd.f32 %v6121_v28, %v6046_v35  ;;  %v15267_v13 = vrot.slane %v13026_v63, 1 }
 0x3bd   : > { %v6172_v10 = vadd.f32 %v6119_v33, %v6045_v37  ;;  %v6477_v45 = vrot.slane %v6429_v42, 2  ;;  %v15699_v20 = vrot.slane %v12726_v62, 1  ;;  %v15266_v8 = vrot.slane %v13032_v51, 2 }
 0x3be   : > { %15698 = vst [vmem:[#allocation54_spill] sm:$0xff] %v13038_v50  ;;  %v6604_v32 = vrot.slane %v6556_v34, 3  ;;  %v15265_v53 = vrot.slane %v13038_v50, 3  ;;  %v6213_v17 = vadd.f32 %v6173_v4, %v5600_v61  ;;  %v6353_v2 = vsel %vm1929_vm5, %v6350_v18, %v15267_v13 }
 0x3bf   : > { %v6351_v24 = vsel %vm1929_vm5, %v15699_v20, %v6350_v18  ;;  %v6212_v52 = vadd.f32 %v6172_v10, %v5599_v9  ;;  %v6405_v28 = vadd.f32 %v6353_v2, %v6278_v15  ;;  %v15700_v37 = vrot.slane %v12732_v59, 2 }
 0x3c0   : > { %v6404_v33 = vadd.f32 %v6351_v24, %v6277_v14  ;;  %v6480_v62 = vsel %vm5276_vm7, %v6477_v45, %v15266_v8  ;;  %v15701_v34 = vrot.slane %v12739_v58, 3  ;;  %v6607_v61 = vsel %vm5404_vm8, %v6604_v32, %v15265_v53 }
 0x3c1   : > { %v6478_v35 = vsel %vm5276_vm7, %v15700_v37, %v6477_v45  ;;  %v6683_v14 = vmul.f32 %v11825_v38, %v15604_v3  ;;  %v13065_v59 = vmul.f32 %v11825_v38, %v15606_v25  ;;  %v6532_v15 = vadd.f32 %v6480_v62, %v6405_v28 }
 0x3c2   : > { %v6605_v20 = vsel %vm5404_vm8, %v15701_v34, %v6604_v32  ;;  %v6531_v9 = vadd.f32 %v6478_v35, %v6404_v33  ;;  %v6890_v42 = vmul.f32 %v11829_v6, %v15606_v25  ;;  %v6891_v58 = vmul.f32 %v11829_v6, %v15660_v16 }
 0x3c3   : > { %15702 = vst [vmem:[#allocation56_spill] sm:$0xff] %v13065_v59  ;;  %v6915_v18 = vmul.f32 %v11872_v11, %v15660_v16  ;;  %v6731_v10 = vrot.slane %v6683_v14, 4  ;;  %v15268_v32 = vrot.slane %v13065_v59, 4  ;;  %v13076_v4 = vmul.f32 %v11872_v11, %v15662_v43 }
 0x3c4   : > { %v6658_v2 = vadd.f32 %v6605_v20, %v6531_v9  ;;  %v6659_v45 = vadd.f32 %v6607_v61, %v6532_v15  ;;  %v7042_v33 = vmul.f32 %v11834_v55, %v15660_v16  ;;  %v13082_v28 = vmul.f32 %v11834_v55, %v15662_v43  ;;  %v15706_v20 = vld [vmem:[#allocation34_spill] sm:$0xff] }
 0x3c5   : > { %15703 = vst [vmem:[#allocation70_spill] sm:$0xff] %v13076_v4  ;;  %v6963_v24 = vrot.slane %v6915_v18, 1  ;;  %v15705_v37 = vrot.slane %v12762_v47, 4  ;;  %v6734_v62 = vsel %vm883_vm1, %v6731_v10, %v15268_v32  ;;  %v15271_v34 = vrot.slane %v13076_v4, 1  ;;  %v15707_v15 = vld [vmem:[#allocation50_spill] sm:$0xff] }
 0x3c6   : > { %15704 = vst [vmem:[#allocation58_spill] sm:$0xff] %v13082_v28  ;;  %v7169_v9 = vmul.f32 %v15706_v20, %v15660_v16  ;;  %v6786_v14 = vadd.f32 %v6734_v62, %v6659_v45  ;;  %v15708_v18 = vrot.slane %v15707_v15, 1  ;;  %v7090_v8 = vrot.slane %v7042_v33, 2  ;;  %v15710_v45 = vld [vmem:[#allocation21_spill] sm:$0xff] }
 0x3c7   : > { %v6732_v35 = vsel %vm883_vm1, %v15705_v37, %v6731_v10  ;;  %v6966_v47 = vsel %vm1929_vm5, %v6963_v24, %v15271_v34  ;;  %v15272_v13 = vrot.slane %v13082_v28, 2  ;;  %v13102_v10 = vmul.f32 %v15706_v20, %v15662_v43 }
 0x3c8   : > { %v6785_v61 = vadd.f32 %v6732_v35, %v6658_v2  ;;  %v6964_v53 = vsel %vm1929_vm5, %v15708_v18, %v6963_v24  ;;  %v6826_v55 = vadd.f32 %v6786_v14, %v6213_v17  ;;  %v7018_v2 = vadd.f32 %v6966_v47, %v6891_v58  ;;  %v15712_v18 = vld [vmem:[#allocation35_spill] sm:$0xff] }
 0x3c9   : > { %v7017_v37 = vadd.f32 %v6964_v53, %v6890_v42  ;;  %15709 = vst [vmem:[#allocation60_spill] sm:$0xff] %v13102_v10  ;;  %v15711_v35 = vrot.slane %v15710_v45, 2  ;;  %v7093_v33 = vsel %vm5276_vm7, %v7090_v8, %v15272_v13  ;;  %v7217_v24 = vrot.slane %v7169_v9, 3  ;;  %v15717_v9 = vld [vmem:[#allocation62_spill] sm:$0xff] }
 0x3ca   : > { %v6825_v32 = vadd.f32 %v6785_v61, %v6212_v52  ;;  %v15276_v53 = vrot.slane %v13102_v10, 3  ;;  %v7145_v42 = vadd.f32 %v7093_v33, %v7018_v2  ;;  %v7296_v34 = vmul.f32 %v15712_v18, %v15660_v16  ;;  %v15714_v52 = vld [vmem:[#allocation36_spill] sm:$0xff]  ;;  %v15715_v61 = vld [vmem:[#allocation22_spill] sm:$0xff]  ;;  %v15720_v10 = vld [vmem:[#allocation39_spill] sm:$0xff] }
 0x3cb   : > { %v7091_v62 = vsel %vm5276_vm7, %v15711_v35, %v7090_v8  ;;  %v13115_v17 = vmul.f32 %v15712_v18, %v15662_v43  ;;  %v7503_v58 = vmul.f32 %v15714_v52, %v15662_v43  ;;  %v15716_v14 = vrot.slane %v15715_v61, 3  ;;  %v15718_v2 = vld [vmem:[#allocation38_spill] sm:$0xff]  ;;  %v15719_v18 = vld [vmem:[#allocation63_spill] sm:$0xff] }
 0x3cc   : > { %v7144_v15 = vadd.f32 %v7091_v62, %v7017_v37  ;;  %v7220_v8 = vsel %vm5404_vm8, %v7217_v24, %v15276_v53  ;;  %v7504_v37 = vmul.f32 %v15714_v52, %v15717_v9  ;;  %v7528_v45 = vmul.f32 %v15718_v2, %v15717_v9 }
 0x3cd   : > { %15713 = vst [vmem:[#allocation23_spill] sm:$0xff] %v13115_v17  ;;  %v7218_v47 = vsel %vm5404_vm8, %v15716_v14, %v7217_v24  ;;  %v7272_v62 = vadd.f32 %v7220_v8, %v7145_v42  ;;  %v7344_v33 = vrot.slane %v7296_v34, 4  ;;  %v15281_v13 = vrot.slane %v13115_v17, 4 }
 0x3ce   : > { %v7271_v35 = vadd.f32 %v7218_v47, %v7144_v15  ;;  %v13132_v61 = vmul.f32 %v15718_v2, %v15719_v18  ;;  %v7576_v14 = vrot.slane %v7528_v45, 1  ;;  %v7655_v28 = vmul.f32 %v15720_v10, %v15717_v9 }
 0x3cf   : > { %v13138_v24 = vmul.f32 %v15720_v10, %v15719_v18  ;;  %v15721_v53 = vrot.slane %v12818_v27, 4  ;;  %v7347_v34 = vsel %vm883_vm1, %v7344_v33, %v15281_v13  ;;  %v7782_v42 = vmul.f32 %v15556_v30, %v15717_v9 }
 0x3d0   : > { %v13150_v47 = vmul.f32 %v15556_v30, %v15719_v18  ;;  %v7399_v45 = vadd.f32 %v7347_v34, %v7272_v62  ;;  %v15722_v4 = vrot.slane %v12834_v23, 1  ;;  %v15290_v27 = vrot.slane %v13132_v61, 1  ;;  %v15727_v34 = vld [vmem:[#allocation37_spill] sm:$0xff] }
 0x3d1   : > { %v7345_v15 = vsel %vm883_vm1, %v15721_v53, %v7344_v33  ;;  %v7703_v59 = vrot.slane %v7655_v28, 2  ;;  %v15289_v17 = vrot.slane %v13138_v24, 2  ;;  %v7830_v33 = vrot.slane %v7782_v42, 3 }
 0x3d2   : > { %v7398_v8 = vadd.f32 %v7345_v15, %v7271_v35  ;;  %v7577_v20 = vsel %vm1929_vm5, %v15722_v4, %v7576_v14  ;;  %v7439_v11 = vadd.f32 %v7399_v45, %v6826_v55  ;;  %v7579_v50 = vsel %vm1929_vm5, %v7576_v14, %v15290_v27  ;;  %v15725_v14 = vld [vmem:[#allocation31_spill] sm:$0xff]  ;;  %v15726_v15 = vld [vmem:[#allocation69_spill] sm:$0xff] }
 0x3d3   : > { %v7630_v53 = vadd.f32 %v7577_v20, %v7503_v58  ;;  %v15288_v35 = vrot.slane %v13150_v47, 3  ;;  %v7631_v62 = vadd.f32 %v7579_v50, %v7504_v37  ;;  %v15723_v23 = vrot.slane %v12840_v21, 2 }
 0x3d4   : > { %v7438_v13 = vadd.f32 %v7398_v8, %v6825_v32  ;;  %v7706_v28 = vsel %vm5276_vm7, %v7703_v59, %v15289_v17  ;;  %v15724_v20 = vrot.slane %v12857_v5, 3  ;;  %v7909_v50 = vmul.f32 %v15614_v48, %v15717_v9  ;;  %v15728_v5 = vld [vmem:[#allocation71_spill] sm:$0xff] }
 0x3d5   : > { %v7704_v4 = vsel %vm5276_vm7, %v15723_v23, %v7703_v59  ;;  %v7833_v58 = vsel %vm5404_vm8, %v7830_v33, %v15288_v35  ;;  %v13177_v21 = vmul.f32 %v15614_v48, %v15719_v18  ;;  %v7758_v37 = vadd.f32 %v7706_v28, %v7631_v62 }
 0x3d6   : > { %v7831_v32 = vsel %vm5404_vm8, %v15724_v20, %v7830_v33  ;;  %v7757_v55 = vadd.f32 %v7704_v4, %v7630_v53  ;;  %v10074_v59 = vadd.f32 %v15726_v15, %v15725_v14  ;;  %v10075_v42 = vadd.f32 %v15728_v5, %v15727_v34 }
 0x3d7   : > { %v5090_v8 = vmul.f32 %v11859_v60, %v12021_v12  ;;  %v7957_v53 = vrot.slane %v7909_v50, 4  ;;  %v15285_v33 = vrot.slane %v13177_v21, 4  ;;  %v5091_v23 = vmul.f32 %v11859_v60, %v12037_v19 }
 0x3d8   : > { %v7884_v45 = vadd.f32 %v7831_v32, %v7757_v55  ;;  %v7885_v4 = vadd.f32 %v7833_v58, %v7758_v37  ;;  %v4961_v20 = vmul.f32 %v12581_v0, %v10074_v59  ;;  %v4962_v62 = vmul.f32 %v12581_v0, %v10075_v42 }
 0x3d9   : > { %v5115_v28 = vmul.f32 %v11845_v1, %v12037_v19  ;;  %v15729_v14 = vrot.slane %v12876_v46, 4  ;;  %v7960_v12 = vsel %vm883_vm1, %v7957_v53, %v15285_v33  ;;  %v13200_v32 = vmul.f32 %v11845_v1, %v12066_v26 }
 0x3da   : > { %v5243_v55 = vmul.f32 %v11853_v40, %v12037_v19  ;;  %v8012_v0 = vadd.f32 %v7960_v12, %v7885_v4  ;;  %v4996_v50 = vadd.f32 %v12598_v39, %v4961_v20  ;;  %v4997_v37 = vadd.f32 %v12598_v39, %v4962_v62 }
 0x3db   : > { %v7958_v15 = vsel %vm883_vm1, %v15729_v14, %v7957_v53  ;;  %v5166_v46 = vrot.slane %v5115_v28, 1  ;;  %v15286_v59 = vrot.slane %v13200_v32, 1  ;;  %v13209_v34 = vmul.f32 %v11853_v40, %v12066_v26 }
 0x3dc   : > { %v8011_v58 = vadd.f32 %v7958_v15, %v7884_v45  ;;  %v5294_v5 = vrot.slane %v5243_v55, 2  ;;  %v8052_v53 = vadd.f32 %v8012_v0, %v7439_v11  ;;  %v13211_v14 = vmax.f32 %v4996_v50, 0.0  ;;  %v13241_v0 = vld [vmem:[%s12269_s27] ss:$0 sm:$0xff] }
 0x3dd   : > { %v5026_v33 = vmax.f32 %v4997_v37, 0.0  ;;  %v15731_v45 = vrot.slane %v12902_v44, 1  ;;  %v5169_v39 = vsel %vm1929_vm5, %v5166_v46, %v15286_v59  ;;  %v15732_v20 = vrot.slane %v12911_v29, 2 }
 0x3de   : > { %v8051_v42 = vadd.f32 %v8011_v58, %v7438_v13  ;;  %15730 = vst [vmem:[#allocation51_spill] sm:$0xff] %v13211_v14  ;;  %v15287_v28 = vrot.slane %v13209_v34, 2  ;;  %v8112_v11 = vsub.f32 %v8052_v53, %v11896_v36 }
 0x3df   : > { %v5167_v4 = vsel %vm1929_vm5, %v15731_v45, %v5166_v46  ;;  %v5295_v62 = vsel %vm5276_vm7, %v15732_v20, %v5294_v5  ;;  %v13226_v15 = vmul.f32 %v15714_v52, %v5026_v33  ;;  %v13229_v44 = vmul.f32 %v15718_v2, %v5026_v33 }
 0x3e0   : > { %v8111_v13 = vsub.f32 %v8051_v42, %v11896_v36  ;;  %v13232_v12 = vmul.f32 %v15720_v10, %v5026_v33  ;;  %v13235_v29 = vmul.f32 %v15556_v30, %v5026_v33  ;;  %v13238_v55 = vmul.f32 %v15614_v48, %v5026_v33 }
 0x3e1   : > { %15733 = vst [vmem:[#allocation24_spill] sm:$0xff] %v13229_v44  ;;  %v5218_v58 = vadd.f32 %v5167_v4, %v5090_v8  ;;  %v8138_v37 = vmul.f32 %v13241_v0, %v8112_v11  ;;  %v5219_v42 = vadd.f32 %v5169_v39, %v5091_v23  ;;  %v5297_v33 = vsel %vm5276_vm7, %v5294_v5, %v15287_v28  ;;  %v13253_v8 = vld [vmem:[%s12285_s28] ss:$0 sm:$0xff] }
 0x3e2   : > { %15734 = vst [vmem:[#allocation52_spill] sm:$0xff] %v13232_v12  ;;  %15735 = vst [vmem:[#allocation45_spill] sm:$0xff] %v13235_v29  ;;  %v8137_v50 = vmul.f32 %v13241_v0, %v8111_v13  ;;  %v5371_v23 = vmul.f32 %v11855_v49, %v12037_v19  ;;  %v13261_v39 = vmul.f32 %v11855_v49, %v12066_v26  ;;  %v15738_v28 = vrot.slane %v12936_v31, 3 }
 0x3e3   : > { %15736 = vst [vmem:[#allocation46_spill] sm:$0xff] %v13238_v55  ;;  %v8164_v13 = vadd.f32 %v13253_v8, %v8138_v37  ;;  %v5346_v11 = vadd.f32 %v5295_v62, %v5218_v58  ;;  %v5347_v59 = vadd.f32 %v5297_v33, %v5219_v42  ;;  %v5499_v20 = vmul.f32 %v15623_v56, %v12037_v19 }
 0x3e4   : > { %v8163_v4 = vadd.f32 %v13253_v8, %v8137_v50  ;;  %v13267_v5 = vmul.f32 %v15623_v56, %v12066_v26  ;;  %v5666_v62 = vmul.f32 %v15568_v41, %v12066_v26  ;;  %v5667_v58 = vmul.f32 %v15568_v41, %v15604_v3 }
 0x3e5   : > { %v8184_v50 = vmax.f32 %v8164_v13, 0.0  ;;  %v5422_v37 = vrot.slane %v5371_v23, 3  ;;  %v15296_v42 = vrot.slane %v13261_v39, 3  ;;  %v5549_v33 = vrot.slane %v5499_v20, 4 }
 0x3e6   : > { %v8183_v45 = vmax.f32 %v8163_v4, 0.0  ;;  %v15295_v53 = vrot.slane %v13267_v5, 4  ;;  %v5691_v19 = vmul.f32 %v15679_v57, %v15604_v3  ;;  %v13279_v4 = vmul.f32 %v15679_v57, %v15606_v25 }
 0x3e7   : > { %v5818_v13 = vmul.f32 %v15681_v7, %v15604_v3  ;;  %v5423_v23 = vsel %vm5404_vm8, %v15738_v28, %v5422_v37  ;;  %v5425_v20 = vsel %vm5404_vm8, %v5422_v37, %v15296_v42  ;;  %v13298_v28 = vmul.f32 %v15681_v7, %v15606_v25 }
 0x3e8   : > { %v8200_v46 = vpack.c.bf16 %v8184_v50, %v8183_v45  ;;  %15737 = vst [vmem:[#allocation57_spill] sm:$0xff] %v13279_v4  ;;  %v15739_v45 = vrot.slane %v12945_v54, 4  ;;  %v5552_v35 = vsel %vm883_vm1, %v5549_v33, %v15295_v53  ;;  %v5474_v17 = vadd.f32 %v5423_v23, %v5346_v11 }
 0x3e9   : > { %v5475_v27 = vadd.f32 %v5425_v20, %v5347_v59  ;;  %v5741_v55 = vrot.slane %v5691_v19, 1  ;;  %v15299_v31 = vrot.slane %v13279_v4, 1  ;;  %15740 = vst [vmem:[#allocation61_spill] sm:$0xff] %v13298_v28  ;;  %v5868_v29 = vrot.slane %v5818_v13, 2  ;;  %v15744_v13 = vld [vmem:[#allocation67_spill] sm:$0xff] }
 0x3ea   : > { %v5550_v50 = vsel %vm883_vm1, %v15739_v45, %v5549_v33  ;;  %9997 = vmatmul.mubr.bf16.gmra.mrb[68].mxu0 %v8200_v46  ;;  %v5945_v54 = vmul.f32 %v15683_v22, %v15604_v3  ;;  %v13304_v37 = vmul.f32 %v15683_v22, %v15606_v25  ;;  %v15742_v46 = vld [vmem:[#allocation44_spill] sm:$0xff]  ;;  %v15745_v53 = vrot.slane %v15744_v13, 2 }
 0x3eb   : > { %v5601_v45 = vadd.f32 %v5550_v50, %v5474_v17  ;;  %v5602_v33 = vadd.f32 %v5552_v35, %v5475_v27  ;;  %v15743_v11 = vrot.slane %v15742_v46, 1  ;;  %v5744_v19 = vsel %vm1929_vm5, %v5741_v55, %v15299_v31  ;;  %v15746_v27 = vld [vmem:[#allocation25_spill] sm:$0xff] }
 0x3ec   : > { %15741 = vst [vmem:[#allocation16_spill] sm:$0xff] %v13304_v37  ;;  %v5794_v20 = vadd.f32 %v5744_v19, %v5667_v58  ;;  %v5869_v42 = vsel %vm5276_vm7, %v15745_v53, %v5868_v29  ;;  %v15301_v14 = vrot.slane %v13298_v28, 2  ;;  %v5995_v22 = vrot.slane %v5945_v54, 3  ;;  %v15747_v58 = vld [vmem:[#allocation26_spill] sm:$0xff] }
 0x3ed   : > { %v5742_v59 = vsel %vm1929_vm5, %v15743_v11, %v5741_v55  ;;  %v15304_v17 = vrot.slane %v13304_v37, 3  ;;  %v6072_v35 = vmul.f32 %v15746_v27, %v15604_v3  ;;  %v13321_v50 = vmul.f32 %v15746_v27, %v15606_v25  ;;  %v15748_v11 = vld [vmem:[#allocation68_spill] sm:$0xff] }
 0x3ee   : > { %v5793_v23 = vadd.f32 %v5742_v59, %v5666_v62  ;;  %v5871_v55 = vsel %vm5276_vm7, %v5868_v29, %v15301_v14  ;;  %v6279_v53 = vmul.f32 %v15747_v58, %v15606_v25  ;;  %v6280_v54 = vmul.f32 %v15747_v58, %v15660_v16  ;;  %v15753_v58 = vld [vmem:[#allocation28_spill] sm:$0xff] }
 0x3ef   : > { %v5921_v46 = vadd.f32 %v5871_v55, %v5794_v20  ;;  %v15749_v59 = vrot.slane %v15748_v11, 3  ;;  %v5998_v13 = vsel %vm5404_vm8, %v5995_v22, %v15304_v17  ;;  %v6122_v31 = vrot.slane %v6072_v35, 4  ;;  %v15751_v55 = vld [vmem:[#allocation53_spill] sm:$0xff] }
 0x3f0   : > { %v5920_v62 = vadd.f32 %v5869_v42, %v5793_v23  ;;  %v15312_v29 = vrot.slane %v13321_v50, 4  ;;  %v15750_v42 = vld [vmem:[#allocation27_spill] sm:$0xff]  ;;  %v15752_v11 = vrot.slane %v15751_v55, 4  ;;  %v6431_v37 = vmul.f32 %v15753_v58, %v15660_v16 }
 0x3f1   : > { %v5996_v19 = vsel %vm5404_vm8, %v15749_v59, %v5995_v22  ;;  %v6304_v23 = vmul.f32 %v15750_v42, %v15660_v16  ;;  %v13341_v14 = vmul.f32 %v15750_v42, %v15662_v43  ;;  %v6048_v20 = vadd.f32 %v5998_v13, %v5921_v46 }
 0x3f2   : > { %v6047_v28 = vadd.f32 %v5996_v19, %v5920_v62  ;;  %v6123_v59 = vsel %vm883_vm1, %v15752_v11, %v6122_v31  ;;  %v13350_v22 = vmul.f32 %v15753_v58, %v15662_v43  ;;  %v6125_v35 = vsel %vm883_vm1, %v6122_v31, %v15312_v29  ;;  %v15755_v11 = vld [vmem:[#allocation29_spill] sm:$0xff] }
 0x3f3   : > { %v6354_v19 = vrot.slane %v6304_v23, 1  ;;  %v15309_v17 = vrot.slane %v13341_v14, 1  ;;  %v6175_v46 = vadd.f32 %v6125_v35, %v6048_v20  ;;  %v6481_v13 = vrot.slane %v6431_v37, 2 }
 0x3f4   : > { %15754 = vst [vmem:[#allocation50_spill] sm:$0xff] %v13350_v22  ;;  %v6174_v62 = vadd.f32 %v6123_v59, %v6047_v28  ;;  %v15310_v55 = vrot.slane %v13350_v22, 2  ;;  %v6558_v42 = vmul.f32 %v15755_v11, %v15660_v16  ;;  %v15756_v4 = vrot.slane %v13026_v63, 1 }
 0x3f5   : > { %v6357_v31 = vsel %vm1929_vm5, %v6354_v19, %v15309_v17  ;;  %v13367_v28 = vmul.f32 %v15755_v11, %v15662_v43  ;;  %v6215_v23 = vadd.f32 %v6175_v46, %v5602_v33  ;;  %v15758_v59 = vrot.slane %v13032_v51, 2 }
 0x3f6   : > { %v6214_v27 = vadd.f32 %v6174_v62, %v5601_v45  ;;  %v6355_v58 = vsel %vm1929_vm5, %v15756_v4, %v6354_v19  ;;  %v6407_v20 = vadd.f32 %v6357_v31, %v6280_v54  ;;  %v6484_v63 = vsel %vm5276_vm7, %v6481_v13, %v15310_v55 }
 0x3f7   : > { %15757 = vst [vmem:[#allocation21_spill] sm:$0xff] %v13367_v28  ;;  %v6406_v37 = vadd.f32 %v6355_v58, %v6279_v53  ;;  %v6482_v35 = vsel %vm5276_vm7, %v15758_v59, %v6481_v13  ;;  %v6608_v4 = vrot.slane %v6558_v42, 3  ;;  %v15311_v45 = vrot.slane %v13367_v28, 3  ;;  %v15760_v58 = vld [vmem:[#allocation54_spill] sm:$0xff]  ;;  %v15762_v59 = vld [vmem:[#allocation48_spill] sm:$0xff] }
 0x3f8   : > { %v6685_v62 = vmul.f32 %v11825_v38, %v15660_v16  ;;  %v6534_v17 = vadd.f32 %v6484_v63, %v6407_v20  ;;  %v13380_v33 = vmul.f32 %v11825_v38, %v15662_v43  ;;  %v6892_v51 = vmul.f32 %v11829_v6, %v15662_v43  ;;  %v15763_v63 = vld [vmem:[#allocation56_spill] sm:$0xff]  ;;  %v15769_v38 = vld [vmem:[#allocation70_spill] sm:$0xff] }
 0x3f9   : > { %v6533_v19 = vadd.f32 %v6482_v35, %v6406_v37  ;;  %v15761_v53 = vrot.slane %v15760_v58, 3  ;;  %v6611_v42 = vsel %vm5404_vm8, %v6608_v4, %v15311_v45  ;;  %v6893_v13 = vmul.f32 %v11829_v6, %v15717_v9 }
 0x3fa   : > { %15759 = vst [vmem:[#allocation22_spill] sm:$0xff] %v13380_v33  ;;  %v6735_v46 = vrot.slane %v6685_v62, 4  ;;  %v6661_v37 = vadd.f32 %v6611_v42, %v6534_v17  ;;  %v15322_v20 = vrot.slane %v13380_v33, 4  ;;  %v6917_v35 = vmul.f32 %v15762_v59, %v15717_v9 }
 0x3fb   : > { %v6609_v54 = vsel %vm5404_vm8, %v15761_v53, %v6608_v4  ;;  %v15764_v55 = vrot.slane %v15763_v63, 4  ;;  %v13400_v53 = vmul.f32 %v15762_v59, %v15719_v18  ;;  %v15766_v4 = vld [vmem:[#allocation33_spill] sm:$0xff]  ;;  %v15768_v63 = vld [vmem:[#allocation34_spill] sm:$0xff]  ;;  %v15770_v22 = vrot.slane %v15769_v38, 1 }
 0x3fc   : > { %v6660_v31 = vadd.f32 %v6609_v54, %v6533_v19  ;;  %v7044_v62 = vmul.f32 %v15766_v4, %v15717_v9  ;;  %v13406_v19 = vmul.f32 %v15766_v4, %v15719_v18  ;;  %v6738_v17 = vsel %vm883_vm1, %v6735_v46, %v15322_v20 }
 0x3fd   : > { %v6736_v58 = vsel %vm883_vm1, %v15764_v55, %v6735_v46  ;;  %15765 = vst [vmem:[#allocation62_spill] sm:$0xff] %v13400_v53  ;;  %v6967_v42 = vrot.slane %v6917_v35, 1  ;;  %v7171_v55 = vmul.f32 %v15768_v63, %v15717_v9  ;;  %v6788_v45 = vadd.f32 %v6738_v17, %v6661_v37 }
 0x3fe   : > { %15767 = vst [vmem:[#allocation63_spill] sm:$0xff] %v13406_v19  ;;  %v6787_v54 = vadd.f32 %v6736_v58, %v6660_v31  ;;  %v15324_v29 = vrot.slane %v13400_v53, 1  ;;  %v7094_v59 = vrot.slane %v7044_v62, 2  ;;  %v15323_v6 = vrot.slane %v13406_v19, 2  ;;  %v15772_v58 = vld [vmem:[#allocation58_spill] sm:$0xff] }
 0x3ff   : > { %v6968_v4 = vsel %vm1929_vm5, %v15770_v22, %v6967_v42  ;;  %v13420_v33 = vmul.f32 %v15768_v63, %v15719_v18  ;;  %v7221_v46 = vrot.slane %v7171_v55, 3  ;;  %v6828_v31 = vadd.f32 %v6788_v45, %v6215_v23  ;;  %v15774_v22 = vld [vmem:[#allocation60_spill] sm:$0xff]  ;;  %v15776_v55 = vld [vmem:[#allocation35_spill] sm:$0xff] }
 0x400   : > { %v6827_v28 = vadd.f32 %v6787_v54, %v6214_v27  ;;  %v6970_v37 = vsel %vm1929_vm5, %v6967_v42, %v15324_v29  ;;  %v7019_v35 = vadd.f32 %v6968_v4, %v6892_v51  ;;  %v15773_v62 = vrot.slane %v15772_v58, 2 }
 0x401   : > { %15771 = vst [vmem:[#allocation31_spill] sm:$0xff] %v13420_v33  ;;  %v7020_v27 = vadd.f32 %v6970_v37, %v6893_v13  ;;  %v7097_v38 = vsel %vm5276_vm7, %v7094_v59, %v15323_v6  ;;  %v15775_v54 = vrot.slane %v15774_v22, 3  ;;  %v15325_v23 = vrot.slane %v13420_v33, 3  ;;  %v15778_v37 = vld [vmem:[#allocation64_spill] sm:$0xff] }
 0x402   : > { %v7095_v17 = vsel %vm5276_vm7, %v15773_v62, %v7094_v59  ;;  %v7298_v42 = vmul.f32 %v15776_v55, %v15717_v9  ;;  %v13439_v51 = vmul.f32 %v15776_v55, %v15719_v18  ;;  %v7505_v13 = vmul.f32 %v15714_v52, %v15719_v18 }
 0x403   : > { %v7222_v20 = vsel %vm5404_vm8, %v15775_v54, %v7221_v46  ;;  %v7146_v45 = vadd.f32 %v7095_v17, %v7019_v35  ;;  %v7147_v4 = vadd.f32 %v7097_v38, %v7020_v27  ;;  %v7224_v59 = vsel %vm5404_vm8, %v7221_v46, %v15325_v23  ;;  %v15779_v54 = vld [vmem:[#allocation17_spill] sm:$0xff]  ;;  %v15780_v23 = vld [vmem:[#allocation23_spill] sm:$0xff] }
 0x404   : > { %15777 = vst [vmem:[#allocation69_spill] sm:$0xff] %v13439_v51  ;;  %v7506_v58 = vmul.f32 %v15714_v52, %v15778_v37  ;;  %v7530_v35 = vmul.f32 %v15718_v2, %v15778_v37  ;;  %v7348_v17 = vrot.slane %v7298_v42, 4  ;;  %v15331_v22 = vrot.slane %v13439_v51, 4 }
 0x405   : > { %v7273_v62 = vadd.f32 %v7222_v20, %v7146_v45  ;;  %v13453_v6 = vmul.f32 %v15718_v2, %v15779_v54  ;;  %v7274_v29 = vadd.f32 %v7224_v59, %v7147_v4  ;;  %v7657_v38 = vmul.f32 %v15720_v10, %v15778_v37 }
 0x406   : > { %v7580_v27 = vrot.slane %v7530_v35, 1  ;;  %v13459_v46 = vmul.f32 %v15720_v10, %v15779_v54  ;;  %v15781_v52 = vrot.slane %v15780_v23, 4  ;;  %v7351_v45 = vsel %vm883_vm1, %v7348_v17, %v15331_v22 }
 0x407   : > { %v15336_v42 = vrot.slane %v13453_v6, 1  ;;  %v7784_v4 = vmul.f32 %v15556_v30, %v15778_v37  ;;  %v7401_v35 = vadd.f32 %v7351_v45, %v7274_v29  ;;  %v15782_v55 = vrot.slane %v13132_v61, 1 }
 0x408   : > { %v7349_v20 = vsel %vm883_vm1, %v15781_v52, %v7348_v17  ;;  %v7707_v19 = vrot.slane %v7657_v38, 2  ;;  %v15335_v51 = vrot.slane %v13459_v46, 2  ;;  %v13479_v17 = vmul.f32 %v15556_v30, %v15779_v54 }
 0x409   : > { %v7400_v59 = vadd.f32 %v7349_v20, %v7273_v62  ;;  %v7581_v33 = vsel %vm1929_vm5, %v15782_v55, %v7580_v27  ;;  %v7583_v52 = vsel %vm1929_vm5, %v7580_v27, %v15336_v42  ;;  %v7441_v53 = vadd.f32 %v7401_v35, %v6828_v31  ;;  %v15786_v31 = vld [vmem:[#allocation43_spill] sm:$0xff] }
 0x40a   : > { %v7632_v23 = vadd.f32 %v7581_v33, %v7505_v13  ;;  %v7633_v62 = vadd.f32 %v7583_v52, %v7506_v58  ;;  %v15783_v29 = vrot.slane %v13138_v24, 2  ;;  %v7710_v55 = vsel %vm5276_vm7, %v7707_v19, %v15335_v51  ;;  %v15785_v24 = vld [vmem:[#allocation49_spill] sm:$0xff] }
 0x40b   : > { %v7440_v22 = vadd.f32 %v7400_v59, %v6827_v28  ;;  %v7834_v33 = vrot.slane %v7784_v4, 3  ;;  %v15333_v13 = vrot.slane %v13479_v17, 3  ;;  %v7911_v20 = vmul.f32 %v15614_v48, %v15778_v37 }
 0x40c   : > { %v7708_v61 = vsel %vm5276_vm7, %v15783_v29, %v7707_v19  ;;  %v7760_v38 = vadd.f32 %v7710_v55, %v7633_v62  ;;  %v13492_v28 = vmul.f32 %v15614_v48, %v15779_v54  ;;  %v10076_v58 = vadd.f32 %v15786_v31, %v15785_v24 }
 0x40d   : > { %v7759_v27 = vadd.f32 %v7708_v61, %v7632_v23  ;;  %v15787_v45 = vrot.slane %v13150_v47, 3  ;;  %v7837_v4 = vsel %vm5404_vm8, %v7834_v33, %v15333_v13  ;;  %v5092_v59 = vmul.f32 %v11859_v60, %v12066_v26  ;;  %v10744_v61 = vld [vmem:[%s11791_s29] ss:$0 sm:$0xff]  ;;  %s779_s29 = scalar_lea.vmem %s16043_s18, %s11014_s30 }
 0x40e   : > { %15784 = vst [vmem:[#allocation37_spill] sm:$0xff] %v13492_v28  ;;  %v5093_v35 = vmul.f32 %v11859_v60, %v15604_v3  ;;  %v7887_v23 = vadd.f32 %v7837_v4, %v7760_v38  ;;  %v7961_v62 = vrot.slane %v7911_v20, 4  ;;  %v15334_v29 = vrot.slane %v13492_v28, 4 }
 0x40f   : > { %v7835_v19 = vsel %vm5404_vm8, %v15787_v45, %v7834_v33  ;;  %v4963_v47 = vmul.f32 %v10744_v61, %v10076_v58  ;;  %v5117_v55 = vmul.f32 %v11845_v1, %v15604_v3  ;;  %v13512_v33 = vmul.f32 %v11845_v1, %v15606_v25 }
 0x410   : > { %v7886_v52 = vadd.f32 %v7835_v19, %v7759_v27  ;;  %v5245_v26 = vmul.f32 %v11853_v40, %v15604_v3  ;;  %v15788_v24 = vrot.slane %v13177_v21, 4  ;;  %v7964_v38 = vsel %vm883_vm1, %v7961_v62, %v15334_v29  ;;  %v10745_v19 = vld [vmem:[%s11800_s0] ss:$0 sm:$0xff]  ;;  %s768_s0 = scalar_lea.vmem %s15088_s12, %s11014_s30 }
 0x411   : > { %v13524_v20 = vmul.f32 %v11853_v40, %v15606_v25  ;;  %v5373_v31 = vmul.f32 %v11855_v49, %v15604_v3  ;;  %v8014_v45 = vadd.f32 %v7964_v38, %v7887_v23  ;;  %v4998_v4 = vadd.f32 %v10745_v19, %v4963_v47 }
 0x412   : > { %v7962_v27 = vsel %vm883_vm1, %v15788_v24, %v7961_v62  ;;  %v5170_v61 = vrot.slane %v5117_v55, 1  ;;  %v15341_v21 = vrot.slane %v13512_v33, 1  ;;  %v5298_v13 = vrot.slane %v5245_v26, 2 }
 0x413   : > { %v8013_v58 = vadd.f32 %v7962_v27, %v7886_v52  ;;  %v15338_v24 = vrot.slane %v13524_v20, 2  ;;  %v13533_v62 = vmul.f32 %v11855_v49, %v15606_v25  ;;  %v8054_v51 = vadd.f32 %v8014_v45, %v7441_v53 }
 0x414   : > { %v5027_v42 = vmax.f32 %v4998_v4, 0.0  ;;  %v15789_v28 = vrot.slane %v13200_v32, 1  ;;  %v5173_v23 = vsel %vm1929_vm5, %v5170_v61, %v15341_v21  ;;  %v15790_v55 = vrot.slane %v13209_v34, 2  ;;  %v15800_v4 = vld [vmem:[#allocation57_spill] sm:$0xff]  ;;  %v15805_v21 = vld [vmem:[#allocation16_spill] sm:$0xff] }
 0x415   : > { %v8053_v29 = vadd.f32 %v8013_v58, %v7440_v22  ;;  %v5301_v27 = vsel %vm5276_vm7, %v5298_v13, %v15338_v24  ;;  %v8114_v22 = vsub.f32 %v8054_v51, %v11896_v36  ;;  %v5221_v34 = vadd.f32 %v5173_v23, %v5093_v35 }
 0x416   : > { %v5171_v52 = vsel %vm1929_vm5, %v15789_v28, %v5170_v61  ;;  %v5299_v26 = vsel %vm5276_vm7, %v15790_v55, %v5298_v13  ;;  %v7541_v32 = vmul.f32 %v15718_v2, %v5027_v42  ;;  %v7668_v28 = vmul.f32 %v15720_v10, %v5027_v42 }
 0x417   : > { %v5220_v47 = vadd.f32 %v5171_v52, %v5092_v59  ;;  %v8113_v53 = vsub.f32 %v8053_v29, %v11896_v36  ;;  %v13552_v38 = vmul.f32 %v15556_v30, %v5027_v42  ;;  %v13555_v59 = vmul.f32 %v15614_v48, %v5027_v42 }
 0x418   : > { %v8140_v13 = vmul.f32 %v13241_v0, %v8114_v22  ;;  %v7602_v19 = vrot.slane %v7541_v32, 1  ;;  %v7729_v29 = vrot.slane %v7668_v28, 2  ;;  %v5349_v61 = vadd.f32 %v5301_v27, %v5221_v34 }
 0x419   : > { %15791 = vst [vmem:[#allocation71_spill] sm:$0xff] %v13552_v38  ;;  %15792 = vst [vmem:[#allocation44_spill] sm:$0xff] %v13555_v59  ;;  %v5348_v58 = vadd.f32 %v5299_v26, %v5220_v47  ;;  %v8139_v45 = vmul.f32 %v13241_v0, %v8113_v53  ;;  %v5426_v52 = vrot.slane %v5373_v31, 3  ;;  %v15793_v42 = vrot.slane %v13229_v44, 1 }
 0x41a   : > { %v8166_v24 = vadd.f32 %v13253_v8, %v8140_v13  ;;  %v15794_v23 = vrot.slane %v13232_v12, 2  ;;  %v15797_v53 = vrot.slane %v13261_v39, 3  ;;  %v15339_v27 = vrot.slane %v13533_v62, 3 }
 0x41b   : > { %v8165_v55 = vadd.f32 %v13253_v8, %v8139_v45  ;;  %v7603_v35 = vsel %vm1929_vm5, %v15793_v42, %v7602_v19  ;;  %v5501_v22 = vmul.f32 %v15623_v56, %v15604_v3  ;;  %v13582_v45 = vmul.f32 %v15623_v56, %v15606_v25 }
 0x41c   : > { %v13569_v47 = vsel %vm5276_vm7, %v15794_v23, %v7729_v29  ;;  %v13572_v26 = vadd.f32 %v7603_v35, %v13226_v15  ;;  %v5427_v31 = vsel %vm5404_vm8, %v15797_v53, %v5426_v52  ;;  %v8186_v28 = vmax.f32 %v8166_v24, 0.0 }
 0x41d   : > { %15795 = vst [vmem:[#allocation67_spill] sm:$0xff] %v13569_v47  ;;  %v8185_v32 = vmax.f32 %v8165_v55, 0.0  ;;  %v5476_v34 = vadd.f32 %v5427_v31, %v5348_v58  ;;  %v5429_v15 = vsel %vm5404_vm8, %v5426_v52, %v15339_v27  ;;  %v5553_v13 = vrot.slane %v5501_v22, 4  ;;  %v15799_v31 = vld [vmem:[#allocation47_spill] sm:$0xff] }
 0x41e   : > { %15796 = vst [vmem:[#allocation68_spill] sm:$0xff] %v13572_v26  ;;  %v5668_v39 = vmul.f32 %v15568_v41, %v15606_v25  ;;  %v5669_v19 = vmul.f32 %v15568_v41, %v15660_v16  ;;  %v5477_v3 = vadd.f32 %v5429_v15, %v5349_v61  ;;  %v15340_v24 = vrot.slane %v13582_v45, 4 }
 0x41f   : > { %v8201_v29 = vpack.c.bf16 %v8186_v28, %v8185_v32  ;;  %v5693_v58 = vmul.f32 %v15679_v57, %v15660_v16  ;;  %v15798_v55 = vrot.slane %v13267_v5, 4  ;;  %v13599_v52 = vmul.f32 %v15679_v57, %v15662_v43 }
 0x420   : > { %v5820_v35 = vmul.f32 %v15681_v7, %v15660_v16  ;;  %v13605_v23 = vmul.f32 %v15681_v7, %v15662_v43  ;;  %v5556_v61 = vsel %vm883_vm1, %v5553_v13, %v15340_v24  ;;  %v5947_v22 = vmul.f32 %v15799_v31, %v15660_v16 }
 0x421   : > { %v5554_v42 = vsel %vm883_vm1, %v15798_v55, %v5553_v13  ;;  %10000 = vmatprep.mubr.bf16.mxu0 %v8201_v29  ;;  %v5745_v5 = vrot.slane %v5693_v58, 1  ;;  %v5604_v32 = vadd.f32 %v5556_v61, %v5477_v3  ;;  %v15345_v28 = vrot.slane %v13599_v52, 1 }
 0x422   : > { %v5603_v53 = vadd.f32 %v5554_v42, %v5476_v34  ;;  %v5872_v15 = vrot.slane %v5820_v35, 2  ;;  %v15344_v55 = vrot.slane %v13605_v23, 2  ;;  %v15801_v51 = vrot.slane %v15800_v4, 1  ;;  %v15802_v34 = vld [vmem:[#allocation25_spill] sm:$0xff] }
 0x423   : > { %v13619_v29 = vmul.f32 %v15799_v31, %v15662_v43  ;;  %v5999_v13 = vrot.slane %v5947_v22, 3  ;;  %v6074_v58 = vmul.f32 %v15802_v34, %v15660_v16  ;;  %v5748_v3 = vsel %vm1929_vm5, %v5745_v5, %v15345_v28  ;;  %v15803_v35 = vld [vmem:[#allocation61_spill] sm:$0xff] }
 0x424   : > { %v5746_v27 = vsel %vm1929_vm5, %v15801_v51, %v5745_v5  ;;  %v15804_v61 = vrot.slane %v15803_v35, 2  ;;  %v5875_v51 = vsel %vm5276_vm7, %v5872_v15, %v15344_v55  ;;  %v5796_v4 = vadd.f32 %v5748_v3, %v5669_v19  ;;  %v15807_v5 = vld [vmem:[#allocation26_spill] sm:$0xff]  ;;  %v15808_v19 = vld [vmem:[#allocation27_spill] sm:$0xff] }
 0x425   : > { %v5795_v42 = vadd.f32 %v5746_v27, %v5668_v39  ;;  %v15806_v59 = vrot.slane %v15805_v21, 3  ;;  %v15346_v38 = vrot.slane %v13619_v29, 3  ;;  %v13638_v47 = vmul.f32 %v15802_v34, %v15662_v43 }
 0x426   : > { %v5873_v24 = vsel %vm5276_vm7, %v15804_v61, %v5872_v15  ;;  %v6126_v39 = vrot.slane %v6074_v58, 4  ;;  %v6281_v35 = vmul.f32 %v15807_v5, %v15662_v43  ;;  %v6282_v61 = vmul.f32 %v15807_v5, %v15717_v9 }
 0x427   : > { %v6000_v22 = vsel %vm5404_vm8, %v15806_v59, %v5999_v13  ;;  %v5922_v27 = vadd.f32 %v5873_v24, %v5795_v42  ;;  %v5923_v15 = vadd.f32 %v5875_v51, %v5796_v4  ;;  %v6002_v21 = vsel %vm5404_vm8, %v5999_v13, %v15346_v38  ;;  %v15810_v51 = vld [vmem:[#allocation28_spill] sm:$0xff] }
 0x428   : > { %v15349_v59 = vrot.slane %v13638_v47, 4  ;;  %v6306_v3 = vmul.f32 %v15808_v19, %v15717_v9  ;;  %v15809_v24 = vrot.slane %v13321_v50, 4  ;;  %v13655_v42 = vmul.f32 %v15808_v19, %v15719_v18 }
 0x429   : > { %v6049_v55 = vadd.f32 %v6000_v22, %v5922_v27  ;;  %v6433_v4 = vmul.f32 %v15810_v51, %v15717_v9  ;;  %v6050_v28 = vadd.f32 %v6002_v21, %v5923_v15  ;;  %v13664_v22 = vmul.f32 %v15810_v51, %v15719_v18 }
 0x42a   : > { %v6127_v58 = vsel %vm883_vm1, %v15809_v24, %v6126_v39  ;;  %v6129_v13 = vsel %vm883_vm1, %v6126_v39, %v15349_v59  ;;  %v6358_v38 = vrot.slane %v6306_v3, 1  ;;  %v15354_v27 = vrot.slane %v13655_v42, 1 }
 0x42b   : > { %15811 = vst [vmem:[#allocation53_spill] sm:$0xff] %v13664_v22  ;;  %v6176_v50 = vadd.f32 %v6127_v58, %v6049_v55  ;;  %v6485_v24 = vrot.slane %v6433_v4, 2  ;;  %v6560_v26 = vmul.f32 %v15755_v11, %v15717_v9  ;;  %v6177_v12 = vadd.f32 %v6129_v13, %v6050_v28  ;;  %v15814_v4 = vld [vmem:[#allocation50_spill] sm:$0xff] }
 0x42c   : > { %v15812_v44 = vrot.slane %v13341_v14, 1  ;;  %v15353_v21 = vrot.slane %v13664_v22, 2  ;;  %v13675_v39 = vmul.f32 %v15755_v11, %v15719_v18  ;;  %v6361_v55 = vsel %vm1929_vm5, %v6358_v38, %v15354_v27  ;;  %v15823_v27 = vld [vmem:[#allocation22_spill] sm:$0xff] }
 0x42d   : > { %v6216_v3 = vadd.f32 %v6176_v50, %v5603_v53  ;;  %v15815_v59 = vrot.slane %v15814_v4, 2  ;;  %v6217_v13 = vadd.f32 %v6177_v12, %v5604_v32  ;;  %v6409_v14 = vadd.f32 %v6361_v55, %v6282_v61  ;;  %v15816_v53 = vld [vmem:[#allocation30_spill] sm:$0xff]  ;;  %v15820_v32 = vld [vmem:[#allocation32_spill] sm:$0xff] }
 0x42e   : > { %v6359_v15 = vsel %vm1929_vm5, %v15812_v44, %v6358_v38  ;;  %15813 = vst [vmem:[#allocation54_spill] sm:$0xff] %v13675_v39  ;;  %v6488_v44 = vsel %vm5276_vm7, %v6485_v24, %v15353_v21  ;;  %v6612_v51 = vrot.slane %v6560_v26, 3  ;;  %v15357_v11 = vrot.slane %v13675_v39, 3 }
 0x42f   : > { %v6408_v58 = vadd.f32 %v6359_v15, %v6281_v35  ;;  %v6486_v28 = vsel %vm5276_vm7, %v15815_v59, %v6485_v24  ;;  %v6687_v50 = vmul.f32 %v15816_v53, %v15717_v9  ;;  %v13691_v38 = vmul.f32 %v15816_v53, %v15719_v18  ;;  %v15818_v15 = vld [vmem:[#allocation21_spill] sm:$0xff] }
 0x430   : > { %v6536_v35 = vadd.f32 %v6488_v44, %v6409_v14  ;;  %v15819_v59 = vrot.slane %v15818_v15, 3  ;;  %v6894_v61 = vmul.f32 %v15820_v32, %v15719_v18  ;;  %v6895_v26 = vmul.f32 %v15820_v32, %v15778_v37  ;;  %v15821_v14 = vld [vmem:[#allocation48_spill] sm:$0xff] }
 0x431   : > { %v6535_v19 = vadd.f32 %v6486_v28, %v6408_v58  ;;  %15817 = vst [vmem:[#allocation56_spill] sm:$0xff] %v13691_v38  ;;  %v6615_v24 = vsel %vm5404_vm8, %v6612_v51, %v15357_v11  ;;  %v6739_v58 = vrot.slane %v6687_v50, 4  ;;  %v15359_v4 = vrot.slane %v13691_v38, 4 }
 0x432   : > { %v6613_v12 = vsel %vm5404_vm8, %v15819_v59, %v6612_v51  ;;  %v6663_v28 = vadd.f32 %v6615_v24, %v6536_v35  ;;  %v6919_v44 = vmul.f32 %v15821_v14, %v15778_v37  ;;  %v13708_v15 = vmul.f32 %v15821_v14, %v15779_v54  ;;  %v15822_v59 = vld [vmem:[#allocation33_spill] sm:$0xff] }
 0x433   : > { %v6662_v55 = vadd.f32 %v6613_v12, %v6535_v19  ;;  %v7046_v21 = vmul.f32 %v15822_v59, %v15778_v37  ;;  %v15824_v32 = vrot.slane %v15823_v27, 4  ;;  %v6742_v19 = vsel %vm883_vm1, %v6739_v58, %v15359_v4 }
 0x434   : > { %v13720_v51 = vmul.f32 %v15822_v59, %v15779_v54  ;;  %v7173_v50 = vmul.f32 %v15768_v63, %v15778_v37  ;;  %v6790_v12 = vadd.f32 %v6742_v19, %v6663_v28  ;;  %v6971_v24 = vrot.slane %v6919_v44, 1  ;;  %v15826_v59 = vld [vmem:[#allocation62_spill] sm:$0xff] }
 0x435   : > { %v6740_v53 = vsel %vm883_vm1, %v15824_v32, %v6739_v58  ;;  %v15365_v11 = vrot.slane %v13708_v15, 1  ;;  %v7098_v14 = vrot.slane %v7046_v21, 2  ;;  %v13728_v32 = vmul.f32 %v15768_v63, %v15779_v54  ;;  %v15828_v21 = vld [vmem:[#allocation63_spill] sm:$0xff] }
 0x436   : > { %v6789_v35 = vadd.f32 %v6740_v53, %v6662_v55  ;;  %v15364_v27 = vrot.slane %v13720_v51, 2  ;;  %v7225_v58 = vrot.slane %v7173_v50, 3  ;;  %v6830_v38 = vadd.f32 %v6790_v12, %v6217_v13 }
 0x437   : > { %15825 = vst [vmem:[#allocation70_spill] sm:$0xff] %v13728_v32  ;;  %v15827_v39 = vrot.slane %v15826_v59, 1  ;;  %v6974_v53 = vsel %vm1929_vm5, %v6971_v24, %v15365_v11  ;;  %v15829_v44 = vrot.slane %v15828_v21, 2  ;;  %v15835_v21 = vld [vmem:[#allocation18_spill] sm:$0xff] }
 0x438   : > { %v6829_v4 = vadd.f32 %v6789_v35, %v6216_v3  ;;  %v7022_v28 = vadd.f32 %v6974_v53, %v6895_v26  ;;  %v7101_v50 = vsel %vm5276_vm7, %v7098_v14, %v15364_v27  ;;  %v15830_v3 = vld [vmem:[#allocation31_spill] sm:$0xff]  ;;  %v7532_v27 = vmul.f32 %v15718_v2, %v15835_v21 }
 0x439   : > { %v6972_v22 = vsel %vm1929_vm5, %v15827_v39, %v6971_v24  ;;  %v7099_v19 = vsel %vm5276_vm7, %v15829_v44, %v7098_v14  ;;  %v15831_v13 = vrot.slane %v15830_v3, 3  ;;  %v15369_v39 = vrot.slane %v13728_v32, 3  ;;  %v15832_v35 = vld [vmem:[#allocation35_spill] sm:$0xff]  ;;  %v15834_v24 = vld [vmem:[#allocation36_spill] sm:$0xff] }
 0x43a   : > { %v7021_v55 = vadd.f32 %v6972_v22, %v6894_v61  ;;  %v7300_v12 = vmul.f32 %v15832_v35, %v15778_v37  ;;  %v13750_v22 = vmul.f32 %v15832_v35, %v15779_v54  ;;  %v7149_v26 = vadd.f32 %v7101_v50, %v7022_v28  ;;  %v15837_v50 = vld [vmem:[#allocation69_spill] sm:$0xff] }
 0x43b   : > { %v7226_v59 = vsel %vm5404_vm8, %v15831_v13, %v7225_v58  ;;  %v7507_v53 = vmul.f32 %v15834_v24, %v15779_v54  ;;  %v7508_v14 = vmul.f32 %v15834_v24, %v15835_v21  ;;  %v7228_v44 = vsel %vm5404_vm8, %v7225_v58, %v15369_v39 }
 0x43c   : > { %15833 = vst [vmem:[#allocation58_spill] sm:$0xff] %v13750_v22  ;;  %v7148_v61 = vadd.f32 %v7099_v19, %v7021_v55  ;;  %v7352_v3 = vrot.slane %v7300_v12, 4  ;;  %v15372_v13 = vrot.slane %v13750_v22, 4  ;;  %v7276_v35 = vadd.f32 %v7228_v44, %v7149_v26  ;;  %v15836_v55 = vld [vmem:[#allocation19_spill] sm:$0xff] }
 0x43d   : > { %v13764_v28 = vmul.f32 %v15718_v2, %v15836_v55  ;;  %v7659_v19 = vmul.f32 %v15720_v10, %v15835_v21  ;;  %v15838_v24 = vrot.slane %v15837_v50, 4  ;;  %v7584_v12 = vrot.slane %v7532_v27, 1 }
 0x43e   : > { %v7275_v11 = vadd.f32 %v7226_v59, %v7148_v61  ;;  %v7355_v58 = vsel %vm883_vm1, %v7352_v3, %v15372_v13  ;;  %v13776_v59 = vmul.f32 %v15720_v10, %v15836_v55  ;;  %v15839_v2 = vrot.slane %v13453_v6, 1 }
 0x43f   : > { %v7353_v32 = vsel %vm883_vm1, %v15838_v24, %v7352_v3  ;;  %v7403_v26 = vadd.f32 %v7355_v58, %v7276_v35  ;;  %v15378_v44 = vrot.slane %v13764_v28, 1  ;;  %v7711_v39 = vrot.slane %v7659_v19, 2 }
 0x440   : > { %v7402_v61 = vadd.f32 %v7353_v32, %v7275_v11  ;;  %v7585_v50 = vsel %vm1929_vm5, %v15839_v2, %v7584_v12  ;;  %v15377_v24 = vrot.slane %v13776_v59, 2  ;;  %v7786_v22 = vmul.f32 %v15556_v30, %v15835_v21 }
 0x441   : > { %v13787_v27 = vmul.f32 %v15556_v30, %v15836_v55  ;;  %v7443_v13 = vadd.f32 %v7403_v26, %v6830_v38  ;;  %v7587_v11 = vsel %vm1929_vm5, %v7584_v12, %v15378_v44  ;;  %v7634_v32 = vadd.f32 %v7585_v50, %v7507_v53 }
 0x442   : > { %v7442_v3 = vadd.f32 %v7402_v61, %v6829_v4  ;;  %v7635_v35 = vadd.f32 %v7587_v11, %v7508_v14  ;;  %v15840_v6 = vrot.slane %v13459_v46, 2  ;;  %v7714_v19 = vsel %vm5276_vm7, %v7711_v39, %v15377_v24 }
 0x443   : > { %v7838_v58 = vrot.slane %v7786_v22, 3  ;;  %v15376_v30 = vrot.slane %v13787_v27, 3  ;;  %v7913_v38 = vmul.f32 %v15614_v48, %v15835_v21  ;;  %v13803_v4 = vmul.f32 %v15614_v48, %v15836_v55 }
 0x444   : > { %v7712_v2 = vsel %vm5276_vm7, %v15840_v6, %v7711_v39  ;;  %v7762_v53 = vadd.f32 %v7714_v19, %v7635_v35  ;;  %v15841_v46 = vrot.slane %v13479_v17, 3  ;;  %v5094_v12 = vmul.f32 %v11859_v60, %v15606_v25  ;;  %v15842_v35 = vld [vmem:[#allocation37_spill] sm:$0xff] }
 0x445   : > { %v7761_v10 = vadd.f32 %v7712_v2, %v7634_v32  ;;  %v5095_v39 = vmul.f32 %v11859_v60, %v15660_v16  ;;  %v7841_v22 = vsel %vm5404_vm8, %v7838_v58, %v15376_v30  ;;  %v7965_v26 = vrot.slane %v7913_v38, 4 }
 0x446   : > { %v7839_v14 = vsel %vm5404_vm8, %v15841_v46, %v7838_v58  ;;  %v15375_v50 = vrot.slane %v13803_v4, 4  ;;  %v7889_v11 = vadd.f32 %v7841_v22, %v7762_v53  ;;  %v5119_v17 = vmul.f32 %v11845_v1, %v15660_v16 }
 0x447   : > { %v7888_v61 = vadd.f32 %v7839_v14, %v7761_v10  ;;  %v13820_v32 = vmul.f32 %v11845_v1, %v15662_v43  ;;  %v5247_v25 = vmul.f32 %v11853_v40, %v15660_v16  ;;  %v15843_v6 = vrot.slane %v15842_v35, 4 }
 0x448   : > { %v7968_v10 = vsel %vm883_vm1, %v7965_v26, %v15375_v50  ;;  %v13832_v19 = vmul.f32 %v11853_v40, %v15662_v43  ;;  %v5375_v58 = vmul.f32 %v11855_v49, %v15660_v16  ;;  %v5174_v46 = vrot.slane %v5119_v17, 1 }
 0x449   : > { %v7966_v2 = vsel %vm883_vm1, %v15843_v6, %v7965_v26  ;;  %v8016_v53 = vadd.f32 %v7968_v10, %v7889_v11  ;;  %v15386_v14 = vrot.slane %v13820_v32, 1  ;;  %v5302_v22 = vrot.slane %v5247_v25, 2 }
 0x44a   : > { %v8015_v38 = vadd.f32 %v7966_v2, %v7888_v61  ;;  %v15385_v35 = vrot.slane %v13832_v19, 2  ;;  %v13840_v6 = vmul.f32 %v11855_v49, %v15662_v43  ;;  %v5430_v26 = vrot.slane %v5375_v58, 3 }
 0x44b   : > { %v8056_v30 = vadd.f32 %v8016_v53, %v7443_v13  ;;  %v15844_v24 = vrot.slane %v13512_v33, 1  ;;  %v5177_v61 = vsel %vm1929_vm5, %v5174_v46, %v15386_v14  ;;  %v15845_v25 = vrot.slane %v13524_v20, 2  ;;  %v15859_v14 = vld [vmem:[#allocation54_spill] sm:$0xff] }
 0x44c   : > { %v8055_v50 = vadd.f32 %v8015_v38, %v7442_v3  ;;  %v5223_v17 = vadd.f32 %v5177_v61, %v5095_v39  ;;  %v5305_v10 = vsel %vm5276_vm7, %v5302_v22, %v15385_v35  ;;  %v15383_v58 = vrot.slane %v13840_v6, 3 }
 0x44d   : > { %v5175_v44 = vsel %vm1929_vm5, %v15844_v24, %v5174_v46  ;;  %v5303_v2 = vsel %vm5276_vm7, %v15845_v25, %v5302_v22  ;;  %v8116_v33 = vsub.f32 %v8056_v30, %v11896_v36  ;;  %v15846_v24 = vrot.slane %v13533_v62, 3 }
 0x44e   : > { %v5222_v11 = vadd.f32 %v5175_v44, %v5094_v12  ;;  %v8115_v13 = vsub.f32 %v8055_v50, %v11896_v36  ;;  %v5351_v12 = vadd.f32 %v5305_v10, %v5223_v17  ;;  %v5503_v20 = vmul.f32 %v15623_v56, %v15660_v16 }
 0x44f   : > { %v5431_v3 = vsel %vm5404_vm8, %v15846_v24, %v5430_v26  ;;  %v13864_v39 = vmul.f32 %v15623_v56, %v15662_v43  ;;  %v8142_v50 = vmul.f32 %v13241_v0, %v8116_v33  ;;  %v5433_v30 = vsel %vm5404_vm8, %v5430_v26, %v15383_v58 }
 0x450   : > { %v5350_v44 = vadd.f32 %v5303_v2, %v5222_v11  ;;  %v8141_v38 = vmul.f32 %v13241_v0, %v8115_v13  ;;  %v5670_v62 = vmul.f32 %v15568_v41, %v15662_v43  ;;  %v5479_v46 = vadd.f32 %v5433_v30, %v5351_v12 }
 0x451   : > { %v5557_v22 = vrot.slane %v5503_v20, 4  ;;  %v15382_v16 = vrot.slane %v13864_v39, 4  ;;  %v8168_v11 = vadd.f32 %v13253_v8, %v8142_v50  ;;  %v5671_v17 = vmul.f32 %v15568_v41, %v15717_v9 }
 0x452   : > { %v5478_v53 = vadd.f32 %v5431_v3, %v5350_v44  ;;  %v8167_v61 = vadd.f32 %v13253_v8, %v8141_v38  ;;  %v5695_v0 = vmul.f32 %v15679_v57, %v15717_v9  ;;  %v15847_v26 = vrot.slane %v13582_v45, 4 }
 0x453   : > { %v5560_v2 = vsel %vm883_vm1, %v5557_v22, %v15382_v16  ;;  %v13888_v10 = vmul.f32 %v15679_v57, %v15719_v18  ;;  %v5822_v8 = vmul.f32 %v15681_v7, %v15717_v9  ;;  %v8188_v33 = vmax.f32 %v8168_v11, 0.0 }
 0x454   : > { %v5558_v25 = vsel %vm883_vm1, %v15847_v26, %v5557_v22  ;;  %v8187_v13 = vmax.f32 %v8167_v61, 0.0  ;;  %v5606_v3 = vadd.f32 %v5560_v2, %v5479_v46  ;;  %v5749_v44 = vrot.slane %v5695_v0, 1 }
 0x455   : > { %v5605_v24 = vadd.f32 %v5558_v25, %v5478_v53  ;;  %v15381_v45 = vrot.slane %v13888_v10, 1  ;;  %v13895_v12 = vmul.f32 %v15681_v7, %v15719_v18  ;;  %v5876_v20 = vrot.slane %v5822_v8, 2 }
 0x456   : > { %v8202_v38 = vpack.c.bf16 %v8188_v33, %v8187_v13  ;;  %v5949_v50 = vmul.f32 %v15799_v31, %v15717_v9  ;;  %v13901_v30 = vmul.f32 %v15799_v31, %v15719_v18  ;;  %v6076_v53 = vmul.f32 %v15802_v34, %v15717_v9 }
 0x457   : > { %v15848_v46 = vrot.slane %v13599_v52, 1  ;;  %v5752_v61 = vsel %vm1929_vm5, %v5749_v44, %v15381_v45  ;;  %v15849_v11 = vrot.slane %v13605_v23, 2  ;;  %v15380_v26 = vrot.slane %v13895_v12, 2 }
 0x458   : > { %10001 = vmatmul.mubr.bf16.gmra.mrb[72].mxu0 %v8202_v38  ;;  %v5798_v2 = vadd.f32 %v5752_v61, %v5671_v17  ;;  %v6003_v8 = vrot.slane %v5949_v50, 3  ;;  %v15379_v13 = vrot.slane %v13901_v30, 3  ;;  %v13921_v33 = vmul.f32 %v15802_v34, %v15719_v18  ;;  %v15852_v61 = vld [vmem:[#allocation27_spill] sm:$0xff] }
 0x459   : > { %v5750_v22 = vsel %vm1929_vm5, %v15848_v46, %v5749_v44  ;;  %v5877_v0 = vsel %vm5276_vm7, %v15849_v11, %v5876_v20  ;;  %v5879_v52 = vsel %vm5276_vm7, %v5876_v20, %v15380_v26  ;;  %v6130_v44 = vrot.slane %v6076_v53, 4 }
 0x45a   : > { %v5797_v25 = vadd.f32 %v5750_v22, %v5670_v62  ;;  %v6283_v23 = vmul.f32 %v15807_v5, %v15719_v18  ;;  %v5925_v11 = vadd.f32 %v5879_v52, %v5798_v2  ;;  %v15850_v62 = vrot.slane %v13619_v29, 3 }
 0x45b   : > { %v6006_v38 = vsel %vm5404_vm8, %v6003_v8, %v15379_v13  ;;  %v15851_v20 = vrot.slane %v13638_v47, 4  ;;  %v15384_v22 = vrot.slane %v13921_v33, 4  ;;  %v6284_v53 = vmul.f32 %v15807_v5, %v15778_v37  ;;  %v15855_v13 = vld [vmem:[#allocation29_spill] sm:$0xff] }
 0x45c   : > { %v5924_v46 = vadd.f32 %v5877_v0, %v5797_v25  ;;  %v6004_v17 = vsel %vm5404_vm8, %v15850_v62, %v6003_v8  ;;  %v6308_v0 = vmul.f32 %v15852_v61, %v15778_v37  ;;  %v6052_v29 = vadd.f32 %v6006_v38, %v5925_v11  ;;  %v15853_v8 = vld [vmem:[#allocation28_spill] sm:$0xff] }
 0x45d   : > { %v6131_v50 = vsel %vm883_vm1, %v15851_v20, %v6130_v44  ;;  %v13941_v2 = vmul.f32 %v15852_v61, %v15779_v54  ;;  %v6435_v52 = vmul.f32 %v15853_v8, %v15778_v37  ;;  %v6133_v47 = vsel %vm883_vm1, %v6130_v44, %v15384_v22 }
 0x45e   : > { %v6051_v25 = vadd.f32 %v6004_v17, %v5924_v46  ;;  %v6362_v62 = vrot.slane %v6308_v0, 1  ;;  %v13950_v20 = vmul.f32 %v15853_v8, %v15779_v54  ;;  %v6562_v46 = vmul.f32 %v15855_v13, %v15778_v37 }
 0x45f   : > { %v6179_v17 = vadd.f32 %v6133_v47, %v6052_v29  ;;  %v15389_v38 = vrot.slane %v13941_v2, 1  ;;  %v6489_v26 = vrot.slane %v6435_v52, 2  ;;  %v15856_v45 = vrot.slane %v13655_v42, 1  ;;  %v15857_v52 = vld [vmem:[#allocation53_spill] sm:$0xff] }
 0x460   : > { %15854 = vst [vmem:[#allocation60_spill] sm:$0xff] %v13950_v20  ;;  %v6178_v11 = vadd.f32 %v6131_v50, %v6051_v25  ;;  %v15388_v58 = vrot.slane %v13950_v20, 2  ;;  %v13961_v44 = vmul.f32 %v15855_v13, %v15779_v54  ;;  %v6616_v0 = vrot.slane %v6562_v46, 3 }
 0x461   : > { %v6363_v16 = vsel %vm1929_vm5, %v15856_v45, %v6362_v62  ;;  %v6219_v35 = vadd.f32 %v6179_v17, %v5606_v3  ;;  %v6365_v50 = vsel %vm1929_vm5, %v6362_v62, %v15389_v38  ;;  %v15858_v47 = vrot.slane %v15857_v52, 2 }
 0x462   : > { %v6218_v22 = vadd.f32 %v6178_v11, %v5605_v24  ;;  %v6410_v25 = vadd.f32 %v6363_v16, %v6283_v23  ;;  %v6411_v29 = vadd.f32 %v6365_v50, %v6284_v53  ;;  %v6492_v45 = vsel %vm5276_vm7, %v6489_v26, %v15388_v58  ;;  %v15861_v11 = vld [vmem:[#allocation30_spill] sm:$0xff]  ;;  %v15863_v53 = vld [vmem:[#allocation32_spill] sm:$0xff]  ;;  %v15866_v58 = vld [vmem:[#allocation33_spill] sm:$0xff] }
 0x463   : > { %v6490_v42 = vsel %vm5276_vm7, %v15858_v47, %v6489_v26  ;;  %v15860_v13 = vrot.slane %v15859_v14, 3  ;;  %v15393_v3 = vrot.slane %v13961_v44, 3  ;;  %v6689_v62 = vmul.f32 %v15861_v11, %v15778_v37  ;;  %v15864_v14 = vld [vmem:[#allocation48_spill] sm:$0xff] }
 0x464   : > { %v6537_v24 = vadd.f32 %v6490_v42, %v6410_v25  ;;  %v13980_v16 = vmul.f32 %v15861_v11, %v15779_v54  ;;  %v6538_v23 = vadd.f32 %v6492_v45, %v6411_v29  ;;  %v6896_v17 = vmul.f32 %v15863_v53, %v15779_v54 }
 0x465   : > { %v6617_v46 = vsel %vm5404_vm8, %v15860_v13, %v6616_v0  ;;  %v6897_v26 = vmul.f32 %v15863_v53, %v15835_v21  ;;  %v6921_v13 = vmul.f32 %v15864_v14, %v15835_v21  ;;  %v6619_v50 = vsel %vm5404_vm8, %v6616_v0, %v15393_v3  ;;  %v15867_v53 = vld [vmem:[#allocation56_spill] sm:$0xff] }
 0x466   : > { %15862 = vst [vmem:[#allocation64_spill] sm:$0xff] %v13980_v16  ;;  %v6664_v25 = vadd.f32 %v6617_v46, %v6537_v24  ;;  %v6743_v52 = vrot.slane %v6689_v62, 4  ;;  %v15395_v47 = vrot.slane %v13980_v16, 4  ;;  %v6665_v42 = vadd.f32 %v6619_v50, %v6538_v23 }
 0x467   : > { %v13994_v29 = vmul.f32 %v15864_v14, %v15836_v55  ;;  %v6975_v45 = vrot.slane %v6921_v13, 1  ;;  %v7048_v38 = vmul.f32 %v15866_v58, %v15835_v21  ;;  %v15868_v11 = vrot.slane %v15867_v53, 4 }
 0x468   : > { %v6746_v0 = vsel %vm883_vm1, %v6743_v52, %v15395_v47  ;;  %v14006_v46 = vmul.f32 %v15866_v58, %v15836_v55  ;;  %v7175_v24 = vmul.f32 %v15768_v63, %v15835_v21  ;;  %v15870_v13 = vrot.slane %v13708_v15, 1 }
 0x469   : > { %15865 = vst [vmem:[#allocation17_spill] sm:$0xff] %v13994_v29  ;;  %v6744_v20 = vsel %vm883_vm1, %v15868_v11, %v6743_v52  ;;  %v6792_v23 = vadd.f32 %v6746_v0, %v6665_v42  ;;  %v15398_v53 = vrot.slane %v13994_v29, 1  ;;  %v7102_v3 = vrot.slane %v7048_v38, 2 }
 0x46a   : > { %15869 = vst [vmem:[#allocation23_spill] sm:$0xff] %v14006_v46  ;;  %v6791_v62 = vadd.f32 %v6744_v20, %v6664_v25  ;;  %v6976_v50 = vsel %vm1929_vm5, %v15870_v13, %v6975_v45  ;;  %v15397_v16 = vrot.slane %v14006_v46, 2  ;;  %v14017_v52 = vmul.f32 %v15768_v63, %v15836_v55 }
 0x46b   : > { %v7023_v11 = vadd.f32 %v6976_v50, %v6896_v17  ;;  %v6832_v58 = vadd.f32 %v6792_v23, %v6219_v35  ;;  %v6978_v20 = vsel %vm1929_vm5, %v6975_v45, %v15398_v53  ;;  %v7229_v25 = vrot.slane %v7175_v24, 3  ;;  %v15873_v50 = vld [vmem:[#allocation70_spill] sm:$0xff] }
 0x46c   : > { %15871 = vst [vmem:[#allocation49_spill] sm:$0xff] %v14017_v52  ;;  %v6831_v47 = vadd.f32 %v6791_v62, %v6218_v22  ;;  %v7024_v15 = vadd.f32 %v6978_v20, %v6897_v26  ;;  %v15872_v42 = vrot.slane %v13720_v51, 2  ;;  %v7105_v38 = vsel %vm5276_vm7, %v7102_v3, %v15397_v16  ;;  %v15875_v62 = vld [vmem:[#allocation35_spill] sm:$0xff] }
 0x46d   : > { %v15400_v17 = vrot.slane %v14017_v52, 3  ;;  %v15874_v22 = vrot.slane %v15873_v50, 3  ;;  %v7302_v45 = vmul.f32 %v15875_v62, %v15835_v21  ;;  %v14036_v26 = vmul.f32 %v15875_v62, %v15836_v55  ;;  %v15879_v62 = vld [vmem:[#allocation59_spill] sm:$0xff] }
 0x46e   : > { %v7103_v0 = vsel %vm5276_vm7, %v15872_v42, %v7102_v3  ;;  %v7151_v51 = vadd.f32 %v7105_v38, %v7024_v15  ;;  %v15876_v3 = vld [vmem:[#allocation36_spill] sm:$0xff] }
 0x46f   : > { %v7150_v13 = vadd.f32 %v7103_v0, %v7023_v11  ;;  %v7230_v35 = vsel %vm5404_vm8, %v15874_v22, %v7229_v25  ;;  %v7232_v24 = vsel %vm5404_vm8, %v7229_v25, %v15400_v17  ;;  %v7509_v23 = vmul.f32 %v15876_v3, %v15836_v55  ;;  %v15877_v11 = vld [vmem:[#allocation65_spill] sm:$0xff]  ;;  %v15878_v22 = vld [vmem:[#allocation38_spill] sm:$0xff]  ;;  %v15880_v25 = vld [vmem:[#allocation39_spill] sm:$0xff] }
 0x470   : > { %v7510_v20 = vmul.f32 %v15876_v3, %v15877_v11  ;;  %v7356_v0 = vrot.slane %v7302_v45, 4  ;;  %v15409_v50 = vrot.slane %v14036_v26, 4  ;;  %v7534_v16 = vmul.f32 %v15878_v22, %v15877_v11  ;;  %v15881_v3 = vld [vmem:[#allocation58_spill] sm:$0xff] }
 0x471   : > { %v7277_v42 = vadd.f32 %v7230_v35, %v7150_v13  ;;  %v7278_v53 = vadd.f32 %v7232_v24, %v7151_v51  ;;  %v14050_v15 = vmul.f32 %v15878_v22, %v15879_v62  ;;  %v7661_v38 = vmul.f32 %v15880_v25, %v15877_v11  ;;  %v15883_v24 = vld [vmem:[#allocation42_spill] sm:$0xff] }
 0x472   : > { %v14056_v17 = vmul.f32 %v15880_v25, %v15879_v62  ;;  %v15882_v13 = vrot.slane %v15881_v3, 4  ;;  %v7359_v45 = vsel %vm883_vm1, %v7356_v0, %v15409_v50  ;;  %v7588_v51 = vrot.slane %v7534_v16, 1 }
 0x473   : > { %v7788_v22 = vmul.f32 %v15883_v24, %v15877_v11  ;;  %v7405_v46 = vadd.f32 %v7359_v45, %v7278_v53  ;;  %v15417_v29 = vrot.slane %v14050_v15, 1  ;;  %v7715_v63 = vrot.slane %v7661_v38, 2 }
 0x474   : > { %v7357_v35 = vsel %vm883_vm1, %v15882_v13, %v7356_v0  ;;  %v15884_v25 = vrot.slane %v13764_v28, 1  ;;  %v15412_v3 = vrot.slane %v14056_v17, 2  ;;  %v14073_v13 = vmul.f32 %v15883_v24, %v15879_v62 }
 0x475   : > { %v7404_v52 = vadd.f32 %v7357_v35, %v7277_v42  ;;  %v7842_v0 = vrot.slane %v7788_v22, 3  ;;  %v7445_v50 = vadd.f32 %v7405_v46, %v6832_v58  ;;  %v7591_v53 = vsel %vm1929_vm5, %v7588_v51, %v15417_v29 }
 0x476   : > { %v7589_v14 = vsel %vm1929_vm5, %v15884_v25, %v7588_v51  ;;  %v7637_v35 = vadd.f32 %v7591_v53, %v7510_v20  ;;  %v15885_v38 = vrot.slane %v13776_v59, 2  ;;  %v7718_v25 = vsel %vm5276_vm7, %v7715_v63, %v15412_v3 }
 0x477   : > { %v7444_v16 = vadd.f32 %v7404_v52, %v6831_v47  ;;  %v7636_v42 = vadd.f32 %v7589_v14, %v7509_v23  ;;  %v15886_v45 = vrot.slane %v13787_v27, 3  ;;  %v15410_v58 = vrot.slane %v14073_v13, 3 }
 0x478   : > { %v7716_v28 = vsel %vm5276_vm7, %v15885_v38, %v7715_v63  ;;  %v7915_v46 = vmul.f32 %v15614_v48, %v15877_v11  ;;  %v14092_v14 = vmul.f32 %v15614_v48, %v15879_v62  ;;  %v7764_v59 = vadd.f32 %v7718_v25, %v7637_v35 }
 0x479   : > { %v7843_v22 = vsel %vm5404_vm8, %v15886_v45, %v7842_v0  ;;  %v7763_v47 = vadd.f32 %v7716_v28, %v7636_v42  ;;  %v5096_v52 = vmul.f32 %v11859_v60, %v15662_v43  ;;  %v5097_v63 = vmul.f32 %v11859_v60, %v15717_v9 }
 0x47a   : > { %v5121_v27 = vmul.f32 %v11845_v1, %v15717_v9  ;;  %v7845_v23 = vsel %vm5404_vm8, %v7842_v0, %v15410_v58  ;;  %v7969_v51 = vrot.slane %v7915_v46, 4  ;;  %v15411_v53 = vrot.slane %v14092_v14, 4 }
 0x47b   : > { %v7890_v20 = vadd.f32 %v7843_v22, %v7763_v47  ;;  %v7891_v42 = vadd.f32 %v7845_v23, %v7764_v59  ;;  %v14106_v35 = vmul.f32 %v11845_v1, %v15719_v18  ;;  %v5249_v38 = vmul.f32 %v11853_v40, %v15717_v9 }
 0x47c   : > { %v5178_v43 = vrot.slane %v5121_v27, 1  ;;  %v15887_v28 = vrot.slane %v13803_v4, 4  ;;  %v7972_v0 = vsel %vm883_vm1, %v7969_v51, %v15411_v53  ;;  %v14118_v45 = vmul.f32 %v11853_v40, %v15719_v18 }
 0x47d   : > { %v5377_v22 = vmul.f32 %v11855_v49, %v15717_v9  ;;  %v8018_v46 = vadd.f32 %v7972_v0, %v7891_v42  ;;  %v15888_v59 = vrot.slane %v13820_v32, 1  ;;  %v15415_v4 = vrot.slane %v14106_v35, 1 }
 0x47e   : > { %v7970_v25 = vsel %vm883_vm1, %v15887_v28, %v7969_v51  ;;  %v5306_v28 = vrot.slane %v5249_v38, 2  ;;  %v15414_v58 = vrot.slane %v14118_v45, 2  ;;  %v14129_v51 = vmul.f32 %v11855_v49, %v15719_v18 }
 0x47f   : > { %v8017_v47 = vadd.f32 %v7970_v25, %v7890_v20  ;;  %v5179_v27 = vsel %vm1929_vm5, %v15888_v59, %v5178_v43  ;;  %v8058_v3 = vadd.f32 %v8018_v46, %v7445_v50  ;;  %v5181_v20 = vsel %vm1929_vm5, %v5178_v43, %v15415_v4 }
 0x480   : > { %v5224_v23 = vadd.f32 %v5179_v27, %v5096_v52  ;;  %v5434_v32 = vrot.slane %v5377_v22, 3  ;;  %v5225_v42 = vadd.f32 %v5181_v20, %v5097_v63  ;;  %v15889_v25 = vrot.slane %v13832_v19, 2 }
 0x481   : > { %v8057_v53 = vadd.f32 %v8017_v47, %v7444_v16  ;;  %v5309_v38 = vsel %vm5276_vm7, %v5306_v28, %v15414_v58  ;;  %v15413_v0 = vrot.slane %v14129_v51, 3  ;;  %v8118_v50 = vsub.f32 %v8058_v3, %v11896_v36 }
 0x482   : > { %v5307_v52 = vsel %vm5276_vm7, %v15889_v25, %v5306_v28  ;;  %v15890_v43 = vrot.slane %v13840_v6, 3  ;;  %v5353_v22 = vadd.f32 %v5309_v38, %v5225_v42  ;;  %v5505_v46 = vmul.f32 %v15623_v56, %v15717_v9  ;;  %v14166_v42 = vld [vmem:[%s12285_s28] ss:$0 sm:$0xff] }
 0x483   : > { %v8117_v16 = vsub.f32 %v8057_v53, %v11896_v36  ;;  %v5352_v47 = vadd.f32 %v5307_v52, %v5224_v23  ;;  %v5437_v19 = vsel %vm5404_vm8, %v5434_v32, %v15413_v0  ;;  %v14153_v59 = vmul.f32 %v15623_v56, %v15719_v18  ;;  %v14156_v53 = vld [vmem:[%s12269_s27] ss:$0 sm:$0xff] }
 0x484   : > { %v5435_v63 = vsel %vm5404_vm8, %v15890_v43, %v5434_v32  ;;  %v8144_v6 = vmul.f32 %v14156_v53, %v8118_v50  ;;  %v5672_v23 = vmul.f32 %v15568_v41, %v15719_v18  ;;  %v5481_v28 = vadd.f32 %v5437_v19, %v5353_v22 }
 0x485   : > { %v8143_v3 = vmul.f32 %v14156_v53, %v8117_v16  ;;  %v5480_v27 = vadd.f32 %v5435_v63, %v5352_v47  ;;  %v5561_v20 = vrot.slane %v5505_v46, 4  ;;  %v15416_v32 = vrot.slane %v14153_v59, 4 }
 0x486   : > { %v5673_v9 = vmul.f32 %v15568_v41, %v15778_v37  ;;  %v8170_v52 = vadd.f32 %v14166_v42, %v8144_v6  ;;  %v5697_v38 = vmul.f32 %v15679_v57, %v15778_v37  ;;  %v14174_v16 = vmul.f32 %v15679_v57, %v15779_v54 }
 0x487   : > { %v8169_v25 = vadd.f32 %v14166_v42, %v8143_v3  ;;  %v15891_v50 = vrot.slane %v13864_v39, 4  ;;  %v5564_v43 = vsel %vm883_vm1, %v5561_v20, %v15416_v32  ;;  %v5824_v63 = vmul.f32 %v15681_v7, %v15778_v37 }
 0x488   : > { %v14186_v22 = vmul.f32 %v15681_v7, %v15779_v54  ;;  %v8190_v46 = vmax.f32 %v8170_v52, 0.0  ;;  %v5608_v6 = vadd.f32 %v5564_v43, %v5481_v28  ;;  %v5753_v0 = vrot.slane %v5697_v38, 1 }
 0x489   : > { %v5562_v47 = vsel %vm883_vm1, %v15891_v50, %v5561_v20  ;;  %v8189_v19 = vmax.f32 %v8169_v25, 0.0  ;;  %v15418_v39 = vrot.slane %v14174_v16, 1  ;;  %v5880_v58 = vrot.slane %v5824_v63, 2 }
 0x48a   : > { %v5607_v3 = vadd.f32 %v5562_v47, %v5480_v27  ;;  %v15420_v50 = vrot.slane %v14186_v22, 2  ;;  %v5951_v20 = vmul.f32 %v15799_v31, %v15778_v37  ;;  %v14194_v32 = vmul.f32 %v15799_v31, %v15779_v54 }
 0x48b   : > { %v8203_v4 = vpack.c.bf16 %v8190_v46, %v8189_v19  ;;  %v6078_v25 = vmul.f32 %v15802_v34, %v15778_v37  ;;  %v15893_v27 = vrot.slane %v13888_v10, 1  ;;  %v5756_v52 = vsel %vm1929_vm5, %v5753_v0, %v15418_v39 }
 0x48c   : > { %15892 = vst [vmem:[#allocation43_spill] sm:$0xff] %v14194_v32  ;;  %v15894_v38 = vrot.slane %v13895_v12, 2  ;;  %v5883_v43 = vsel %vm5276_vm7, %v5880_v58, %v15420_v50  ;;  %v5800_v19 = vadd.f32 %v5756_v52, %v5673_v9  ;;  %v6007_v46 = vrot.slane %v5951_v20, 3 }
 0x48d   : > { %v5754_v28 = vsel %vm1929_vm5, %v15893_v27, %v5753_v0  ;;  %10004 = vmatprep.mubr.bf16.mxu0 %v8203_v4  ;;  %v15419_v10 = vrot.slane %v14194_v32, 3  ;;  %v14213_v27 = vmul.f32 %v15802_v34, %v15779_v54  ;;  %v6134_v29 = vrot.slane %v6078_v25, 4 }
 0x48e   : > { %v5881_v47 = vsel %vm5276_vm7, %v15894_v38, %v5880_v58  ;;  %v5799_v63 = vadd.f32 %v5754_v28, %v5672_v23  ;;  %v6285_v12 = vmul.f32 %v15807_v5, %v15779_v54  ;;  %v6286_v0 = vmul.f32 %v15807_v5, %v15835_v21 }
 0x48f   : > { %15895 = vst [vmem:[#allocation47_spill] sm:$0xff] %v14213_v27  ;;  %v5927_v39 = vadd.f32 %v5883_v43, %v5800_v19  ;;  %v15896_v58 = vrot.slane %v13901_v30, 3  ;;  %v6010_v23 = vsel %vm5404_vm8, %v6007_v46, %v15419_v10  ;;  %v15897_v9 = vrot.slane %v13921_v33, 4 }
 0x490   : > { %v5926_v38 = vadd.f32 %v5881_v47, %v5799_v63  ;;  %v15423_v25 = vrot.slane %v14213_v27, 4  ;;  %v6310_v28 = vmul.f32 %v15852_v61, %v15835_v21  ;;  %v14233_v52 = vmul.f32 %v15852_v61, %v15836_v55  ;;  %v10731_v27 = vld [vmem:[%s14263_s26 + $0x18] sm:$0xff]  }
 0x491   : > { %v6008_v4 = vsel %vm5404_vm8, %v15896_v58, %v6007_v46  ;;  %v6135_v20 = vsel %vm883_vm1, %v15897_v9, %v6134_v29  ;;  %v6054_v47 = vadd.f32 %v6010_v23, %v5927_v39  ;;  %v6437_v43 = vmul.f32 %v15853_v8, %v15835_v21  ;;  %v15900_v58 = vld [vmem:[#allocation29_spill] sm:$0xff] }
 0x492   : > { %15898 = vst [vmem:[#allocation57_spill] sm:$0xff] %v14233_v52  ;;  %v6053_v30 = vadd.f32 %v6008_v4, %v5926_v38  ;;  %v14239_v33 = vmul.f32 %v15853_v8, %v15836_v55  ;;  %v6137_v63 = vsel %vm883_vm1, %v6134_v29, %v15423_v25  ;;  %v6366_v19 = vrot.slane %v6310_v28, 1 }
 0x493   : > { %v15422_v46 = vrot.slane %v14233_v52, 1  ;;  %v6564_v9 = vmul.f32 %v15900_v58, %v15835_v21  ;;  %v6181_v4 = vadd.f32 %v6137_v63, %v6054_v47  ;;  %v6493_v39 = vrot.slane %v6437_v43, 2  ;;  %v10728_v43 = vld [vmem:[%s14263_s26] sm:$0xff]  }
 0x494   : > { %15899 = vst [vmem:[#allocation25_spill] sm:$0xff] %v14239_v33  ;;  %v6180_v38 = vadd.f32 %v6135_v20, %v6053_v30  ;;  %v15425_v23 = vrot.slane %v14239_v33, 2  ;;  %v15901_v10 = vrot.slane %v13941_v2, 1  ;;  %v14256_v29 = vmul.f32 %v15900_v58, %v15836_v55  ;;  %v14265_v2 = vpop.f32.mrb[64].mxu0  ;;  %10012 = vmatprep.subr.bf16.mxu0 %v10728_v43  ;;  %v15919_v33 = vld [vmem:[#allocation17_spill] sm:$0xff] }
 0x495   : > { %v6369_v8 = vsel %vm1929_vm5, %v6366_v19, %v15422_v46  ;;  %v6620_v28 = vrot.slane %v6564_v9, 3  ;;  %15903 = vst [vmem:[#allocation16_spill] sm:$0xff] %v14265_v2  ;;  %v6221_v20 = vadd.f32 %v6181_v4, %v5608_v6  ;;  %v14268_v63 = vpop.f32.mrb[65].mxu0  ;;  %v15907_v52 = vrot.slane %v13961_v44, 3  ;;  %v10729_v6 = vld [vmem:[%s14263_s26 + $0x8] sm:$0xff]   ;;  %10013 = vmatpush3.bf16.msra.mxu0 %v10728_v43 }
 0x496   : > { %v6367_v50 = vsel %vm1929_vm5, %v15901_v10, %v6366_v19  ;;  %15902 = vst [vmem:[#allocation61_spill] sm:$0xff] %v14256_v29  ;;  %v6220_v10 = vadd.f32 %v6180_v38, %v5607_v3  ;;  %v6413_v47 = vadd.f32 %v6369_v8, %v6286_v0  ;;  %15904 = vst [vmem:[#allocation26_spill] sm:$0xff] %v14268_v63  ;;  %v15905_v19 = vld [vmem:[#allocation60_spill] sm:$0xff]  ;;  %v15426_v3 = vrot.slane %v14256_v29, 3  ;;  %v14287_v38 = vpop.f32.mrb[66].mxu0  ;;  %v15914_v29 = vld [vmem:[#allocation33_spill] sm:$0xff] }
 0x497   : > { %v6412_v30 = vadd.f32 %v6367_v50, %v6285_v12  ;;  %v15906_v46 = vrot.slane %v15905_v19, 2  ;;  %v6496_v25 = vsel %vm5276_vm7, %v6493_v39, %v15425_v23  ;;  %v6621_v2 = vsel %vm5404_vm8, %v15907_v52, %v6620_v28  ;;  %v15908_v12 = vld [vmem:[#allocation30_spill] sm:$0xff]  ;;  %15910 = vst [vmem:[#allocation21_spill] sm:$0xff] %v14287_v38  ;;  %v15911_v52 = vld [vmem:[#allocation32_spill] sm:$0xff]  ;;  %v14299_v19 = vpop.f32.mrb[67].mxu0  ;;  %10014 = vmatprep.subr.bf16.mxu0 %v10729_v6 }
 0x498   : > { %v6540_v50 = vadd.f32 %v6496_v25, %v6413_v47  ;;  %v6691_v0 = vmul.f32 %v15908_v12, %v15835_v21  ;;  %v6623_v44 = vsel %vm5404_vm8, %v6620_v28, %v15426_v3  ;;  %v6898_v4 = vmul.f32 %v15911_v52, %v15836_v55  ;;  %v10730_v47 = vld [vmem:[%s14263_s26 + $0x10] sm:$0xff]   ;;  %15913 = vst [vmem:[#allocation22_spill] sm:$0xff] %v14299_v19  ;;  %v15915_v19 = vld [vmem:[#allocation64_spill] sm:$0xff] }
 0x499   : > { %v6494_v9 = vsel %vm5276_vm7, %v15906_v46, %v6493_v39  ;;  %v14285_v46 = vmul.f32 %v15908_v12, %v15836_v55  ;;  %v6899_v25 = vmul.f32 %v15911_v52, %v15877_v11  ;;  %v15912_v39 = vld [vmem:[#allocation48_spill] sm:$0xff]  ;;  %v7050_v52 = vmul.f32 %v15914_v29, %v15877_v11  ;;  %10015 = vmatpush3.bf16.msra.mxu0 %v10729_v6 }
 0x49a   : > { %v6539_v8 = vadd.f32 %v6494_v9, %v6412_v30  ;;  %v6923_v30 = vmul.f32 %v15912_v39, %v15877_v11  ;;  %v6667_v23 = vadd.f32 %v6623_v44, %v6540_v50  ;;  %v6747_v38 = vrot.slane %v6691_v0, 4  ;;  %v15917_v0 = vld [vmem:[#allocation34_spill] sm:$0xff]  ;;  %10016 = vmatprep.subr.bf16.mxu0 %v10730_v47 }
 0x49b   : > { %15909 = vst [vmem:[#allocation50_spill] sm:$0xff] %v14285_v46  ;;  %v15435_v63 = vrot.slane %v14285_v46, 4  ;;  %v14304_v28 = vmul.f32 %v15912_v39, %v15879_v62  ;;  %v14310_v43 = vmul.f32 %v15914_v29, %v15879_v62  ;;  %v7177_v44 = vmul.f32 %v15917_v0, %v15877_v11 }
 0x49c   : > { %v6666_v9 = vadd.f32 %v6621_v2, %v6539_v8  ;;  %v6979_v3 = vrot.slane %v6923_v30, 1  ;;  %v15916_v2 = vrot.slane %v15915_v19, 4  ;;  %v14322_v30 = vmul.f32 %v15917_v0, %v15879_v62 }
 0x49d   : > { %v6750_v50 = vsel %vm883_vm1, %v6747_v38, %v15435_v63  ;;  %v15920_v29 = vrot.slane %v15919_v33, 1  ;;  %v15441_v19 = vrot.slane %v14304_v28, 1  ;;  %v7106_v46 = vrot.slane %v7050_v52, 2  ;;  %v15923_v52 = vld [vmem:[#allocation49_spill] sm:$0xff]  ;;  %10017 = vmatpush3.bf16.msra.mxu0 %v10730_v47 }
 0x49e   : > { %v6748_v8 = vsel %vm883_vm1, %v15916_v2, %v6747_v38  ;;  %15918 = vst [vmem:[#allocation62_spill] sm:$0xff] %v14322_v30  ;;  %v6794_v12 = vadd.f32 %v6750_v50, %v6667_v23  ;;  %v15440_v38 = vrot.slane %v14310_v43, 2  ;;  %v7233_v63 = vrot.slane %v7177_v44, 3  ;;  %10018 = vmatprep.subr.bf16.mxu0 %v10731_v27 }
 0x49f   : > { %v6793_v39 = vadd.f32 %v6748_v8, %v6666_v9  ;;  %v6980_v58 = vsel %vm1929_vm5, %v15920_v29, %v6979_v3  ;;  %v6982_v23 = vsel %vm1929_vm5, %v6979_v3, %v15441_v19  ;;  %v15439_v33 = vrot.slane %v14322_v30, 3  ;;  %v15921_v9 = vld [vmem:[#allocation23_spill] sm:$0xff] }
 0x4a0   : > { %v7025_v2 = vadd.f32 %v6980_v58, %v6898_v4  ;;  %v6834_v32 = vadd.f32 %v6794_v12, %v6221_v20  ;;  %v7026_v29 = vadd.f32 %v6982_v23, %v6899_v25  ;;  %v15922_v8 = vrot.slane %v15921_v9, 2  ;;  %v15925_v12 = vld [vmem:[#allocation35_spill] sm:$0xff] }
 0x4a1   : > { %v6833_v61 = vadd.f32 %v6793_v39, %v6220_v10  ;;  %v7109_v6 = vsel %vm5276_vm7, %v7106_v46, %v15440_v38  ;;  %v15924_v4 = vrot.slane %v15923_v52, 3  ;;  %v7236_v3 = vsel %vm5404_vm8, %v7233_v63, %v15439_v33  ;;  %v15927_v23 = vld [vmem:[#allocation55_spill] sm:$0xff]  ;;  %v15929_v33 = vld [vmem:[#allocation20_spill] sm:$0xff]  ;;  %10019 = vmatpush3.bf16.msra.mxu0 %v10731_v27 }
 0x4a2   : > { %v7107_v58 = vsel %vm5276_vm7, %v15922_v8, %v7106_v46  ;;  %v7304_v25 = vmul.f32 %v15925_v12, %v15877_v11  ;;  %v14350_v39 = vmul.f32 %v15925_v12, %v15879_v62  ;;  %v7153_v50 = vadd.f32 %v7109_v6, %v7026_v29  ;;  %v15926_v46 = vld [vmem:[#allocation36_spill] sm:$0xff]  ;;  %v15930_v38 = vld [vmem:[#allocation39_spill] sm:$0xff] }
 0x4a3   : > { %v7234_v10 = vsel %vm5404_vm8, %v15924_v4, %v7233_v63  ;;  %v7152_v20 = vadd.f32 %v7107_v58, %v7025_v2  ;;  %v7511_v44 = vmul.f32 %v15926_v46, %v15879_v62  ;;  %v7512_v9 = vmul.f32 %v15926_v46, %v15927_v23  ;;  %v15928_v2 = vld [vmem:[#allocation38_spill] sm:$0xff]  ;;  %v10732_v63 = vld [vmem:[%s14263_s26 + $0x20] sm:$0xff]  }
 0x4a4   : > { %v7536_v8 = vmul.f32 %v15928_v2, %v15927_v23  ;;  %v7360_v52 = vrot.slane %v7304_v25, 4  ;;  %v15447_v4 = vrot.slane %v14350_v39, 4  ;;  %v14362_v47 = vmul.f32 %v15928_v2, %v15929_v33  ;;  %10020 = vmatprep.subr.bf16.mxu0 %v10732_v63 }
 0x4a5   : > { %v7279_v58 = vadd.f32 %v7234_v10, %v7152_v20  ;;  %v7280_v29 = vadd.f32 %v7236_v3, %v7153_v50  ;;  %v7663_v19 = vmul.f32 %v15930_v38, %v15927_v23  ;;  %v14368_v30 = vmul.f32 %v15930_v38, %v15929_v33  ;;  %10021 = vmatpush3.bf16.msra.mxu0 %v10732_v63 }
 0x4a6   : > { %v7592_v6 = vrot.slane %v7536_v8, 1  ;;  %v15931_v46 = vrot.slane %v14036_v26, 4  ;;  %v7363_v20 = vsel %vm883_vm1, %v7360_v52, %v15447_v4  ;;  %v15448_v25 = vrot.slane %v14362_v47, 1  ;;  %v10733_v26 = vld [vmem:[%s14263_s26 + $0x28] sm:$0xff]  }
 0x4a7   : > { %v7790_v3 = vmul.f32 %v15883_v24, %v15927_v23  ;;  %v7407_v8 = vadd.f32 %v7363_v20, %v7280_v29  ;;  %v15932_v2 = vrot.slane %v14050_v15, 1  ;;  %v7719_v12 = vrot.slane %v7663_v19, 2  ;;  %10022 = vmatprep.subr.bf16.mxu0 %v10733_v26 }
 0x4a8   : > { %v7361_v10 = vsel %vm883_vm1, %v15931_v46, %v7360_v52  ;;  %v7595_v46 = vsel %vm1929_vm5, %v7592_v6, %v15448_v25  ;;  %v15451_v4 = vrot.slane %v14368_v30, 2  ;;  %v14389_v27 = vmul.f32 %v15883_v24, %v15929_v33 }
 0x4a9   : > { %v7406_v50 = vadd.f32 %v7361_v10, %v7279_v58  ;;  %v7593_v38 = vsel %vm1929_vm5, %v15932_v2, %v7592_v6  ;;  %v7447_v29 = vadd.f32 %v7407_v8, %v6834_v32  ;;  %v7639_v15 = vadd.f32 %v7595_v46, %v7512_v9  ;;  %v10734_v32 = vld [vmem:[%s14263_s26 + $0x30] sm:$0xff]   ;;  %10023 = vmatpush3.bf16.msra.mxu0 %v10733_v26 }
 0x4aa   : > { %v7638_v52 = vadd.f32 %v7593_v38, %v7511_v44  ;;  %v15933_v2 = vrot.slane %v14056_v17, 2  ;;  %v7722_v10 = vsel %vm5276_vm7, %v7719_v12, %v15451_v4  ;;  %v7846_v38 = vrot.slane %v7790_v3, 3  ;;  %10024 = vmatprep.subr.bf16.mxu0 %v10734_v32 }
 0x4ab   : > { %v7446_v58 = vadd.f32 %v7406_v50, %v6833_v61  ;;  %v15449_v44 = vrot.slane %v14389_v27, 3  ;;  %v7766_v20 = vadd.f32 %v7722_v10, %v7639_v15  ;;  %v7917_v25 = vmul.f32 %v15614_v48, %v15927_v23 }
 0x4ac   : > { %v7720_v19 = vsel %vm5276_vm7, %v15933_v2, %v7719_v12  ;;  %v14402_v61 = vmul.f32 %v15614_v48, %v15929_v33  ;;  %v5098_v17 = vmul.f32 %v11859_v60, %v15719_v18  ;;  %v15934_v12 = vrot.slane %v14073_v13, 3 }
 0x4ad   : > { %v7765_v6 = vadd.f32 %v7720_v19, %v7638_v52  ;;  %v7849_v63 = vsel %vm5404_vm8, %v7846_v38, %v15449_v44  ;;  %v5099_v3 = vmul.f32 %v11859_v60, %v15778_v37  ;;  %v5123_v50 = vmul.f32 %v11845_v1, %v15778_v37  ;;  %10025 = vmatpush3.bf16.msra.mxu0 %v10734_v32 }
 0x4ae   : > { %v7847_v9 = vsel %vm5404_vm8, %v15934_v12, %v7846_v38  ;;  %v7893_v46 = vadd.f32 %v7849_v63, %v7766_v20  ;;  %v7973_v18 = vrot.slane %v7917_v25, 4  ;;  %v15450_v52 = vrot.slane %v14402_v61, 4  ;;  %v10735_v12 = vld [vmem:[%s14263_s26 + $0x38] sm:$0xff]  }
 0x4af   : > { %v7892_v8 = vadd.f32 %v7847_v9, %v7765_v6  ;;  %v14420_v13 = vmul.f32 %v11845_v1, %v15779_v54  ;;  %v5182_v15 = vrot.slane %v5123_v50, 1  ;;  %v5251_v2 = vmul.f32 %v11853_v40, %v15778_v37  ;;  %10026 = vmatprep.subr.bf16.mxu0 %v10735_v12 }
 0x4b0   : > { %v14426_v19 = vmul.f32 %v11853_v40, %v15779_v54  ;;  %v15935_v10 = vrot.slane %v14092_v14, 4  ;;  %v7976_v25 = vsel %vm883_vm1, %v7973_v18, %v15450_v52  ;;  %v5379_v38 = vmul.f32 %v11855_v49, %v15778_v37 }
 0x4b1   : > { %v14438_v20 = vmul.f32 %v11855_v49, %v15779_v54  ;;  %v8020_v63 = vadd.f32 %v7976_v25, %v7893_v46  ;;  %v15936_v26 = vrot.slane %v14106_v35, 1  ;;  %v15462_v50 = vrot.slane %v14420_v13, 1  ;;  %10027 = vmatpush3.bf16.msra.mxu0 %v10735_v12 }
 0x4b2   : > { %v7974_v6 = vsel %vm883_vm1, %v15935_v10, %v7973_v18  ;;  %v5310_v44 = vrot.slane %v5251_v2, 2  ;;  %v15461_v18 = vrot.slane %v14426_v19, 2  ;;  %v5438_v52 = vrot.slane %v5379_v38, 3 }
 0x4b3   : > { %v8019_v9 = vadd.f32 %v7974_v6, %v7892_v8  ;;  %v5183_v14 = vsel %vm1929_vm5, %v15936_v26, %v5182_v15  ;;  %v8060_v40 = vadd.f32 %v8020_v63, %v7447_v29  ;;  %v5185_v49 = vsel %vm1929_vm5, %v5182_v15, %v15462_v50 }
 0x4b4   : > { %v5226_v10 = vadd.f32 %v5183_v14, %v5098_v17  ;;  %v15460_v8 = vrot.slane %v14438_v20, 3  ;;  %v5227_v46 = vadd.f32 %v5185_v49, %v5099_v3  ;;  %v15937_v35 = vrot.slane %v14118_v45, 2 }
 0x4b5   : > { %v8059_v4 = vadd.f32 %v8019_v9, %v7446_v58  ;;  %v5313_v17 = vsel %vm5276_vm7, %v5310_v44, %v15461_v18  ;;  %v15938_v2 = vrot.slane %v14129_v51, 3  ;;  %v8120_v15 = vsub.f32 %v8060_v40, %v11896_v36 }
 0x4b6   : > { %v5311_v6 = vsel %vm5276_vm7, %v15937_v35, %v5310_v44  ;;  %v5441_v49 = vsel %vm5404_vm8, %v5438_v52, %v15460_v8  ;;  %v5355_v45 = vadd.f32 %v5313_v17, %v5227_v46  ;;  %v5507_v32 = vmul.f32 %v15623_v56, %v15778_v37 }
 0x4b7   : > { %v5439_v58 = vsel %vm5404_vm8, %v15938_v2, %v5438_v52  ;;  %v8119_v29 = vsub.f32 %v8059_v4, %v11896_v36  ;;  %v5354_v25 = vadd.f32 %v5311_v6, %v5226_v10  ;;  %v14468_v44 = vmul.f32 %v15623_v56, %v15779_v54 }
 0x4b8   : > { %v5674_v51 = vmul.f32 %v15568_v41, %v15779_v54  ;;  %v8146_v40 = vmul.f32 %v14156_v53, %v8120_v15  ;;  %v5675_v38 = vmul.f32 %v15568_v41, %v15835_v21  ;;  %v5483_v52 = vadd.f32 %v5441_v49, %v5355_v45 }
 0x4b9   : > { %v8145_v4 = vmul.f32 %v14156_v53, %v8119_v29  ;;  %v5482_v3 = vadd.f32 %v5439_v58, %v5354_v25  ;;  %v5565_v9 = vrot.slane %v5507_v32, 4  ;;  %v15459_v37 = vrot.slane %v14468_v44, 4 }
 0x4ba   : > { %v5699_v63 = vmul.f32 %v15679_v57, %v15835_v21  ;;  %v8172_v14 = vadd.f32 %v14166_v42, %v8146_v40  ;;  %v14483_v10 = vmul.f32 %v15679_v57, %v15836_v55  ;;  %v5826_v46 = vmul.f32 %v15681_v7, %v15835_v21 }
 0x4bb   : > { %v8171_v26 = vadd.f32 %v14166_v42, %v8145_v4  ;;  %v15939_v12 = vrot.slane %v14153_v59, 4  ;;  %v5568_v6 = vsel %vm883_vm1, %v5565_v9, %v15459_v37  ;;  %v14495_v2 = vmul.f32 %v15681_v7, %v15836_v55 }
 0x4bc   : > { %v5757_v17 = vrot.slane %v5699_v63, 1  ;;  %v8192_v29 = vmax.f32 %v8172_v14, 0.0  ;;  %v5610_v25 = vadd.f32 %v5568_v6, %v5483_v52  ;;  %v15940_v49 = vrot.slane %v14174_v16, 1 }
 0x4bd   : > { %v5566_v35 = vsel %vm883_vm1, %v15939_v12, %v5565_v9  ;;  %v8191_v58 = vmax.f32 %v8171_v26, 0.0  ;;  %v15457_v59 = vrot.slane %v14483_v10, 1  ;;  %v5884_v32 = vrot.slane %v5826_v46, 2 }
 0x4be   : > { %v5609_v15 = vadd.f32 %v5566_v35, %v5482_v3  ;;  %v5758_v45 = vsel %vm1929_vm5, %v15940_v49, %v5757_v17  ;;  %v15456_v4 = vrot.slane %v14495_v2, 2  ;;  %v5953_v63 = vmul.f32 %v15799_v31, %v15835_v21 }
 0x4bf   : > { %v8204_v40 = vpack.c.bf16 %v8192_v29, %v8191_v58  ;;  %v5801_v9 = vadd.f32 %v5758_v45, %v5674_v51  ;;  %v14506_v26 = vmul.f32 %v15799_v31, %v15836_v55  ;;  %v5760_v16 = vsel %vm1929_vm5, %v5757_v17, %v15457_v59  ;;  %v15943_v45 = vld [vmem:[#allocation43_spill] sm:$0xff] }
 0x4c0   : > { %v15941_v3 = vrot.slane %v14186_v22, 2  ;;  %v5887_v14 = vsel %vm5276_vm7, %v5884_v32, %v15456_v4  ;;  %v6080_v51 = vmul.f32 %v15802_v34, %v15835_v21  ;;  %v5802_v46 = vadd.f32 %v5760_v16, %v5675_v38 }
 0x4c1   : > { %10005 = vmatmul.mubr.bf16.gmra.mrb[76].mxu0 %v8204_v40  ;;  %v6011_v35 = vrot.slane %v5953_v63, 3  ;;  %v15458_v6 = vrot.slane %v14506_v26, 3  ;;  %v14522_v17 = vmul.f32 %v15802_v34, %v15836_v55  ;;  %v6287_v58 = vmul.f32 %v15807_v5, %v15836_v55 }
 0x4c2   : > { %v5885_v52 = vsel %vm5276_vm7, %v15941_v3, %v5884_v32  ;;  %v6138_v22 = vrot.slane %v6080_v51, 4  ;;  %v6288_v29 = vmul.f32 %v15807_v5, %v15877_v11  ;;  %v5929_v49 = vadd.f32 %v5887_v14, %v5802_v46  ;;  %v15946_v3 = vld [vmem:[#allocation47_spill] sm:$0xff] }
 0x4c3   : > { %v5928_v12 = vadd.f32 %v5885_v52, %v5801_v9  ;;  %15942 = vst [vmem:[#allocation63_spill] sm:$0xff] %v14522_v17  ;;  %v15944_v32 = vrot.slane %v15943_v45, 3  ;;  %v6014_v40 = vsel %vm5404_vm8, %v6011_v35, %v15458_v6  ;;  %v15945_v9 = vld [vmem:[#allocation27_spill] sm:$0xff]  ;;  %v15947_v52 = vrot.slane %v15946_v3, 4 }
 0x4c4   : > { %v6312_v63 = vmul.f32 %v15945_v9, %v15877_v11  ;;  %v15464_v4 = vrot.slane %v14522_v17, 4  ;;  %v14542_v14 = vmul.f32 %v15945_v9, %v15879_v62  ;;  %v6056_v46 = vadd.f32 %v6014_v40, %v5929_v49  ;;  %v15951_v49 = vld [vmem:[#allocation57_spill] sm:$0xff] }
 0x4c5   : > { %v6012_v38 = vsel %vm5404_vm8, %v15944_v32, %v6011_v35  ;;  %v6139_v51 = vsel %vm883_vm1, %v15947_v52, %v6138_v22  ;;  %v15948_v32 = vld [vmem:[#allocation28_spill] sm:$0xff]  ;;  %v15950_v52 = vld [vmem:[#allocation29_spill] sm:$0xff]  ;;  %v15952_v40 = vrot.slane %v15951_v49, 1 }
 0x4c6   : > { %v6055_v16 = vadd.f32 %v6012_v38, %v5928_v12  ;;  %v6370_v45 = vrot.slane %v6312_v63, 1  ;;  %v6439_v59 = vmul.f32 %v15948_v32, %v15877_v11  ;;  %v14548_v35 = vmul.f32 %v15948_v32, %v15879_v62 }
 0x4c7   : > { %v6141_v12 = vsel %vm883_vm1, %v6138_v22, %v15464_v4  ;;  %v15466_v3 = vrot.slane %v14542_v14, 1  ;;  %v6566_v6 = vmul.f32 %v15950_v52, %v15877_v11 }
 0x4c8   : > { %15949 = vst [vmem:[#allocation31_spill] sm:$0xff] %v14548_v35  ;;  %v6182_v38 = vadd.f32 %v6139_v51, %v6055_v16  ;;  %v6183_v37 = vadd.f32 %v6141_v12, %v6056_v46  ;;  %v6371_v63 = vsel %vm1929_vm5, %v15952_v40, %v6370_v45  ;;  %v6497_v8 = vrot.slane %v6439_v59, 2  ;;  %v15954_v46 = vld [vmem:[#allocation25_spill] sm:$0xff] }
 0x4c9   : > { %v15465_v18 = vrot.slane %v14548_v35, 2  ;;  %v6373_v17 = vsel %vm1929_vm5, %v6370_v45, %v15466_v3  ;;  %v6414_v22 = vadd.f32 %v6371_v63, %v6287_v58  ;;  %v14565_v16 = vmul.f32 %v15950_v52, %v15879_v62  ;;  %v15956_v58 = vld [vmem:[#allocation30_spill] sm:$0xff] }
 0x4ca   : > { %v6222_v50 = vadd.f32 %v6182_v38, %v5609_v15  ;;  %v6223_v51 = vadd.f32 %v6183_v37, %v5610_v25  ;;  %v6415_v4 = vadd.f32 %v6373_v17, %v6288_v29  ;;  %v15955_v12 = vrot.slane %v15954_v46, 2  ;;  %v15958_v25 = vld [vmem:[#allocation32_spill] sm:$0xff]  ;;  %v15959_v46 = vld [vmem:[#allocation61_spill] sm:$0xff] }
 0x4cb   : > { %15953 = vst [vmem:[#allocation18_spill] sm:$0xff] %v14565_v16  ;;  %v6500_v59 = vsel %vm5276_vm7, %v6497_v8, %v15465_v18  ;;  %v6624_v38 = vrot.slane %v6566_v6, 3  ;;  %v15471_v40 = vrot.slane %v14565_v16, 3  ;;  %v6693_v45 = vmul.f32 %v15956_v58, %v15877_v11  ;;  %v15964_v16 = vld [vmem:[#allocation33_spill] sm:$0xff] }
 0x4cc   : > { %v6498_v49 = vsel %vm5276_vm7, %v15955_v12, %v6497_v8  ;;  %v6542_v63 = vadd.f32 %v6500_v59, %v6415_v4  ;;  %v14578_v37 = vmul.f32 %v15956_v58, %v15879_v62  ;;  %v6900_v17 = vmul.f32 %v15958_v25, %v15879_v62  ;;  %v15961_v4 = vld [vmem:[#allocation48_spill] sm:$0xff] }
 0x4cd   : > { %v6541_v15 = vadd.f32 %v6498_v49, %v6414_v22  ;;  %v6901_v29 = vmul.f32 %v15958_v25, %v15927_v23  ;;  %v15960_v8 = vrot.slane %v15959_v46, 3  ;;  %v6627_v22 = vsel %vm5404_vm8, %v6624_v38, %v15471_v40  ;;  %v15962_v25 = vld [vmem:[#allocation50_spill] sm:$0xff] }
 0x4ce   : > { %15957 = vst [vmem:[#allocation19_spill] sm:$0xff] %v14578_v37  ;;  %v6751_v12 = vrot.slane %v6693_v45, 4  ;;  %v6925_v49 = vmul.f32 %v15961_v4, %v15927_v23  ;;  %v6669_v18 = vadd.f32 %v6627_v22, %v6542_v63  ;;  %v15476_v3 = vrot.slane %v14578_v37, 4 }
 0x4cf   : > { %v6625_v6 = vsel %vm5404_vm8, %v15960_v8, %v6624_v38  ;;  %v14595_v58 = vmul.f32 %v15961_v4, %v15929_v33  ;;  %v15963_v46 = vrot.slane %v15962_v25, 4  ;;  %v7052_v38 = vmul.f32 %v15964_v16, %v15927_v23 }
 0x4d0   : > { %v6668_v59 = vadd.f32 %v6625_v6, %v6541_v15  ;;  %v6983_v35 = vrot.slane %v6925_v49, 1  ;;  %v14604_v45 = vmul.f32 %v15964_v16, %v15929_v33  ;;  %v6754_v15 = vsel %vm883_vm1, %v6751_v12, %v15476_v3 }
 0x4d1   : > { %v6752_v8 = vsel %vm883_vm1, %v15963_v46, %v6751_v12  ;;  %v15475_v6 = vrot.slane %v14595_v58, 1  ;;  %v7179_v25 = vmul.f32 %v15917_v0, %v15927_v23  ;;  %v6796_v22 = vadd.f32 %v6754_v15, %v6669_v18 }
 0x4d2   : > { %15965 = vst [vmem:[#allocation69_spill] sm:$0xff] %v14604_v45  ;;  %v6795_v63 = vadd.f32 %v6752_v8, %v6668_v59  ;;  %v15966_v49 = vrot.slane %v14304_v28, 1  ;;  %v7110_v40 = vrot.slane %v7052_v38, 2  ;;  %v15477_v4 = vrot.slane %v14604_v45, 2  ;;  %v14623_v8 = vpop.f32.mrb[68].mxu0  ;;  %v15980_v45 = vld [vmem:[#allocation51_spill] sm:$0xff] }
 0x4d3   : > { %v6986_v37 = vsel %vm1929_vm5, %v6983_v35, %v15475_v6  ;;  %v14621_v59 = vmul.f32 %v15917_v0, %v15929_v33  ;;  %15968 = vst [vmem:[#allocation53_spill] sm:$0xff] %v14623_v8  ;;  %v6836_v18 = vadd.f32 %v6796_v22, %v6223_v51  ;;  %v15969_v28 = vrot.slane %v14310_v43, 2 }
 0x4d4   : > { %v6984_v46 = vsel %vm1929_vm5, %v15966_v49, %v6983_v35  ;;  %v6835_v16 = vadd.f32 %v6795_v63, %v6222_v50  ;;  %v7028_v15 = vadd.f32 %v6986_v37, %v6901_v29  ;;  %v7113_v50 = vsel %vm5276_vm7, %v7110_v40, %v15477_v4  ;;  %v14631_v63 = vpop.f32.mrb[69].mxu0  ;;  %v15974_v37 = vld [vmem:[#allocation36_spill] sm:$0xff]  ;;  %v15979_v4 = vld [vmem:[#allocation38_spill] sm:$0xff] }
 0x4d5   : > { %v7027_v12 = vadd.f32 %v6984_v46, %v6900_v17  ;;  %15967 = vst [vmem:[#allocation37_spill] sm:$0xff] %v14621_v59  ;;  %v7111_v38 = vsel %vm5276_vm7, %v15969_v28, %v7110_v40  ;;  %15970 = vst [vmem:[#allocation54_spill] sm:$0xff] %v14631_v63  ;;  %v7237_v17 = vrot.slane %v7179_v25, 3  ;;  %v15482_v49 = vrot.slane %v14621_v59, 3  ;;  %v15971_v46 = vld [vmem:[#allocation35_spill] sm:$0xff]  ;;  %v14636_v3 = vpop.f32.mrb[70].mxu0 }
 0x4d6   : > { %v7306_v6 = vmul.f32 %v15971_v46, %v15927_v23  ;;  %15972 = vst [vmem:[#allocation56_spill] sm:$0xff] %v14636_v3  ;;  %v7155_v51 = vadd.f32 %v7113_v50, %v7028_v15  ;;  %v14640_v43 = vmul.f32 %v15971_v46, %v15929_v33  ;;  %v7513_v29 = vmul.f32 %v15974_v37, %v15929_v33  ;;  %v15975_v40 = vld [vmem:[#allocation66_spill] sm:$0xff]  ;;  %v15982_v59 = vld [vmem:[#allocation39_spill] sm:$0xff] }
 0x4d7   : > { %v7154_v35 = vadd.f32 %v7111_v38, %v7027_v12  ;;  %v7514_v22 = vmul.f32 %v15974_v37, %v15975_v40  ;;  %v14646_v12 = vpop.f32.mrb[71].mxu0  ;;  %v15977_v25 = vld [vmem:[#allocation62_spill] sm:$0xff]  ;;  %v7240_v15 = vsel %vm5404_vm8, %v7237_v17, %v15482_v49  ;;  %v7538_v3 = vmul.f32 %v15979_v4, %v15975_v40 }
 0x4d8   : > { %15973 = vst [vmem:[#allocation70_spill] sm:$0xff] %v14640_v43  ;;  %15976 = vst [vmem:[#allocation65_spill] sm:$0xff] %v14646_v12  ;;  %v15978_v28 = vrot.slane %v15977_v25, 3  ;;  %v7364_v50 = vrot.slane %v7306_v6, 4  ;;  %v7282_v8 = vadd.f32 %v7240_v15, %v7155_v51  ;;  %v15484_v46 = vrot.slane %v14640_v43, 4 }
 0x4d9   : > { %v14659_v37 = vmul.f32 %v15979_v4, %v15980_v45  ;;  %v15981_v25 = vrot.slane %v14350_v39, 4  ;;  %v7596_v12 = vrot.slane %v7538_v3, 1  ;;  %v14668_v6 = vmul.f32 %v15982_v59, %v15980_v45 }
 0x4da   : > { %v7238_v38 = vsel %vm5404_vm8, %v15978_v28, %v7237_v17  ;;  %v7665_v17 = vmul.f32 %v15982_v59, %v15975_v40  ;;  %v7792_v39 = vmul.f32 %v15883_v24, %v15975_v40  ;;  %v15983_v3 = vrot.slane %v14362_v47, 1 }
 0x4db   : > { %v7281_v63 = vadd.f32 %v7238_v38, %v7154_v35  ;;  %v7365_v28 = vsel %vm883_vm1, %v15981_v25, %v7364_v50  ;;  %v7367_v35 = vsel %vm883_vm1, %v7364_v50, %v15484_v46  ;;  %v7598_v4 = vrot.slane %v14659_v37, 1  ;;  %v16020_v37 = vld [vmem:[#allocation68_spill] sm:$0xff] }
 0x4dc   : > { %v7409_v38 = vadd.f32 %v7367_v35, %v7282_v8  ;;  %v7597_v15 = vsel %vm1929_vm5, %v15983_v3, %v7596_v12  ;;  %v7723_v25 = vrot.slane %v7665_v17, 2  ;;  %v7725_v49 = vrot.slane %v14668_v6, 2  ;;  %v16027_v6 = vld [vmem:[#allocation71_spill] sm:$0xff] }
 0x4dd   : > { %v7408_v51 = vadd.f32 %v7365_v28, %v7281_v63  ;;  %v7599_v43 = vsel %vm1929_vm5, %v7596_v12, %v7598_v4  ;;  %v7640_v50 = vadd.f32 %v7597_v15, %v7513_v29  ;;  %v14685_v63 = vmul.f32 %v15883_v24, %v15980_v45 }
 0x4de   : > { %v7449_v28 = vadd.f32 %v7409_v38, %v6836_v18  ;;  %v7641_v46 = vadd.f32 %v7599_v43, %v7514_v22  ;;  %v15984_v8 = vrot.slane %v14368_v30, 2  ;;  %v7726_v17 = vsel %vm5276_vm7, %v7723_v25, %v7725_v49 }
 0x4df   : > { %v7448_v59 = vadd.f32 %v7408_v51, %v6835_v16  ;;  %v7850_v35 = vrot.slane %v7792_v39, 3  ;;  %v15485_v51 = vrot.slane %v14685_v63, 3  ;;  %v7919_v29 = vmul.f32 %v15614_v48, %v15975_v40 }
 0x4e0   : > { %v7724_v47 = vsel %vm5276_vm7, %v15984_v8, %v7723_v25  ;;  %v7768_v12 = vadd.f32 %v7726_v17, %v7641_v46  ;;  %v14698_v24 = vmul.f32 %v15614_v48, %v15980_v45  ;;  %v5100_v30 = vmul.f32 %v11859_v60, %v15779_v54 }
 0x4e1   : > { %v7767_v16 = vadd.f32 %v7724_v47, %v7640_v50  ;;  %v5101_v18 = vmul.f32 %v11859_v60, %v15835_v21  ;;  %v15985_v43 = vrot.slane %v14389_v27, 3  ;;  %v7853_v39 = vsel %vm5404_vm8, %v7850_v35, %v15485_v51  ;;  %v15987_v50 = vld [vmem:[#allocation40_spill] sm:$0xff] }
 0x4e2   : > { %v7977_v38 = vrot.slane %v7919_v29, 4  ;;  %v5125_v46 = vmul.f32 %v11845_v1, %v15835_v21  ;;  %v7895_v3 = vadd.f32 %v7853_v39, %v7768_v12  ;;  %v7979_v15 = vrot.slane %v14698_v24, 4  ;;  %v15988_v29 = vld [vmem:[#allocation41_spill] sm:$0xff] }
 0x4e3   : > { %v7851_v22 = vsel %vm5404_vm8, %v15985_v43, %v7850_v35  ;;  %v5126_v54 = vmul.f32 %v11845_v1, %v15836_v55  ;;  %v15986_v60 = vrot.slane %v14402_v61, 4  ;;  %v5253_v8 = vmul.f32 %v15987_v50, %v15835_v21 }
 0x4e4   : > { %v7894_v48 = vadd.f32 %v7851_v22, %v7767_v16  ;;  %v5186_v25 = vrot.slane %v5125_v46, 1  ;;  %v5254_v47 = vmul.f32 %v15987_v50, %v15836_v55  ;;  %v7980_v17 = vsel %vm883_vm1, %v7977_v38, %v7979_v15 }
 0x4e5   : > { %v7978_v27 = vsel %vm883_vm1, %v15986_v60, %v7977_v38  ;;  %v5188_v35 = vrot.slane %v5126_v54, 1  ;;  %v5381_v1 = vmul.f32 %v15988_v29, %v15835_v21  ;;  %v8022_v12 = vadd.f32 %v7980_v17, %v7895_v3 }
 0x4e6   : > { %v8021_v16 = vadd.f32 %v7978_v27, %v7894_v48  ;;  %v15989_v61 = vrot.slane %v14420_v13, 1  ;;  %v5314_v22 = vrot.slane %v5253_v8, 2  ;;  %v5316_v39 = vrot.slane %v5254_v47, 2 }
 0x4e7   : > { %v5189_v60 = vsel %vm1929_vm5, %v5186_v25, %v5188_v35  ;;  %v5382_v51 = vmul.f32 %v15988_v29, %v15836_v55  ;;  %v8062_v38 = vadd.f32 %v8022_v12, %v7449_v28  ;;  %v15990_v54 = vrot.slane %v14426_v19, 2 }
 0x4e8   : > { %v5187_v43 = vsel %vm1929_vm5, %v15989_v61, %v5186_v25  ;;  %v8061_v46 = vadd.f32 %v8021_v16, %v7448_v59  ;;  %v5229_v48 = vadd.f32 %v5189_v60, %v5101_v18  ;;  %v5317_v3 = vsel %vm5276_vm7, %v5314_v22, %v5316_v39 }
 0x4e9   : > { %v5228_v50 = vadd.f32 %v5187_v43, %v5100_v30  ;;  %v5315_v27 = vsel %vm5276_vm7, %v15990_v54, %v5314_v22  ;;  %v5442_v8 = vrot.slane %v5381_v1, 3  ;;  %v5444_v47 = vrot.slane %v5382_v51, 3 }
 0x4ea   : > { %v8121_v13 = vsub.f32 %v8061_v46, %v11896_v36  ;;  %v8122_v59 = vsub.f32 %v8062_v38, %v11896_v36  ;;  %v5357_v25 = vadd.f32 %v5317_v3, %v5229_v48  ;;  %v5509_v30 = vmul.f32 %v15623_v56, %v15835_v21 }
 0x4eb   : > { %v5356_v17 = vadd.f32 %v5315_v27, %v5228_v50  ;;  %v5510_v28 = vmul.f32 %v15623_v56, %v15836_v55  ;;  %v15991_v18 = vrot.slane %v14438_v20, 3  ;;  %v5445_v35 = vsel %vm5404_vm8, %v5442_v8, %v5444_v47 }
 0x4ec   : > { %v8147_v19 = vmul.f32 %v14156_v53, %v8121_v13  ;;  %v5676_v51 = vmul.f32 %v15568_v41, %v15836_v55  ;;  %v8148_v29 = vmul.f32 %v14156_v53, %v8122_v59  ;;  %v5485_v12 = vadd.f32 %v5445_v35, %v5357_v25 }
 0x4ed   : > { %v5443_v16 = vsel %vm5404_vm8, %v15991_v18, %v5442_v8  ;;  %v5569_v61 = vrot.slane %v5509_v30, 4  ;;  %v5571_v43 = vrot.slane %v5510_v28, 4  ;;  %v5677_v56 = vmul.f32 %v15568_v41, %v15877_v11 }
 0x4ee   : > { %v5484_v1 = vadd.f32 %v5443_v16, %v5356_v17  ;;  %v8173_v21 = vadd.f32 %v14166_v42, %v8147_v19  ;;  %v5701_v20 = vmul.f32 %v15679_v57, %v15877_v11  ;;  %v8174_v22 = vadd.f32 %v14166_v42, %v8148_v29 }
 0x4ef   : > { %v15992_v39 = vrot.slane %v14468_v44, 4  ;;  %v5702_v53 = vmul.f32 %v15679_v57, %v15879_v62  ;;  %v5828_v46 = vmul.f32 %v15681_v7, %v15877_v11  ;;  %v5572_v50 = vsel %vm883_vm1, %v5569_v61, %v5571_v43 }
 0x4f0   : > { %v8193_v60 = vmax.f32 %v8173_v21, 0.0  ;;  %v5761_v41 = vrot.slane %v5701_v20, 1  ;;  %v8194_v48 = vmax.f32 %v8174_v22, 0.0  ;;  %v5612_v54 = vadd.f32 %v5572_v50, %v5485_v12  ;;  %v15996_v22 = vld [vmem:[#allocation63_spill] sm:$0xff] }
 0x4f1   : > { %v5570_v55 = vsel %vm883_vm1, %v15992_v39, %v5569_v61  ;;  %v5763_v27 = vrot.slane %v5702_v53, 1  ;;  %v5829_v42 = vmul.f32 %v15681_v7, %v15879_v62  ;;  %v15993_v44 = vrot.slane %v14483_v10, 1 }
 0x4f2   : > { %v5611_v38 = vadd.f32 %v5570_v55, %v5484_v1  ;;  %v5888_v13 = vrot.slane %v5828_v46, 2  ;;  %v5955_v57 = vmul.f32 %v15799_v31, %v15877_v11  ;;  %v5956_v17 = vmul.f32 %v15799_v31, %v15879_v62 }
 0x4f3   : > { %v5762_v3 = vsel %vm1929_vm5, %v15993_v44, %v5761_v41  ;;  %v8205_v8 = vpack.c.bf16 %v8194_v48, %v8193_v60  ;;  %v5764_v47 = vsel %vm1929_vm5, %v5761_v41, %v5763_v27  ;;  %v5890_v25 = vrot.slane %v5829_v42, 2 }
 0x4f4   : > { %v5803_v59 = vadd.f32 %v5762_v3, %v5676_v51  ;;  %v5804_v30 = vadd.f32 %v5764_v47, %v5677_v56  ;;  %v15994_v28 = vrot.slane %v14495_v2, 2  ;;  %v6015_v10 = vrot.slane %v5955_v57, 3  ;;  %v15999_v47 = vld [vmem:[#allocation31_spill] sm:$0xff] }
 0x4f5   : > { %v6017_v19 = vrot.slane %v5956_v17, 3  ;;  %10008 = vmatprep.mubr.bf16.mxu0 %v8205_v8  ;;  %v5891_v18 = vsel %vm5276_vm7, %v5888_v13, %v5890_v25  ;;  %v6082_v35 = vmul.f32 %v15802_v34, %v15877_v11  ;;  %v6083_v31 = vmul.f32 %v15802_v34, %v15879_v62 }
 0x4f6   : > { %v5889_v7 = vsel %vm5276_vm7, %v15994_v28, %v5888_v13  ;;  %v5931_v29 = vadd.f32 %v5891_v18, %v5804_v30  ;;  %v15995_v51 = vrot.slane %v14506_v26, 3  ;;  %v6289_v12 = vmul.f32 %v15807_v5, %v15879_v62  ;;  %v16001_v28 = vld [vmem:[#allocation18_spill] sm:$0xff] }
 0x4f7   : > { %v5930_v16 = vadd.f32 %v5889_v7, %v5803_v59  ;;  %v6018_v2 = vsel %vm5404_vm8, %v6015_v10, %v6017_v19  ;;  %v6142_v21 = vrot.slane %v6082_v35, 4  ;;  %v6144_v43 = vrot.slane %v6083_v31, 4 }
 0x4f8   : > { %v6016_v1 = vsel %vm5404_vm8, %v15995_v51, %v6015_v10  ;;  %v6290_v56 = vmul.f32 %v15807_v5, %v15927_v23  ;;  %v6058_v11 = vadd.f32 %v6018_v2, %v5931_v29  ;;  %v6314_v34 = vmul.f32 %v15945_v9, %v15927_v23  ;;  %v16005_v2 = vld [vmem:[#allocation48_spill] sm:$0xff] }
 0x4f9   : > { %v6057_v61 = vadd.f32 %v6016_v1, %v5930_v16  ;;  %v6315_v26 = vmul.f32 %v15945_v9, %v15929_v33  ;;  %v6441_v20 = vmul.f32 %v15948_v32, %v15927_v23  ;;  %v15997_v39 = vrot.slane %v15996_v22, 4  ;;  %v16004_v16 = vld [vmem:[#allocation32_spill] sm:$0xff] }
 0x4fa   : > { %v6145_v55 = vsel %vm883_vm1, %v6142_v21, %v6144_v43  ;;  %v6442_v53 = vmul.f32 %v15948_v32, %v15929_v33  ;;  %v6568_v5 = vmul.f32 %v15950_v52, %v15927_v23  ;;  %v6374_v50 = vrot.slane %v6314_v34, 1  ;;  %v16006_v43 = vld [vmem:[#allocation33_spill] sm:$0xff] }
 0x4fb   : > { %v6143_v62 = vsel %vm883_vm1, %v15997_v39, %v6142_v21  ;;  %v6185_v60 = vadd.f32 %v6145_v55, %v6058_v11  ;;  %v6376_v41 = vrot.slane %v6315_v26, 1  ;;  %v6501_v9 = vrot.slane %v6441_v20, 2  ;;  %v16007_v11 = vld [vmem:[#allocation19_spill] sm:$0xff] }
 0x4fc   : > { %v6184_v46 = vadd.f32 %v6143_v62, %v6057_v61  ;;  %v6503_v48 = vrot.slane %v6442_v53, 2  ;;  %v6569_v27 = vmul.f32 %v15950_v52, %v15929_v33  ;;  %v6628_v42 = vrot.slane %v6568_v5, 3 }
 0x4fd   : > { %v6225_v3 = vadd.f32 %v6185_v60, %v5612_v54  ;;  %v15998_v13 = vrot.slane %v14542_v14, 1  ;;  %v6377_v32 = vsel %vm1929_vm5, %v6374_v50, %v6376_v41  ;;  %v16000_v59 = vrot.slane %v15999_v47, 2  ;;  %v16003_v54 = vld [vmem:[#allocation30_spill] sm:$0xff] }
 0x4fe   : > { %v6224_v44 = vadd.f32 %v6184_v46, %v5611_v38  ;;  %v6417_v8 = vadd.f32 %v6377_v32, %v6290_v56  ;;  %v6504_v30 = vsel %vm5276_vm7, %v6501_v9, %v6503_v48  ;;  %v16002_v7 = vrot.slane %v16001_v28, 3 }
 0x4ff   : > { %v6375_v57 = vsel %vm1929_vm5, %v15998_v13, %v6374_v50  ;;  %v6502_v25 = vsel %vm5276_vm7, %v16000_v59, %v6501_v9  ;;  %v6630_v38 = vrot.slane %v6569_v27, 3  ;;  %v6695_v14 = vmul.f32 %v16003_v54, %v15927_v23 }
 0x500   : > { %v6416_v17 = vadd.f32 %v6375_v57, %v6289_v12  ;;  %v6629_v52 = vsel %vm5404_vm8, %v16002_v7, %v6628_v42  ;;  %v6696_v10 = vmul.f32 %v16003_v54, %v15929_v33  ;;  %v6544_v18 = vadd.f32 %v6504_v30, %v6417_v8  ;;  %v16010_v57 = vld [vmem:[#allocation69_spill] sm:$0xff]  ;;  %v16016_v54 = vld [vmem:[#allocation24_spill] sm:$0xff] }
 0x501   : > { %v6902_v35 = vmul.f32 %v16004_v16, %v15929_v33  ;;  %v6903_v31 = vmul.f32 %v16004_v16, %v15975_v40  ;;  %v6631_v29 = vsel %vm5404_vm8, %v6628_v42, %v6630_v38  ;;  %v6755_v51 = vrot.slane %v6695_v14, 4 }
 0x502   : > { %v6543_v19 = vadd.f32 %v6502_v25, %v6416_v17  ;;  %v6757_v1 = vrot.slane %v6696_v10, 4  ;;  %v6927_v12 = vmul.f32 %v16005_v2, %v15975_v40  ;;  %v6671_v23 = vadd.f32 %v6631_v29, %v6544_v18  ;;  %v16012_v25 = vld [vmem:[#allocation35_spill] sm:$0xff]  ;;  %v16018_v29 = vld [vmem:[#allocation52_spill] sm:$0xff] }
 0x503   : > { %v6928_v21 = vmul.f32 %v16005_v2, %v15980_v45  ;;  %v7054_v56 = vmul.f32 %v16006_v43, %v15975_v40  ;;  %v16008_v33 = vrot.slane %v16007_v11, 4  ;;  %v7055_v22 = vmul.f32 %v16006_v43, %v15980_v45  ;;  %v14881_v2 = vld [vmem:[%s768_s0] ss:$0 sm:$0xff]  ;;  %v16024_v43 = vld [vmem:[#allocation45_spill] sm:$0xff]  ;;  %s8650_s0 = sadd.s32 %s10502_s21, %s10501_s23 }
 0x504   : > { %v6670_v61 = vadd.f32 %v6629_v52, %v6543_v19  ;;  %v6758_v26 = vsel %vm883_vm1, %v6755_v51, %v6757_v1  ;;  %v6987_v20 = vrot.slane %v6927_v12, 1  ;;  %v16009_v5 = vrot.slane %v14595_v58, 1  ;;  %v16015_v52 = vld [vmem:[#allocation36_spill] sm:$0xff]  ;;  %v16021_v1 = vld [vmem:[#allocation67_spill] sm:$0xff]  ;;  %v16022_v12 = vld [vmem:[#allocation70_spill] sm:$0xff]  ;;  %s9210_s20 = sshll.u32 %s8650_s0, 7 }
 0x505   : > { %v6756_v34 = vsel %vm883_vm1, %v16008_v33, %v6755_v51  ;;  %v6798_v62 = vadd.f32 %v6758_v26, %v6671_v23  ;;  %v6989_v55 = vrot.slane %v6928_v21, 1  ;;  %v7114_v53 = vrot.slane %v7054_v56, 2 }
 0x506   : > { %v6797_v39 = vadd.f32 %v6756_v34, %v6670_v61  ;;  %v6988_v46 = vsel %vm1929_vm5, %v16009_v5, %v6987_v20  ;;  %v7116_v60 = vrot.slane %v7055_v22, 2  ;;  %v7181_v50 = vmul.f32 %v15917_v0, %v15975_v40 }
 0x507   : > { %v7182_v41 = vmul.f32 %v15917_v0, %v15980_v45  ;;  %v6838_v48 = vadd.f32 %v6798_v62, %v6225_v3  ;;  %v6990_v27 = vsel %vm1929_vm5, %v6987_v20, %v6989_v55  ;;  %v7029_v42 = vadd.f32 %v6988_v46, %v6902_v35  ;;  %v16013_v3 = vld [vmem:[#allocation37_spill] sm:$0xff]  ;;  %v14897_v55 = vld [vmem:[%s771_s15] ss:$0 sm:$0xff]  ;;  %v16032_v46 = vld [vmem:[#allocation44_spill] sm:$0xff]  ;;  %s16044_s15 = sld [smem:[#allocation74_spill]] }
 0x508   : > { %v6837_v9 = vadd.f32 %v6797_v39, %v6224_v44  ;;  %v7030_v13 = vadd.f32 %v6990_v27, %v6903_v31  ;;  %v16011_v32 = vrot.slane %v16010_v57, 2  ;;  %v7117_v17 = vsel %vm5276_vm7, %v7114_v53, %v7116_v60  ;;  %v16035_v27 = vld [vmem:[#allocation16_spill] sm:$0xff] }
 0x509   : > { %v7241_v8 = vrot.slane %v7181_v50, 3  ;;  %v7243_v59 = vrot.slane %v7182_v41, 3  ;;  %v7308_v30 = vmul.f32 %v16012_v25, %v15975_v40  ;;  %v7309_v0 = vmul.f32 %v16012_v25, %v15980_v45  ;;  %v16038_v25 = vld [vmem:[#allocation22_spill] sm:$0xff] }
 0x50a   : > { %v7115_v58 = vsel %vm5276_vm7, %v16011_v32, %v7114_v53  ;;  %v7157_v44 = vadd.f32 %v7117_v17, %v7030_v13  ;;  %v16014_v28 = vrot.slane %v16013_v3, 3  ;;  %v7515_v38 = vmul.f32 %v16015_v52, %v15980_v45  ;;  %v16030_v53 = vld [vmem:[#allocation46_spill] sm:$0xff]  ;;  %v16039_v3 = vld [vmem:[#allocation53_spill] sm:$0xff] }
 0x50b   : > { %v7156_v47 = vadd.f32 %v7115_v58, %v7029_v42  ;;  %v16017_v14 = vrot.slane %v16016_v54, 1  ;;  %v7244_v10 = vsel %vm5404_vm8, %v7241_v8, %v7243_v59  ;;  %v7368_v18 = vrot.slane %v7308_v30, 4  ;;  %v16036_v13 = vld [vmem:[#allocation26_spill] sm:$0xff] }
 0x50c   : > { %v7242_v7 = vsel %vm5404_vm8, %v16014_v28, %v7241_v8  ;;  %v7370_v16 = vrot.slane %v7309_v0, 4  ;;  %v7284_v35 = vadd.f32 %v7244_v10, %v7157_v44  ;;  %v16019_v51 = vrot.slane %v16018_v29, 2  ;;  %v16042_v29 = vld [vmem:[#allocation65_spill] sm:$0xff] }
 0x50d   : > { %v7601_v40 = vsel %vm1929_vm5, %v7598_v4, %v16017_v14  ;;  %v7283_v19 = vadd.f32 %v7242_v7, %v7156_v47  ;;  %v7770_v4 = vadd.f32 %v16021_v1, %v16020_v37  ;;  %v16023_v61 = vrot.slane %v16022_v12, 4  ;;  %v16037_v47 = vld [vmem:[#allocation21_spill] sm:$0xff]  ;;  %v10748_v37 = vld [vmem:[%s12269_s27] ss:$0 sm:$0xff]  ;;  %s715_s27 = sand.u32 1, %s10821_s22   ;;  %s15018_s16 = scalar_lea.hbm %s16044_s15, %s9210_s20 }
 0x50e   : > { %v7642_v31 = vadd.f32 %v7601_v40, %v7515_v38  ;;  %v7728_v45 = vsel %vm5276_vm7, %v7725_v49, %v16019_v51  ;;  %v7371_v21 = vsel %vm883_vm1, %v7368_v18, %v7370_v16  ;;  %v16025_v56 = vrot.slane %v16024_v43, 3  ;;  %v10749_v43 = vld [vmem:[%s12285_s28] ss:$0 sm:$0xff]  ;;  %s10498_s26 = smul.u32 160, %s715_s27  ;;  %s15024_s28 = scalar_lea.sflag [#allocation5], %s715_s27 }
 0x50f   : > { %v7369_v23 = vsel %vm883_vm1, %v16023_v61, %v7368_v18  ;;  %v16026_v11 = vrot.slane %v14685_v63, 3  ;;  %v16028_v34 = vrot.slane %v16027_v6, 3  ;;  %v7411_v22 = vadd.f32 %v7371_v21, %v7284_v35  ;;  %v16041_v35 = vld [vmem:[#allocation56_spill] sm:$0xff] }
 0x510   : > { %v16029_v49 = vmov %v16025_v56  ;;  %v7410_v20 = vadd.f32 %v7369_v23, %v7283_v19  ;;  %v7769_v39 = vadd.f32 %v7728_v45, %v7642_v31  ;;  %v16031_v5 = vrot.slane %v16030_v53, 4  ;;  %s14972_s30 = scalar_lea.vmem [#allocation4], %s10498_s26 }
 0x511   : > { %v7855_v33 = vsel %vm5404_vm8, %v16026_v11, %v16025_v56  ;;  %v7857_v26 = vsel %vm5404_vm8, %v16029_v49, %v16028_v34  ;;  %v16033_v60 = vrot.slane %v16032_v46, 4  ;;  %v8376_v42 = vmul.f32 %v16035_v27, %v14881_v2  ;;  %s8653_s17 = sshll.u32 %s14972_s30, 4  ;;  %s15011_s17 = int_to_ptr.vmem [resolvable:$true] %s8653_s17 }
 0x512   : > { %v7897_v62 = vadd.f32 %v7857_v26, %v7770_v4  ;;  %v7982_v63 = vsel %vm883_vm1, %v7979_v15, %v16031_v5  ;;  %v16034_v50 = vmov %v16031_v5  ;;  %v8374_v57 = vmul.f32 %v14881_v2, %v16036_v13  ;;  %s10751_s18 = scalar_lea.vmem %s15011_s17, 2560 }
 0x513   : > { %v7984_v41 = vsel %vm883_vm1, %v16034_v50, %v16033_v60  ;;  %v7450_v32 = vadd.f32 %v7410_v20, %v6837_v9  ;;  %v7451_v58 = vadd.f32 %v7411_v22, %v6838_v48  ;;  %v7896_v17 = vadd.f32 %v7855_v33, %v7769_v39  ;;  %v16040_v9 = vld [vmem:[#allocation54_spill] sm:$0xff]  ;;  %p10752_p0 = scmp.ne.s32.totalorder %s15011_s17, %s10751_s18 }
 0x514   : > { %v8024_v8 = vadd.f32 %v7984_v41, %v7897_v62  ;;  %v8402_v24 = vadd.f32 %v14897_v55, %v8376_v42  ;;  %v8400_v15 = vadd.f32 %v14897_v55, %v8374_v57  ;;  %v8377_v59 = vmul.f32 %v16037_v47, %v14881_v2 }
 0x515   : > { %v8375_v30 = vmul.f32 %v14881_v2, %v16038_v25  ;;  %v8023_v0 = vadd.f32 %v7982_v63, %v7896_v17  ;;  %v8380_v28 = vmul.f32 %v16039_v3, %v14881_v2  ;;  %v8378_v48 = vmul.f32 %v14881_v2, %v16040_v9  ;;  %p10753_p1 = pnand %p10752_p0, %p10988_p3 }
 0x516   : > { %v8064_v44 = vadd.f32 %v8024_v8, %v7451_v58  ;;  %v8422_v7 = vmax.f32 %v8402_v24, 0.0  ;;  %v8420_v52 = vmax.f32 %v8400_v15, 0.0  ;;  %v8403_v38 = vadd.f32 %v14897_v55, %v8377_v59 }
 0x517   : > { %v8401_v54 = vadd.f32 %v14897_v55, %v8375_v30  ;;  %v8063_v14 = vadd.f32 %v8023_v0, %v7450_v32  ;;  %v8406_v10 = vadd.f32 %v14897_v55, %v8380_v28  ;;  %v8404_v19 = vadd.f32 %v14897_v55, %v8378_v48  ;;  %p10754_p2 = pneg %p10753_p1 }
 0x518   : > { %v8124_v40 = vsub.f32 %v8064_v44, %v11896_v36  ;;  %v8423_v18 = vmax.f32 %v8403_v38, 0.0  ;;  %v8381_v31 = vmul.f32 %v16041_v35, %v14881_v2  ;;  %v8379_v51 = vmul.f32 %v14881_v2, %v16042_v29 }
 0x519   : > { %v8421_v16 = vmax.f32 %v8401_v54, 0.0  ;;  %v8123_v45 = vsub.f32 %v8063_v14, %v11896_v36  ;;  %v8426_v11 = vmax.f32 %v8406_v10, 0.0  ;;  %v8424_v33 = vmax.f32 %v8404_v19, 0.0 }
 0x51a   : > { %v8150_v1 = vmul.f32 %v10748_v37, %v8124_v40  ;;  %v8441_v4 = vpack.c.bf16 %v8423_v18, %v8422_v7  ;;  %v8407_v61 = vadd.f32 %v14897_v55, %v8381_v31  ;;  %v8405_v23 = vadd.f32 %v14897_v55, %v8379_v51 }
 0x51b   : > { %v8440_v12 = vpack.c.bf16 %v8421_v16, %v8420_v52  ;;  %v8149_v21 = vmul.f32 %v10748_v37, %v8123_v45 }
 0x51c   : > { %v8176_v56 = vadd.f32 %v10749_v43, %v8150_v1  ;;  %v8427_v6 = vmax.f32 %v8407_v61, 0.0  ;;  %v8425_v34 = vmax.f32 %v8405_v23, 0.0  ;;  %v14968_v23 = vld [vmem:[%s779_s29] ss:$0 sm:$0xff]  ;;  %s10849_s29 = smov [#allocation4]  }
 0x51d   : > { %v8175_v49 = vadd.f32 %v10749_v43, %v8149_v21  ;;  %s10755_s26 = sshll.u32 %s10849_s29, 4  ;;  %s10756_s26 = int_to_ptr.vmem [resolvable:$false] %s10755_s26 }
 0x51e   : > { %v8196_v26 = vmax.f32 %v8176_v56, 0.0  ;;  %v8442_v20 = vpack.c.bf16 %v8425_v34, %v8424_v33  ;;  %v8443_v22 = vpack.c.bf16 %v8427_v6, %v8426_v11  ;;  %s10757_s23 = scalar_lea.vmem %s10756_s26, 5120  ;;  %p10758_p4 = scmp.lt.s32.totalorder %s15011_s17, %s10756_s26 }
 0x51f   : > { %v8195_v36 = vmax.f32 %v8175_v49, 0.0  ;;  %p10759_p5 = scmp.lt.s32.totalorder %s10757_s23, %s10751_s18 }
 0x521   : > { %v8206_v39 = vpack.c.bf16 %v8196_v26, %v8195_v36  ;;  %p10760_p6 = por %p10759_p5, %p10758_p4 }
 0x523   : > { %10009 = vmatmul.mubr.bf16.gmra.mrb[80].mxu0 %v8206_v39  ;;  %p10761_p7 = pnand %p10760_p6, %p10754_p2 }
 0x524   : > { %10028 = vmatprep.mubr.bf16.mxu0 %v8440_v12 }
 0x52b   : > { %10029 = vmatmul.mubr.bf16.vlgmr.msra.gmra.mrb[84].mxu0 %v8441_v4  ;;  %v10002_v62 = vpop.f32.mrb[72].mxu0 }
 0x52c   : > { %10032 = vmatprep.mubr.bf16.mxu0 %v8442_v20  ;;  %v8384_v53 = vmul.f32 %v10002_v62, %v14881_v2  ;;  %v8321_v5 = vpop.f32.mrb[73].mxu0 }
 0x52d   : > { %v8382_v63 = vmul.f32 %v14881_v2, %v8321_v5  ;;  %v10003_v46 = vpop.f32.mrb[74].mxu0 }
 0x52e   : > { %v8410_v60 = vadd.f32 %v14897_v55, %v8384_v53  ;;  %v8385_v50 = vmul.f32 %v10003_v46, %v14881_v2  ;;  %v8324_v41 = vpop.f32.mrb[75].mxu0 }
 0x52f   : > { %v8408_v27 = vadd.f32 %v14897_v55, %v8382_v63  ;;  %v8383_v42 = vmul.f32 %v14881_v2, %v8324_v41 }
 0x530   : > { %v8411_v13 = vadd.f32 %v14897_v55, %v8385_v50  ;;  %v8430_v32 = vmax.f32 %v8410_v60, 0.0 }
 0x531   : > { %v8409_v57 = vadd.f32 %v14897_v55, %v8383_v42  ;;  %v8428_v17 = vmax.f32 %v8408_v27, 0.0 }
 0x532   : > { %v8431_v58 = vmax.f32 %v8411_v13, 0.0 }
 0x533   : > { %10033 = vmatmul.mubr.bf16.gmra.mrb[88].mxu0 %v8443_v22  ;;  %v8429_v8 = vmax.f32 %v8409_v57, 0.0 }
 0x534   : > { %v8445_v24 = vpack.c.bf16 %v8431_v58, %v8430_v32 }
 0x535   : > { %v8444_v15 = vpack.c.bf16 %v8429_v8, %v8428_v17 }
 0x537   : > { %10036 = vmatprep.mubr.bf16.mxu0 %v8444_v15 }
 0x53b   : > { %10037 = vmatmul.mubr.bf16.gmra.mrb[92].mxu0 %v8445_v24 }
 0x594   : > { %v10006_v47 = vpop.f32.mrb[76].mxu0 }
 0x595   : > { %v8388_v59 = vmul.f32 %v10006_v47, %v14881_v2  ;;  %v8337_v25 = vpop.f32.mrb[77].mxu0 }
 0x596   : > { %v8386_v30 = vmul.f32 %v14881_v2, %v8337_v25  ;;  %v10007_v0 = vpop.f32.mrb[78].mxu0 }
 0x597   : > { %v8414_v44 = vadd.f32 %v14897_v55, %v8388_v59  ;;  %v8389_v3 = vmul.f32 %v10007_v0, %v14881_v2  ;;  %v8340_v28 = vpop.f32.mrb[79].mxu0 }
 0x598   : > { %v8412_v9 = vadd.f32 %v14897_v55, %v8386_v30  ;;  %v8387_v48 = vmul.f32 %v14881_v2, %v8340_v28 }
 0x599   : > { %v8415_v7 = vadd.f32 %v14897_v55, %v8389_v3  ;;  %v8434_v38 = vmax.f32 %v8414_v44, 0.0 }
 0x59a   : > { %v8413_v52 = vadd.f32 %v14897_v55, %v8387_v48  ;;  %v8432_v14 = vmax.f32 %v8412_v9, 0.0 }
 0x59b   : > { %v8435_v54 = vmax.f32 %v8415_v7, 0.0 }
 0x59c   : > { %v8433_v40 = vmax.f32 %v8413_v52, 0.0 }
 0x59d   : > { %v8447_v10 = vpack.c.bf16 %v8435_v54, %v8434_v38 }
 0x59e   : > { %v8446_v19 = vpack.c.bf16 %v8433_v40, %v8432_v14 }
 0x5a0   : > { %10040 = vmatprep.mubr.bf16.mxu0 %v8446_v19 }
 0x5a1   : > { %10041 = vmatmul.mubr.bf16.gmra.mrb[96].mxu0 %v8447_v10 }
 0x5f6   : > { %v10010_v18 = vpop.f32.mrb[80].mxu0 }
 0x5f7   : > { %v8392_v16 = vmul.f32 %v10010_v18, %v14881_v2  ;;  %v8353_v35 = vpop.f32.mrb[81].mxu0 }
 0x5f8   : > { %v8390_v31 = vmul.f32 %v14881_v2, %v8353_v35  ;;  %v10011_v29 = vpop.f32.mrb[82].mxu0 }
 0x5f9   : > { %v8418_v51 = vadd.f32 %v14897_v55, %v8392_v16  ;;  %v8393_v45 = vmul.f32 %v10011_v29, %v14881_v2  ;;  %v8356_v37 = vpop.f32.mrb[83].mxu0 }
 0x5fa   : > { %v8416_v1 = vadd.f32 %v14897_v55, %v8390_v31  ;;  %v8391_v4 = vmul.f32 %v14881_v2, %v8356_v37 }
 0x5fb   : > { %v8419_v12 = vadd.f32 %v14897_v55, %v8393_v45  ;;  %v8438_v21 = vmax.f32 %v8418_v51, 0.0 }
 0x5fc   : > { %v8417_v61 = vadd.f32 %v14897_v55, %v8391_v4  ;;  %v8436_v56 = vmax.f32 %v8416_v1, 0.0 }
 0x5fd   : > { %v8439_v43 = vmax.f32 %v8419_v12, 0.0 }
 0x5fe   : > { %v8437_v11 = vmax.f32 %v8417_v61, 0.0  ;;  %v10030_v33 = vpop.f32.mrb[84].mxu0 }
 0x5ff   : > { %v8449_v6 = vpack.c.bf16 %v8439_v43, %v8438_v21  ;;  %v8547_v34 = vadd.f32 %v10030_v33, %v14968_v23  ;;  %v8538_v49 = vpop.f32.mrb[85].mxu0 }
 0x600   : > { %v8448_v26 = vpack.c.bf16 %v8437_v11, %v8436_v56  ;;  %v8539_v2 = vadd.f32 %v14968_v23, %v8538_v49  ;;  %v10031_v20 = vpop.f32.mrb[86].mxu0 }
 0x601   : > { %8619 = vst [vmem:[%s14972_s30 + $0x10] sm:$0xff] %v8547_v34  ;;  %v8550_v55 = vadd.f32 %v10031_v20, %v14968_v23  ;;  %v8541_v22 = vpop.f32.mrb[87].mxu0 }
 0x602   : > { %10044 = vmatprep.mubr.bf16.mxu0 %v8448_v26  ;;  %8617 = vst [vmem:[%s14972_s30] sm:$0xff] %v8539_v2  ;;  %v8542_v36 = vadd.f32 %v14968_v23, %v8541_v22 }
 0x603   : > { %10045 = vmatmul.mubr.bf16.gmra.mrb[100].mxu0 %v8449_v6  ;;  %8620 = vst [vmem:[%s14972_s30 + $0x18] sm:$0xff] %v8550_v55 }
 0x604   : > { %8618 = vst [vmem:[%s14972_s30 + $0x8] sm:$0xff] %v8542_v36 }
 0x606   : > { %v10034_v39 = vpop.f32.mrb[88].mxu0 }
 0x607   : > { %v8563_v62 = vadd.f32 %v10034_v39, %v14968_v23  ;;  %v8554_v53 = vpop.f32.mrb[89].mxu0 }
 0x608   : > { %v8555_v5 = vadd.f32 %v14968_v23, %v8554_v53  ;;  %v10035_v63 = vpop.f32.mrb[90].mxu0 }
 0x609   : > { %8623 = vst [vmem:[%s14972_s30 + $0x30] sm:$0xff] %v8563_v62  ;;  %v8566_v46 = vadd.f32 %v10035_v63, %v14968_v23  ;;  %v8557_v60 = vpop.f32.mrb[91].mxu0 }
 0x60a   : > { %8621 = vst [vmem:[%s14972_s30 + $0x20] sm:$0xff] %v8555_v5  ;;  %v8558_v50 = vadd.f32 %v14968_v23, %v8557_v60 }
 0x60b   : > { %8624 = vst [vmem:[%s14972_s30 + $0x38] sm:$0xff] %v8566_v46 }
 0x60c   : > { %8622 = vst [vmem:[%s14972_s30 + $0x28] sm:$0xff] %v8558_v50 }
 0x60e   : > { %v10038_v41 = vpop.f32.mrb[92].mxu0 }
 0x60f   : > { %v8579_v27 = vadd.f32 %v10038_v41, %v14968_v23  ;;  %v8570_v42 = vpop.f32.mrb[93].mxu0 }
 0x610   : > { %v8571_v13 = vadd.f32 %v14968_v23, %v8570_v42  ;;  %v10039_v57 = vpop.f32.mrb[94].mxu0 }
 0x611   : > { %8627 = vst [vmem:[%s14972_s30 + $0x50] sm:$0xff] %v8579_v27  ;;  %v8582_v32 = vadd.f32 %v10039_v57, %v14968_v23  ;;  %v8573_v58 = vpop.f32.mrb[95].mxu0 }
 0x612   : > { %8625 = vst [vmem:[%s14972_s30 + $0x40] sm:$0xff] %v8571_v13  ;;  %v8574_v17 = vadd.f32 %v14968_v23, %v8573_v58 }
 0x613   : > { %8628 = vst [vmem:[%s14972_s30 + $0x58] sm:$0xff] %v8582_v32 }
 0x614   : > { %8626 = vst [vmem:[%s14972_s30 + $0x48] sm:$0xff] %v8574_v17 }
 0x674   : > { %v10042_v8 = vpop.f32.mrb[96].mxu0 }
 0x675   : > { %v8595_v24 = vadd.f32 %v10042_v8, %v14968_v23  ;;  %v8586_v15 = vpop.f32.mrb[97].mxu0 }
 0x676   : > { %v8587_v47 = vadd.f32 %v14968_v23, %v8586_v15  ;;  %v10043_v59 = vpop.f32.mrb[98].mxu0 }
 0x677   : > { %8631 = vst [vmem:[%s14972_s30 + $0x70] sm:$0xff] %v8595_v24  ;;  %v8598_v25 = vadd.f32 %v10043_v59, %v14968_v23  ;;  %v8589_v30 = vpop.f32.mrb[99].mxu0 }
 0x678   : > { %8629 = vst [vmem:[%s14972_s30 + $0x60] sm:$0xff] %v8587_v47  ;;  %v8590_v0 = vadd.f32 %v14968_v23, %v8589_v30 }
 0x679   : > { %8632 = vst [vmem:[%s14972_s30 + $0x78] sm:$0xff] %v8598_v25 }
 0x67a   : > { %8630 = vst [vmem:[%s14972_s30 + $0x68] sm:$0xff] %v8590_v0 }
 0x6d6   : > { %v10046_v44 = vpop.f32.mrb[100].mxu0 }
 0x6d7   : > { %v8611_v3 = vadd.f32 %v10046_v44, %v14968_v23  ;;  %v8602_v28 = vpop.f32.mrb[101].mxu0 }
 0x6d8   : > { %v8603_v9 = vadd.f32 %v14968_v23, %v8602_v28  ;;  %v10047_v48 = vpop.f32.mrb[102].mxu0 }
 0x6d9   : > { %8635 = vst [vmem:[%s14972_s30 + $0x90] sm:$0xff] %v8611_v3  ;;  %v8614_v7 = vadd.f32 %v10047_v48, %v14968_v23  ;;  %v8605_v52 = vpop.f32.mrb[103].mxu0 }
 0x6da   : > { %8633 = vst [vmem:[%s14972_s30 + $0x80] sm:$0xff] %v8603_v9  ;;  %v8606_v38 = vadd.f32 %v14968_v23, %v8605_v52 }
 0x6db   : > { %8636 = vst [vmem:[%s14972_s30 + $0x98] sm:$0xff] %v8614_v7 }
 0x6dc   : > { %8634 = vst [vmem:[%s14972_s30 + $0x88] sm:$0xff] %v8606_v38 }
 0x6dd   : > { %10764 = shalt.err (!%p10761_p7)
}
 0x6de   : > { %s10765_s27 = scalar_lea.hbm %s15018_s16, 2560  ;;  %s10769_s0 = scalar_lea.hbm %s16044_s15, 10240 }
 0x6df   : > { %p10766_p9 = scmp.ne.s32.totalorder %s15018_s16, %s10765_s27  ;;  %p10770_p12 = scmp.lt.u32.totalorder %s15018_s16, %s16044_s15 }
 0x6e0   : > { %p10771_p13 = scmp.lt.u32.totalorder %s10769_s0, %s10765_s27  ;;  %p10773_p1 = scmp.lt.u32.totalorder %s10765_s27, %s15018_s16 }
 0x6e1   : > { %p10767_p10 = pnand %p10766_p9, %p10988_p3 }
 0x6e2   : > { %p10772_p0 = por %p10771_p13, %p10770_p12 }
 0x6e3   : > { %p10768_p11 = pneg %p10767_p10 }
 0x6e4   : > { %p10774_p2 = por %p10773_p1, %p10772_p0 }
 0x6e6   : > { %p10775_p4 = pnand %p10774_p2, %p10768_p11 }
 0x6e8   : > { %10778 = shalt.err (!%p10775_p4)
}
 0x6e9   : > { %s10850_s25 = smov 128   ;;  %s10851_s18 = smov 8  }
 0x6ea   : > { %10503 = dma.vmem_to_hbm [thread:$0]  (%p10988_p3), %s15011_s17, 2560, %s15018_s16, %s15024_s28, %s10850_s25, %s10850_s25, %s10851_s18  }
 0x6eb PF: > { %s16045_s29 = sld [smem:[#allocation11_spill]]  ;;  %s16046_s26 = sld [smem:[#allocation7_spill]] }
 0x6f1   : > { %p10509_p5 = scmp.ge.s32.totalorder %s16045_s29, 2  ;;  %s8668_s30 = sand.u32 1, %s16046_s26  }
 0x6f2   : > { %s8669_s27 = scalar_lea.sflag [#allocation5], %s8668_s30 }
 0x6f3   : > { %p10506_p6 = pnand %p10509_p5, %p10997_p8 }
 0x6f5   : > { %10812 = dma.done.wait (!%p10506_p6), %s8669_s27, 2560  }
 0x6f6   : > { %10814 = vsyncadd (!%p10506_p6), %s8669_s27, 4294964736  ;;  %s29_s28 = sadd.s32 1, %s16045_s29   ;;  %s16048_s0 = sld [smem:[#allocation8_spill]] }
 0x6f7   : > { %p26_p7 = scmp.ge.s32.totalorder %s29_s28, 6   ;;  %s16049_s23 = sld [smem:[#allocation15_spill]] }
 0x6f8   : > { %s16050_s24 = sld [smem:[#allocation9_spill]]  ;;  %s16051_s25 = sld [smem:[#allocation10_spill]] }
 0x6f9   : > { %s16052_s26 = sld [smem:[#allocation12_spill]]  ;;  %s16053_s27 = sld [smem:[#allocation13_spill]] }
 0x6fa   : > { %s16054_s21 = smov %s10821_s22  ;;  %28 = sbr.rel (!%p26_p7) target bundleno = 9 (0x9), region = 172 }
 0x6fc   : > { %s16055_s22 = smov %s16048_s0 }
 0x701   :  { %8674 = vsyncpa [#allocation5], 1 }
 0x702   :  { %8676 = vsyncpa [#allocation5 + $0x1], 1 }

</bundles_post_ra>
